<compile_context>
chip_gen: v7x
topology: tpu7x:2x2x1
jax: 0.10.0
libtpu: 0.0.40
codegen_flags: <defaults>
</compile_context>

<pallas_src>
import functools

import jax
import jax.numpy as jnp
import numpy as np
from jax import lax
from jax.experimental import pallas as pl
from jax.experimental.pallas import tpu as pltpu

KSZ = 3
ENC_STRIDES = (2, 2, 2, 1, 1)

_OPS_ORDER = ("w1", "w2", "w3", "w4", "w5",
              "t2", "t3", "t45",
              "wls", "blin", "wds", "bds", "td1c",
              "wd1", "wd2", "wd3", "td2", "td3")


def _rup8(n):
    return ((n + 7) // 8) * 8


# ----------------------------------------------------------------------------
# Host-side geometry: per-sample 0/1 transition matrices.  Each T maps the
# previous layer's output rows (row-major spatial, zero-padded to a multiple
# of 8) to the next conv's im2col rows, grouped per tap so that the in-kernel
# tap slices are sublane-aligned views:
#       IM[t*opad + o, :] = padded_input[anchor(o) + offset(t), :]
# ----------------------------------------------------------------------------
def _enc_transition(h_in, w_in, stride):
    hp, wp = h_in + 2, w_in + 2
    h_out, w_out = (hp - KSZ) // stride + 1, (wp - KSZ) // stride + 1
    opad_prev, opad = _rup8(h_in * w_in), _rup8(h_out * w_out)
    t = np.zeros((9 * opad, opad_prev), np.float32)
    for ky in range(KSZ):
        for kx in range(KSZ):
            tap = ky * KSZ + kx
            for io in range(h_out):
                for jo in range(w_out):
                    ri, qi = io * stride + ky - 1, jo * stride + kx - 1
                    if 0 <= ri < h_in and 0 <= qi < w_in:
                        t[tap * opad + io * w_out + jo, ri * w_in + qi] = 1.0
    return t, h_out, w_out, opad


def _dec_transition(h_in, w_in):
    # ConvTranspose2d(k=3, s=2, p=1, op=1) == stride-1 conv with the flipped
    # kernel over the input dilated by 2 and padded (lo=1, hi=2).
    h_out, w_out = 2 * h_in, 2 * w_in
    opad_prev, opad = _rup8(h_in * w_in), _rup8(h_out * w_out)
    t = np.zeros((9 * opad, opad_prev), np.float32)
    for ky in range(KSZ):
        for kx in range(KSZ):
            tap = ky * KSZ + kx
            for io in range(h_out):
                for jo in range(w_out):
                    r, q = io + ky - 1, jo + kx - 1
                    if r >= 0 and q >= 0 and r % 2 == 0 and q % 2 == 0:
                        ri, qi = r // 2, q // 2
                        if ri < h_in and qi < w_in:
                            t[tap * opad + io * w_out + jo, ri * w_in + qi] = 1.0
    return t, h_out, w_out, opad


def build_plan(x_dim, z_dim, hid):
    C, H, W = x_dim
    assert H % 8 == 0 and W % 8 == 0
    hs, ws = [H], [W]
    h, w = H, W
    for s in ENC_STRIDES:
        h, w = (h + 2 - KSZ) // s + 1, (w + 2 - KSZ) // s + 1
        hs.append(h)
        ws.append(w)

    enc_opad = [_rup8(hs[1] * ws[1])]
    assert enc_opad[0] == hs[1] * ws[1]   # wrapper builds IM1 without row padding
    geom = {}
    tnames = ("t2", "t3", "t45", "t45")   # layers 4 and 5 share identical geometry
    for i in range(2, 6):
        t, ho, wo, opad = _enc_transition(hs[i - 1], ws[i - 1], ENC_STRIDES[i - 1])
        assert (ho, wo) == (hs[i], ws[i])
        geom[tnames[i - 2]] = t
        enc_opad.append(opad)

    hf, wf = hs[5], ws[5]
    hwf = hf * wf

    dec_opad = []
    h, w = hf, wf
    for name in ("td1", "td2", "td3"):
        t, ho, wo, opad = _dec_transition(h, w)
        geom[name] = t
        dec_opad.append(opad)
        h, w = ho, wo
    assert (h, w) == (H, W)

    return dict(x_dim=x_dim, z_dim=z_dim, hid=hid,
                enc_opad=tuple(enc_opad), dec_opad=tuple(dec_opad),
                hwf=hwf, h1=hs[1], w1=ws[1], geom=geom)


# ----------------------------------------------------------------------------
# Parameters (torch layout, same shapes as CNNAE.__init__) + one-time packing
# ----------------------------------------------------------------------------
def init_params(key, x_dim, z_dim, hid=8):
    C, dimx, dimy = x_dim
    feat = hid * 4 * (dimx // 8) * (dimy // 8)
    keys = jax.random.split(key, 12)

    def w(k, shape):
        fan_in = float(np.prod(shape[1:]))
        return jax.random.normal(k, shape, jnp.float32) / np.sqrt(fan_in)

    return dict(
        enc_w1=w(keys[0], (hid, C, 3, 3)),
        enc_w2=w(keys[1], (hid * 2, hid, 3, 3)),
        enc_w3=w(keys[2], (hid * 4, hid * 2, 3, 3)),
        enc_w4=w(keys[3], (hid * 4, hid * 4, 3, 3)),
        enc_w5=w(keys[4], (hid * 4, hid * 4, 3, 3)),
        enc_lin_w=w(keys[5], (z_dim, feat)),                      # torch Linear: (out, in)
        enc_lin_b=jax.random.normal(keys[6], (z_dim,), jnp.float32) * 0.01,
        dec_lin_w=w(keys[7], (feat, z_dim)),
        dec_lin_b=jax.random.normal(keys[8], (feat,), jnp.float32) * 0.01,
        dec_wt1=w(keys[9], (hid * 4, hid * 2, 3, 3)),             # ConvT: (in, out, kH, kW)
        dec_wt2=w(keys[10], (hid * 2, hid, 3, 3)),
        dec_wt3=w(keys[11], (hid, C, 3, 3)),
    )


def pack_inputs(params, plan):
    C, H, W = plan["x_dim"]
    z_dim, hid, hwf = plan["z_dim"], plan["hid"], plan["hwf"]
    Cf = hid * 4
    bf = jnp.bfloat16
    g = plan["geom"]

    def pack_conv(w):        # Conv2d (Cout, Cin, 3, 3) -> (9, Cin, Cout)
        co, ci = w.shape[0], w.shape[1]
        return jnp.transpose(w, (2, 3, 1, 0)).reshape(9, ci, co).astype(bf)

    def pack_convT(w):       # ConvTranspose2d (Cin, Cout, 3, 3) -> (9, Cin, Cout), flipped
        ci, co = w.shape[0], w.shape[1]
        return jnp.transpose(jnp.flip(w, (2, 3)), (2, 3, 0, 1)).reshape(9, ci, co).astype(bf)

    return dict(
        w1=pack_conv(params["enc_w1"]), w2=pack_conv(params["enc_w2"]),
        w3=pack_conv(params["enc_w3"]), w4=pack_conv(params["enc_w4"]),
        w5=pack_conv(params["enc_w5"]),
        t2=jnp.asarray(g["t2"], bf), t3=jnp.asarray(g["t3"], bf),
        t45=jnp.asarray(g["t45"], bf),
        # encoder Flatten(NCHW)+Linear, split per spatial pos: wls[s][c, k] = W[k, c*hwf+s]
        wls=jnp.transpose(params["enc_lin_w"].reshape(z_dim, Cf, hwf), (2, 1, 0)).astype(bf),
        blin=params["enc_lin_b"].reshape(1, z_dim),
        # decoder Linear+Unflatten, per spatial pos: wds[s][k, c] = W[c*hwf+s, k]
        wds=jnp.transpose(params["dec_lin_w"].reshape(Cf, hwf, z_dim), (1, 2, 0)).astype(bf),
        bds=params["dec_lin_b"].reshape(Cf, hwf).T.reshape(hwf, 1, Cf),
        # column s of ConvT1's transition: scatters spatial pos s into its im2col
        # rows; applied in-kernel as a VPU broadcast-multiply (kept f32, exact).
        td1c=jnp.asarray(g["td1"][:, :hwf].T[:, :, None]),
        wd1=pack_convT(params["dec_wt1"]), wd2=pack_convT(params["dec_wt2"]),
        wd3=pack_convT(params["dec_wt3"]),
        td2=jnp.asarray(g["td2"], bf), td3=jnp.asarray(g["td3"], bf),
    )


# ----------------------------------------------------------------------------
# The fused Pallas kernel (one grid step == one sample)
# ----------------------------------------------------------------------------
def _make_kernel(plan):
    f32, bf = jnp.float32, jnp.bfloat16
    eo, do, hwf = plan["enc_opad"], plan["dec_opad"], plan["hwf"]

    def conv9(im, w_ref, opad, relu):
        # im: (9*opad, Cin) with taps in sublane-aligned blocks; 9 MXU matmuls,
        # bf16 operands, f32 accumulation.
        acc = None
        for t in range(9):
            part = jnp.dot(im[t * opad:(t + 1) * opad, :].astype(bf), w_ref[t],
                           preferred_element_type=f32)
            acc = part if acc is None else acc + part
        return jnp.maximum(acc, 0.0) if relu else acc

    def trans(t_ref, b):
        # next layer's im2col = T @ B  (stride select + zero pad + 9-tap expand)
        return jnp.dot(t_ref[...], b.astype(bf), preferred_element_type=f32)

    def kernel(im1_ref, w1, w2, w3, w4, w5, t2, t3, t45,
               wls, blin, wds, bds, td1c,
               wd1, wd2, wd3, td2, td3,
               z_ref, out_ref):
        # ------------------------------ encoder ------------------------------
        b = conv9(im1_ref[0], w1, eo[0], True)
        b = conv9(trans(t2, b), w2, eo[1], True)
        b = conv9(trans(t3, b), w3, eo[2], True)
        b = conv9(trans(t45, b), w4, eo[3], True)
        b = conv9(trans(t45, b), w5, eo[4], True)

        # Flatten(NCHW) + Linear  (hwf == 4 spatial positions per sample)
        z = blin[...]
        for s in range(hwf):
            z = z + jnp.dot(b[s:s + 1, :].astype(bf), wls[s],
                            preferred_element_type=f32)
        z_ref[0] = z

        # ------------------------------ decoder ------------------------------
        # Linear + Unflatten + ReLU, scattered straight into ConvT1's im2col
        # via a 0/1 column broadcast-multiply (VPU, no scatter matmuls).
        zb = z.astype(bf)
        im = None
        for s in range(hwf):
            hd = jnp.maximum(
                jnp.dot(zb, wds[s], preferred_element_type=f32) + bds[s], 0.0)
            part = td1c[s] * hd
            im = part if im is None else im + part

        d = conv9(im, wd1, do[0], True)
        d = conv9(trans(td2, d), wd2, do[1], True)
        d = conv9(trans(td3, d), wd3, do[2], False)
        out_ref[0] = d

    return kernel


# ----------------------------------------------------------------------------
# Forward pass (mirrors CNNAE.forward): returns (x_hat, z)
# ----------------------------------------------------------------------------
def cnnae_forward(ops, x_nchw, *, plan):
    C, H, W = plan["x_dim"]
    z_dim = plan["z_dim"]
    N = x_nchw.shape[0]
    h1, w1 = plan["h1"], plan["w1"]
    do2 = plan["dec_opad"][2]

    # Input prep (one tiny XLA fusion): NCHW -> NHWC, pad by 1, and build the
    # first conv's im2col with taps grouped for aligned in-kernel slices.
    xt = jnp.transpose(x_nchw, (0, 2, 3, 1))
    xp = jnp.pad(xt, ((0, 0), (1, 1), (1, 1), (0, 0)))
    taps = []
    for ky in range(KSZ):
        for kx in range(KSZ):
            taps.append(xp[:, ky:ky + 2 * h1:2, kx:kx + 2 * w1:2, :]
                        .reshape(N, h1 * w1, C))
    im1 = jnp.concatenate(taps, axis=1).astype(jnp.bfloat16)   # (N, 9*h1*w1, C)

    kernel = _make_kernel(plan)
    ops_list = [ops[k] for k in _OPS_ORDER]

    def const_spec(a):
        nd = a.ndim
        return pl.BlockSpec(a.shape, lambda n, _z=(0,) * nd: _z)

    in_specs = ([pl.BlockSpec((1, 9 * h1 * w1, C), lambda n: (n, 0, 0))]
                + [const_spec(a) for a in ops_list])
    out_specs = (pl.BlockSpec((1, 1, z_dim), lambda n: (n, 0, 0)),
                 pl.BlockSpec((1, do2, C), lambda n: (n, 0, 0)))

    z, out = pl.pallas_call(
        kernel,
        grid=(N,),
        out_shape=(jax.ShapeDtypeStruct((N, 1, z_dim), jnp.float32),
                   jax.ShapeDtypeStruct((N, do2, C), jnp.float32)),
        in_specs=in_specs,
        out_specs=out_specs,
        compiler_params=pltpu.CompilerParams(
            dimension_semantics=("parallel",),
            vmem_limit_bytes=32 * 1024 * 1024),
    )(im1, *ops_list)

    x_hat = jnp.transpose(out[:, :H * W, :].reshape(N, H, W, C), (0, 3, 1, 2))
    return x_hat, z.reshape(N, z_dim)


# ----------------------------------------------------------------------------
# Pure-JAX (XLA conv) reference for correctness checking
# ----------------------------------------------------------------------------
def _ref_conv(x, w_oihw, stride, padding):
    return lax.conv_general_dilated(
        x, jnp.transpose(w_oihw, (2, 3, 1, 0)),
        window_strides=(stride, stride), padding=[(padding, padding)] * 2,
        dimension_numbers=("NHWC", "HWIO", "NHWC"))


def _ref_convT(x, w_iohw, stride, padding, op):
    kH = w_iohw.shape[2]
    w_eq = jnp.transpose(jnp.flip(w_iohw, axis=(2, 3)), (1, 0, 2, 3))
    return lax.conv_general_dilated(
        x, jnp.transpose(w_eq, (2, 3, 1, 0)),
        window_strides=(1, 1),
        padding=[(kH - 1 - padding, kH - 1 - padding + op)] * 2,
        lhs_dilation=(stride, stride),
        dimension_numbers=("NHWC", "HWIO", "NHWC"))


def ref_forward(params, x_nchw, *, x_dim, hid):
    C, dimx, dimy = x_dim
    N = x_nchw.shape[0]
    dx8, dy8 = dimx // 8, dimy // 8
    relu = lambda t: jnp.maximum(t, 0.0)

    x = jnp.transpose(x_nchw, (0, 2, 3, 1))
    h = relu(_ref_conv(x, params["enc_w1"], 2, 1))
    h = relu(_ref_conv(h, params["enc_w2"], 2, 1))
    h = relu(_ref_conv(h, params["enc_w3"], 2, 1))
    h = relu(_ref_conv(h, params["enc_w4"], 1, 1))
    h = relu(_ref_conv(h, params["enc_w5"], 1, 1))
    h_flat = jnp.transpose(h, (0, 3, 1, 2)).reshape(N, -1)
    z = h_flat @ params["enc_lin_w"].T + params["enc_lin_b"][None, :]
    d = relu(z @ params["dec_lin_w"].T + params["dec_lin_b"][None, :])
    d = jnp.transpose(d.reshape(N, hid * 4, dx8, dy8), (0, 2, 3, 1))
    d = relu(_ref_convT(d, params["dec_wt1"], 2, 1, 1))
    d = relu(_ref_convT(d, params["dec_wt2"], 2, 1, 1))
    d = _ref_convT(d, params["dec_wt3"], 2, 1, 1)
    return jnp.transpose(d, (0, 3, 1, 2)), z


if __name__ == "__main__":
    x_dim = (4, 16, 16)   # (init_channel, dimx, dimy)
    z_dim = 32
    hid = 8
    batch = 2

    key = jax.random.PRNGKey(0)
    kx, kp = jax.random.split(key)
    x = jax.random.normal(kx, (batch,) + x_dim, jnp.float32)
    params = init_params(kp, x_dim, z_dim, hid)

    plan = build_plan(x_dim, z_dim, hid)
    ops = pack_inputs(params, plan)

    fwd = jax.jit(functools.partial(cnnae_forward, plan=plan))
    x_hat, z = fwd(ops, x)
    jax.block_until_ready((x_hat, z))

    assert x_hat.shape == (batch,) + x_dim and z.shape == (batch, z_dim)

    x_hat_ref, z_ref = ref_forward(params, x, x_dim=x_dim, hid=hid)
    # bf16 matmuls (f32 accumulation) -> relax tolerance vs. the f32 reference.
    np.testing.assert_allclose(np.asarray(z), np.asarray(z_ref), rtol=3e-2, atol=3e-2)
    np.testing.assert_allclose(np.asarray(x_hat), np.asarray(x_hat_ref), rtol=3e-2, atol=3e-2)

    print("KERNEL_OK")
</pallas_src>

<mosaic_0001>
module attributes {stable_mosaic.version = 11 : i64} {
  func.func @kernel(%arg0: i32, %arg1: memref<1x576x4xbf16, #tpu.memory_space<vmem>>, %arg2: memref<9x4x8xbf16, #tpu.memory_space<vmem>>, %arg3: memref<9x8x16xbf16, #tpu.memory_space<vmem>>, %arg4: memref<9x16x32xbf16, #tpu.memory_space<vmem>>, %arg5: memref<9x32x32xbf16, #tpu.memory_space<vmem>>, %arg6: memref<9x32x32xbf16, #tpu.memory_space<vmem>>, %arg7: memref<144x64xbf16, #tpu.memory_space<vmem>>, %arg8: memref<72x16xbf16, #tpu.memory_space<vmem>>, %arg9: memref<72x8xbf16, #tpu.memory_space<vmem>>, %arg10: memref<4x32x32xbf16, #tpu.memory_space<vmem>>, %arg11: memref<1x32xf32, #tpu.memory_space<vmem>>, %arg12: memref<4x32x32xbf16, #tpu.memory_space<vmem>>, %arg13: memref<4x1x32xf32, #tpu.memory_space<vmem>>, %arg14: memref<4x144x1xf32, #tpu.memory_space<vmem>>, %arg15: memref<9x32x16xbf16, #tpu.memory_space<vmem>>, %arg16: memref<9x16x8xbf16, #tpu.memory_space<vmem>>, %arg17: memref<9x8x4xbf16, #tpu.memory_space<vmem>>, %arg18: memref<576x16xbf16, #tpu.memory_space<vmem>>, %arg19: memref<2304x64xbf16, #tpu.memory_space<vmem>>, %arg20: memref<1x1x32xf32, #tpu.memory_space<vmem>>, %arg21: memref<1x256x4xf32, #tpu.memory_space<vmem>>) attributes {dimension_semantics = [#tpu.dimension_semantics<parallel>], iteration_bounds = array<i64: 2>, scalar_prefetch = 0 : i64, scratch_operands = 0 : i64, tpu.core_type = #tpu.core_type<tc>, window_params = [{transform_indices = @transform_0, window_bounds = array<i64: 1, 576, 4>}, {pipeline_mode = #tpu.pipeline_mode<synchronous>, transform_indices = @transform_1, window_bounds = array<i64: 9, 4, 8>}, {pipeline_mode = #tpu.pipeline_mode<synchronous>, transform_indices = @transform_2, window_bounds = array<i64: 9, 8, 16>}, {pipeline_mode = #tpu.pipeline_mode<synchronous>, transform_indices = @transform_3, window_bounds = array<i64: 9, 16, 32>}, {pipeline_mode = #tpu.pipeline_mode<synchronous>, transform_indices = @transform_4, window_bounds = array<i64: 9, 32, 32>}, {pipeline_mode = #tpu.pipeline_mode<synchronous>, transform_indices = @transform_5, window_bounds = array<i64: 9, 32, 32>}, {pipeline_mode = #tpu.pipeline_mode<synchronous>, transform_indices = @transform_6, window_bounds = array<i64: 144, 64>}, {pipeline_mode = #tpu.pipeline_mode<synchronous>, transform_indices = @transform_7, window_bounds = array<i64: 72, 16>}, {pipeline_mode = #tpu.pipeline_mode<synchronous>, transform_indices = @transform_8, window_bounds = array<i64: 72, 8>}, {pipeline_mode = #tpu.pipeline_mode<synchronous>, transform_indices = @transform_9, window_bounds = array<i64: 4, 32, 32>}, {pipeline_mode = #tpu.pipeline_mode<synchronous>, transform_indices = @transform_10, window_bounds = array<i64: 1, 32>}, {pipeline_mode = #tpu.pipeline_mode<synchronous>, transform_indices = @transform_11, window_bounds = array<i64: 4, 32, 32>}, {pipeline_mode = #tpu.pipeline_mode<synchronous>, transform_indices = @transform_12, window_bounds = array<i64: 4, 1, 32>}, {pipeline_mode = #tpu.pipeline_mode<synchronous>, transform_indices = @transform_13, window_bounds = array<i64: 4, 144, 1>}, {pipeline_mode = #tpu.pipeline_mode<synchronous>, transform_indices = @transform_14, window_bounds = array<i64: 9, 32, 16>}, {pipeline_mode = #tpu.pipeline_mode<synchronous>, transform_indices = @transform_15, window_bounds = array<i64: 9, 16, 8>}, {pipeline_mode = #tpu.pipeline_mode<synchronous>, transform_indices = @transform_16, window_bounds = array<i64: 9, 8, 4>}, {pipeline_mode = #tpu.pipeline_mode<synchronous>, transform_indices = @transform_17, window_bounds = array<i64: 576, 16>}, {pipeline_mode = #tpu.pipeline_mode<synchronous>, transform_indices = @transform_18, window_bounds = array<i64: 2304, 64>}, {transform_indices = @transform_19, window_bounds = array<i64: 1, 1, 32>}, {transform_indices = @transform_20, window_bounds = array<i64: 1, 256, 4>}]} {
    %c0 = arith.constant 0 : index
    %c0_0 = arith.constant 0 : index
    %c0_1 = arith.constant 0 : index
    %0 = vector.load %arg1[%c0, %c0_0, %c0_1] : memref<1x576x4xbf16, #tpu.memory_space<vmem>>, vector<1x576x4xbf16>
    %1 = vector.shape_cast %0 : vector<1x576x4xbf16> to vector<576x4xbf16>
    %2 = vector.extract_strided_slice %1 {offsets = [0, 0], sizes = [64, 4], strides = [1, 1]} : vector<576x4xbf16> to vector<64x4xbf16>
    %c0_2 = arith.constant 0 : index
    %c0_3 = arith.constant 0 : index
    %c0_4 = arith.constant 0 : index
    %3 = vector.load %arg2[%c0_2, %c0_3, %c0_4] : memref<9x4x8xbf16, #tpu.memory_space<vmem>>, vector<1x4x8xbf16>
    %4 = vector.shape_cast %3 : vector<1x4x8xbf16> to vector<4x8xbf16>
    %cst = arith.constant dense<0.000000e+00> : vector<64x8xf32>
    %5 = tpu.matmul %2, %4, %cst {dimension_numbers = #tpu.dot_dimension_numbers<[1], [0], [0], [1], [0, 0, 1, 1], [], []>} : vector<64x4xbf16>, vector<4x8xbf16>, vector<64x8xf32> -> vector<64x8xf32>
    %6 = vector.extract_strided_slice %1 {offsets = [64, 0], sizes = [64, 4], strides = [1, 1]} : vector<576x4xbf16> to vector<64x4xbf16>
    %c1 = arith.constant 1 : index
    %c0_5 = arith.constant 0 : index
    %c0_6 = arith.constant 0 : index
    %7 = vector.load %arg2[%c1, %c0_5, %c0_6] : memref<9x4x8xbf16, #tpu.memory_space<vmem>>, vector<1x4x8xbf16>
    %8 = vector.shape_cast %7 : vector<1x4x8xbf16> to vector<4x8xbf16>
    %cst_7 = arith.constant dense<0.000000e+00> : vector<64x8xf32>
    %9 = tpu.matmul %6, %8, %cst_7 {dimension_numbers = #tpu.dot_dimension_numbers<[1], [0], [0], [1], [0, 0, 1, 1], [], []>} : vector<64x4xbf16>, vector<4x8xbf16>, vector<64x8xf32> -> vector<64x8xf32>
    %10 = arith.addf %5, %9 : vector<64x8xf32>
    %11 = vector.extract_strided_slice %1 {offsets = [128, 0], sizes = [64, 4], strides = [1, 1]} : vector<576x4xbf16> to vector<64x4xbf16>
    %c2 = arith.constant 2 : index
    %c0_8 = arith.constant 0 : index
    %c0_9 = arith.constant 0 : index
    %12 = vector.load %arg2[%c2, %c0_8, %c0_9] : memref<9x4x8xbf16, #tpu.memory_space<vmem>>, vector<1x4x8xbf16>
    %13 = vector.shape_cast %12 : vector<1x4x8xbf16> to vector<4x8xbf16>
    %cst_10 = arith.constant dense<0.000000e+00> : vector<64x8xf32>
    %14 = tpu.matmul %11, %13, %cst_10 {dimension_numbers = #tpu.dot_dimension_numbers<[1], [0], [0], [1], [0, 0, 1, 1], [], []>} : vector<64x4xbf16>, vector<4x8xbf16>, vector<64x8xf32> -> vector<64x8xf32>
    %15 = arith.addf %10, %14 : vector<64x8xf32>
    %16 = vector.extract_strided_slice %1 {offsets = [192, 0], sizes = [64, 4], strides = [1, 1]} : vector<576x4xbf16> to vector<64x4xbf16>
    %c3 = arith.constant 3 : index
    %c0_11 = arith.constant 0 : index
    %c0_12 = arith.constant 0 : index
    %17 = vector.load %arg2[%c3, %c0_11, %c0_12] : memref<9x4x8xbf16, #tpu.memory_space<vmem>>, vector<1x4x8xbf16>
    %18 = vector.shape_cast %17 : vector<1x4x8xbf16> to vector<4x8xbf16>
    %cst_13 = arith.constant dense<0.000000e+00> : vector<64x8xf32>
    %19 = tpu.matmul %16, %18, %cst_13 {dimension_numbers = #tpu.dot_dimension_numbers<[1], [0], [0], [1], [0, 0, 1, 1], [], []>} : vector<64x4xbf16>, vector<4x8xbf16>, vector<64x8xf32> -> vector<64x8xf32>
    %20 = arith.addf %15, %19 : vector<64x8xf32>
    %21 = vector.extract_strided_slice %1 {offsets = [256, 0], sizes = [64, 4], strides = [1, 1]} : vector<576x4xbf16> to vector<64x4xbf16>
    %c4 = arith.constant 4 : index
    %c0_14 = arith.constant 0 : index
    %c0_15 = arith.constant 0 : index
    %22 = vector.load %arg2[%c4, %c0_14, %c0_15] : memref<9x4x8xbf16, #tpu.memory_space<vmem>>, vector<1x4x8xbf16>
    %23 = vector.shape_cast %22 : vector<1x4x8xbf16> to vector<4x8xbf16>
    %cst_16 = arith.constant dense<0.000000e+00> : vector<64x8xf32>
    %24 = tpu.matmul %21, %23, %cst_16 {dimension_numbers = #tpu.dot_dimension_numbers<[1], [0], [0], [1], [0, 0, 1, 1], [], []>} : vector<64x4xbf16>, vector<4x8xbf16>, vector<64x8xf32> -> vector<64x8xf32>
    %25 = arith.addf %20, %24 : vector<64x8xf32>
    %26 = vector.extract_strided_slice %1 {offsets = [320, 0], sizes = [64, 4], strides = [1, 1]} : vector<576x4xbf16> to vector<64x4xbf16>
    %c5 = arith.constant 5 : index
    %c0_17 = arith.constant 0 : index
    %c0_18 = arith.constant 0 : index
    %27 = vector.load %arg2[%c5, %c0_17, %c0_18] : memref<9x4x8xbf16, #tpu.memory_space<vmem>>, vector<1x4x8xbf16>
    %28 = vector.shape_cast %27 : vector<1x4x8xbf16> to vector<4x8xbf16>
    %cst_19 = arith.constant dense<0.000000e+00> : vector<64x8xf32>
    %29 = tpu.matmul %26, %28, %cst_19 {dimension_numbers = #tpu.dot_dimension_numbers<[1], [0], [0], [1], [0, 0, 1, 1], [], []>} : vector<64x4xbf16>, vector<4x8xbf16>, vector<64x8xf32> -> vector<64x8xf32>
    %30 = arith.addf %25, %29 : vector<64x8xf32>
    %31 = vector.extract_strided_slice %1 {offsets = [384, 0], sizes = [64, 4], strides = [1, 1]} : vector<576x4xbf16> to vector<64x4xbf16>
    %c6 = arith.constant 6 : index
    %c0_20 = arith.constant 0 : index
    %c0_21 = arith.constant 0 : index
    %32 = vector.load %arg2[%c6, %c0_20, %c0_21] : memref<9x4x8xbf16, #tpu.memory_space<vmem>>, vector<1x4x8xbf16>
    %33 = vector.shape_cast %32 : vector<1x4x8xbf16> to vector<4x8xbf16>
    %cst_22 = arith.constant dense<0.000000e+00> : vector<64x8xf32>
    %34 = tpu.matmul %31, %33, %cst_22 {dimension_numbers = #tpu.dot_dimension_numbers<[1], [0], [0], [1], [0, 0, 1, 1], [], []>} : vector<64x4xbf16>, vector<4x8xbf16>, vector<64x8xf32> -> vector<64x8xf32>
    %35 = arith.addf %30, %34 : vector<64x8xf32>
    %36 = vector.extract_strided_slice %1 {offsets = [448, 0], sizes = [64, 4], strides = [1, 1]} : vector<576x4xbf16> to vector<64x4xbf16>
    %c7 = arith.constant 7 : index
    %c0_23 = arith.constant 0 : index
    %c0_24 = arith.constant 0 : index
    %37 = vector.load %arg2[%c7, %c0_23, %c0_24] : memref<9x4x8xbf16, #tpu.memory_space<vmem>>, vector<1x4x8xbf16>
    %38 = vector.shape_cast %37 : vector<1x4x8xbf16> to vector<4x8xbf16>
    %cst_25 = arith.constant dense<0.000000e+00> : vector<64x8xf32>
    %39 = tpu.matmul %36, %38, %cst_25 {dimension_numbers = #tpu.dot_dimension_numbers<[1], [0], [0], [1], [0, 0, 1, 1], [], []>} : vector<64x4xbf16>, vector<4x8xbf16>, vector<64x8xf32> -> vector<64x8xf32>
    %40 = arith.addf %35, %39 : vector<64x8xf32>
    %41 = vector.extract_strided_slice %1 {offsets = [512, 0], sizes = [64, 4], strides = [1, 1]} : vector<576x4xbf16> to vector<64x4xbf16>
    %c8 = arith.constant 8 : index
    %c0_26 = arith.constant 0 : index
    %c0_27 = arith.constant 0 : index
    %42 = vector.load %arg2[%c8, %c0_26, %c0_27] : memref<9x4x8xbf16, #tpu.memory_space<vmem>>, vector<1x4x8xbf16>
    %43 = vector.shape_cast %42 : vector<1x4x8xbf16> to vector<4x8xbf16>
    %cst_28 = arith.constant dense<0.000000e+00> : vector<64x8xf32>
    %44 = tpu.matmul %41, %43, %cst_28 {dimension_numbers = #tpu.dot_dimension_numbers<[1], [0], [0], [1], [0, 0, 1, 1], [], []>} : vector<64x4xbf16>, vector<4x8xbf16>, vector<64x8xf32> -> vector<64x8xf32>
    %45 = arith.addf %40, %44 : vector<64x8xf32>
    %cst_29 = arith.constant 0.000000e+00 : f32
    %46 = vector.broadcast %cst_29 : f32 to vector<64x8xf32>
    %47 = arith.maximumf %45, %46 : vector<64x8xf32>
    %c0_30 = arith.constant 0 : index
    %c0_31 = arith.constant 0 : index
    %48 = vector.load %arg7[%c0_30, %c0_31] : memref<144x64xbf16, #tpu.memory_space<vmem>>, vector<144x64xbf16>
    %49 = arith.truncf %47 : vector<64x8xf32> to vector<64x8xbf16>
    %cst_32 = arith.constant dense<0.000000e+00> : vector<144x8xf32>
    %50 = tpu.matmul %48, %49, %cst_32 {dimension_numbers = #tpu.dot_dimension_numbers<[1], [0], [0], [1], [0, 0, 1, 1], [], []>} : vector<144x64xbf16>, vector<64x8xbf16>, vector<144x8xf32> -> vector<144x8xf32>
    %51 = vector.extract_strided_slice %50 {offsets = [0, 0], sizes = [16, 8], strides = [1, 1]} : vector<144x8xf32> to vector<16x8xf32>
    %52 = arith.truncf %51 : vector<16x8xf32> to vector<16x8xbf16>
    %c0_33 = arith.constant 0 : index
    %c0_34 = arith.constant 0 : index
    %c0_35 = arith.constant 0 : index
    %53 = vector.load %arg3[%c0_33, %c0_34, %c0_35] : memref<9x8x16xbf16, #tpu.memory_space<vmem>>, vector<1x8x16xbf16>
    %54 = vector.shape_cast %53 : vector<1x8x16xbf16> to vector<8x16xbf16>
    %cst_36 = arith.constant dense<0.000000e+00> : vector<16x16xf32>
    %55 = tpu.matmul %52, %54, %cst_36 {dimension_numbers = #tpu.dot_dimension_numbers<[1], [0], [0], [1], [0, 0, 1, 1], [], []>} : vector<16x8xbf16>, vector<8x16xbf16>, vector<16x16xf32> -> vector<16x16xf32>
    %56 = vector.extract_strided_slice %50 {offsets = [16, 0], sizes = [16, 8], strides = [1, 1]} : vector<144x8xf32> to vector<16x8xf32>
    %57 = arith.truncf %56 : vector<16x8xf32> to vector<16x8xbf16>
    %c1_37 = arith.constant 1 : index
    %c0_38 = arith.constant 0 : index
    %c0_39 = arith.constant 0 : index
    %58 = vector.load %arg3[%c1_37, %c0_38, %c0_39] : memref<9x8x16xbf16, #tpu.memory_space<vmem>>, vector<1x8x16xbf16>
    %59 = vector.shape_cast %58 : vector<1x8x16xbf16> to vector<8x16xbf16>
    %cst_40 = arith.constant dense<0.000000e+00> : vector<16x16xf32>
    %60 = tpu.matmul %57, %59, %cst_40 {dimension_numbers = #tpu.dot_dimension_numbers<[1], [0], [0], [1], [0, 0, 1, 1], [], []>} : vector<16x8xbf16>, vector<8x16xbf16>, vector<16x16xf32> -> vector<16x16xf32>
    %61 = arith.addf %55, %60 : vector<16x16xf32>
    %62 = vector.extract_strided_slice %50 {offsets = [32, 0], sizes = [16, 8], strides = [1, 1]} : vector<144x8xf32> to vector<16x8xf32>
    %63 = arith.truncf %62 : vector<16x8xf32> to vector<16x8xbf16>
    %c2_41 = arith.constant 2 : index
    %c0_42 = arith.constant 0 : index
    %c0_43 = arith.constant 0 : index
    %64 = vector.load %arg3[%c2_41, %c0_42, %c0_43] : memref<9x8x16xbf16, #tpu.memory_space<vmem>>, vector<1x8x16xbf16>
    %65 = vector.shape_cast %64 : vector<1x8x16xbf16> to vector<8x16xbf16>
    %cst_44 = arith.constant dense<0.000000e+00> : vector<16x16xf32>
    %66 = tpu.matmul %63, %65, %cst_44 {dimension_numbers = #tpu.dot_dimension_numbers<[1], [0], [0], [1], [0, 0, 1, 1], [], []>} : vector<16x8xbf16>, vector<8x16xbf16>, vector<16x16xf32> -> vector<16x16xf32>
    %67 = arith.addf %61, %66 : vector<16x16xf32>
    %68 = vector.extract_strided_slice %50 {offsets = [48, 0], sizes = [16, 8], strides = [1, 1]} : vector<144x8xf32> to vector<16x8xf32>
    %69 = arith.truncf %68 : vector<16x8xf32> to vector<16x8xbf16>
    %c3_45 = arith.constant 3 : index
    %c0_46 = arith.constant 0 : index
    %c0_47 = arith.constant 0 : index
    %70 = vector.load %arg3[%c3_45, %c0_46, %c0_47] : memref<9x8x16xbf16, #tpu.memory_space<vmem>>, vector<1x8x16xbf16>
    %71 = vector.shape_cast %70 : vector<1x8x16xbf16> to vector<8x16xbf16>
    %cst_48 = arith.constant dense<0.000000e+00> : vector<16x16xf32>
    %72 = tpu.matmul %69, %71, %cst_48 {dimension_numbers = #tpu.dot_dimension_numbers<[1], [0], [0], [1], [0, 0, 1, 1], [], []>} : vector<16x8xbf16>, vector<8x16xbf16>, vector<16x16xf32> -> vector<16x16xf32>
    %73 = arith.addf %67, %72 : vector<16x16xf32>
    %74 = vector.extract_strided_slice %50 {offsets = [64, 0], sizes = [16, 8], strides = [1, 1]} : vector<144x8xf32> to vector<16x8xf32>
    %75 = arith.truncf %74 : vector<16x8xf32> to vector<16x8xbf16>
    %c4_49 = arith.constant 4 : index
    %c0_50 = arith.constant 0 : index
    %c0_51 = arith.constant 0 : index
    %76 = vector.load %arg3[%c4_49, %c0_50, %c0_51] : memref<9x8x16xbf16, #tpu.memory_space<vmem>>, vector<1x8x16xbf16>
    %77 = vector.shape_cast %76 : vector<1x8x16xbf16> to vector<8x16xbf16>
    %cst_52 = arith.constant dense<0.000000e+00> : vector<16x16xf32>
    %78 = tpu.matmul %75, %77, %cst_52 {dimension_numbers = #tpu.dot_dimension_numbers<[1], [0], [0], [1], [0, 0, 1, 1], [], []>} : vector<16x8xbf16>, vector<8x16xbf16>, vector<16x16xf32> -> vector<16x16xf32>
    %79 = arith.addf %73, %78 : vector<16x16xf32>
    %80 = vector.extract_strided_slice %50 {offsets = [80, 0], sizes = [16, 8], strides = [1, 1]} : vector<144x8xf32> to vector<16x8xf32>
    %81 = arith.truncf %80 : vector<16x8xf32> to vector<16x8xbf16>
    %c5_53 = arith.constant 5 : index
    %c0_54 = arith.constant 0 : index
    %c0_55 = arith.constant 0 : index
    %82 = vector.load %arg3[%c5_53, %c0_54, %c0_55] : memref<9x8x16xbf16, #tpu.memory_space<vmem>>, vector<1x8x16xbf16>
    %83 = vector.shape_cast %82 : vector<1x8x16xbf16> to vector<8x16xbf16>
    %cst_56 = arith.constant dense<0.000000e+00> : vector<16x16xf32>
    %84 = tpu.matmul %81, %83, %cst_56 {dimension_numbers = #tpu.dot_dimension_numbers<[1], [0], [0], [1], [0, 0, 1, 1], [], []>} : vector<16x8xbf16>, vector<8x16xbf16>, vector<16x16xf32> -> vector<16x16xf32>
    %85 = arith.addf %79, %84 : vector<16x16xf32>
    %86 = vector.extract_strided_slice %50 {offsets = [96, 0], sizes = [16, 8], strides = [1, 1]} : vector<144x8xf32> to vector<16x8xf32>
    %87 = arith.truncf %86 : vector<16x8xf32> to vector<16x8xbf16>
    %c6_57 = arith.constant 6 : index
    %c0_58 = arith.constant 0 : index
    %c0_59 = arith.constant 0 : index
    %88 = vector.load %arg3[%c6_57, %c0_58, %c0_59] : memref<9x8x16xbf16, #tpu.memory_space<vmem>>, vector<1x8x16xbf16>
    %89 = vector.shape_cast %88 : vector<1x8x16xbf16> to vector<8x16xbf16>
    %cst_60 = arith.constant dense<0.000000e+00> : vector<16x16xf32>
    %90 = tpu.matmul %87, %89, %cst_60 {dimension_numbers = #tpu.dot_dimension_numbers<[1], [0], [0], [1], [0, 0, 1, 1], [], []>} : vector<16x8xbf16>, vector<8x16xbf16>, vector<16x16xf32> -> vector<16x16xf32>
    %91 = arith.addf %85, %90 : vector<16x16xf32>
    %92 = vector.extract_strided_slice %50 {offsets = [112, 0], sizes = [16, 8], strides = [1, 1]} : vector<144x8xf32> to vector<16x8xf32>
    %93 = arith.truncf %92 : vector<16x8xf32> to vector<16x8xbf16>
    %c7_61 = arith.constant 7 : index
    %c0_62 = arith.constant 0 : index
    %c0_63 = arith.constant 0 : index
    %94 = vector.load %arg3[%c7_61, %c0_62, %c0_63] : memref<9x8x16xbf16, #tpu.memory_space<vmem>>, vector<1x8x16xbf16>
    %95 = vector.shape_cast %94 : vector<1x8x16xbf16> to vector<8x16xbf16>
    %cst_64 = arith.constant dense<0.000000e+00> : vector<16x16xf32>
    %96 = tpu.matmul %93, %95, %cst_64 {dimension_numbers = #tpu.dot_dimension_numbers<[1], [0], [0], [1], [0, 0, 1, 1], [], []>} : vector<16x8xbf16>, vector<8x16xbf16>, vector<16x16xf32> -> vector<16x16xf32>
    %97 = arith.addf %91, %96 : vector<16x16xf32>
    %98 = vector.extract_strided_slice %50 {offsets = [128, 0], sizes = [16, 8], strides = [1, 1]} : vector<144x8xf32> to vector<16x8xf32>
    %99 = arith.truncf %98 : vector<16x8xf32> to vector<16x8xbf16>
    %c8_65 = arith.constant 8 : index
    %c0_66 = arith.constant 0 : index
    %c0_67 = arith.constant 0 : index
    %100 = vector.load %arg3[%c8_65, %c0_66, %c0_67] : memref<9x8x16xbf16, #tpu.memory_space<vmem>>, vector<1x8x16xbf16>
    %101 = vector.shape_cast %100 : vector<1x8x16xbf16> to vector<8x16xbf16>
    %cst_68 = arith.constant dense<0.000000e+00> : vector<16x16xf32>
    %102 = tpu.matmul %99, %101, %cst_68 {dimension_numbers = #tpu.dot_dimension_numbers<[1], [0], [0], [1], [0, 0, 1, 1], [], []>} : vector<16x8xbf16>, vector<8x16xbf16>, vector<16x16xf32> -> vector<16x16xf32>
    %103 = arith.addf %97, %102 : vector<16x16xf32>
    %cst_69 = arith.constant 0.000000e+00 : f32
    %104 = vector.broadcast %cst_69 : f32 to vector<16x16xf32>
    %105 = arith.maximumf %103, %104 : vector<16x16xf32>
    %c0_70 = arith.constant 0 : index
    %c0_71 = arith.constant 0 : index
    %106 = vector.load %arg8[%c0_70, %c0_71] : memref<72x16xbf16, #tpu.memory_space<vmem>>, vector<72x16xbf16>
    %107 = arith.truncf %105 : vector<16x16xf32> to vector<16x16xbf16>
    %cst_72 = arith.constant dense<0.000000e+00> : vector<72x16xf32>
    %108 = tpu.matmul %106, %107, %cst_72 {dimension_numbers = #tpu.dot_dimension_numbers<[1], [0], [0], [1], [0, 0, 1, 1], [], []>} : vector<72x16xbf16>, vector<16x16xbf16>, vector<72x16xf32> -> vector<72x16xf32>
    %109 = vector.extract_strided_slice %108 {offsets = [0, 0], sizes = [8, 16], strides = [1, 1]} : vector<72x16xf32> to vector<8x16xf32>
    %110 = arith.truncf %109 : vector<8x16xf32> to vector<8x16xbf16>
    %c0_73 = arith.constant 0 : index
    %c0_74 = arith.constant 0 : index
    %c0_75 = arith.constant 0 : index
    %111 = vector.load %arg4[%c0_73, %c0_74, %c0_75] : memref<9x16x32xbf16, #tpu.memory_space<vmem>>, vector<1x16x32xbf16>
    %112 = vector.shape_cast %111 : vector<1x16x32xbf16> to vector<16x32xbf16>
    %cst_76 = arith.constant dense<0.000000e+00> : vector<8x32xf32>
    %113 = tpu.matmul %110, %112, %cst_76 {dimension_numbers = #tpu.dot_dimension_numbers<[1], [0], [0], [1], [0, 0, 1, 1], [], []>} : vector<8x16xbf16>, vector<16x32xbf16>, vector<8x32xf32> -> vector<8x32xf32>
    %114 = vector.extract_strided_slice %108 {offsets = [8, 0], sizes = [8, 16], strides = [1, 1]} : vector<72x16xf32> to vector<8x16xf32>
    %115 = arith.truncf %114 : vector<8x16xf32> to vector<8x16xbf16>
    %c1_77 = arith.constant 1 : index
    %c0_78 = arith.constant 0 : index
    %c0_79 = arith.constant 0 : index
    %116 = vector.load %arg4[%c1_77, %c0_78, %c0_79] : memref<9x16x32xbf16, #tpu.memory_space<vmem>>, vector<1x16x32xbf16>
    %117 = vector.shape_cast %116 : vector<1x16x32xbf16> to vector<16x32xbf16>
    %cst_80 = arith.constant dense<0.000000e+00> : vector<8x32xf32>
    %118 = tpu.matmul %115, %117, %cst_80 {dimension_numbers = #tpu.dot_dimension_numbers<[1], [0], [0], [1], [0, 0, 1, 1], [], []>} : vector<8x16xbf16>, vector<16x32xbf16>, vector<8x32xf32> -> vector<8x32xf32>
    %119 = arith.addf %113, %118 : vector<8x32xf32>
    %120 = vector.extract_strided_slice %108 {offsets = [16, 0], sizes = [8, 16], strides = [1, 1]} : vector<72x16xf32> to vector<8x16xf32>
    %121 = arith.truncf %120 : vector<8x16xf32> to vector<8x16xbf16>
    %c2_81 = arith.constant 2 : index
    %c0_82 = arith.constant 0 : index
    %c0_83 = arith.constant 0 : index
    %122 = vector.load %arg4[%c2_81, %c0_82, %c0_83] : memref<9x16x32xbf16, #tpu.memory_space<vmem>>, vector<1x16x32xbf16>
    %123 = vector.shape_cast %122 : vector<1x16x32xbf16> to vector<16x32xbf16>
    %cst_84 = arith.constant dense<0.000000e+00> : vector<8x32xf32>
    %124 = tpu.matmul %121, %123, %cst_84 {dimension_numbers = #tpu.dot_dimension_numbers<[1], [0], [0], [1], [0, 0, 1, 1], [], []>} : vector<8x16xbf16>, vector<16x32xbf16>, vector<8x32xf32> -> vector<8x32xf32>
    %125 = arith.addf %119, %124 : vector<8x32xf32>
    %126 = vector.extract_strided_slice %108 {offsets = [24, 0], sizes = [8, 16], strides = [1, 1]} : vector<72x16xf32> to vector<8x16xf32>
    %127 = arith.truncf %126 : vector<8x16xf32> to vector<8x16xbf16>
    %c3_85 = arith.constant 3 : index
    %c0_86 = arith.constant 0 : index
    %c0_87 = arith.constant 0 : index
    %128 = vector.load %arg4[%c3_85, %c0_86, %c0_87] : memref<9x16x32xbf16, #tpu.memory_space<vmem>>, vector<1x16x32xbf16>
    %129 = vector.shape_cast %128 : vector<1x16x32xbf16> to vector<16x32xbf16>
    %cst_88 = arith.constant dense<0.000000e+00> : vector<8x32xf32>
    %130 = tpu.matmul %127, %129, %cst_88 {dimension_numbers = #tpu.dot_dimension_numbers<[1], [0], [0], [1], [0, 0, 1, 1], [], []>} : vector<8x16xbf16>, vector<16x32xbf16>, vector<8x32xf32> -> vector<8x32xf32>
    %131 = arith.addf %125, %130 : vector<8x32xf32>
    %132 = vector.extract_strided_slice %108 {offsets = [32, 0], sizes = [8, 16], strides = [1, 1]} : vector<72x16xf32> to vector<8x16xf32>
    %133 = arith.truncf %132 : vector<8x16xf32> to vector<8x16xbf16>
    %c4_89 = arith.constant 4 : index
    %c0_90 = arith.constant 0 : index
    %c0_91 = arith.constant 0 : index
    %134 = vector.load %arg4[%c4_89, %c0_90, %c0_91] : memref<9x16x32xbf16, #tpu.memory_space<vmem>>, vector<1x16x32xbf16>
    %135 = vector.shape_cast %134 : vector<1x16x32xbf16> to vector<16x32xbf16>
    %cst_92 = arith.constant dense<0.000000e+00> : vector<8x32xf32>
    %136 = tpu.matmul %133, %135, %cst_92 {dimension_numbers = #tpu.dot_dimension_numbers<[1], [0], [0], [1], [0, 0, 1, 1], [], []>} : vector<8x16xbf16>, vector<16x32xbf16>, vector<8x32xf32> -> vector<8x32xf32>
    %137 = arith.addf %131, %136 : vector<8x32xf32>
    %138 = vector.extract_strided_slice %108 {offsets = [40, 0], sizes = [8, 16], strides = [1, 1]} : vector<72x16xf32> to vector<8x16xf32>
    %139 = arith.truncf %138 : vector<8x16xf32> to vector<8x16xbf16>
    %c5_93 = arith.constant 5 : index
    %c0_94 = arith.constant 0 : index
    %c0_95 = arith.constant 0 : index
    %140 = vector.load %arg4[%c5_93, %c0_94, %c0_95] : memref<9x16x32xbf16, #tpu.memory_space<vmem>>, vector<1x16x32xbf16>
    %141 = vector.shape_cast %140 : vector<1x16x32xbf16> to vector<16x32xbf16>
    %cst_96 = arith.constant dense<0.000000e+00> : vector<8x32xf32>
    %142 = tpu.matmul %139, %141, %cst_96 {dimension_numbers = #tpu.dot_dimension_numbers<[1], [0], [0], [1], [0, 0, 1, 1], [], []>} : vector<8x16xbf16>, vector<16x32xbf16>, vector<8x32xf32> -> vector<8x32xf32>
    %143 = arith.addf %137, %142 : vector<8x32xf32>
    %144 = vector.extract_strided_slice %108 {offsets = [48, 0], sizes = [8, 16], strides = [1, 1]} : vector<72x16xf32> to vector<8x16xf32>
    %145 = arith.truncf %144 : vector<8x16xf32> to vector<8x16xbf16>
    %c6_97 = arith.constant 6 : index
    %c0_98 = arith.constant 0 : index
    %c0_99 = arith.constant 0 : index
    %146 = vector.load %arg4[%c6_97, %c0_98, %c0_99] : memref<9x16x32xbf16, #tpu.memory_space<vmem>>, vector<1x16x32xbf16>
    %147 = vector.shape_cast %146 : vector<1x16x32xbf16> to vector<16x32xbf16>
    %cst_100 = arith.constant dense<0.000000e+00> : vector<8x32xf32>
    %148 = tpu.matmul %145, %147, %cst_100 {dimension_numbers = #tpu.dot_dimension_numbers<[1], [0], [0], [1], [0, 0, 1, 1], [], []>} : vector<8x16xbf16>, vector<16x32xbf16>, vector<8x32xf32> -> vector<8x32xf32>
    %149 = arith.addf %143, %148 : vector<8x32xf32>
    %150 = vector.extract_strided_slice %108 {offsets = [56, 0], sizes = [8, 16], strides = [1, 1]} : vector<72x16xf32> to vector<8x16xf32>
    %151 = arith.truncf %150 : vector<8x16xf32> to vector<8x16xbf16>
    %c7_101 = arith.constant 7 : index
    %c0_102 = arith.constant 0 : index
    %c0_103 = arith.constant 0 : index
    %152 = vector.load %arg4[%c7_101, %c0_102, %c0_103] : memref<9x16x32xbf16, #tpu.memory_space<vmem>>, vector<1x16x32xbf16>
    %153 = vector.shape_cast %152 : vector<1x16x32xbf16> to vector<16x32xbf16>
    %cst_104 = arith.constant dense<0.000000e+00> : vector<8x32xf32>
    %154 = tpu.matmul %151, %153, %cst_104 {dimension_numbers = #tpu.dot_dimension_numbers<[1], [0], [0], [1], [0, 0, 1, 1], [], []>} : vector<8x16xbf16>, vector<16x32xbf16>, vector<8x32xf32> -> vector<8x32xf32>
    %155 = arith.addf %149, %154 : vector<8x32xf32>
    %156 = vector.extract_strided_slice %108 {offsets = [64, 0], sizes = [8, 16], strides = [1, 1]} : vector<72x16xf32> to vector<8x16xf32>
    %157 = arith.truncf %156 : vector<8x16xf32> to vector<8x16xbf16>
    %c8_105 = arith.constant 8 : index
    %c0_106 = arith.constant 0 : index
    %c0_107 = arith.constant 0 : index
    %158 = vector.load %arg4[%c8_105, %c0_106, %c0_107] : memref<9x16x32xbf16, #tpu.memory_space<vmem>>, vector<1x16x32xbf16>
    %159 = vector.shape_cast %158 : vector<1x16x32xbf16> to vector<16x32xbf16>
    %cst_108 = arith.constant dense<0.000000e+00> : vector<8x32xf32>
    %160 = tpu.matmul %157, %159, %cst_108 {dimension_numbers = #tpu.dot_dimension_numbers<[1], [0], [0], [1], [0, 0, 1, 1], [], []>} : vector<8x16xbf16>, vector<16x32xbf16>, vector<8x32xf32> -> vector<8x32xf32>
    %161 = arith.addf %155, %160 : vector<8x32xf32>
    %cst_109 = arith.constant 0.000000e+00 : f32
    %162 = vector.broadcast %cst_109 : f32 to vector<8x32xf32>
    %163 = arith.maximumf %161, %162 : vector<8x32xf32>
    %c0_110 = arith.constant 0 : index
    %c0_111 = arith.constant 0 : index
    %164 = vector.load %arg9[%c0_110, %c0_111] : memref<72x8xbf16, #tpu.memory_space<vmem>>, vector<72x8xbf16>
    %165 = arith.truncf %163 : vector<8x32xf32> to vector<8x32xbf16>
    %cst_112 = arith.constant dense<0.000000e+00> : vector<72x32xf32>
    %166 = tpu.matmul %164, %165, %cst_112 {dimension_numbers = #tpu.dot_dimension_numbers<[1], [0], [0], [1], [0, 0, 1, 1], [], []>} : vector<72x8xbf16>, vector<8x32xbf16>, vector<72x32xf32> -> vector<72x32xf32>
    %167 = vector.extract_strided_slice %166 {offsets = [0, 0], sizes = [8, 32], strides = [1, 1]} : vector<72x32xf32> to vector<8x32xf32>
    %168 = arith.truncf %167 : vector<8x32xf32> to vector<8x32xbf16>
    %c0_113 = arith.constant 0 : index
    %c0_114 = arith.constant 0 : index
    %c0_115 = arith.constant 0 : index
    %169 = vector.load %arg5[%c0_113, %c0_114, %c0_115] : memref<9x32x32xbf16, #tpu.memory_space<vmem>>, vector<1x32x32xbf16>
    %170 = vector.shape_cast %169 : vector<1x32x32xbf16> to vector<32x32xbf16>
    %cst_116 = arith.constant dense<0.000000e+00> : vector<8x32xf32>
    %171 = tpu.matmul %168, %170, %cst_116 {dimension_numbers = #tpu.dot_dimension_numbers<[1], [0], [0], [1], [0, 0, 1, 1], [], []>} : vector<8x32xbf16>, vector<32x32xbf16>, vector<8x32xf32> -> vector<8x32xf32>
    %172 = vector.extract_strided_slice %166 {offsets = [8, 0], sizes = [8, 32], strides = [1, 1]} : vector<72x32xf32> to vector<8x32xf32>
    %173 = arith.truncf %172 : vector<8x32xf32> to vector<8x32xbf16>
    %c1_117 = arith.constant 1 : index
    %c0_118 = arith.constant 0 : index
    %c0_119 = arith.constant 0 : index
    %174 = vector.load %arg5[%c1_117, %c0_118, %c0_119] : memref<9x32x32xbf16, #tpu.memory_space<vmem>>, vector<1x32x32xbf16>
    %175 = vector.shape_cast %174 : vector<1x32x32xbf16> to vector<32x32xbf16>
    %cst_120 = arith.constant dense<0.000000e+00> : vector<8x32xf32>
    %176 = tpu.matmul %173, %175, %cst_120 {dimension_numbers = #tpu.dot_dimension_numbers<[1], [0], [0], [1], [0, 0, 1, 1], [], []>} : vector<8x32xbf16>, vector<32x32xbf16>, vector<8x32xf32> -> vector<8x32xf32>
    %177 = arith.addf %171, %176 : vector<8x32xf32>
    %178 = vector.extract_strided_slice %166 {offsets = [16, 0], sizes = [8, 32], strides = [1, 1]} : vector<72x32xf32> to vector<8x32xf32>
    %179 = arith.truncf %178 : vector<8x32xf32> to vector<8x32xbf16>
    %c2_121 = arith.constant 2 : index
    %c0_122 = arith.constant 0 : index
    %c0_123 = arith.constant 0 : index
    %180 = vector.load %arg5[%c2_121, %c0_122, %c0_123] : memref<9x32x32xbf16, #tpu.memory_space<vmem>>, vector<1x32x32xbf16>
    %181 = vector.shape_cast %180 : vector<1x32x32xbf16> to vector<32x32xbf16>
    %cst_124 = arith.constant dense<0.000000e+00> : vector<8x32xf32>
    %182 = tpu.matmul %179, %181, %cst_124 {dimension_numbers = #tpu.dot_dimension_numbers<[1], [0], [0], [1], [0, 0, 1, 1], [], []>} : vector<8x32xbf16>, vector<32x32xbf16>, vector<8x32xf32> -> vector<8x32xf32>
    %183 = arith.addf %177, %182 : vector<8x32xf32>
    %184 = vector.extract_strided_slice %166 {offsets = [24, 0], sizes = [8, 32], strides = [1, 1]} : vector<72x32xf32> to vector<8x32xf32>
    %185 = arith.truncf %184 : vector<8x32xf32> to vector<8x32xbf16>
    %c3_125 = arith.constant 3 : index
    %c0_126 = arith.constant 0 : index
    %c0_127 = arith.constant 0 : index
    %186 = vector.load %arg5[%c3_125, %c0_126, %c0_127] : memref<9x32x32xbf16, #tpu.memory_space<vmem>>, vector<1x32x32xbf16>
    %187 = vector.shape_cast %186 : vector<1x32x32xbf16> to vector<32x32xbf16>
    %cst_128 = arith.constant dense<0.000000e+00> : vector<8x32xf32>
    %188 = tpu.matmul %185, %187, %cst_128 {dimension_numbers = #tpu.dot_dimension_numbers<[1], [0], [0], [1], [0, 0, 1, 1], [], []>} : vector<8x32xbf16>, vector<32x32xbf16>, vector<8x32xf32> -> vector<8x32xf32>
    %189 = arith.addf %183, %188 : vector<8x32xf32>
    %190 = vector.extract_strided_slice %166 {offsets = [32, 0], sizes = [8, 32], strides = [1, 1]} : vector<72x32xf32> to vector<8x32xf32>
    %191 = arith.truncf %190 : vector<8x32xf32> to vector<8x32xbf16>
    %c4_129 = arith.constant 4 : index
    %c0_130 = arith.constant 0 : index
    %c0_131 = arith.constant 0 : index
    %192 = vector.load %arg5[%c4_129, %c0_130, %c0_131] : memref<9x32x32xbf16, #tpu.memory_space<vmem>>, vector<1x32x32xbf16>
    %193 = vector.shape_cast %192 : vector<1x32x32xbf16> to vector<32x32xbf16>
    %cst_132 = arith.constant dense<0.000000e+00> : vector<8x32xf32>
    %194 = tpu.matmul %191, %193, %cst_132 {dimension_numbers = #tpu.dot_dimension_numbers<[1], [0], [0], [1], [0, 0, 1, 1], [], []>} : vector<8x32xbf16>, vector<32x32xbf16>, vector<8x32xf32> -> vector<8x32xf32>
    %195 = arith.addf %189, %194 : vector<8x32xf32>
    %196 = vector.extract_strided_slice %166 {offsets = [40, 0], sizes = [8, 32], strides = [1, 1]} : vector<72x32xf32> to vector<8x32xf32>
    %197 = arith.truncf %196 : vector<8x32xf32> to vector<8x32xbf16>
    %c5_133 = arith.constant 5 : index
    %c0_134 = arith.constant 0 : index
    %c0_135 = arith.constant 0 : index
    %198 = vector.load %arg5[%c5_133, %c0_134, %c0_135] : memref<9x32x32xbf16, #tpu.memory_space<vmem>>, vector<1x32x32xbf16>
    %199 = vector.shape_cast %198 : vector<1x32x32xbf16> to vector<32x32xbf16>
    %cst_136 = arith.constant dense<0.000000e+00> : vector<8x32xf32>
    %200 = tpu.matmul %197, %199, %cst_136 {dimension_numbers = #tpu.dot_dimension_numbers<[1], [0], [0], [1], [0, 0, 1, 1], [], []>} : vector<8x32xbf16>, vector<32x32xbf16>, vector<8x32xf32> -> vector<8x32xf32>
    %201 = arith.addf %195, %200 : vector<8x32xf32>
    %202 = vector.extract_strided_slice %166 {offsets = [48, 0], sizes = [8, 32], strides = [1, 1]} : vector<72x32xf32> to vector<8x32xf32>
    %203 = arith.truncf %202 : vector<8x32xf32> to vector<8x32xbf16>
    %c6_137 = arith.constant 6 : index
    %c0_138 = arith.constant 0 : index
    %c0_139 = arith.constant 0 : index
    %204 = vector.load %arg5[%c6_137, %c0_138, %c0_139] : memref<9x32x32xbf16, #tpu.memory_space<vmem>>, vector<1x32x32xbf16>
    %205 = vector.shape_cast %204 : vector<1x32x32xbf16> to vector<32x32xbf16>
    %cst_140 = arith.constant dense<0.000000e+00> : vector<8x32xf32>
    %206 = tpu.matmul %203, %205, %cst_140 {dimension_numbers = #tpu.dot_dimension_numbers<[1], [0], [0], [1], [0, 0, 1, 1], [], []>} : vector<8x32xbf16>, vector<32x32xbf16>, vector<8x32xf32> -> vector<8x32xf32>
    %207 = arith.addf %201, %206 : vector<8x32xf32>
    %208 = vector.extract_strided_slice %166 {offsets = [56, 0], sizes = [8, 32], strides = [1, 1]} : vector<72x32xf32> to vector<8x32xf32>
    %209 = arith.truncf %208 : vector<8x32xf32> to vector<8x32xbf16>
    %c7_141 = arith.constant 7 : index
    %c0_142 = arith.constant 0 : index
    %c0_143 = arith.constant 0 : index
    %210 = vector.load %arg5[%c7_141, %c0_142, %c0_143] : memref<9x32x32xbf16, #tpu.memory_space<vmem>>, vector<1x32x32xbf16>
    %211 = vector.shape_cast %210 : vector<1x32x32xbf16> to vector<32x32xbf16>
    %cst_144 = arith.constant dense<0.000000e+00> : vector<8x32xf32>
    %212 = tpu.matmul %209, %211, %cst_144 {dimension_numbers = #tpu.dot_dimension_numbers<[1], [0], [0], [1], [0, 0, 1, 1], [], []>} : vector<8x32xbf16>, vector<32x32xbf16>, vector<8x32xf32> -> vector<8x32xf32>
    %213 = arith.addf %207, %212 : vector<8x32xf32>
    %214 = vector.extract_strided_slice %166 {offsets = [64, 0], sizes = [8, 32], strides = [1, 1]} : vector<72x32xf32> to vector<8x32xf32>
    %215 = arith.truncf %214 : vector<8x32xf32> to vector<8x32xbf16>
    %c8_145 = arith.constant 8 : index
    %c0_146 = arith.constant 0 : index
    %c0_147 = arith.constant 0 : index
    %216 = vector.load %arg5[%c8_145, %c0_146, %c0_147] : memref<9x32x32xbf16, #tpu.memory_space<vmem>>, vector<1x32x32xbf16>
    %217 = vector.shape_cast %216 : vector<1x32x32xbf16> to vector<32x32xbf16>
    %cst_148 = arith.constant dense<0.000000e+00> : vector<8x32xf32>
    %218 = tpu.matmul %215, %217, %cst_148 {dimension_numbers = #tpu.dot_dimension_numbers<[1], [0], [0], [1], [0, 0, 1, 1], [], []>} : vector<8x32xbf16>, vector<32x32xbf16>, vector<8x32xf32> -> vector<8x32xf32>
    %219 = arith.addf %213, %218 : vector<8x32xf32>
    %cst_149 = arith.constant 0.000000e+00 : f32
    %220 = vector.broadcast %cst_149 : f32 to vector<8x32xf32>
    %221 = arith.maximumf %219, %220 : vector<8x32xf32>
    %c0_150 = arith.constant 0 : index
    %c0_151 = arith.constant 0 : index
    %222 = vector.load %arg9[%c0_150, %c0_151] : memref<72x8xbf16, #tpu.memory_space<vmem>>, vector<72x8xbf16>
    %223 = arith.truncf %221 : vector<8x32xf32> to vector<8x32xbf16>
    %cst_152 = arith.constant dense<0.000000e+00> : vector<72x32xf32>
    %224 = tpu.matmul %222, %223, %cst_152 {dimension_numbers = #tpu.dot_dimension_numbers<[1], [0], [0], [1], [0, 0, 1, 1], [], []>} : vector<72x8xbf16>, vector<8x32xbf16>, vector<72x32xf32> -> vector<72x32xf32>
    %225 = vector.extract_strided_slice %224 {offsets = [0, 0], sizes = [8, 32], strides = [1, 1]} : vector<72x32xf32> to vector<8x32xf32>
    %226 = arith.truncf %225 : vector<8x32xf32> to vector<8x32xbf16>
    %c0_153 = arith.constant 0 : index
    %c0_154 = arith.constant 0 : index
    %c0_155 = arith.constant 0 : index
    %227 = vector.load %arg6[%c0_153, %c0_154, %c0_155] : memref<9x32x32xbf16, #tpu.memory_space<vmem>>, vector<1x32x32xbf16>
    %228 = vector.shape_cast %227 : vector<1x32x32xbf16> to vector<32x32xbf16>
    %cst_156 = arith.constant dense<0.000000e+00> : vector<8x32xf32>
    %229 = tpu.matmul %226, %228, %cst_156 {dimension_numbers = #tpu.dot_dimension_numbers<[1], [0], [0], [1], [0, 0, 1, 1], [], []>} : vector<8x32xbf16>, vector<32x32xbf16>, vector<8x32xf32> -> vector<8x32xf32>
    %230 = vector.extract_strided_slice %224 {offsets = [8, 0], sizes = [8, 32], strides = [1, 1]} : vector<72x32xf32> to vector<8x32xf32>
    %231 = arith.truncf %230 : vector<8x32xf32> to vector<8x32xbf16>
    %c1_157 = arith.constant 1 : index
    %c0_158 = arith.constant 0 : index
    %c0_159 = arith.constant 0 : index
    %232 = vector.load %arg6[%c1_157, %c0_158, %c0_159] : memref<9x32x32xbf16, #tpu.memory_space<vmem>>, vector<1x32x32xbf16>
    %233 = vector.shape_cast %232 : vector<1x32x32xbf16> to vector<32x32xbf16>
    %cst_160 = arith.constant dense<0.000000e+00> : vector<8x32xf32>
    %234 = tpu.matmul %231, %233, %cst_160 {dimension_numbers = #tpu.dot_dimension_numbers<[1], [0], [0], [1], [0, 0, 1, 1], [], []>} : vector<8x32xbf16>, vector<32x32xbf16>, vector<8x32xf32> -> vector<8x32xf32>
    %235 = arith.addf %229, %234 : vector<8x32xf32>
    %236 = vector.extract_strided_slice %224 {offsets = [16, 0], sizes = [8, 32], strides = [1, 1]} : vector<72x32xf32> to vector<8x32xf32>
    %237 = arith.truncf %236 : vector<8x32xf32> to vector<8x32xbf16>
    %c2_161 = arith.constant 2 : index
    %c0_162 = arith.constant 0 : index
    %c0_163 = arith.constant 0 : index
    %238 = vector.load %arg6[%c2_161, %c0_162, %c0_163] : memref<9x32x32xbf16, #tpu.memory_space<vmem>>, vector<1x32x32xbf16>
    %239 = vector.shape_cast %238 : vector<1x32x32xbf16> to vector<32x32xbf16>
    %cst_164 = arith.constant dense<0.000000e+00> : vector<8x32xf32>
    %240 = tpu.matmul %237, %239, %cst_164 {dimension_numbers = #tpu.dot_dimension_numbers<[1], [0], [0], [1], [0, 0, 1, 1], [], []>} : vector<8x32xbf16>, vector<32x32xbf16>, vector<8x32xf32> -> vector<8x32xf32>
    %241 = arith.addf %235, %240 : vector<8x32xf32>
    %242 = vector.extract_strided_slice %224 {offsets = [24, 0], sizes = [8, 32], strides = [1, 1]} : vector<72x32xf32> to vector<8x32xf32>
    %243 = arith.truncf %242 : vector<8x32xf32> to vector<8x32xbf16>
    %c3_165 = arith.constant 3 : index
    %c0_166 = arith.constant 0 : index
    %c0_167 = arith.constant 0 : index
    %244 = vector.load %arg6[%c3_165, %c0_166, %c0_167] : memref<9x32x32xbf16, #tpu.memory_space<vmem>>, vector<1x32x32xbf16>
    %245 = vector.shape_cast %244 : vector<1x32x32xbf16> to vector<32x32xbf16>
    %cst_168 = arith.constant dense<0.000000e+00> : vector<8x32xf32>
    %246 = tpu.matmul %243, %245, %cst_168 {dimension_numbers = #tpu.dot_dimension_numbers<[1], [0], [0], [1], [0, 0, 1, 1], [], []>} : vector<8x32xbf16>, vector<32x32xbf16>, vector<8x32xf32> -> vector<8x32xf32>
    %247 = arith.addf %241, %246 : vector<8x32xf32>
    %248 = vector.extract_strided_slice %224 {offsets = [32, 0], sizes = [8, 32], strides = [1, 1]} : vector<72x32xf32> to vector<8x32xf32>
    %249 = arith.truncf %248 : vector<8x32xf32> to vector<8x32xbf16>
    %c4_169 = arith.constant 4 : index
    %c0_170 = arith.constant 0 : index
    %c0_171 = arith.constant 0 : index
    %250 = vector.load %arg6[%c4_169, %c0_170, %c0_171] : memref<9x32x32xbf16, #tpu.memory_space<vmem>>, vector<1x32x32xbf16>
    %251 = vector.shape_cast %250 : vector<1x32x32xbf16> to vector<32x32xbf16>
    %cst_172 = arith.constant dense<0.000000e+00> : vector<8x32xf32>
    %252 = tpu.matmul %249, %251, %cst_172 {dimension_numbers = #tpu.dot_dimension_numbers<[1], [0], [0], [1], [0, 0, 1, 1], [], []>} : vector<8x32xbf16>, vector<32x32xbf16>, vector<8x32xf32> -> vector<8x32xf32>
    %253 = arith.addf %247, %252 : vector<8x32xf32>
    %254 = vector.extract_strided_slice %224 {offsets = [40, 0], sizes = [8, 32], strides = [1, 1]} : vector<72x32xf32> to vector<8x32xf32>
    %255 = arith.truncf %254 : vector<8x32xf32> to vector<8x32xbf16>
    %c5_173 = arith.constant 5 : index
    %c0_174 = arith.constant 0 : index
    %c0_175 = arith.constant 0 : index
    %256 = vector.load %arg6[%c5_173, %c0_174, %c0_175] : memref<9x32x32xbf16, #tpu.memory_space<vmem>>, vector<1x32x32xbf16>
    %257 = vector.shape_cast %256 : vector<1x32x32xbf16> to vector<32x32xbf16>
    %cst_176 = arith.constant dense<0.000000e+00> : vector<8x32xf32>
    %258 = tpu.matmul %255, %257, %cst_176 {dimension_numbers = #tpu.dot_dimension_numbers<[1], [0], [0], [1], [0, 0, 1, 1], [], []>} : vector<8x32xbf16>, vector<32x32xbf16>, vector<8x32xf32> -> vector<8x32xf32>
    %259 = arith.addf %253, %258 : vector<8x32xf32>
    %260 = vector.extract_strided_slice %224 {offsets = [48, 0], sizes = [8, 32], strides = [1, 1]} : vector<72x32xf32> to vector<8x32xf32>
    %261 = arith.truncf %260 : vector<8x32xf32> to vector<8x32xbf16>
    %c6_177 = arith.constant 6 : index
    %c0_178 = arith.constant 0 : index
    %c0_179 = arith.constant 0 : index
    %262 = vector.load %arg6[%c6_177, %c0_178, %c0_179] : memref<9x32x32xbf16, #tpu.memory_space<vmem>>, vector<1x32x32xbf16>
    %263 = vector.shape_cast %262 : vector<1x32x32xbf16> to vector<32x32xbf16>
    %cst_180 = arith.constant dense<0.000000e+00> : vector<8x32xf32>
    %264 = tpu.matmul %261, %263, %cst_180 {dimension_numbers = #tpu.dot_dimension_numbers<[1], [0], [0], [1], [0, 0, 1, 1], [], []>} : vector<8x32xbf16>, vector<32x32xbf16>, vector<8x32xf32> -> vector<8x32xf32>
    %265 = arith.addf %259, %264 : vector<8x32xf32>
    %266 = vector.extract_strided_slice %224 {offsets = [56, 0], sizes = [8, 32], strides = [1, 1]} : vector<72x32xf32> to vector<8x32xf32>
    %267 = arith.truncf %266 : vector<8x32xf32> to vector<8x32xbf16>
    %c7_181 = arith.constant 7 : index
    %c0_182 = arith.constant 0 : index
    %c0_183 = arith.constant 0 : index
    %268 = vector.load %arg6[%c7_181, %c0_182, %c0_183] : memref<9x32x32xbf16, #tpu.memory_space<vmem>>, vector<1x32x32xbf16>
    %269 = vector.shape_cast %268 : vector<1x32x32xbf16> to vector<32x32xbf16>
    %cst_184 = arith.constant dense<0.000000e+00> : vector<8x32xf32>
    %270 = tpu.matmul %267, %269, %cst_184 {dimension_numbers = #tpu.dot_dimension_numbers<[1], [0], [0], [1], [0, 0, 1, 1], [], []>} : vector<8x32xbf16>, vector<32x32xbf16>, vector<8x32xf32> -> vector<8x32xf32>
    %271 = arith.addf %265, %270 : vector<8x32xf32>
    %272 = vector.extract_strided_slice %224 {offsets = [64, 0], sizes = [8, 32], strides = [1, 1]} : vector<72x32xf32> to vector<8x32xf32>
    %273 = arith.truncf %272 : vector<8x32xf32> to vector<8x32xbf16>
    %c8_185 = arith.constant 8 : index
    %c0_186 = arith.constant 0 : index
    %c0_187 = arith.constant 0 : index
    %274 = vector.load %arg6[%c8_185, %c0_186, %c0_187] : memref<9x32x32xbf16, #tpu.memory_space<vmem>>, vector<1x32x32xbf16>
    %275 = vector.shape_cast %274 : vector<1x32x32xbf16> to vector<32x32xbf16>
    %cst_188 = arith.constant dense<0.000000e+00> : vector<8x32xf32>
    %276 = tpu.matmul %273, %275, %cst_188 {dimension_numbers = #tpu.dot_dimension_numbers<[1], [0], [0], [1], [0, 0, 1, 1], [], []>} : vector<8x32xbf16>, vector<32x32xbf16>, vector<8x32xf32> -> vector<8x32xf32>
    %277 = arith.addf %271, %276 : vector<8x32xf32>
    %cst_189 = arith.constant 0.000000e+00 : f32
    %278 = vector.broadcast %cst_189 : f32 to vector<8x32xf32>
    %279 = arith.maximumf %277, %278 : vector<8x32xf32>
    %c0_190 = arith.constant 0 : index
    %c0_191 = arith.constant 0 : index
    %280 = vector.load %arg11[%c0_190, %c0_191] : memref<1x32xf32, #tpu.memory_space<vmem>>, vector<1x32xf32>
    %281 = vector.extract_strided_slice %279 {offsets = [0, 0], sizes = [1, 32], strides = [1, 1]} : vector<8x32xf32> to vector<1x32xf32>
    %282 = arith.truncf %281 : vector<1x32xf32> to vector<1x32xbf16>
    %c0_192 = arith.constant 0 : index
    %c0_193 = arith.constant 0 : index
    %c0_194 = arith.constant 0 : index
    %283 = vector.load %arg10[%c0_192, %c0_193, %c0_194] : memref<4x32x32xbf16, #tpu.memory_space<vmem>>, vector<1x32x32xbf16>
    %284 = vector.shape_cast %283 : vector<1x32x32xbf16> to vector<32x32xbf16>
    %cst_195 = arith.constant dense<0.000000e+00> : vector<1x32xf32>
    %285 = tpu.matmul %282, %284, %cst_195 {dimension_numbers = #tpu.dot_dimension_numbers<[1], [0], [0], [1], [0, 0, 1, 1], [], []>} : vector<1x32xbf16>, vector<32x32xbf16>, vector<1x32xf32> -> vector<1x32xf32>
    %286 = arith.addf %280, %285 : vector<1x32xf32>
    %287 = vector.extract_strided_slice %279 {offsets = [1, 0], sizes = [1, 32], strides = [1, 1]} : vector<8x32xf32> to vector<1x32xf32>
    %288 = arith.truncf %287 : vector<1x32xf32> to vector<1x32xbf16>
    %c1_196 = arith.constant 1 : index
    %c0_197 = arith.constant 0 : index
    %c0_198 = arith.constant 0 : index
    %289 = vector.load %arg10[%c1_196, %c0_197, %c0_198] : memref<4x32x32xbf16, #tpu.memory_space<vmem>>, vector<1x32x32xbf16>
    %290 = vector.shape_cast %289 : vector<1x32x32xbf16> to vector<32x32xbf16>
    %cst_199 = arith.constant dense<0.000000e+00> : vector<1x32xf32>
    %291 = tpu.matmul %288, %290, %cst_199 {dimension_numbers = #tpu.dot_dimension_numbers<[1], [0], [0], [1], [0, 0, 1, 1], [], []>} : vector<1x32xbf16>, vector<32x32xbf16>, vector<1x32xf32> -> vector<1x32xf32>
    %292 = arith.addf %286, %291 : vector<1x32xf32>
    %293 = vector.extract_strided_slice %279 {offsets = [2, 0], sizes = [1, 32], strides = [1, 1]} : vector<8x32xf32> to vector<1x32xf32>
    %294 = arith.truncf %293 : vector<1x32xf32> to vector<1x32xbf16>
    %c2_200 = arith.constant 2 : index
    %c0_201 = arith.constant 0 : index
    %c0_202 = arith.constant 0 : index
    %295 = vector.load %arg10[%c2_200, %c0_201, %c0_202] : memref<4x32x32xbf16, #tpu.memory_space<vmem>>, vector<1x32x32xbf16>
    %296 = vector.shape_cast %295 : vector<1x32x32xbf16> to vector<32x32xbf16>
    %cst_203 = arith.constant dense<0.000000e+00> : vector<1x32xf32>
    %297 = tpu.matmul %294, %296, %cst_203 {dimension_numbers = #tpu.dot_dimension_numbers<[1], [0], [0], [1], [0, 0, 1, 1], [], []>} : vector<1x32xbf16>, vector<32x32xbf16>, vector<1x32xf32> -> vector<1x32xf32>
    %298 = arith.addf %292, %297 : vector<1x32xf32>
    %299 = vector.extract_strided_slice %279 {offsets = [3, 0], sizes = [1, 32], strides = [1, 1]} : vector<8x32xf32> to vector<1x32xf32>
    %300 = arith.truncf %299 : vector<1x32xf32> to vector<1x32xbf16>
    %c3_204 = arith.constant 3 : index
    %c0_205 = arith.constant 0 : index
    %c0_206 = arith.constant 0 : index
    %301 = vector.load %arg10[%c3_204, %c0_205, %c0_206] : memref<4x32x32xbf16, #tpu.memory_space<vmem>>, vector<1x32x32xbf16>
    %302 = vector.shape_cast %301 : vector<1x32x32xbf16> to vector<32x32xbf16>
    %cst_207 = arith.constant dense<0.000000e+00> : vector<1x32xf32>
    %303 = tpu.matmul %300, %302, %cst_207 {dimension_numbers = #tpu.dot_dimension_numbers<[1], [0], [0], [1], [0, 0, 1, 1], [], []>} : vector<1x32xbf16>, vector<32x32xbf16>, vector<1x32xf32> -> vector<1x32xf32>
    %304 = arith.addf %298, %303 : vector<1x32xf32>
    %c0_208 = arith.constant 0 : index
    %c0_209 = arith.constant 0 : index
    %c0_210 = arith.constant 0 : index
    %305 = vector.load %arg20[%c0_208, %c0_209, %c0_210] : memref<1x1x32xf32, #tpu.memory_space<vmem>>, vector<1x1x32xf32>
    %306 = vector.shape_cast %305 : vector<1x1x32xf32> to vector<1x32xf32>
    %307 = vector.shape_cast %304 : vector<1x32xf32> to vector<1x1x32xf32>
    tpu.vector_store %arg20[%c0_208, %c0_209, %c0_210], %307 {strides = array<i32>} : memref<1x1x32xf32, #tpu.memory_space<vmem>>, vector<1x1x32xf32>,
    %308 = arith.truncf %304 : vector<1x32xf32> to vector<1x32xbf16>
    %c0_211 = arith.constant 0 : index
    %c0_212 = arith.constant 0 : index
    %c0_213 = arith.constant 0 : index
    %309 = vector.load %arg12[%c0_211, %c0_212, %c0_213] : memref<4x32x32xbf16, #tpu.memory_space<vmem>>, vector<1x32x32xbf16>
    %310 = vector.shape_cast %309 : vector<1x32x32xbf16> to vector<32x32xbf16>
    %cst_214 = arith.constant dense<0.000000e+00> : vector<1x32xf32>
    %311 = tpu.matmul %308, %310, %cst_214 {dimension_numbers = #tpu.dot_dimension_numbers<[1], [0], [0], [1], [0, 0, 1, 1], [], []>} : vector<1x32xbf16>, vector<32x32xbf16>, vector<1x32xf32> -> vector<1x32xf32>
    %c0_215 = arith.constant 0 : index
    %c0_216 = arith.constant 0 : index
    %c0_217 = arith.constant 0 : index
    %312 = vector.load %arg13[%c0_215, %c0_216, %c0_217] : memref<4x1x32xf32, #tpu.memory_space<vmem>>, vector<1x1x32xf32>
    %313 = vector.shape_cast %312 : vector<1x1x32xf32> to vector<1x32xf32>
    %314 = arith.addf %311, %313 : vector<1x32xf32>
    %cst_218 = arith.constant 0.000000e+00 : f32
    %315 = vector.broadcast %cst_218 : f32 to vector<1x32xf32>
    %316 = arith.maximumf %314, %315 : vector<1x32xf32>
    %c0_219 = arith.constant 0 : index
    %c0_220 = arith.constant 0 : index
    %c0_221 = arith.constant 0 : index
    %317 = vector.load %arg14[%c0_219, %c0_220, %c0_221] : memref<4x144x1xf32, #tpu.memory_space<vmem>>, vector<1x144x1xf32>
    %318 = vector.shape_cast %317 : vector<1x144x1xf32> to vector<144x1xf32>
    %319 = vector.broadcast %318 : vector<144x1xf32> to vector<144x32xf32>
    %320 = vector.broadcast %316 : vector<1x32xf32> to vector<144x32xf32>
    %321 = arith.mulf %319, %320 : vector<144x32xf32>
    %c1_222 = arith.constant 1 : index
    %c0_223 = arith.constant 0 : index
    %c0_224 = arith.constant 0 : index
    %322 = vector.load %arg12[%c1_222, %c0_223, %c0_224] : memref<4x32x32xbf16, #tpu.memory_space<vmem>>, vector<1x32x32xbf16>
    %323 = vector.shape_cast %322 : vector<1x32x32xbf16> to vector<32x32xbf16>
    %cst_225 = arith.constant dense<0.000000e+00> : vector<1x32xf32>
    %324 = tpu.matmul %308, %323, %cst_225 {dimension_numbers = #tpu.dot_dimension_numbers<[1], [0], [0], [1], [0, 0, 1, 1], [], []>} : vector<1x32xbf16>, vector<32x32xbf16>, vector<1x32xf32> -> vector<1x32xf32>
    %c1_226 = arith.constant 1 : index
    %c0_227 = arith.constant 0 : index
    %c0_228 = arith.constant 0 : index
    %325 = vector.load %arg13[%c1_226, %c0_227, %c0_228] : memref<4x1x32xf32, #tpu.memory_space<vmem>>, vector<1x1x32xf32>
    %326 = vector.shape_cast %325 : vector<1x1x32xf32> to vector<1x32xf32>
    %327 = arith.addf %324, %326 : vector<1x32xf32>
    %cst_229 = arith.constant 0.000000e+00 : f32
    %328 = vector.broadcast %cst_229 : f32 to vector<1x32xf32>
    %329 = arith.maximumf %327, %328 : vector<1x32xf32>
    %c1_230 = arith.constant 1 : index
    %c0_231 = arith.constant 0 : index
    %c0_232 = arith.constant 0 : index
    %330 = vector.load %arg14[%c1_230, %c0_231, %c0_232] : memref<4x144x1xf32, #tpu.memory_space<vmem>>, vector<1x144x1xf32>
    %331 = vector.shape_cast %330 : vector<1x144x1xf32> to vector<144x1xf32>
    %332 = vector.broadcast %331 : vector<144x1xf32> to vector<144x32xf32>
    %333 = vector.broadcast %329 : vector<1x32xf32> to vector<144x32xf32>
    %334 = arith.mulf %332, %333 : vector<144x32xf32>
    %335 = arith.addf %321, %334 : vector<144x32xf32>
    %c2_233 = arith.constant 2 : index
    %c0_234 = arith.constant 0 : index
    %c0_235 = arith.constant 0 : index
    %336 = vector.load %arg12[%c2_233, %c0_234, %c0_235] : memref<4x32x32xbf16, #tpu.memory_space<vmem>>, vector<1x32x32xbf16>
    %337 = vector.shape_cast %336 : vector<1x32x32xbf16> to vector<32x32xbf16>
    %cst_236 = arith.constant dense<0.000000e+00> : vector<1x32xf32>
    %338 = tpu.matmul %308, %337, %cst_236 {dimension_numbers = #tpu.dot_dimension_numbers<[1], [0], [0], [1], [0, 0, 1, 1], [], []>} : vector<1x32xbf16>, vector<32x32xbf16>, vector<1x32xf32> -> vector<1x32xf32>
    %c2_237 = arith.constant 2 : index
    %c0_238 = arith.constant 0 : index
    %c0_239 = arith.constant 0 : index
    %339 = vector.load %arg13[%c2_237, %c0_238, %c0_239] : memref<4x1x32xf32, #tpu.memory_space<vmem>>, vector<1x1x32xf32>
    %340 = vector.shape_cast %339 : vector<1x1x32xf32> to vector<1x32xf32>
    %341 = arith.addf %338, %340 : vector<1x32xf32>
    %cst_240 = arith.constant 0.000000e+00 : f32
    %342 = vector.broadcast %cst_240 : f32 to vector<1x32xf32>
    %343 = arith.maximumf %341, %342 : vector<1x32xf32>
    %c2_241 = arith.constant 2 : index
    %c0_242 = arith.constant 0 : index
    %c0_243 = arith.constant 0 : index
    %344 = vector.load %arg14[%c2_241, %c0_242, %c0_243] : memref<4x144x1xf32, #tpu.memory_space<vmem>>, vector<1x144x1xf32>
    %345 = vector.shape_cast %344 : vector<1x144x1xf32> to vector<144x1xf32>
    %346 = vector.broadcast %345 : vector<144x1xf32> to vector<144x32xf32>
    %347 = vector.broadcast %343 : vector<1x32xf32> to vector<144x32xf32>
    %348 = arith.mulf %346, %347 : vector<144x32xf32>
    %349 = arith.addf %335, %348 : vector<144x32xf32>
    %c3_244 = arith.constant 3 : index
    %c0_245 = arith.constant 0 : index
    %c0_246 = arith.constant 0 : index
    %350 = vector.load %arg12[%c3_244, %c0_245, %c0_246] : memref<4x32x32xbf16, #tpu.memory_space<vmem>>, vector<1x32x32xbf16>
    %351 = vector.shape_cast %350 : vector<1x32x32xbf16> to vector<32x32xbf16>
    %cst_247 = arith.constant dense<0.000000e+00> : vector<1x32xf32>
    %352 = tpu.matmul %308, %351, %cst_247 {dimension_numbers = #tpu.dot_dimension_numbers<[1], [0], [0], [1], [0, 0, 1, 1], [], []>} : vector<1x32xbf16>, vector<32x32xbf16>, vector<1x32xf32> -> vector<1x32xf32>
    %c3_248 = arith.constant 3 : index
    %c0_249 = arith.constant 0 : index
    %c0_250 = arith.constant 0 : index
    %353 = vector.load %arg13[%c3_248, %c0_249, %c0_250] : memref<4x1x32xf32, #tpu.memory_space<vmem>>, vector<1x1x32xf32>
    %354 = vector.shape_cast %353 : vector<1x1x32xf32> to vector<1x32xf32>
    %355 = arith.addf %352, %354 : vector<1x32xf32>
    %cst_251 = arith.constant 0.000000e+00 : f32
    %356 = vector.broadcast %cst_251 : f32 to vector<1x32xf32>
    %357 = arith.maximumf %355, %356 : vector<1x32xf32>
    %c3_252 = arith.constant 3 : index
    %c0_253 = arith.constant 0 : index
    %c0_254 = arith.constant 0 : index
    %358 = vector.load %arg14[%c3_252, %c0_253, %c0_254] : memref<4x144x1xf32, #tpu.memory_space<vmem>>, vector<1x144x1xf32>
    %359 = vector.shape_cast %358 : vector<1x144x1xf32> to vector<144x1xf32>
    %360 = vector.broadcast %359 : vector<144x1xf32> to vector<144x32xf32>
    %361 = vector.broadcast %357 : vector<1x32xf32> to vector<144x32xf32>
    %362 = arith.mulf %360, %361 : vector<144x32xf32>
    %363 = arith.addf %349, %362 : vector<144x32xf32>
    %364 = vector.extract_strided_slice %363 {offsets = [0, 0], sizes = [16, 32], strides = [1, 1]} : vector<144x32xf32> to vector<16x32xf32>
    %365 = arith.truncf %364 : vector<16x32xf32> to vector<16x32xbf16>
    %c0_255 = arith.constant 0 : index
    %c0_256 = arith.constant 0 : index
    %c0_257 = arith.constant 0 : index
    %366 = vector.load %arg15[%c0_255, %c0_256, %c0_257] : memref<9x32x16xbf16, #tpu.memory_space<vmem>>, vector<1x32x16xbf16>
    %367 = vector.shape_cast %366 : vector<1x32x16xbf16> to vector<32x16xbf16>
    %cst_258 = arith.constant dense<0.000000e+00> : vector<16x16xf32>
    %368 = tpu.matmul %365, %367, %cst_258 {dimension_numbers = #tpu.dot_dimension_numbers<[1], [0], [0], [1], [0, 0, 1, 1], [], []>} : vector<16x32xbf16>, vector<32x16xbf16>, vector<16x16xf32> -> vector<16x16xf32>
    %369 = vector.extract_strided_slice %363 {offsets = [16, 0], sizes = [16, 32], strides = [1, 1]} : vector<144x32xf32> to vector<16x32xf32>
    %370 = arith.truncf %369 : vector<16x32xf32> to vector<16x32xbf16>
    %c1_259 = arith.constant 1 : index
    %c0_260 = arith.constant 0 : index
    %c0_261 = arith.constant 0 : index
    %371 = vector.load %arg15[%c1_259, %c0_260, %c0_261] : memref<9x32x16xbf16, #tpu.memory_space<vmem>>, vector<1x32x16xbf16>
    %372 = vector.shape_cast %371 : vector<1x32x16xbf16> to vector<32x16xbf16>
    %cst_262 = arith.constant dense<0.000000e+00> : vector<16x16xf32>
    %373 = tpu.matmul %370, %372, %cst_262 {dimension_numbers = #tpu.dot_dimension_numbers<[1], [0], [0], [1], [0, 0, 1, 1], [], []>} : vector<16x32xbf16>, vector<32x16xbf16>, vector<16x16xf32> -> vector<16x16xf32>
    %374 = arith.addf %368, %373 : vector<16x16xf32>
    %375 = vector.extract_strided_slice %363 {offsets = [32, 0], sizes = [16, 32], strides = [1, 1]} : vector<144x32xf32> to vector<16x32xf32>
    %376 = arith.truncf %375 : vector<16x32xf32> to vector<16x32xbf16>
    %c2_263 = arith.constant 2 : index
    %c0_264 = arith.constant 0 : index
    %c0_265 = arith.constant 0 : index
    %377 = vector.load %arg15[%c2_263, %c0_264, %c0_265] : memref<9x32x16xbf16, #tpu.memory_space<vmem>>, vector<1x32x16xbf16>
    %378 = vector.shape_cast %377 : vector<1x32x16xbf16> to vector<32x16xbf16>
    %cst_266 = arith.constant dense<0.000000e+00> : vector<16x16xf32>
    %379 = tpu.matmul %376, %378, %cst_266 {dimension_numbers = #tpu.dot_dimension_numbers<[1], [0], [0], [1], [0, 0, 1, 1], [], []>} : vector<16x32xbf16>, vector<32x16xbf16>, vector<16x16xf32> -> vector<16x16xf32>
    %380 = arith.addf %374, %379 : vector<16x16xf32>
    %381 = vector.extract_strided_slice %363 {offsets = [48, 0], sizes = [16, 32], strides = [1, 1]} : vector<144x32xf32> to vector<16x32xf32>
    %382 = arith.truncf %381 : vector<16x32xf32> to vector<16x32xbf16>
    %c3_267 = arith.constant 3 : index
    %c0_268 = arith.constant 0 : index
    %c0_269 = arith.constant 0 : index
    %383 = vector.load %arg15[%c3_267, %c0_268, %c0_269] : memref<9x32x16xbf16, #tpu.memory_space<vmem>>, vector<1x32x16xbf16>
    %384 = vector.shape_cast %383 : vector<1x32x16xbf16> to vector<32x16xbf16>
    %cst_270 = arith.constant dense<0.000000e+00> : vector<16x16xf32>
    %385 = tpu.matmul %382, %384, %cst_270 {dimension_numbers = #tpu.dot_dimension_numbers<[1], [0], [0], [1], [0, 0, 1, 1], [], []>} : vector<16x32xbf16>, vector<32x16xbf16>, vector<16x16xf32> -> vector<16x16xf32>
    %386 = arith.addf %380, %385 : vector<16x16xf32>
    %387 = vector.extract_strided_slice %363 {offsets = [64, 0], sizes = [16, 32], strides = [1, 1]} : vector<144x32xf32> to vector<16x32xf32>
    %388 = arith.truncf %387 : vector<16x32xf32> to vector<16x32xbf16>
    %c4_271 = arith.constant 4 : index
    %c0_272 = arith.constant 0 : index
    %c0_273 = arith.constant 0 : index
    %389 = vector.load %arg15[%c4_271, %c0_272, %c0_273] : memref<9x32x16xbf16, #tpu.memory_space<vmem>>, vector<1x32x16xbf16>
    %390 = vector.shape_cast %389 : vector<1x32x16xbf16> to vector<32x16xbf16>
    %cst_274 = arith.constant dense<0.000000e+00> : vector<16x16xf32>
    %391 = tpu.matmul %388, %390, %cst_274 {dimension_numbers = #tpu.dot_dimension_numbers<[1], [0], [0], [1], [0, 0, 1, 1], [], []>} : vector<16x32xbf16>, vector<32x16xbf16>, vector<16x16xf32> -> vector<16x16xf32>
    %392 = arith.addf %386, %391 : vector<16x16xf32>
    %393 = vector.extract_strided_slice %363 {offsets = [80, 0], sizes = [16, 32], strides = [1, 1]} : vector<144x32xf32> to vector<16x32xf32>
    %394 = arith.truncf %393 : vector<16x32xf32> to vector<16x32xbf16>
    %c5_275 = arith.constant 5 : index
    %c0_276 = arith.constant 0 : index
    %c0_277 = arith.constant 0 : index
    %395 = vector.load %arg15[%c5_275, %c0_276, %c0_277] : memref<9x32x16xbf16, #tpu.memory_space<vmem>>, vector<1x32x16xbf16>
    %396 = vector.shape_cast %395 : vector<1x32x16xbf16> to vector<32x16xbf16>
    %cst_278 = arith.constant dense<0.000000e+00> : vector<16x16xf32>
    %397 = tpu.matmul %394, %396, %cst_278 {dimension_numbers = #tpu.dot_dimension_numbers<[1], [0], [0], [1], [0, 0, 1, 1], [], []>} : vector<16x32xbf16>, vector<32x16xbf16>, vector<16x16xf32> -> vector<16x16xf32>
    %398 = arith.addf %392, %397 : vector<16x16xf32>
    %399 = vector.extract_strided_slice %363 {offsets = [96, 0], sizes = [16, 32], strides = [1, 1]} : vector<144x32xf32> to vector<16x32xf32>
    %400 = arith.truncf %399 : vector<16x32xf32> to vector<16x32xbf16>
    %c6_279 = arith.constant 6 : index
    %c0_280 = arith.constant 0 : index
    %c0_281 = arith.constant 0 : index
    %401 = vector.load %arg15[%c6_279, %c0_280, %c0_281] : memref<9x32x16xbf16, #tpu.memory_space<vmem>>, vector<1x32x16xbf16>
    %402 = vector.shape_cast %401 : vector<1x32x16xbf16> to vector<32x16xbf16>
    %cst_282 = arith.constant dense<0.000000e+00> : vector<16x16xf32>
    %403 = tpu.matmul %400, %402, %cst_282 {dimension_numbers = #tpu.dot_dimension_numbers<[1], [0], [0], [1], [0, 0, 1, 1], [], []>} : vector<16x32xbf16>, vector<32x16xbf16>, vector<16x16xf32> -> vector<16x16xf32>
    %404 = arith.addf %398, %403 : vector<16x16xf32>
    %405 = vector.extract_strided_slice %363 {offsets = [112, 0], sizes = [16, 32], strides = [1, 1]} : vector<144x32xf32> to vector<16x32xf32>
    %406 = arith.truncf %405 : vector<16x32xf32> to vector<16x32xbf16>
    %c7_283 = arith.constant 7 : index
    %c0_284 = arith.constant 0 : index
    %c0_285 = arith.constant 0 : index
    %407 = vector.load %arg15[%c7_283, %c0_284, %c0_285] : memref<9x32x16xbf16, #tpu.memory_space<vmem>>, vector<1x32x16xbf16>
    %408 = vector.shape_cast %407 : vector<1x32x16xbf16> to vector<32x16xbf16>
    %cst_286 = arith.constant dense<0.000000e+00> : vector<16x16xf32>
    %409 = tpu.matmul %406, %408, %cst_286 {dimension_numbers = #tpu.dot_dimension_numbers<[1], [0], [0], [1], [0, 0, 1, 1], [], []>} : vector<16x32xbf16>, vector<32x16xbf16>, vector<16x16xf32> -> vector<16x16xf32>
    %410 = arith.addf %404, %409 : vector<16x16xf32>
    %411 = vector.extract_strided_slice %363 {offsets = [128, 0], sizes = [16, 32], strides = [1, 1]} : vector<144x32xf32> to vector<16x32xf32>
    %412 = arith.truncf %411 : vector<16x32xf32> to vector<16x32xbf16>
    %c8_287 = arith.constant 8 : index
    %c0_288 = arith.constant 0 : index
    %c0_289 = arith.constant 0 : index
    %413 = vector.load %arg15[%c8_287, %c0_288, %c0_289] : memref<9x32x16xbf16, #tpu.memory_space<vmem>>, vector<1x32x16xbf16>
    %414 = vector.shape_cast %413 : vector<1x32x16xbf16> to vector<32x16xbf16>
    %cst_290 = arith.constant dense<0.000000e+00> : vector<16x16xf32>
    %415 = tpu.matmul %412, %414, %cst_290 {dimension_numbers = #tpu.dot_dimension_numbers<[1], [0], [0], [1], [0, 0, 1, 1], [], []>} : vector<16x32xbf16>, vector<32x16xbf16>, vector<16x16xf32> -> vector<16x16xf32>
    %416 = arith.addf %410, %415 : vector<16x16xf32>
    %cst_291 = arith.constant 0.000000e+00 : f32
    %417 = vector.broadcast %cst_291 : f32 to vector<16x16xf32>
    %418 = arith.maximumf %416, %417 : vector<16x16xf32>
    %c0_292 = arith.constant 0 : index
    %c0_293 = arith.constant 0 : index
    %419 = vector.load %arg18[%c0_292, %c0_293] : memref<576x16xbf16, #tpu.memory_space<vmem>>, vector<576x16xbf16>
    %420 = arith.truncf %418 : vector<16x16xf32> to vector<16x16xbf16>
    %cst_294 = arith.constant dense<0.000000e+00> : vector<576x16xf32>
    %421 = tpu.matmul %419, %420, %cst_294 {dimension_numbers = #tpu.dot_dimension_numbers<[1], [0], [0], [1], [0, 0, 1, 1], [], []>} : vector<576x16xbf16>, vector<16x16xbf16>, vector<576x16xf32> -> vector<576x16xf32>
    %422 = vector.extract_strided_slice %421 {offsets = [0, 0], sizes = [64, 16], strides = [1, 1]} : vector<576x16xf32> to vector<64x16xf32>
    %423 = arith.truncf %422 : vector<64x16xf32> to vector<64x16xbf16>
    %c0_295 = arith.constant 0 : index
    %c0_296 = arith.constant 0 : index
    %c0_297 = arith.constant 0 : index
    %424 = vector.load %arg16[%c0_295, %c0_296, %c0_297] : memref<9x16x8xbf16, #tpu.memory_space<vmem>>, vector<1x16x8xbf16>
    %425 = vector.shape_cast %424 : vector<1x16x8xbf16> to vector<16x8xbf16>
    %cst_298 = arith.constant dense<0.000000e+00> : vector<64x8xf32>
    %426 = tpu.matmul %423, %425, %cst_298 {dimension_numbers = #tpu.dot_dimension_numbers<[1], [0], [0], [1], [0, 0, 1, 1], [], []>} : vector<64x16xbf16>, vector<16x8xbf16>, vector<64x8xf32> -> vector<64x8xf32>
    %427 = vector.extract_strided_slice %421 {offsets = [64, 0], sizes = [64, 16], strides = [1, 1]} : vector<576x16xf32> to vector<64x16xf32>
    %428 = arith.truncf %427 : vector<64x16xf32> to vector<64x16xbf16>
    %c1_299 = arith.constant 1 : index
    %c0_300 = arith.constant 0 : index
    %c0_301 = arith.constant 0 : index
    %429 = vector.load %arg16[%c1_299, %c0_300, %c0_301] : memref<9x16x8xbf16, #tpu.memory_space<vmem>>, vector<1x16x8xbf16>
    %430 = vector.shape_cast %429 : vector<1x16x8xbf16> to vector<16x8xbf16>
    %cst_302 = arith.constant dense<0.000000e+00> : vector<64x8xf32>
    %431 = tpu.matmul %428, %430, %cst_302 {dimension_numbers = #tpu.dot_dimension_numbers<[1], [0], [0], [1], [0, 0, 1, 1], [], []>} : vector<64x16xbf16>, vector<16x8xbf16>, vector<64x8xf32> -> vector<64x8xf32>
    %432 = arith.addf %426, %431 : vector<64x8xf32>
    %433 = vector.extract_strided_slice %421 {offsets = [128, 0], sizes = [64, 16], strides = [1, 1]} : vector<576x16xf32> to vector<64x16xf32>
    %434 = arith.truncf %433 : vector<64x16xf32> to vector<64x16xbf16>
    %c2_303 = arith.constant 2 : index
    %c0_304 = arith.constant 0 : index
    %c0_305 = arith.constant 0 : index
    %435 = vector.load %arg16[%c2_303, %c0_304, %c0_305] : memref<9x16x8xbf16, #tpu.memory_space<vmem>>, vector<1x16x8xbf16>
    %436 = vector.shape_cast %435 : vector<1x16x8xbf16> to vector<16x8xbf16>
    %cst_306 = arith.constant dense<0.000000e+00> : vector<64x8xf32>
    %437 = tpu.matmul %434, %436, %cst_306 {dimension_numbers = #tpu.dot_dimension_numbers<[1], [0], [0], [1], [0, 0, 1, 1], [], []>} : vector<64x16xbf16>, vector<16x8xbf16>, vector<64x8xf32> -> vector<64x8xf32>
    %438 = arith.addf %432, %437 : vector<64x8xf32>
    %439 = vector.extract_strided_slice %421 {offsets = [192, 0], sizes = [64, 16], strides = [1, 1]} : vector<576x16xf32> to vector<64x16xf32>
    %440 = arith.truncf %439 : vector<64x16xf32> to vector<64x16xbf16>
    %c3_307 = arith.constant 3 : index
    %c0_308 = arith.constant 0 : index
    %c0_309 = arith.constant 0 : index
    %441 = vector.load %arg16[%c3_307, %c0_308, %c0_309] : memref<9x16x8xbf16, #tpu.memory_space<vmem>>, vector<1x16x8xbf16>
    %442 = vector.shape_cast %441 : vector<1x16x8xbf16> to vector<16x8xbf16>
    %cst_310 = arith.constant dense<0.000000e+00> : vector<64x8xf32>
    %443 = tpu.matmul %440, %442, %cst_310 {dimension_numbers = #tpu.dot_dimension_numbers<[1], [0], [0], [1], [0, 0, 1, 1], [], []>} : vector<64x16xbf16>, vector<16x8xbf16>, vector<64x8xf32> -> vector<64x8xf32>
    %444 = arith.addf %438, %443 : vector<64x8xf32>
    %445 = vector.extract_strided_slice %421 {offsets = [256, 0], sizes = [64, 16], strides = [1, 1]} : vector<576x16xf32> to vector<64x16xf32>
    %446 = arith.truncf %445 : vector<64x16xf32> to vector<64x16xbf16>
    %c4_311 = arith.constant 4 : index
    %c0_312 = arith.constant 0 : index
    %c0_313 = arith.constant 0 : index
    %447 = vector.load %arg16[%c4_311, %c0_312, %c0_313] : memref<9x16x8xbf16, #tpu.memory_space<vmem>>, vector<1x16x8xbf16>
    %448 = vector.shape_cast %447 : vector<1x16x8xbf16> to vector<16x8xbf16>
    %cst_314 = arith.constant dense<0.000000e+00> : vector<64x8xf32>
    %449 = tpu.matmul %446, %448, %cst_314 {dimension_numbers = #tpu.dot_dimension_numbers<[1], [0], [0], [1], [0, 0, 1, 1], [], []>} : vector<64x16xbf16>, vector<16x8xbf16>, vector<64x8xf32> -> vector<64x8xf32>
    %450 = arith.addf %444, %449 : vector<64x8xf32>
    %451 = vector.extract_strided_slice %421 {offsets = [320, 0], sizes = [64, 16], strides = [1, 1]} : vector<576x16xf32> to vector<64x16xf32>
    %452 = arith.truncf %451 : vector<64x16xf32> to vector<64x16xbf16>
    %c5_315 = arith.constant 5 : index
    %c0_316 = arith.constant 0 : index
    %c0_317 = arith.constant 0 : index
    %453 = vector.load %arg16[%c5_315, %c0_316, %c0_317] : memref<9x16x8xbf16, #tpu.memory_space<vmem>>, vector<1x16x8xbf16>
    %454 = vector.shape_cast %453 : vector<1x16x8xbf16> to vector<16x8xbf16>
    %cst_318 = arith.constant dense<0.000000e+00> : vector<64x8xf32>
    %455 = tpu.matmul %452, %454, %cst_318 {dimension_numbers = #tpu.dot_dimension_numbers<[1], [0], [0], [1], [0, 0, 1, 1], [], []>} : vector<64x16xbf16>, vector<16x8xbf16>, vector<64x8xf32> -> vector<64x8xf32>
    %456 = arith.addf %450, %455 : vector<64x8xf32>
    %457 = vector.extract_strided_slice %421 {offsets = [384, 0], sizes = [64, 16], strides = [1, 1]} : vector<576x16xf32> to vector<64x16xf32>
    %458 = arith.truncf %457 : vector<64x16xf32> to vector<64x16xbf16>
    %c6_319 = arith.constant 6 : index
    %c0_320 = arith.constant 0 : index
    %c0_321 = arith.constant 0 : index
    %459 = vector.load %arg16[%c6_319, %c0_320, %c0_321] : memref<9x16x8xbf16, #tpu.memory_space<vmem>>, vector<1x16x8xbf16>
    %460 = vector.shape_cast %459 : vector<1x16x8xbf16> to vector<16x8xbf16>
    %cst_322 = arith.constant dense<0.000000e+00> : vector<64x8xf32>
    %461 = tpu.matmul %458, %460, %cst_322 {dimension_numbers = #tpu.dot_dimension_numbers<[1], [0], [0], [1], [0, 0, 1, 1], [], []>} : vector<64x16xbf16>, vector<16x8xbf16>, vector<64x8xf32> -> vector<64x8xf32>
    %462 = arith.addf %456, %461 : vector<64x8xf32>
    %463 = vector.extract_strided_slice %421 {offsets = [448, 0], sizes = [64, 16], strides = [1, 1]} : vector<576x16xf32> to vector<64x16xf32>
    %464 = arith.truncf %463 : vector<64x16xf32> to vector<64x16xbf16>
    %c7_323 = arith.constant 7 : index
    %c0_324 = arith.constant 0 : index
    %c0_325 = arith.constant 0 : index
    %465 = vector.load %arg16[%c7_323, %c0_324, %c0_325] : memref<9x16x8xbf16, #tpu.memory_space<vmem>>, vector<1x16x8xbf16>
    %466 = vector.shape_cast %465 : vector<1x16x8xbf16> to vector<16x8xbf16>
    %cst_326 = arith.constant dense<0.000000e+00> : vector<64x8xf32>
    %467 = tpu.matmul %464, %466, %cst_326 {dimension_numbers = #tpu.dot_dimension_numbers<[1], [0], [0], [1], [0, 0, 1, 1], [], []>} : vector<64x16xbf16>, vector<16x8xbf16>, vector<64x8xf32> -> vector<64x8xf32>
    %468 = arith.addf %462, %467 : vector<64x8xf32>
    %469 = vector.extract_strided_slice %421 {offsets = [512, 0], sizes = [64, 16], strides = [1, 1]} : vector<576x16xf32> to vector<64x16xf32>
    %470 = arith.truncf %469 : vector<64x16xf32> to vector<64x16xbf16>
    %c8_327 = arith.constant 8 : index
    %c0_328 = arith.constant 0 : index
    %c0_329 = arith.constant 0 : index
    %471 = vector.load %arg16[%c8_327, %c0_328, %c0_329] : memref<9x16x8xbf16, #tpu.memory_space<vmem>>, vector<1x16x8xbf16>
    %472 = vector.shape_cast %471 : vector<1x16x8xbf16> to vector<16x8xbf16>
    %cst_330 = arith.constant dense<0.000000e+00> : vector<64x8xf32>
    %473 = tpu.matmul %470, %472, %cst_330 {dimension_numbers = #tpu.dot_dimension_numbers<[1], [0], [0], [1], [0, 0, 1, 1], [], []>} : vector<64x16xbf16>, vector<16x8xbf16>, vector<64x8xf32> -> vector<64x8xf32>
    %474 = arith.addf %468, %473 : vector<64x8xf32>
    %cst_331 = arith.constant 0.000000e+00 : f32
    %475 = vector.broadcast %cst_331 : f32 to vector<64x8xf32>
    %476 = arith.maximumf %474, %475 : vector<64x8xf32>
    %c0_332 = arith.constant 0 : index
    %c0_333 = arith.constant 0 : index
    %477 = vector.load %arg19[%c0_332, %c0_333] : memref<2304x64xbf16, #tpu.memory_space<vmem>>, vector<2304x64xbf16>
    %478 = arith.truncf %476 : vector<64x8xf32> to vector<64x8xbf16>
    %cst_334 = arith.constant dense<0.000000e+00> : vector<2304x8xf32>
    %479 = tpu.matmul %477, %478, %cst_334 {dimension_numbers = #tpu.dot_dimension_numbers<[1], [0], [0], [1], [0, 0, 1, 1], [], []>} : vector<2304x64xbf16>, vector<64x8xbf16>, vector<2304x8xf32> -> vector<2304x8xf32>
    %480 = vector.extract_strided_slice %479 {offsets = [0, 0], sizes = [256, 8], strides = [1, 1]} : vector<2304x8xf32> to vector<256x8xf32>
    %481 = arith.truncf %480 : vector<256x8xf32> to vector<256x8xbf16>
    %c0_335 = arith.constant 0 : index
    %c0_336 = arith.constant 0 : index
    %c0_337 = arith.constant 0 : index
    %482 = vector.load %arg17[%c0_335, %c0_336, %c0_337] : memref<9x8x4xbf16, #tpu.memory_space<vmem>>, vector<1x8x4xbf16>
    %483 = vector.shape_cast %482 : vector<1x8x4xbf16> to vector<8x4xbf16>
    %cst_338 = arith.constant dense<0.000000e+00> : vector<256x4xf32>
    %484 = tpu.matmul %481, %483, %cst_338 {dimension_numbers = #tpu.dot_dimension_numbers<[1], [0], [0], [1], [0, 0, 1, 1], [], []>} : vector<256x8xbf16>, vector<8x4xbf16>, vector<256x4xf32> -> vector<256x4xf32>
    %485 = vector.extract_strided_slice %479 {offsets = [256, 0], sizes = [256, 8], strides = [1, 1]} : vector<2304x8xf32> to vector<256x8xf32>
    %486 = arith.truncf %485 : vector<256x8xf32> to vector<256x8xbf16>
    %c1_339 = arith.constant 1 : index
    %c0_340 = arith.constant 0 : index
    %c0_341 = arith.constant 0 : index
    %487 = vector.load %arg17[%c1_339, %c0_340, %c0_341] : memref<9x8x4xbf16, #tpu.memory_space<vmem>>, vector<1x8x4xbf16>
    %488 = vector.shape_cast %487 : vector<1x8x4xbf16> to vector<8x4xbf16>
    %cst_342 = arith.constant dense<0.000000e+00> : vector<256x4xf32>
    %489 = tpu.matmul %486, %488, %cst_342 {dimension_numbers = #tpu.dot_dimension_numbers<[1], [0], [0], [1], [0, 0, 1, 1], [], []>} : vector<256x8xbf16>, vector<8x4xbf16>, vector<256x4xf32> -> vector<256x4xf32>
    %490 = arith.addf %484, %489 : vector<256x4xf32>
    %491 = vector.extract_strided_slice %479 {offsets = [512, 0], sizes = [256, 8], strides = [1, 1]} : vector<2304x8xf32> to vector<256x8xf32>
    %492 = arith.truncf %491 : vector<256x8xf32> to vector<256x8xbf16>
    %c2_343 = arith.constant 2 : index
    %c0_344 = arith.constant 0 : index
    %c0_345 = arith.constant 0 : index
    %493 = vector.load %arg17[%c2_343, %c0_344, %c0_345] : memref<9x8x4xbf16, #tpu.memory_space<vmem>>, vector<1x8x4xbf16>
    %494 = vector.shape_cast %493 : vector<1x8x4xbf16> to vector<8x4xbf16>
    %cst_346 = arith.constant dense<0.000000e+00> : vector<256x4xf32>
    %495 = tpu.matmul %492, %494, %cst_346 {dimension_numbers = #tpu.dot_dimension_numbers<[1], [0], [0], [1], [0, 0, 1, 1], [], []>} : vector<256x8xbf16>, vector<8x4xbf16>, vector<256x4xf32> -> vector<256x4xf32>
    %496 = arith.addf %490, %495 : vector<256x4xf32>
    %497 = vector.extract_strided_slice %479 {offsets = [768, 0], sizes = [256, 8], strides = [1, 1]} : vector<2304x8xf32> to vector<256x8xf32>
    %498 = arith.truncf %497 : vector<256x8xf32> to vector<256x8xbf16>
    %c3_347 = arith.constant 3 : index
    %c0_348 = arith.constant 0 : index
    %c0_349 = arith.constant 0 : index
    %499 = vector.load %arg17[%c3_347, %c0_348, %c0_349] : memref<9x8x4xbf16, #tpu.memory_space<vmem>>, vector<1x8x4xbf16>
    %500 = vector.shape_cast %499 : vector<1x8x4xbf16> to vector<8x4xbf16>
    %cst_350 = arith.constant dense<0.000000e+00> : vector<256x4xf32>
    %501 = tpu.matmul %498, %500, %cst_350 {dimension_numbers = #tpu.dot_dimension_numbers<[1], [0], [0], [1], [0, 0, 1, 1], [], []>} : vector<256x8xbf16>, vector<8x4xbf16>, vector<256x4xf32> -> vector<256x4xf32>
    %502 = arith.addf %496, %501 : vector<256x4xf32>
    %503 = vector.extract_strided_slice %479 {offsets = [1024, 0], sizes = [256, 8], strides = [1, 1]} : vector<2304x8xf32> to vector<256x8xf32>
    %504 = arith.truncf %503 : vector<256x8xf32> to vector<256x8xbf16>
    %c4_351 = arith.constant 4 : index
    %c0_352 = arith.constant 0 : index
    %c0_353 = arith.constant 0 : index
    %505 = vector.load %arg17[%c4_351, %c0_352, %c0_353] : memref<9x8x4xbf16, #tpu.memory_space<vmem>>, vector<1x8x4xbf16>
    %506 = vector.shape_cast %505 : vector<1x8x4xbf16> to vector<8x4xbf16>
    %cst_354 = arith.constant dense<0.000000e+00> : vector<256x4xf32>
    %507 = tpu.matmul %504, %506, %cst_354 {dimension_numbers = #tpu.dot_dimension_numbers<[1], [0], [0], [1], [0, 0, 1, 1], [], []>} : vector<256x8xbf16>, vector<8x4xbf16>, vector<256x4xf32> -> vector<256x4xf32>
    %508 = arith.addf %502, %507 : vector<256x4xf32>
    %509 = vector.extract_strided_slice %479 {offsets = [1280, 0], sizes = [256, 8], strides = [1, 1]} : vector<2304x8xf32> to vector<256x8xf32>
    %510 = arith.truncf %509 : vector<256x8xf32> to vector<256x8xbf16>
    %c5_355 = arith.constant 5 : index
    %c0_356 = arith.constant 0 : index
    %c0_357 = arith.constant 0 : index
    %511 = vector.load %arg17[%c5_355, %c0_356, %c0_357] : memref<9x8x4xbf16, #tpu.memory_space<vmem>>, vector<1x8x4xbf16>
    %512 = vector.shape_cast %511 : vector<1x8x4xbf16> to vector<8x4xbf16>
    %cst_358 = arith.constant dense<0.000000e+00> : vector<256x4xf32>
    %513 = tpu.matmul %510, %512, %cst_358 {dimension_numbers = #tpu.dot_dimension_numbers<[1], [0], [0], [1], [0, 0, 1, 1], [], []>} : vector<256x8xbf16>, vector<8x4xbf16>, vector<256x4xf32> -> vector<256x4xf32>
    %514 = arith.addf %508, %513 : vector<256x4xf32>
    %515 = vector.extract_strided_slice %479 {offsets = [1536, 0], sizes = [256, 8], strides = [1, 1]} : vector<2304x8xf32> to vector<256x8xf32>
    %516 = arith.truncf %515 : vector<256x8xf32> to vector<256x8xbf16>
    %c6_359 = arith.constant 6 : index
    %c0_360 = arith.constant 0 : index
    %c0_361 = arith.constant 0 : index
    %517 = vector.load %arg17[%c6_359, %c0_360, %c0_361] : memref<9x8x4xbf16, #tpu.memory_space<vmem>>, vector<1x8x4xbf16>
    %518 = vector.shape_cast %517 : vector<1x8x4xbf16> to vector<8x4xbf16>
    %cst_362 = arith.constant dense<0.000000e+00> : vector<256x4xf32>
    %519 = tpu.matmul %516, %518, %cst_362 {dimension_numbers = #tpu.dot_dimension_numbers<[1], [0], [0], [1], [0, 0, 1, 1], [], []>} : vector<256x8xbf16>, vector<8x4xbf16>, vector<256x4xf32> -> vector<256x4xf32>
    %520 = arith.addf %514, %519 : vector<256x4xf32>
    %521 = vector.extract_strided_slice %479 {offsets = [1792, 0], sizes = [256, 8], strides = [1, 1]} : vector<2304x8xf32> to vector<256x8xf32>
    %522 = arith.truncf %521 : vector<256x8xf32> to vector<256x8xbf16>
    %c7_363 = arith.constant 7 : index
    %c0_364 = arith.constant 0 : index
    %c0_365 = arith.constant 0 : index
    %523 = vector.load %arg17[%c7_363, %c0_364, %c0_365] : memref<9x8x4xbf16, #tpu.memory_space<vmem>>, vector<1x8x4xbf16>
    %524 = vector.shape_cast %523 : vector<1x8x4xbf16> to vector<8x4xbf16>
    %cst_366 = arith.constant dense<0.000000e+00> : vector<256x4xf32>
    %525 = tpu.matmul %522, %524, %cst_366 {dimension_numbers = #tpu.dot_dimension_numbers<[1], [0], [0], [1], [0, 0, 1, 1], [], []>} : vector<256x8xbf16>, vector<8x4xbf16>, vector<256x4xf32> -> vector<256x4xf32>
    %526 = arith.addf %520, %525 : vector<256x4xf32>
    %527 = vector.extract_strided_slice %479 {offsets = [2048, 0], sizes = [256, 8], strides = [1, 1]} : vector<2304x8xf32> to vector<256x8xf32>
    %528 = arith.truncf %527 : vector<256x8xf32> to vector<256x8xbf16>
    %c8_367 = arith.constant 8 : index
    %c0_368 = arith.constant 0 : index
    %c0_369 = arith.constant 0 : index
    %529 = vector.load %arg17[%c8_367, %c0_368, %c0_369] : memref<9x8x4xbf16, #tpu.memory_space<vmem>>, vector<1x8x4xbf16>
    %530 = vector.shape_cast %529 : vector<1x8x4xbf16> to vector<8x4xbf16>
    %cst_370 = arith.constant dense<0.000000e+00> : vector<256x4xf32>
    %531 = tpu.matmul %528, %530, %cst_370 {dimension_numbers = #tpu.dot_dimension_numbers<[1], [0], [0], [1], [0, 0, 1, 1], [], []>} : vector<256x8xbf16>, vector<8x4xbf16>, vector<256x4xf32> -> vector<256x4xf32>
    %532 = arith.addf %526, %531 : vector<256x4xf32>
    %c0_371 = arith.constant 0 : index
    %c0_372 = arith.constant 0 : index
    %c0_373 = arith.constant 0 : index
    %533 = vector.load %arg21[%c0_371, %c0_372, %c0_373] : memref<1x256x4xf32, #tpu.memory_space<vmem>>, vector<1x256x4xf32>
    %534 = vector.shape_cast %533 : vector<1x256x4xf32> to vector<256x4xf32>
    %535 = vector.shape_cast %532 : vector<256x4xf32> to vector<1x256x4xf32>
    tpu.vector_store %arg21[%c0_371, %c0_372, %c0_373], %535 {strides = array<i32>} : memref<1x256x4xf32, #tpu.memory_space<vmem>>, vector<1x256x4xf32>,
    return
  }
  func.func @transform_0(%arg0: i32) -> (i32, i32, i32) {
    %c0_i32 = arith.constant 0 : i32
    %c0_i32_0 = arith.constant 0 : i32
    %c0_i32_1 = arith.constant 0 : i32
    return %arg0, %c0_i32, %c0_i32_0 : i32, i32, i32
  }
  func.func @transform_1(%arg0: i32) -> (i32, i32, i32) {
    %c0_i32 = arith.constant 0 : i32
    %c0_i32_0 = arith.constant 0 : i32
    %c0_i32_1 = arith.constant 0 : i32
    %c0_i32_2 = arith.constant 0 : i32
    return %c0_i32, %c0_i32_0, %c0_i32_1 : i32, i32, i32
  }
  func.func @transform_2(%arg0: i32) -> (i32, i32, i32) {
    %c0_i32 = arith.constant 0 : i32
    %c0_i32_0 = arith.constant 0 : i32
    %c0_i32_1 = arith.constant 0 : i32
    %c0_i32_2 = arith.constant 0 : i32
    return %c0_i32, %c0_i32_0, %c0_i32_1 : i32, i32, i32
  }
  func.func @transform_3(%arg0: i32) -> (i32, i32, i32) {
    %c0_i32 = arith.constant 0 : i32
    %c0_i32_0 = arith.constant 0 : i32
    %c0_i32_1 = arith.constant 0 : i32
    %c0_i32_2 = arith.constant 0 : i32
    return %c0_i32, %c0_i32_0, %c0_i32_1 : i32, i32, i32
  }
  func.func @transform_4(%arg0: i32) -> (i32, i32, i32) {
    %c0_i32 = arith.constant 0 : i32
    %c0_i32_0 = arith.constant 0 : i32
    %c0_i32_1 = arith.constant 0 : i32
    %c0_i32_2 = arith.constant 0 : i32
    return %c0_i32, %c0_i32_0, %c0_i32_1 : i32, i32, i32
  }
  func.func @transform_5(%arg0: i32) -> (i32, i32, i32) {
    %c0_i32 = arith.constant 0 : i32
    %c0_i32_0 = arith.constant 0 : i32
    %c0_i32_1 = arith.constant 0 : i32
    %c0_i32_2 = arith.constant 0 : i32
    return %c0_i32, %c0_i32_0, %c0_i32_1 : i32, i32, i32
  }
  func.func @transform_6(%arg0: i32) -> (i32, i32) {
    %c0_i32 = arith.constant 0 : i32
    %c0_i32_0 = arith.constant 0 : i32
    %c0_i32_1 = arith.constant 0 : i32
    return %c0_i32, %c0_i32_0 : i32, i32
  }
  func.func @transform_7(%arg0: i32) -> (i32, i32) {
    %c0_i32 = arith.constant 0 : i32
    %c0_i32_0 = arith.constant 0 : i32
    %c0_i32_1 = arith.constant 0 : i32
    return %c0_i32, %c0_i32_0 : i32, i32
  }
  func.func @transform_8(%arg0: i32) -> (i32, i32) {
    %c0_i32 = arith.constant 0 : i32
    %c0_i32_0 = arith.constant 0 : i32
    %c0_i32_1 = arith.constant 0 : i32
    return %c0_i32, %c0_i32_0 : i32, i32
  }
  func.func @transform_9(%arg0: i32) -> (i32, i32, i32) {
    %c0_i32 = arith.constant 0 : i32
    %c0_i32_0 = arith.constant 0 : i32
    %c0_i32_1 = arith.constant 0 : i32
    %c0_i32_2 = arith.constant 0 : i32
    return %c0_i32, %c0_i32_0, %c0_i32_1 : i32, i32, i32
  }
  func.func @transform_10(%arg0: i32) -> (i32, i32) {
    %c0_i32 = arith.constant 0 : i32
    %c0_i32_0 = arith.constant 0 : i32
    %c0_i32_1 = arith.constant 0 : i32
    return %c0_i32, %c0_i32_0 : i32, i32
  }
  func.func @transform_11(%arg0: i32) -> (i32, i32, i32) {
    %c0_i32 = arith.constant 0 : i32
    %c0_i32_0 = arith.constant 0 : i32
    %c0_i32_1 = arith.constant 0 : i32
    %c0_i32_2 = arith.constant 0 : i32
    return %c0_i32, %c0_i32_0, %c0_i32_1 : i32, i32, i32
  }
  func.func @transform_12(%arg0: i32) -> (i32, i32, i32) {
    %c0_i32 = arith.constant 0 : i32
    %c0_i32_0 = arith.constant 0 : i32
    %c0_i32_1 = arith.constant 0 : i32
    %c0_i32_2 = arith.constant 0 : i32
    return %c0_i32, %c0_i32_0, %c0_i32_1 : i32, i32, i32
  }
  func.func @transform_13(%arg0: i32) -> (i32, i32, i32) {
    %c0_i32 = arith.constant 0 : i32
    %c0_i32_0 = arith.constant 0 : i32
    %c0_i32_1 = arith.constant 0 : i32
    %c0_i32_2 = arith.constant 0 : i32
    return %c0_i32, %c0_i32_0, %c0_i32_1 : i32, i32, i32
  }
  func.func @transform_14(%arg0: i32) -> (i32, i32, i32) {
    %c0_i32 = arith.constant 0 : i32
    %c0_i32_0 = arith.constant 0 : i32
    %c0_i32_1 = arith.constant 0 : i32
    %c0_i32_2 = arith.constant 0 : i32
    return %c0_i32, %c0_i32_0, %c0_i32_1 : i32, i32, i32
  }
  func.func @transform_15(%arg0: i32) -> (i32, i32, i32) {
    %c0_i32 = arith.constant 0 : i32
    %c0_i32_0 = arith.constant 0 : i32
    %c0_i32_1 = arith.constant 0 : i32
    %c0_i32_2 = arith.constant 0 : i32
    return %c0_i32, %c0_i32_0, %c0_i32_1 : i32, i32, i32
  }
  func.func @transform_16(%arg0: i32) -> (i32, i32, i32) {
    %c0_i32 = arith.constant 0 : i32
    %c0_i32_0 = arith.constant 0 : i32
    %c0_i32_1 = arith.constant 0 : i32
    %c0_i32_2 = arith.constant 0 : i32
    return %c0_i32, %c0_i32_0, %c0_i32_1 : i32, i32, i32
  }
  func.func @transform_17(%arg0: i32) -> (i32, i32) {
    %c0_i32 = arith.constant 0 : i32
    %c0_i32_0 = arith.constant 0 : i32
    %c0_i32_1 = arith.constant 0 : i32
    return %c0_i32, %c0_i32_0 : i32, i32
  }
  func.func @transform_18(%arg0: i32) -> (i32, i32) {
    %c0_i32 = arith.constant 0 : i32
    %c0_i32_0 = arith.constant 0 : i32
    %c0_i32_1 = arith.constant 0 : i32
    return %c0_i32, %c0_i32_0 : i32, i32
  }
  func.func @transform_19(%arg0: i32) -> (i32, i32, i32) {
    %c0_i32 = arith.constant 0 : i32
    %c0_i32_0 = arith.constant 0 : i32
    %c0_i32_1 = arith.constant 0 : i32
    return %arg0, %c0_i32, %c0_i32_0 : i32, i32, i32
  }
  func.func @transform_20(%arg0: i32) -> (i32, i32, i32) {
    %c0_i32 = arith.constant 0 : i32
    %c0_i32_0 = arith.constant 0 : i32
    %c0_i32_1 = arith.constant 0 : i32
    return %arg0, %c0_i32, %c0_i32_0 : i32, i32, i32
  }
}

</mosaic_0001>

<bundles_post_ra>
// kernel: cnnae_forward.1
= control target key start
LH: loop header
LB: loop body
LE: loop exit
PB: predicated region body
PF: predicated region fallthrough
CT: control target
= control target key end

     0   :  { %s20185_s0 = inlined_call_operand.vmem [shape: bf16[2,576,4], index: 0, kind: input, shape index: {}]   ;;  %s20186_s1 = inlined_call_operand.vmem [shape: bf16[9,4,8], index: 1, kind: input, shape index: {}]   ;;  %s20187_s2 = inlined_call_operand.vmem [shape: bf16[9,8,16], index: 2, kind: input, shape index: {}]   ;;  %s20188_s3 = inlined_call_operand.vmem [shape: bf16[9,16,32], index: 3, kind: input, shape index: {}]   ;;  %s20189_s4 = inlined_call_operand.vmem [shape: bf16[9,32,32], index: 4, kind: input, shape index: {}]   ;;  %s20190_s5 = inlined_call_operand.vmem [shape: bf16[9,32,32], index: 5, kind: input, shape index: {}]   ;;  %s20191_s6 = inlined_call_operand.vmem [shape: bf16[144,64], index: 6, kind: input, shape index: {}]   ;;  %s20192_s7 = inlined_call_operand.vmem [shape: bf16[72,16], index: 7, kind: input, shape index: {}]   ;;  %s20193_s8 = inlined_call_operand.vmem [shape: bf16[72,8], index: 8, kind: input, shape index: {}]   ;;  %s20194_s9 = inlined_call_operand.vmem [shape: bf16[4,32,32], index: 9, kind: input, shape index: {}]   ;;  %s20195_s10 = inlined_call_operand.vmem [shape: f32[1,32], index: 10, kind: input, shape index: {}]   ;;  %s20196_s11 = inlined_call_operand.vmem [shape: bf16[4,32,32], index: 11, kind: input, shape index: {}]   ;;  %s20197_s12 = inlined_call_operand.vmem [shape: f32[4,1,32], index: 12, kind: input, shape index: {}]   ;;  %s20198_s13 = inlined_call_operand.vmem [shape: f32[4,144,1], index: 13, kind: input, shape index: {}]   ;;  %s20199_s14 = inlined_call_operand.vmem [shape: bf16[9,32,16], index: 14, kind: input, shape index: {}]   ;;  %s20200_s15 = inlined_call_operand.vmem [shape: bf16[9,16,8], index: 15, kind: input, shape index: {}]   ;;  %s20201_s16 = inlined_call_operand.vmem [shape: bf16[9,8,4], index: 16, kind: input, shape index: {}]   ;;  %s20202_s17 = inlined_call_operand.vmem [shape: bf16[576,16], index: 17, kind: input, shape index: {}]   ;;  %s20203_s18 = inlined_call_operand.vmem [shape: bf16[2304,64], index: 18, kind: input, shape index: {}]   ;;  %s20204_s19 = inlined_call_operand.hbm [shape: f32[2,1,32], index: 19, kind: output, shape index: {0}]   ;;  %s20205_s20 = inlined_call_operand.vmem [shape: f32[2,256,4], index: 20, kind: output, shape index: {1}]  }
   0x1   :  { %20224 = sst [smem:[#allocation36_spill]] %s20185_s0 }
   0x2   :  { %20225 = sst [smem:[#allocation37_spill]] %s20186_s1 }
   0x3   :  { %20226 = sst [smem:[#allocation38_spill]] %s20187_s2 }
   0x4   :  { %20227 = sst [smem:[#allocation39_spill]] %s20188_s3 }
   0x5   :  { %20228 = sst [smem:[#allocation40_spill]] %s20189_s4 }
   0x6   :  { %20229 = sst [smem:[#allocation41_spill]] %s20190_s5 }
   0x7   :  { %20230 = sst [smem:[#allocation42_spill]] %s20191_s6 }
   0x8   :  { %20231 = sst [smem:[#allocation43_spill]] %s20192_s7 }
   0x9   :  { %20232 = sst [smem:[#allocation44_spill]] %s20205_s20 }
   0xa   :  { %26 = vsyncpa [#allocation3], 0 }
   0xb   :  { %28 = vsyncpa [#allocation3 + $0x1], 0  ;;  %s16652_s1 = smov 0   ;;  %s16654_s22 = smov 0  }
   0xc   :  { %s16656_s23 = smov 0   ;;  %s16658_s24 = smov 0  }
   0xd LB: > { %20233 = sst [smem:[#allocation5_spill]] %s16529_s1  ;;  %s16673_s2 = sadd.s32 4294967295, %s16541_s24   ;;  %s16541_s24 = sphi %s16658_s24, %s20307_s24   ;;  %s16537_s23 = sphi %s16656_s23, %s20309_s23   ;;  %s16533_s22 = sphi %s16654_s22, %s20311_s22   ;;  %s16529_s1 = sphi %s16652_s1, %s20310_s1  }
   0xe   : > { %20234 = sst [smem:[#allocation6_spill]] %s16537_s23  ;;  %s12534_s25 = sadd.s32 4294967294, %s16541_s24  }
   0xf   : > { %20235 = sst [smem:[#allocation7_spill]] %s16541_s24  ;;  %s16677_s3 = sadd.s32 1, %s16541_s24  }
  0x10   : > { %20236 = sst [smem:[#allocation8_spill]] %s16677_s3  ;;  %s445_s26 = sadd.s32 1, %s16537_s23 }
  0x11   : > { %s442_s27 = ssub.s32 %s16541_s24, %s16677_s3  ;;  %p455_p0 = scmp.ne.s32.totalorder %s16537_s23, %s16533_s22 }
  0x12   : > { %p443_p1 = scmp.eq.s32.totalorder %s442_s27, 0  ;;  %p456_p2 = scmp.eq.s32.totalorder %s16673_s2, 1 }
  0x13   : > { %p461_p3 = scmp.ne.s32.totalorder %s16533_s22, %s16529_s1  ;;  %p462_p4 = scmp.eq.s32.totalorder %s12534_s25, 1 }
  0x14   : > { %s16688_s28 = scalar_select %p443_p1, %s16537_s23, %s445_s26  }
  0x15   : > { %p16690_p5 = por %p456_p2, %p455_p0  ;;  %p16694_p6 = por %p462_p4, %p461_p3 }
  0x16   : > { %20237 = sst [smem:[#allocation9_spill]] %s16688_s28  ;;  %p12537_p7 = scmp.ge.s32.totalorder %s16541_s24, 1 }
  0x17   : > { %s20239_s29 = scalar_select %p16694_p6, 1, 0 }
  0x18   : > { %p568_p8 = scmp.lt.s32.totalorder %s16541_s24, 3 }
  0x19   : > { %20240 = sst [smem:[#allocation10_spill]] %s20239_s29 }
  0x1a   : > { %p569_p9 = pnand %p12537_p7, %p568_p8 }
  0x1c   : > { %572 = sbr.rel (%p569_p9) target bundleno = 5015 (0x1397), region = 96 }
  0x23   : > { %s20241_s21 = sld [smem:[#allocation37_spill]]  ;;  %vm749_vm0 = vcmask 1041408   ;;  %p630_p10 = scmp.lt.s32.totalorder %s16673_s2, 1  ;;  %vm736_vm1 = vcmask 31744   ;;  %v20217_v54 = vmov 0.0   ;;  %vm16544_vm2 = vmmov 0  }
  0x24   : > { %s20242_s23 = sld [smem:[#allocation36_spill]]  ;;  %15528 = vmatprep.subr.bf16.mxu1 %v20217_v54  ;;  %14288 = vmatprep.mubr.msk.bf16.mxu1 %vm16544_vm2, %v20217_v54  ;;  %s20243_s6 = sld [smem:[#allocation42_spill]]  ;;  %vm1763_vm3 = vcmask 523264   ;;  %vm1905_vm4 = vcmask 1043456   ;;  %vm1901_vm5 = vcmask 64512   ;;  %vm2396_vm6 = vcmask 130048  }
  0x25   : > { %s16710_s27 = scalar_select %p630_p10, %s16673_s2, 1  ;;  %vm3114_vm7 = vcmask 261120   ;;  %vm4530_vm8 = vcmask 253952  }
  0x26   : > { %s20246_s7 = sld [smem:[#allocation43_spill]]  ;;  %s20247_s26 = sld [smem:[#allocation39_spill]] }
  0x27   : > { %s16111_s30 = smul.u32 288, %s16710_s27  ;;  %s20248_s1 = sld [smem:[#allocation40_spill]] }
  0x28   : > { %s20250_s5 = sld [smem:[#allocation41_spill]]  ;;  %s20223_s20 = sand.u32 1, %s16533_s22  }
  0x29   : > { %v12541_v0 = vld [vmem:[%s20241_s21 + $0x2] sm:$0x3]  ;;  %v713_v2 = vld [vmem:[%s20241_s21] sm:$0x3]  ;;  %v12558_v4 = vld [vmem:[%s20241_s21 + $0x4] sm:$0x3] }
  0x2a   : > { %16093 = vmatprep.subr.msk.bf16.mxu0 %vm749_vm0, %v12541_v0  ;;  %v751_v1 = vsel %vm749_vm0, %v12541_v0, 0  ;;  %s16717_s3 = scalar_lea.vmem %s20242_s23, %s16111_s30  ;;  %v851_v6 = vsel %vm749_vm0, %v713_v2, 0  ;;  %v953_v12 = vsel %vm749_vm0, %v12558_v4, 0  ;;  %v12567_v13 = vld [vmem:[%s20241_s21 + $0x6] sm:$0x3]  ;;  %s20244_s23 = sld [smem:[#allocation38_spill]] }
  0x2b   : > { %14175 = vmatpush3.bf16.msra.mxu0 %v751_v1  ;;  %v16156_v3 = vld [vmem:[%s16717_s3 + $0x20] sm:$0xff]   ;;  %v16157_v5 = vld [vmem:[%s16717_s3 + $0x28] sm:$0xff]   ;;  %v16158_v7 = vld [vmem:[%s16717_s3 + $0x30] sm:$0xff]   ;;  %v1063_v23 = vsel %vm749_vm0, %v12567_v13, 0  ;;  %s17625_s0 = scalar_lea.vmem [#allocation2], %s20223_s20  ;;  %s13570_s25 = sshll.u32 %s16673_s2, 4 }
  0x2c   : > { %16094 = vmatprep.subr.msk.bf16.mxu0 %vm749_vm0, %v713_v2  ;;  %14176 = vmatprep.mubr.msk.bf16.mxu0 %vm736_vm1, %v16156_v3  ;;  %v16159_v8 = vld [vmem:[%s16717_s3 + $0x38] sm:$0xff]   ;;  %v16160_v9 = vld [vmem:[%s16717_s3] sm:$0xff]   ;;  %v16161_v10 = vld [vmem:[%s16717_s3 + $0x8] sm:$0xff]   ;;  %s20302_s24 = sand.u32 1, %s16533_s22  }
  0x2d   : > { %v16162_v11 = vld [vmem:[%s16717_s3 + $0x10] sm:$0xff]   ;;  %v16163_v14 = vld [vmem:[%s16717_s3 + $0x18] sm:$0xff]   ;;  %v16164_v15 = vld [vmem:[%s16717_s3 + $0x40] sm:$0xff]   ;;  %s12434_s29 = scalar_lea.sflag [#allocation3], %s20302_s24 }
  0x2e   : > { %14177 = vmatmul.mubr.msk.bf16.vlgmr.msra.gmra.mrb[0].mxu0 %vm736_vm1, %v16157_v5  ;;  %v12576_v16 = vld [vmem:[%s20241_s21 + $0x8] sm:$0x3]  ;;  %v12585_v17 = vld [vmem:[%s20241_s21 + $0xa] sm:$0x3]  ;;  %v12594_v18 = vld [vmem:[%s20241_s21 + $0xc] sm:$0x3] }
  0x2f   : > { %14180 = vmatprep.mubr.msk.bf16.mxu0 %vm736_vm1, %v16158_v7  ;;  %14185 = vmatpush3.bf16.msra.mxu0 %v851_v6  ;;  %v12603_v19 = vld [vmem:[%s20241_s21 + $0xe] sm:$0x3]  ;;  %v12612_v20 = vld [vmem:[%s20241_s21 + $0x10] sm:$0x3]  ;;  %v1173_v24 = vsel %vm749_vm0, %v12576_v16, 0  ;;  %v1283_v25 = vsel %vm749_vm0, %v12585_v17, 0 }
  0x30   : > { %16095 = vmatprep.subr.msk.bf16.mxu0 %vm749_vm0, %v12558_v4  ;;  %v16165_v21 = vld [vmem:[%s16717_s3 + $0x48] sm:$0xff]   ;;  %v16166_v22 = vld [vmem:[%s16717_s3 + $0x50] sm:$0xff]   ;;  %v1393_v26 = vsel %vm749_vm0, %v12594_v18, 0  ;;  %v1503_v27 = vsel %vm749_vm0, %v12603_v19, 0  ;;  %v1613_v28 = vsel %vm749_vm0, %v12612_v20, 0  ;;  %v16167_v29 = vld [vmem:[%s16717_s3 + $0x58] sm:$0xff]   ;;  %s20245_s28 = smov %s20244_s23 }
  0x31   : > { %v16168_v30 = vld [vmem:[%s16717_s3 + $0x60] sm:$0xff]   ;;  %v16169_v31 = vld [vmem:[%s16717_s3 + $0x68] sm:$0xff]   ;;  %v16170_v32 = vld [vmem:[%s16717_s3 + $0x70] sm:$0xff]  }
  0x32   : > { %v16171_v33 = vld [vmem:[%s16717_s3 + $0x78] sm:$0xff]   ;;  %v16172_v34 = vld [vmem:[%s16717_s3 + $0x80] sm:$0xff]   ;;  %v16173_v35 = vld [vmem:[%s16717_s3 + $0x88] sm:$0xff]  }
  0x33   : > { %v16174_v36 = vld [vmem:[%s16717_s3 + $0x90] sm:$0xff]   ;;  %v16175_v37 = vld [vmem:[%s16717_s3 + $0x98] sm:$0xff]   ;;  %v16176_v38 = vld [vmem:[%s16717_s3 + $0xa0] sm:$0xff]  }
  0x34   : > { %v16177_v39 = vld [vmem:[%s16717_s3 + $0xa8] sm:$0xff]   ;;  %v16178_v40 = vld [vmem:[%s16717_s3 + $0xb0] sm:$0xff]   ;;  %v16179_v41 = vld [vmem:[%s16717_s3 + $0xb8] sm:$0xff]  }
  0x35   : > { %v16180_v42 = vld [vmem:[%s16717_s3 + $0xc0] sm:$0xff]   ;;  %v16181_v43 = vld [vmem:[%s16717_s3 + $0xc8] sm:$0xff]   ;;  %v16182_v44 = vld [vmem:[%s16717_s3 + $0xd0] sm:$0xff]  }
  0x36   : > { %14181 = vmatmul.mubr.msk.bf16.gmra.mrb[4].mxu0 %vm736_vm1, %v16159_v8  ;;  %v16183_v45 = vld [vmem:[%s16717_s3 + $0xd8] sm:$0xff]   ;;  %v16184_v46 = vld [vmem:[%s16717_s3 + $0xe0] sm:$0xff]   ;;  %v16185_v47 = vld [vmem:[%s16717_s3 + $0xe8] sm:$0xff]  }
  0x37   : > { %14186 = vmatprep.mubr.msk.bf16.mxu0 %vm736_vm1, %v16160_v9  ;;  %v16186_v48 = vld [vmem:[%s16717_s3 + $0xf0] sm:$0xff]   ;;  %v16187_v49 = vld [vmem:[%s16717_s3 + $0xf8] sm:$0xff]   ;;  %v16188_v50 = vld [vmem:[%s16717_s3 + $0x100] sm:$0xff]  }
  0x38   : > { %v16189_v51 = vld [vmem:[%s16717_s3 + $0x108] sm:$0xff]   ;;  %v16190_v52 = vld [vmem:[%s16717_s3 + $0x110] sm:$0xff]   ;;  %v16191_v53 = vld [vmem:[%s16717_s3 + $0x118] sm:$0xff]   ;;  %s20249_s3 = smov %s20248_s1 }
  0x3e   : > { %14187 = vmatmul.mubr.msk.bf16.vlgmr.msra.gmra.mrb[0].mxu0 %vm736_vm1, %v16161_v10 }
  0x3f   : > { %14190 = vmatprep.mubr.msk.bf16.mxu0 %vm736_vm1, %v16162_v11  ;;  %14195 = vmatpush3.bf16.msra.mxu0 %v953_v12  ;;  %v16192_v11 = vld [vmem:[%s20243_s6] sm:$0xff]  }
  0x40   : > { %16096 = vmatprep.subr.msk.bf16.mxu0 %vm749_vm0, %v12567_v13  ;;  %v16196_v12 = vld [vmem:[%s20243_s6 + $0x20] sm:$0xff]   ;;  %v16193_v13 = vld [vmem:[%s20243_s6 + $0x8] sm:$0xff]  }
  0x46   : > { %14191 = vmatmul.mubr.msk.bf16.gmra.mrb[4].mxu0 %vm736_vm1, %v16163_v14  ;;  %v16197_v14 = vld [vmem:[%s20243_s6 + $0x28] sm:$0xff]  }
  0x47   : > { %14196 = vmatprep.mubr.msk.bf16.mxu0 %vm736_vm1, %v16164_v15  ;;  %v16194_v15 = vld [vmem:[%s20243_s6 + $0x10] sm:$0xff]  }
  0x4e   : > { %14197 = vmatmul.mubr.msk.bf16.vlgmr.msra.gmra.mrb[0].mxu0 %vm736_vm1, %v16165_v21 }
  0x4f   : > { %14200 = vmatprep.mubr.msk.bf16.mxu0 %vm736_vm1, %v16166_v22  ;;  %14205 = vmatpush3.bf16.msra.mxu0 %v1063_v23 }
  0x50   : > { %16097 = vmatprep.subr.msk.bf16.mxu0 %vm749_vm0, %v12576_v16  ;;  %v16198_v16 = vld [vmem:[%s20243_s6 + $0x30] sm:$0xff]  }
  0x56   : > { %14201 = vmatmul.mubr.msk.bf16.gmra.mrb[4].mxu0 %vm736_vm1, %v16167_v29 }
  0x57   : > { %14206 = vmatprep.mubr.msk.bf16.mxu0 %vm736_vm1, %v16168_v30 }
  0x5e   : > { %14207 = vmatmul.mubr.msk.bf16.vlgmr.msra.gmra.mrb[0].mxu0 %vm736_vm1, %v16169_v31 }
  0x5f   : > { %14210 = vmatprep.mubr.msk.bf16.mxu0 %vm736_vm1, %v16170_v32  ;;  %14215 = vmatpush3.bf16.msra.mxu0 %v1173_v24 }
  0x60   : > { %16098 = vmatprep.subr.msk.bf16.mxu0 %vm749_vm0, %v12585_v17  ;;  %v16195_v17 = vld [vmem:[%s20243_s6 + $0x18] sm:$0xff]  }
  0x66   : > { %14211 = vmatmul.mubr.msk.bf16.gmra.mrb[4].mxu0 %vm736_vm1, %v16171_v33  ;;  %v1897_v33 = vld [vmem:[%s20245_s28] sm:$0xf] }
  0x67   : > { %14216 = vmatprep.mubr.msk.bf16.mxu0 %vm736_vm1, %v16172_v34 }
  0x6e   : > { %14217 = vmatmul.mubr.msk.bf16.vlgmr.msra.gmra.mrb[0].mxu0 %vm736_vm1, %v16173_v35 }
  0x6f   : > { %14220 = vmatprep.mubr.msk.bf16.mxu0 %vm736_vm1, %v16174_v36  ;;  %14225 = vmatpush3.bf16.msra.mxu0 %v1283_v25 }
  0x70   : > { %16099 = vmatprep.subr.msk.bf16.mxu0 %vm749_vm0, %v12594_v18  ;;  %v16199_v18 = vld [vmem:[%s20243_s6 + $0x38] sm:$0xff]  }
  0x76   : > { %14221 = vmatmul.mubr.msk.bf16.gmra.mrb[4].mxu0 %vm736_vm1, %v16175_v37 }
  0x77   : > { %14226 = vmatprep.mubr.msk.bf16.mxu0 %vm736_vm1, %v16176_v38 }
  0x7e   : > { %14227 = vmatmul.mubr.msk.bf16.vlgmr.msra.gmra.mrb[0].mxu0 %vm736_vm1, %v16177_v39 }
  0x7f   : > { %14230 = vmatprep.mubr.msk.bf16.mxu0 %vm736_vm1, %v16178_v40  ;;  %14235 = vmatpush3.bf16.msra.mxu0 %v1393_v26 }
  0x80   : > { %16100 = vmatprep.subr.msk.bf16.mxu0 %vm749_vm0, %v12603_v19  ;;  %v16200_v19 = vld [vmem:[%s20243_s6 + $0x40] sm:$0xff]   ;;  %s16546_s6 = smov [#allocation2]  }
  0x81   : > { %s16483_s20 = sshll.u32 %s16546_s6, 4  ;;  %s16484_s20 = int_to_ptr.vmem [resolvable:$false] %s16483_s20 }
  0x86   : > { %14231 = vmatmul.mubr.msk.bf16.gmra.mrb[4].mxu0 %vm736_vm1, %v16179_v41  ;;  %v1954_v41 = vsel %vm1905_vm4, %v1897_v33, 0 }
  0x87   : > { %14236 = vmatprep.mubr.msk.bf16.mxu0 %vm736_vm1, %v16180_v42 }
  0x8e   : > { %14237 = vmatmul.mubr.msk.bf16.vlgmr.msra.gmra.mrb[0].mxu0 %vm736_vm1, %v16181_v43 }
  0x8f   : > { %14240 = vmatprep.mubr.msk.bf16.mxu0 %vm736_vm1, %v16182_v44  ;;  %14245 = vmatpush3.bf16.msra.mxu0 %v1503_v27 }
  0x90   : > { %16101 = vmatprep.subr.msk.bf16.mxu0 %vm749_vm0, %v12612_v20  ;;  %v12639_v20 = vld [vmem:[%s20244_s23 + $0x4] sm:$0xf] }
  0x91   : > { %v1907_v21 = vsel %vm1905_vm4, %v12639_v20, 0 }
  0x96   : > { %14241 = vmatmul.mubr.msk.bf16.gmra.mrb[4].mxu0 %vm736_vm1, %v16183_v45 }
  0x97   : > { %14246 = vmatprep.mubr.msk.bf16.mxu0 %vm736_vm1, %v16184_v46 }
  0x9e   : > { %14247 = vmatmul.mubr.msk.bf16.vlgmr.msra.gmra.mrb[0].mxu0 %vm736_vm1, %v16185_v47 }
  0x9f   : > { %14250 = vmatprep.mubr.msk.bf16.mxu0 %vm736_vm1, %v16186_v48  ;;  %14255 = vmatpush3.bf16.msra.mxu0 %v1613_v28 }
  0xa0   : > { %14264 = vmatprep.subr.bf16.mxu0 %v20217_v54 }
  0xa6   : > { %14251 = vmatmul.mubr.msk.bf16.gmra.mrb[4].mxu0 %vm736_vm1, %v16187_v49 }
  0xa7   : > { %14256 = vmatprep.mubr.msk.bf16.mxu0 %vm736_vm1, %v16188_v50 }
  0xae   : > { %14257 = vmatmul.mubr.msk.bf16.vlgmr.msra.gmra.mrb[0].mxu0 %vm736_vm1, %v16189_v51 }
  0xaf   : > { %14260 = vmatprep.mubr.msk.bf16.mxu0 %vm736_vm1, %v16190_v52 }
  0xb6   : > { %14261 = vmatmul.mubr.msk.bf16.gmra.mrb[4].mxu0 %vm736_vm1, %v16191_v53 }
  0xb7   : > { %14272 = vmatprep.mubr.msk.bf16.mxu0 %vm16544_vm2, %v20217_v54 }
 0x181   : > { %v14258_v55 = vpop.f32.mrb[0].mxu0 }
 0x182   : > { %v1649_v56 = vpop.f32.mrb[1].mxu0  ;;  %v1690_v58 = vmax.f32 %v14258_v55, 0.0  ;;  %v12642_v55 = vld [vmem:[%s20245_s28 + $0x8] sm:$0xf] }
 0x183   : > { %v14259_v57 = vpop.f32.mrb[2].mxu0  ;;  %v1688_v61 = vmax.f32 %v1649_v56, 0.0  ;;  %v2004_v56 = vsel %vm1905_vm4, %v12642_v55, 0 }
 0x184   : > { %v1691_v59 = vmax.f32 %v14259_v57, 0.0  ;;  %v1652_v60 = vpop.f32.mrb[3].mxu0 }
 0x185   : > { %v1689_v62 = vmax.f32 %v1652_v60, 0.0 }
 0x186   : > { %v1715_v63 = vpack.c.bf16 %v1691_v59, %v1690_v58 }
 0x187   : > { %v1714_v0 = vpack.c.bf16 %v1689_v62, %v1688_v61 }
 0x189   : > { %v14262_v1 = vpop.f32.mrb[4].mxu0  ;;  %14265 = vmatpush3.bf16.msra.mxu0 %v1714_v0  ;;  %15532 = vmatpush3.bf16.msra.mxu1 %v1714_v0 }
 0x18a   : > { %v1665_v2 = vpop.f32.mrb[5].mxu0  ;;  %14266 = vmatprep.subr.bf16.mxu0 %v20217_v54  ;;  %15529 = vmatprep.subr.bf16.mxu1 %v20217_v54  ;;  %v1694_v4 = vmax.f32 %v14262_v1, 0.0 }
 0x18b   : > { %v14263_v3 = vpop.f32.mrb[6].mxu0  ;;  %v1692_v7 = vmax.f32 %v1665_v2, 0.0 }
 0x18c   : > { %v1695_v5 = vmax.f32 %v14263_v3, 0.0  ;;  %v1668_v6 = vpop.f32.mrb[7].mxu0  ;;  %v12644_v3 = vld [vmem:[%s20245_s28 + $0xc] sm:$0xf] }
 0x18d   : > { %v1693_v8 = vmax.f32 %v1668_v6, 0.0  ;;  %14267 = vmatpush3.bf16.msra.mxu0 %v1715_v63  ;;  %15533 = vmatpush3.bf16.msra.mxu1 %v1715_v63 }
 0x18e   : > { %v1717_v9 = vpack.c.bf16 %v1695_v5, %v1694_v4  ;;  %14268 = vmatprep.subr.bf16.mxu0 %v20217_v54  ;;  %15530 = vmatprep.subr.bf16.mxu1 %v20217_v54 }
 0x18f   : > { %v1716_v10 = vpack.c.bf16 %v1693_v8, %v1692_v7  ;;  %v2056_v7 = vsel %vm1905_vm4, %v12644_v3, 0  ;;  %v16213_v3 = vld [vmem:[%s20247_s26 + $0x38] sm:$0xff]  }
 0x191   : > { %14269 = vmatpush3.bf16.msra.mxu0 %v1716_v10  ;;  %15534 = vmatpush3.bf16.msra.mxu1 %v1716_v10  ;;  %v12646_v10 = vld [vmem:[%s20245_s28 + $0x10] sm:$0xf] }
 0x192   : > { %14270 = vmatprep.subr.bf16.mxu0 %v20217_v54  ;;  %15531 = vmatprep.subr.bf16.mxu1 %v20217_v54 }
 0x195   : > { %14271 = vmatpush3.bf16.msra.mxu0 %v1717_v9  ;;  %15535 = vmatpush3.bf16.msra.mxu1 %v1717_v9 }
 0x196   : > { %14308 = vmatprep.subr.bf16.mxu1 %v20217_v54  ;;  %14362 = vmatprep.subr.bf16.mxu0 %v20217_v54 }
 0x198   : > { %14273 = vmatmul.mubr.msk.bf16.vlgmr.msra.gmra.mrb[8].mxu0 %vm1763_vm3, %v16192_v11  ;;  %14289 = vmatmul.mubr.msk.bf16.vlgmr.msra.gmra.mrb[0].mxu1 %vm1763_vm3, %v16196_v12  ;;  %v2108_v11 = vsel %vm1905_vm4, %v12646_v10, 0  ;;  %v12648_v12 = vld [vmem:[%s20245_s28 + $0x14] sm:$0xf] }
 0x199   : > { %14276 = vmatprep.mubr.msk.bf16.mxu0 %vm16544_vm2, %v20217_v54  ;;  %14292 = vmatprep.mubr.msk.bf16.mxu1 %vm16544_vm2, %v20217_v54 }
 0x19a   : > { %14309 = vmatpush3.bf16.msra.mxu1 %v1907_v21 }
 0x19b   : > { %14314 = vmatprep.subr.bf16.mxu1 %v20217_v54 }
 0x1a0   : > { %14277 = vmatmul.mubr.msk.bf16.gmra.mrb[12].mxu0 %vm1763_vm3, %v16193_v13  ;;  %14293 = vmatmul.mubr.msk.bf16.gmra.mrb[4].mxu1 %vm1763_vm3, %v16197_v14  ;;  %v2160_v13 = vsel %vm1905_vm4, %v12648_v12, 0  ;;  %v12650_v14 = vld [vmem:[%s20245_s28 + $0x18] sm:$0xf] }
 0x1a1   : > { %14280 = vmatprep.mubr.msk.bf16.mxu0 %vm16544_vm2, %v20217_v54  ;;  %14296 = vmatprep.mubr.msk.bf16.mxu1 %vm16544_vm2, %v20217_v54 }
 0x1a8   : > { %14281 = vmatmul.mubr.msk.bf16.gmra.mrb[16].mxu0 %vm1763_vm3, %v16194_v15  ;;  %14297 = vmatmul.mubr.msk.bf16.gmra.mrb[8].mxu1 %vm1763_vm3, %v16198_v16  ;;  %v2212_v15 = vsel %vm1905_vm4, %v12650_v14, 0  ;;  %v12652_v16 = vld [vmem:[%s20245_s28 + $0x1c] sm:$0xf]  ;;  %v17077_v14 = vld [vmem:[%s20193_s8] sm:$0xff]  }
 0x1a9   : > { %14284 = vmatprep.mubr.msk.bf16.mxu0 %vm16544_vm2, %v20217_v54  ;;  %14300 = vmatprep.mubr.msk.bf16.mxu1 %vm16544_vm2, %v20217_v54 }
 0x1b0   : > { %14285 = vmatmul.mubr.msk.bf16.gmra.mrb[20].mxu0 %vm1763_vm3, %v16195_v17  ;;  %14301 = vmatmul.mubr.msk.bf16.gmra.mrb[12].mxu1 %vm1763_vm3, %v16199_v18  ;;  %v2264_v17 = vsel %vm1905_vm4, %v12652_v16, 0  ;;  %v12654_v18 = vld [vmem:[%s20245_s28 + $0x20] sm:$0xf]  ;;  %v17091_v16 = vld [vmem:[%s20193_s8 + $0x8] sm:$0xff]  }
 0x1b1   : > { %14304 = vmatprep.mubr.msk.bf16.mxu1 %vm16544_vm2, %v20217_v54  ;;  %14364 = vmatprep.mubr.msk.bf16.mxu0 %vm16544_vm2, %v20217_v54 }
 0x1b8   : > { %14305 = vmatmul.mubr.msk.bf16.gmra.mrb[16].mxu1 %vm1763_vm3, %v16200_v19  ;;  %v2316_v19 = vsel %vm1905_vm4, %v12654_v18, 0  ;;  %v17109_v18 = vld [vmem:[%s20193_s8 + $0x18] sm:$0xff]  }
 0x1b9   : > { %14310 = vmatprep.mubr.msk.bf16.mxu1 %vm16544_vm2, %v20217_v54 }
 0x26b   : > { %v1825_v22 = vpop.f32.mrb[8].mxu0  ;;  %v16900_v23 = vpop.f32.mrb[0].mxu1 }
 0x26c   : > { %v14274_v24 = vpop.f32.mrb[9].mxu0  ;;  %v14290_v25 = vpop.f32.mrb[1].mxu1 }
 0x26d   : > { %v1828_v26 = vpop.f32.mrb[10].mxu0  ;;  %v16902_v27 = vpop.f32.mrb[2].mxu1 }
 0x26e   : > { %v1896_v28 = vpack.c.bf16 %v1828_v26, %v1825_v22  ;;  %v14275_v29 = vpop.f32.mrb[11].mxu0  ;;  %v2101_v30 = vpack.c.bf16 %v16902_v27, %v16900_v23  ;;  %v14291_v31 = vpop.f32.mrb[3].mxu1  ;;  %v16201_v27 = vld [vmem:[%s20246_s7] sm:$0xff]  }
 0x26f   : > { %v16203_v29 = vld [vmem:[%s20246_s7 + $0x10] sm:$0xff]   ;;  %v16205_v31 = vld [vmem:[%s20246_s7 + $0x20] ss:$0 sps:$4 sm:$0xff]  }
 0x273   : > { %v1833_v32 = vpop.f32.mrb[12].mxu0  ;;  %v16909_v34 = vpop.f32.mrb[4].mxu1 }
 0x274   : > { %v14278_v35 = vpop.f32.mrb[13].mxu0  ;;  %v14294_v36 = vpop.f32.mrb[5].mxu1 }
 0x275   : > { %v1836_v37 = vpop.f32.mrb[14].mxu0  ;;  %v1868_v38 = vpop.f32.mrb[6].mxu1  ;;  %v16207_v36 = vld [vmem:[%s20247_s26] sm:$0xff]  }
 0x276   : > { %v1898_v39 = vpack.c.bf16 %v1836_v37, %v1833_v32  ;;  %v14279_v40 = vpop.f32.mrb[15].mxu0  ;;  %v2153_v42 = vpack.c.bf16 %v1868_v38, %v16909_v34  ;;  %v14295_v43 = vpop.f32.mrb[7].mxu1  ;;  %v16206_v32 = vld [vmem:[%s20247_s26 + $0x8] sm:$0xff]  }
 0x277   : > { %v16208_v43 = vld [vmem:[%s20247_s26 + $0x10] sm:$0xff]  }
 0x278   : > { %14311 = vmatmul.mubr.msk.bf16.vlgmr.msra.gmra.mrb[20].mxu1 %vm1901_vm5, %v1898_v39 }
 0x279   : > { %14315 = vmatpush3.bf16.msra.mxu1 %v1954_v41  ;;  %14316 = vmatprep.mubr.msk.bf16.mxu1 %vm16544_vm2, %v20217_v54 }
 0x27a   : > { %14320 = vmatprep.subr.bf16.mxu1 %v20217_v54 }
 0x27b   : > { %v1841_v44 = vpop.f32.mrb[16].mxu0  ;;  %v1873_v45 = vpop.f32.mrb[8].mxu1 }
 0x27c   : > { %v14282_v46 = vpop.f32.mrb[17].mxu0  ;;  %v14298_v47 = vpop.f32.mrb[9].mxu1 }
 0x27d   : > { %v1844_v48 = vpop.f32.mrb[18].mxu0  ;;  %v1876_v49 = vpop.f32.mrb[10].mxu1 }
 0x27e   : > { %v1997_v50 = vpack.c.bf16 %v1844_v48, %v1841_v44  ;;  %v14283_v51 = vpop.f32.mrb[19].mxu0  ;;  %v2205_v52 = vpack.c.bf16 %v1876_v49, %v1873_v45  ;;  %v14299_v53 = vpop.f32.mrb[11].mxu1 }
 0x283   : > { %v1849_v57 = vpop.f32.mrb[20].mxu0  ;;  %v1881_v58 = vpop.f32.mrb[12].mxu1 }
 0x284   : > { %14317 = vmatmul.mubr.msk.bf16.vlgmr.msra.gmra.mrb[20].mxu1 %vm1901_vm5, %v1896_v28  ;;  %v14286_v59 = vpop.f32.mrb[21].mxu0  ;;  %v14302_v60 = vpop.f32.mrb[13].mxu1  ;;  %v16202_v28 = vld [vmem:[%s20246_s7 + $0x8] sm:$0xff]  }
 0x285   : > { %14321 = vmatpush3.bf16.msra.mxu1 %v2004_v56  ;;  %14322 = vmatprep.mubr.msk.bf16.mxu1 %vm16544_vm2, %v20217_v54  ;;  %v1852_v61 = vpop.f32.mrb[22].mxu0  ;;  %v1884_v62 = vpop.f32.mrb[14].mxu1  ;;  %v16210_v60 = vld [vmem:[%s20247_s26 + $0x20] sm:$0xff]  }
 0x286   : > { %v2049_v63 = vpack.c.bf16 %v1852_v61, %v1849_v57  ;;  %v14287_v0 = vpop.f32.mrb[23].mxu0  ;;  %14326 = vmatprep.subr.bf16.mxu1 %v20217_v54  ;;  %v2257_v1 = vpack.c.bf16 %v1884_v62, %v1881_v58  ;;  %v14303_v2 = vpop.f32.mrb[15].mxu1 }
 0x287   : > { %v16212_v0 = vld [vmem:[%s20247_s26 + $0x30] sm:$0xff]  }
 0x28b   : > { %v1889_v4 = vpop.f32.mrb[16].mxu1 }
 0x28c   : > { %v14306_v5 = vpop.f32.mrb[17].mxu1 }
 0x28d   : > { %v1892_v6 = vpop.f32.mrb[18].mxu1 }
 0x28e   : > { %v2309_v8 = vpack.c.bf16 %v1892_v6, %v1889_v4  ;;  %v14307_v9 = vpop.f32.mrb[19].mxu1  ;;  %v16214_v4 = vld [vmem:[%s20247_s26 + $0x40] sm:$0xff]  }
 0x290   : > { %14323 = vmatmul.mubr.msk.bf16.vlgmr.msra.gmra.mrb[20].mxu1 %vm1901_vm5, %v1997_v50 }
 0x291   : > { %14327 = vmatpush3.bf16.msra.mxu1 %v2056_v7  ;;  %14328 = vmatprep.mubr.msk.bf16.mxu1 %vm16544_vm2, %v20217_v54 }
 0x292   : > { %14332 = vmatprep.subr.bf16.mxu1 %v20217_v54 }
 0x29c   : > { %14329 = vmatmul.mubr.msk.bf16.vlgmr.msra.gmra.mrb[20].mxu1 %vm1901_vm5, %v2049_v63  ;;  %v16211_v63 = vld [vmem:[%s20247_s26 + $0x28] sm:$0xff]  }
 0x29d   : > { %14333 = vmatpush3.bf16.msra.mxu1 %v2108_v11  ;;  %14334 = vmatprep.mubr.msk.bf16.mxu1 %vm16544_vm2, %v20217_v54 }
 0x29e   : > { %14338 = vmatprep.subr.bf16.mxu1 %v20217_v54 }
 0x2a8   : > { %14335 = vmatmul.mubr.msk.bf16.vlgmr.msra.gmra.mrb[20].mxu1 %vm1901_vm5, %v2101_v30  ;;  %v16204_v30 = vld [vmem:[%s20246_s7 + $0x18] sm:$0xff]   ;;  %s16485_s7 = scalar_lea.vmem %s16484_s20, 32 }
 0x2a9   : > { %14339 = vmatpush3.bf16.msra.mxu1 %v2160_v13  ;;  %14340 = vmatprep.mubr.msk.bf16.mxu1 %vm16544_vm2, %v20217_v54 }
 0x2aa   : > { %14344 = vmatprep.subr.bf16.mxu1 %v20217_v54 }
 0x2b4   : > { %14341 = vmatmul.mubr.msk.bf16.vlgmr.msra.gmra.mrb[20].mxu1 %vm1901_vm5, %v2153_v42 }
 0x2b5   : > { %14345 = vmatpush3.bf16.msra.mxu1 %v2212_v15  ;;  %14346 = vmatprep.mubr.msk.bf16.mxu1 %vm16544_vm2, %v20217_v54  ;;  %v16220_v15 = vld [vmem:[%s20248_s1 + $0x10] sm:$0xff]   ;;  %s12451_s1 = sshll.u32 %s17625_s0, 4  ;;  %s12452_s1 = int_to_ptr.vmem [resolvable:$true] %s12451_s1 }
 0x2b6   : > { %14350 = vmatprep.subr.bf16.mxu1 %v20217_v54  ;;  %s16479_s30 = scalar_lea.vmem %s12452_s1, 16  ;;  %p16486_p0 = scmp.lt.s32.totalorder %s12452_s1, %s16484_s20 }
 0x2b7   : > { %p16480_p11 = scmp.ne.s32.totalorder %s12452_s1, %s16479_s30  ;;  %p16487_p1 = scmp.lt.s32.totalorder %s16485_s7, %s16479_s30 }
 0x2b9   : > { %p16481_p12 = pnand %p16480_p11, %p16690_p5  ;;  %p16488_p2 = por %p16487_p1, %p16486_p0 }
 0x2bb   : > { %p16482_p13 = pneg %p16481_p12 }
 0x2bd   : > { %p16489_p3 = pnand %p16488_p2, %p16482_p13 }
 0x2c0   : > { %14347 = vmatmul.mubr.msk.bf16.vlgmr.msra.gmra.mrb[20].mxu1 %vm1901_vm5, %v2205_v52  ;;  %v16209_v52 = vld [vmem:[%s20247_s26 + $0x18] sm:$0xff]  }
 0x2c1   : > { %14351 = vmatpush3.bf16.msra.mxu1 %v2264_v17  ;;  %14352 = vmatprep.mubr.msk.bf16.mxu1 %vm16544_vm2, %v20217_v54  ;;  %v17100_v17 = vld [vmem:[%s20193_s8 + $0x10] sm:$0xff]  }
 0x2c2   : > { %14356 = vmatprep.subr.bf16.mxu1 %v20217_v54 }
 0x2cc   : > { %14353 = vmatmul.mubr.msk.bf16.vlgmr.msra.gmra.mrb[20].mxu1 %vm1901_vm5, %v2257_v1 }
 0x2cd   : > { %14357 = vmatpush3.bf16.msra.mxu1 %v2316_v19  ;;  %14358 = vmatprep.mubr.msk.bf16.mxu1 %vm16544_vm2, %v20217_v54  ;;  %v17118_v19 = vld [vmem:[%s20193_s8 + $0x20] ss:$0 sps:$4 sm:$0xff]  }
 0x2ce   : > { %14384 = vmatprep.subr.bf16.mxu1 %v20217_v54 }
 0x2d8   : > { %14359 = vmatmul.mubr.msk.bf16.vlgmr.msra.gmra.mrb[20].mxu1 %vm1901_vm5, %v2309_v8 }
 0x2d9   : > { %14386 = vmatprep.mubr.msk.bf16.mxu1 %vm16544_vm2, %v20217_v54  ;;  %14385 = vmatpush3.bf16.msra.mxu1 %v16206_v32  ;;  %v16224_v32 = vld [vmem:[%s20249_s3 + $0x20] sm:$0xff]  }
 0x2da   : > { %14390 = vmatprep.subr.bf16.mxu1 %v20217_v54 }
 0x3ab   : > { %v2352_v20 = vpop.f32.mrb[20].mxu1 }
 0x3ac   : > { %v14360_v21 = vpop.f32.mrb[21].mxu1  ;;  %v2361_v23 = vmax.f32 %v2352_v20, 0.0  ;;  %v16221_v20 = vld [vmem:[%s20249_s3 + $0x18] sm:$0xff]  }
 0x3ad   : > { %v2355_v22 = vpop.f32.mrb[22].mxu1 }
 0x3ae   : > { %v2362_v24 = vmax.f32 %v2355_v22, 0.0  ;;  %v14361_v25 = vpop.f32.mrb[23].mxu1 }
 0x3b0   : > { %v2372_v26 = vpack.c.bf16 %v2362_v24, %v2361_v23  ;;  %v16222_v24 = vld [vmem:[%s20249_s3] sm:$0xff]  }
 0x3b2   : > { %14363 = vmatpush3.bf16.msra.mxu0 %v2372_v26 }
 0x3b3   : > { %14438 = vmatprep.subr.bf16.mxu0 %v20217_v54 }
 0x3b5   : > { %14365 = vmatmul.mubr.msk.bf16.vlgmr.msra.gmra.mrb[24].mxu0 %vm2396_vm6, %v16201_v27  ;;  %v16223_v27 = vld [vmem:[%s20249_s3 + $0x8] sm:$0xff]  }
 0x3b6   : > { %14368 = vmatprep.mubr.msk.bf16.mxu0 %vm16544_vm2, %v20217_v54 }
 0x3bd   : > { %14369 = vmatmul.mubr.msk.bf16.gmra.mrb[28].mxu0 %vm2396_vm6, %v16202_v28 }
 0x3be   : > { %14372 = vmatprep.mubr.msk.bf16.mxu0 %vm16544_vm2, %v20217_v54 }
 0x3c5   : > { %14373 = vmatmul.mubr.msk.bf16.gmra.mrb[32].mxu0 %vm2396_vm6, %v16203_v29 }
 0x3c6   : > { %14376 = vmatprep.mubr.msk.bf16.mxu0 %vm16544_vm2, %v20217_v54 }
 0x3cd   : > { %14377 = vmatmul.mubr.msk.bf16.gmra.mrb[36].mxu0 %vm2396_vm6, %v16204_v30 }
 0x3ce   : > { %14380 = vmatprep.mubr.msk.bf16.mxu0 %vm16544_vm2, %v20217_v54 }
 0x3d5   : > { %14381 = vmatmul.mubr.msk.bf16.gmra.mrb[40].mxu0 %vm2396_vm6, %v16205_v31 }
 0x3d6   : > { %14440 = vmatprep.mubr.msk.bf16.mxu0 %vm16544_vm2, %v20217_v54 }
 0x488   : > { %v2446_v33 = vpop.f32.mrb[24].mxu0 }
 0x489   : > { %v14366_v34 = vpop.f32.mrb[25].mxu0  ;;  %v2484_v44 = vpack.c.bf16 %v2446_v33, %v2446_v33 }
 0x48a   : > { %v2449_v35 = vpop.f32.mrb[26].mxu0 }
 0x48b   : > { %v2487_v37 = vpack.c.bf16 %v2449_v35, %v2449_v35  ;;  %v14367_v38 = vpop.f32.mrb[27].mxu0 }
 0x48d   : > { %14387 = vmatmul.mubr.msk.bf16.vlgmr.msra.gmra.mrb[24].mxu1 %vm2396_vm6, %v2487_v37 }
 0x48e   : > { %14391 = vmatpush3.bf16.msra.mxu1 %v16207_v36  ;;  %14392 = vmatprep.mubr.msk.bf16.mxu1 %vm16544_vm2, %v20217_v54  ;;  %v16225_v36 = vld [vmem:[%s20249_s3 + $0x28] sm:$0xff]  }
 0x48f   : > { %14396 = vmatprep.subr.bf16.mxu1 %v20217_v54 }
 0x490   : > { %v2454_v39 = vpop.f32.mrb[28].mxu0 }
 0x491   : > { %v14370_v40 = vpop.f32.mrb[29].mxu0  ;;  %v2589_v50 = vpack.c.bf16 %v2454_v39, %v2454_v39 }
 0x492   : > { %v2457_v41 = vpop.f32.mrb[30].mxu0 }
 0x493   : > { %v14371_v42 = vpop.f32.mrb[31].mxu0  ;;  %v2643_v61 = vpack.c.bf16 %v2457_v41, %v2457_v41 }
 0x494   : > { %v16226_v42 = vld [vmem:[%s20249_s3 + $0x30] sm:$0xff]  }
 0x498   : > { %v2462_v45 = vpop.f32.mrb[32].mxu0 }
 0x499   : > { %14393 = vmatmul.mubr.msk.bf16.vlgmr.msra.gmra.mrb[24].mxu1 %vm2396_vm6, %v2484_v44  ;;  %v14374_v46 = vpop.f32.mrb[33].mxu0  ;;  %v2697_v62 = vpack.c.bf16 %v2462_v45, %v2462_v45  ;;  %v16227_v45 = vld [vmem:[%s20249_s3 + $0x38] sm:$0xff]  }
 0x49a   : > { %14397 = vmatpush3.bf16.msra.mxu1 %v16208_v43  ;;  %14398 = vmatprep.mubr.msk.bf16.mxu1 %vm16544_vm2, %v20217_v54  ;;  %v2465_v47 = vpop.f32.mrb[34].mxu0 }
 0x49b   : > { %14402 = vmatprep.subr.bf16.mxu1 %v20217_v54  ;;  %v14375_v48 = vpop.f32.mrb[35].mxu0  ;;  %v2751_v1 = vpack.c.bf16 %v2465_v47, %v2465_v47 }
 0x4a0   : > { %v2470_v49 = vpop.f32.mrb[36].mxu0 }
 0x4a1   : > { %v14378_v51 = vpop.f32.mrb[37].mxu0  ;;  %v2805_v2 = vpack.c.bf16 %v2470_v49, %v2470_v49 }
 0x4a2   : > { %v2473_v53 = vpop.f32.mrb[38].mxu0 }
 0x4a3   : > { %v14379_v55 = vpop.f32.mrb[39].mxu0  ;;  %v2859_v5 = vpack.c.bf16 %v2473_v53, %v2473_v53 }
 0x4a4   : > { %v16230_v55 = vld [vmem:[%s20249_s3 + $0x50] sm:$0xff]  }
 0x4a5   : > { %14399 = vmatmul.mubr.msk.bf16.vlgmr.msra.gmra.mrb[24].mxu1 %vm2396_vm6, %v2589_v50  ;;  %v16228_v50 = vld [vmem:[%s20249_s3 + $0x40] sm:$0xff]  }
 0x4a6   : > { %14403 = vmatpush3.bf16.msra.mxu1 %v16209_v52  ;;  %14404 = vmatprep.mubr.msk.bf16.mxu1 %vm16544_vm2, %v20217_v54  ;;  %v16229_v52 = vld [vmem:[%s20249_s3 + $0x48] sm:$0xff]  }
 0x4a7   : > { %14408 = vmatprep.subr.bf16.mxu1 %v20217_v54 }
 0x4a8   : > { %v2478_v56 = vpop.f32.mrb[40].mxu0 }
 0x4a9   : > { %v14382_v57 = vpop.f32.mrb[41].mxu0  ;;  %v2913_v6 = vpack.c.bf16 %v2478_v56, %v2478_v56  ;;  %v16231_v56 = vld [vmem:[%s20249_s3 + $0x58] sm:$0xff]  }
 0x4aa   : > { %v2481_v58 = vpop.f32.mrb[42].mxu0  ;;  %v16232_v57 = vld [vmem:[%s20249_s3 + $0x60] sm:$0xff]  }
 0x4ab   : > { %v14383_v59 = vpop.f32.mrb[43].mxu0 }
 0x4ac   : > { %v16233_v59 = vld [vmem:[%s20249_s3 + $0x68] sm:$0xff]  }
 0x4b1   : > { %14405 = vmatmul.mubr.msk.bf16.vlgmr.msra.gmra.mrb[24].mxu1 %vm2396_vm6, %v2643_v61  ;;  %v16234_v61 = vld [vmem:[%s20249_s3 + $0x70] sm:$0xff]  }
 0x4b2   : > { %14409 = vmatpush3.bf16.msra.mxu1 %v16210_v60  ;;  %14410 = vmatprep.mubr.msk.bf16.mxu1 %vm16544_vm2, %v20217_v54 }
 0x4b3   : > { %14414 = vmatprep.subr.bf16.mxu1 %v20217_v54 }
 0x4bd   : > { %14411 = vmatmul.mubr.msk.bf16.vlgmr.msra.gmra.mrb[24].mxu1 %vm2396_vm6, %v2697_v62  ;;  %v16235_v62 = vld [vmem:[%s20249_s3 + $0x78] sm:$0xff]  }
 0x4be   : > { %14415 = vmatpush3.bf16.msra.mxu1 %v16211_v63  ;;  %14416 = vmatprep.mubr.msk.bf16.mxu1 %vm16544_vm2, %v20217_v54  ;;  %v16236_v63 = vld [vmem:[%s20249_s3 + $0x80] sm:$0xff]  }
 0x4bf   : > { %14420 = vmatprep.subr.bf16.mxu1 %v20217_v54 }
 0x4c9   : > { %14417 = vmatmul.mubr.msk.bf16.vlgmr.msra.gmra.mrb[24].mxu1 %vm2396_vm6, %v2751_v1  ;;  %v16237_v1 = vld [vmem:[%s20249_s3 + $0x88] sm:$0xff]   ;;  %s20076_s3 = scalar_lea.hbm %s20204_s19, %s13570_s25 }
 0x4ca   : > { %14421 = vmatpush3.bf16.msra.mxu1 %v16212_v0  ;;  %14422 = vmatprep.mubr.msk.bf16.mxu1 %vm16544_vm2, %v20217_v54 }
 0x4cb   : > { %14426 = vmatprep.subr.bf16.mxu1 %v20217_v54 }
 0x4d5   : > { %14423 = vmatmul.mubr.msk.bf16.vlgmr.msra.gmra.mrb[24].mxu1 %vm2396_vm6, %v2805_v2 }
 0x4d6   : > { %14427 = vmatpush3.bf16.msra.mxu1 %v16213_v3  ;;  %14428 = vmatprep.mubr.msk.bf16.mxu1 %vm16544_vm2, %v20217_v54 }
 0x4d7   : > { %14432 = vmatprep.subr.bf16.mxu1 %v20217_v54 }
 0x4e1   : > { %14429 = vmatmul.mubr.msk.bf16.vlgmr.msra.gmra.mrb[24].mxu1 %vm2396_vm6, %v2859_v5 }
 0x4e2   : > { %14433 = vmatpush3.bf16.msra.mxu1 %v16214_v4  ;;  %14434 = vmatprep.mubr.msk.bf16.mxu1 %vm16544_vm2, %v20217_v54 }
 0x4e3   : > { %14532 = vmatprep.subr.bf16.mxu1 %v20217_v54 }
 0x4ed   : > { %14435 = vmatmul.mubr.msk.bf16.vlgmr.msra.gmra.mrb[24].mxu1 %vm2396_vm6, %v2913_v6 }
 0x4ee   : > { %14534 = vmatprep.mubr.msk.bf16.mxu1 %vm16544_vm2, %v20217_v54 }
 0x5c0   : > { %v2960_v7 = vpop.f32.mrb[24].mxu1 }
 0x5c1   : > { %v2967_v8 = vmax.f32 %v2960_v7, 0.0  ;;  %v14436_v9 = vpop.f32.mrb[25].mxu1 }
 0x5c2   : > { %v2963_v10 = vpop.f32.mrb[26].mxu1 }
 0x5c3   : > { %v2977_v11 = vpack.c.bf16 %v2967_v8, %v2967_v8  ;;  %v14437_v12 = vpop.f32.mrb[27].mxu1  ;;  %v16238_v10 = vld [vmem:[%s20250_s5 + $0x10] sm:$0xff]  }
 0x5c4   : > { %v16256_v12 = vld [vmem:[%s20194_s9] sm:$0xff]  }
 0x5c5   : > { %v3017_v13 = vsel %vm1905_vm4, %v2977_v11, 0  ;;  %v16239_v11 = vld [vmem:[%s20250_s5 + $0x18] sm:$0xff]  }
 0x5c6   : > { %14439 = vmatpush3.bf16.msra.mxu0 %v3017_v13 }
 0x5c7   : > { %14460 = vmatprep.subr.bf16.mxu0 %v20217_v54 }
 0x5c9   : > { %14441 = vmatmul.mubr.msk.bf16.vlgmr.msra.gmra.mrb[44].mxu0 %vm1901_vm5, %v17077_v14 }
 0x5ca   : > { %14444 = vmatprep.mubr.msk.bf16.mxu0 %vm16544_vm2, %v20217_v54  ;;  %14461 = vmatpush3.bf16.msra.mxu0 %v16220_v15 }
 0x5cb   : > { %14462 = vmatprep.subr.bf16.mxu0 %v20217_v54 }
 0x5ce   : > { %14463 = vmatpush3.bf16.msra.mxu0 %v16221_v20 }
 0x5cf   : > { %14468 = vmatprep.subr.bf16.mxu0 %v20217_v54 }
 0x5d1   : > { %14445 = vmatmul.mubr.msk.bf16.gmra.mrb[48].mxu0 %vm1901_vm5, %v17091_v16 }
 0x5d2   : > { %14448 = vmatprep.mubr.msk.bf16.mxu0 %vm16544_vm2, %v20217_v54 }
 0x5d9   : > { %14449 = vmatmul.mubr.msk.bf16.gmra.mrb[52].mxu0 %vm1901_vm5, %v17100_v17 }
 0x5da   : > { %14452 = vmatprep.mubr.msk.bf16.mxu0 %vm16544_vm2, %v20217_v54 }
 0x5e1   : > { %14453 = vmatmul.mubr.msk.bf16.gmra.mrb[56].mxu0 %vm1901_vm5, %v17109_v18 }
 0x5e2   : > { %14456 = vmatprep.mubr.msk.bf16.mxu0 %vm16544_vm2, %v20217_v54 }
 0x5e9   : > { %14457 = vmatmul.mubr.msk.bf16.gmra.mrb[60].mxu0 %vm1901_vm5, %v17118_v19 }
 0x5ea   : > { %14464 = vmatprep.mubr.msk.bf16.mxu0 %vm16544_vm2, %v20217_v54 }
 0x69c   : > { %v3053_v21 = vpop.f32.mrb[44].mxu0 }
 0x69d   : > { %v14442_v22 = vpop.f32.mrb[45].mxu0  ;;  %v3091_v33 = vpack.c.bf16 %v3053_v21, %v3053_v21 }
 0x69e   : > { %v3056_v23 = vpop.f32.mrb[46].mxu0 }
 0x69f   : > { %v3096_v25 = vpack.c.bf16 %v3056_v23, %v3056_v23  ;;  %v14443_v26 = vpop.f32.mrb[47].mxu0 }
 0x6a1   : > { %14465 = vmatmul.mubr.msk.bf16.vlgmr.msra.gmra.mrb[64].mxu0 %vm3114_vm7, %v3096_v25 }
 0x6a2   : > { %14469 = vmatpush3.bf16.msra.mxu0 %v16222_v24  ;;  %14472 = vmatprep.mubr.msk.bf16.mxu0 %vm16544_vm2, %v20217_v54  ;;  %v16242_v24 = vld [vmem:[%s20250_s5 + $0x20] sm:$0xff]  }
 0x6a3   : > { %14470 = vmatprep.subr.bf16.mxu0 %v20217_v54 }
 0x6a4   : > { %v3061_v28 = vpop.f32.mrb[48].mxu0 }
 0x6a5   : > { %v14446_v29 = vpop.f32.mrb[49].mxu0  ;;  %v3213_v40 = vpack.c.bf16 %v3061_v28, %v3061_v28  ;;  %v16243_v28 = vld [vmem:[%s20250_s5 + $0x28] sm:$0xff]  }
 0x6a6   : > { %14471 = vmatpush3.bf16.msra.mxu0 %v16223_v27  ;;  %v3064_v30 = vpop.f32.mrb[50].mxu0 }
 0x6a7   : > { %14476 = vmatprep.subr.bf16.mxu0 %v20217_v54  ;;  %v14447_v31 = vpop.f32.mrb[51].mxu0  ;;  %v3275_v51 = vpack.c.bf16 %v3064_v30, %v3064_v30 }
 0x6ac   : > { %v3069_v34 = vpop.f32.mrb[52].mxu0 }
 0x6ad   : > { %14473 = vmatmul.mubr.msk.bf16.vlgmr.msra.gmra.mrb[64].mxu0 %vm3114_vm7, %v3091_v33  ;;  %v14450_v35 = vpop.f32.mrb[53].mxu0  ;;  %v3337_v53 = vpack.c.bf16 %v3069_v34, %v3069_v34  ;;  %v16244_v34 = vld [vmem:[%s20250_s5 + $0x30] sm:$0xff]  }
 0x6ae   : > { %14477 = vmatpush3.bf16.msra.mxu0 %v16224_v32  ;;  %14480 = vmatprep.mubr.msk.bf16.mxu0 %vm16544_vm2, %v20217_v54  ;;  %v3072_v37 = vpop.f32.mrb[54].mxu0 }
 0x6af   : > { %14478 = vmatprep.subr.bf16.mxu0 %v20217_v54  ;;  %v14451_v38 = vpop.f32.mrb[55].mxu0  ;;  %v3399_v58 = vpack.c.bf16 %v3072_v37, %v3072_v37  ;;  %v16245_v37 = vld [vmem:[%s20250_s5 + $0x38] sm:$0xff]  }
 0x6b2   : > { %14479 = vmatpush3.bf16.msra.mxu0 %v16225_v36 }
 0x6b3   : > { %14484 = vmatprep.subr.bf16.mxu0 %v20217_v54 }
 0x6b4   : > { %v3077_v39 = vpop.f32.mrb[56].mxu0 }
 0x6b5   : > { %v14454_v41 = vpop.f32.mrb[57].mxu0  ;;  %v3461_v60 = vpack.c.bf16 %v3077_v39, %v3077_v39 }
 0x6b6   : > { %v3080_v43 = vpop.f32.mrb[58].mxu0 }
 0x6b7   : > { %v14455_v44 = vpop.f32.mrb[59].mxu0  ;;  %v3523_v0 = vpack.c.bf16 %v3080_v43, %v3080_v43 }
 0x6b8   : > { %v16247_v44 = vld [vmem:[%s20250_s5 + $0x48] sm:$0xff]  }
 0x6b9   : > { %14481 = vmatmul.mubr.msk.bf16.vlgmr.msra.gmra.mrb[64].mxu0 %vm3114_vm7, %v3213_v40 }
 0x6ba   : > { %14485 = vmatpush3.bf16.msra.mxu0 %v16226_v42  ;;  %14488 = vmatprep.mubr.msk.bf16.mxu0 %vm16544_vm2, %v20217_v54  ;;  %v16246_v42 = vld [vmem:[%s20250_s5 + $0x40] sm:$0xff]  }
 0x6bb   : > { %14486 = vmatprep.subr.bf16.mxu0 %v20217_v54 }
 0x6bc   : > { %v3085_v46 = vpop.f32.mrb[60].mxu0 }
 0x6bd   : > { %v14458_v47 = vpop.f32.mrb[61].mxu0  ;;  %v3585_v2 = vpack.c.bf16 %v3085_v46, %v3085_v46  ;;  %v16248_v46 = vld [vmem:[%s20250_s5 + $0x50] sm:$0xff]  }
 0x6be   : > { %14487 = vmatpush3.bf16.msra.mxu0 %v16227_v45  ;;  %v3088_v48 = vpop.f32.mrb[62].mxu0  ;;  %v16249_v47 = vld [vmem:[%s20250_s5 + $0x58] sm:$0xff]  }
 0x6bf   : > { %14492 = vmatprep.subr.bf16.mxu0 %v20217_v54  ;;  %v14459_v49 = vpop.f32.mrb[63].mxu0  ;;  %v16250_v48 = vld [vmem:[%s20250_s5 + $0x60] sm:$0xff]  }
 0x6c5   : > { %14489 = vmatmul.mubr.msk.bf16.vlgmr.msra.gmra.mrb[64].mxu0 %vm3114_vm7, %v3275_v51 }
 0x6c6   : > { %14493 = vmatpush3.bf16.msra.mxu0 %v16228_v50  ;;  %14496 = vmatprep.mubr.msk.bf16.mxu0 %vm16544_vm2, %v20217_v54  ;;  %v16251_v50 = vld [vmem:[%s20250_s5 + $0x68] sm:$0xff]  }
 0x6c7   : > { %14494 = vmatprep.subr.bf16.mxu0 %v20217_v54 }
 0x6ca   : > { %14495 = vmatpush3.bf16.msra.mxu0 %v16229_v52  ;;  %v16252_v52 = vld [vmem:[%s20250_s5 + $0x70] sm:$0xff]  }
 0x6cb   : > { %14500 = vmatprep.subr.bf16.mxu0 %v20217_v54 }
 0x6d1   : > { %14497 = vmatmul.mubr.msk.bf16.vlgmr.msra.gmra.mrb[64].mxu0 %vm3114_vm7, %v3337_v53  ;;  %v16253_v53 = vld [vmem:[%s20250_s5 + $0x78] sm:$0xff]  }
 0x6d2   : > { %14501 = vmatpush3.bf16.msra.mxu0 %v16230_v55  ;;  %14504 = vmatprep.mubr.msk.bf16.mxu0 %vm16544_vm2, %v20217_v54  ;;  %v16254_v55 = vld [vmem:[%s20250_s5 + $0x80] sm:$0xff]  }
 0x6d3   : > { %14502 = vmatprep.subr.bf16.mxu0 %v20217_v54 }
 0x6d6   : > { %14503 = vmatpush3.bf16.msra.mxu0 %v16231_v56 }
 0x6d7   : > { %14508 = vmatprep.subr.bf16.mxu0 %v20217_v54 }
 0x6dd   : > { %14505 = vmatmul.mubr.msk.bf16.vlgmr.msra.gmra.mrb[64].mxu0 %vm3114_vm7, %v3399_v58 }
 0x6de   : > { %14509 = vmatpush3.bf16.msra.mxu0 %v16232_v57  ;;  %14512 = vmatprep.mubr.msk.bf16.mxu0 %vm16544_vm2, %v20217_v54  ;;  %v16255_v57 = vld [vmem:[%s20250_s5 + $0x88] sm:$0xff]  }
 0x6df   : > { %14510 = vmatprep.subr.bf16.mxu0 %v20217_v54 }
 0x6e2   : > { %14511 = vmatpush3.bf16.msra.mxu0 %v16233_v59  ;;  %v16257_v59 = vld [vmem:[%s20194_s9 + $0x8] sm:$0xff]  }
 0x6e3   : > { %14516 = vmatprep.subr.bf16.mxu0 %v20217_v54 }
 0x6e9   : > { %14513 = vmatmul.mubr.msk.bf16.vlgmr.msra.gmra.mrb[64].mxu0 %vm3114_vm7, %v3461_v60  ;;  %v12870_v60 = vld [vmem:[%s20198_s13 + $0xa0] sm:$0xff] }
 0x6ea   : > { %14517 = vmatpush3.bf16.msra.mxu0 %v16234_v61  ;;  %14520 = vmatprep.mubr.msk.bf16.mxu0 %vm16544_vm2, %v20217_v54  ;;  %v4596_v61 = vld [vmem:[%s20198_s13 + $0x10] sm:$0xff] }
 0x6eb   : > { %14518 = vmatprep.subr.bf16.mxu0 %v20217_v54 }
 0x6ee   : > { %14519 = vmatpush3.bf16.msra.mxu0 %v16235_v62  ;;  %v16545_v62 = vmov 0  }
 0x6ef   : > { %14524 = vmatprep.subr.bf16.mxu0 %v20217_v54  ;;  %16155 = vset.pattern.permute.xlu1 %v16545_v62 }
 0x6f0   : > { %16154 = vset.pattern.permute.xlu0 %v16545_v62  ;;  %4815 = vperm.xlu1 %16155, %v12870_v60   ;;  %v12878_v60 = vld [vmem:[%s20198_s13 + $0xe0] sm:$0xff]  ;;  %v12904_v62 = vld [vmem:[%s20198_s13 + $0x170] sm:$0xff] }
 0x6f1   : > { %4624 = vperm.xlu0 %16154, %v4596_v61   ;;  %v12905_v61 = vld [vmem:[%s20198_s13 + $0x178] sm:$0xff] }
 0x6f5   : > { %14521 = vmatmul.mubr.msk.bf16.vlgmr.msra.gmra.mrb[64].mxu0 %vm3114_vm7, %v3523_v0  ;;  %v4597_v0 = vld [vmem:[%s20198_s13 + $0x18] sm:$0xff] }
 0x6f6   : > { %14525 = vmatpush3.bf16.msra.mxu0 %v16236_v63  ;;  %14528 = vmatprep.mubr.msk.bf16.mxu0 %vm16544_vm2, %v20217_v54  ;;  %v12871_v63 = vld [vmem:[%s20198_s13 + $0xa8] sm:$0xff] }
 0x6f7   : > { %14526 = vmatprep.subr.bf16.mxu0 %v20217_v54  ;;  %4820 = vperm.xlu1 %16155, %v12871_v63   ;;  %v12931_v63 = vld [vmem:[%s20198_s13 + $0x208] sm:$0xff] }
 0x6f8   : > { %4629 = vperm.xlu0 %16154, %v4597_v0   ;;  %v12930_v0 = vld [vmem:[%s20198_s13 + $0x200] sm:$0xff] }
 0x6fa   : > { %14527 = vmatpush3.bf16.msra.mxu0 %v16237_v1  ;;  %v12897_v1 = vld [vmem:[%s20198_s13 + $0x138] sm:$0xff] }
 0x6fb   : > { %14626 = vmatprep.subr.bf16.mxu0 %v20217_v54  ;;  %5029 = vperm.xlu1 %16155, %v12897_v1   ;;  %v4607_v1 = vld [vmem:[%s20198_s13 + $0x68] sm:$0xff] }
 0x701   : > { %14529 = vmatmul.mubr.msk.bf16.vlgmr.msra.gmra.mrb[64].mxu0 %vm3114_vm7, %v3585_v2  ;;  %v12896_v2 = vld [vmem:[%s20198_s13 + $0x130] sm:$0xff] }
 0x702   : > { %14630 = vmatprep.mubr.msk.bf16.mxu0 %vm16544_vm2, %v20217_v54  ;;  %14627 = vmatpush3.bf16.msra.mxu0 %v16256_v12  ;;  %v12921_v12 = vld [vmem:[%s20198_s13 + $0x1b8] sm:$0xff] }
 0x703   : > { %14628 = vmatprep.subr.bf16.mxu0 %v20217_v54  ;;  %5024 = vperm.xlu0 %16154, %v12896_v2   ;;  %v4606_v2 = vld [vmem:[%s20198_s13 + $0x60] sm:$0xff] }
 0x706   : > { %14629 = vmatpush3.bf16.msra.mxu0 %v16257_v59  ;;  %v12879_v59 = vld [vmem:[%s20198_s13 + $0xe8] sm:$0xff] }
 0x707   : > { %14634 = vmatprep.subr.bf16.mxu0 %v20217_v54 }
 0x7d4   : > { %v3640_v3 = vpop.f32.mrb[64].mxu0 }
 0x7d5   : > { %v3647_v4 = vmax.f32 %v3640_v3, 0.0  ;;  %v14530_v5 = vpop.f32.mrb[65].mxu0  ;;  %v12923_v3 = vld [vmem:[%s20198_s13 + $0x1c8] sm:$0xff] }
 0x7d6   : > { %v3643_v6 = vpop.f32.mrb[66].mxu0  ;;  %v16265_v5 = vld [vmem:[%s20196_s11 + $0x20] sm:$0xff]   ;;  %5238 = vperm.xlu1 %16155, %v12923_v3   ;;  %v12881_v3 = vld [vmem:[%s20198_s13 + $0xf8] sm:$0xff] }
 0x7d7   : > { %v3648_v7 = vpack.c.bf16 %v3647_v4, %v3647_v4  ;;  %v14531_v8 = vpop.f32.mrb[67].mxu0  ;;  %v12922_v4 = vld [vmem:[%s20198_s13 + $0x1c0] sm:$0xff]  ;;  %v4595_v6 = vld [vmem:[%s20198_s13 + $0x8] sm:$0xff] }
 0x7d8   : > { %5233 = vperm.xlu0 %16154, %v12922_v4   ;;  %v12869_v8 = vld [vmem:[%s20198_s13 + $0x98] sm:$0xff]  ;;  %v12880_v4 = vld [vmem:[%s20198_s13 + $0xf0] sm:$0xff] }
 0x7d9   : > { %v3650_v9 = vsel %vm1905_vm4, %v3648_v7, 0  ;;  %v4594_v7 = vld [vmem:[%s20198_s13] sm:$0xff] }
 0x7da   : > { %14533 = vmatpush3.bf16.msra.mxu1 %v3650_v9  ;;  %4619 = vperm.xlu1 %16155, %v4595_v6   ;;  %v12868_v9 = vld [vmem:[%s20198_s13 + $0x90] sm:$0xff]  ;;  %v12906_v6 = vld [vmem:[%s20198_s13 + $0x180] sm:$0xff] }
 0x7db   : > { %14554 = vmatprep.subr.bf16.mxu1 %v20217_v54 }
 0x7dc   : > { %4614 = vperm.xlu0 %16154, %v4594_v7   ;;  %v12933_v7 = vld [vmem:[%s20198_s13 + $0x218] sm:$0xff] }
 0x7dd   : > { %14535 = vmatmul.mubr.msk.bf16.vlgmr.msra.gmra.mrb[28].mxu1 %vm1901_vm5, %v17077_v14 }
 0x7de   : > { %14538 = vmatprep.mubr.msk.bf16.mxu1 %vm16544_vm2, %v20217_v54  ;;  %14555 = vmatpush3.bf16.msra.mxu1 %v16238_v10  ;;  %v12895_v10 = vld [vmem:[%s20198_s13 + $0x128] sm:$0xff] }
 0x7df   : > { %14556 = vmatprep.subr.bf16.mxu1 %v20217_v54  ;;  %4810 = vperm.xlu1 %16155, %v12869_v8   ;;  %v12932_v8 = vld [vmem:[%s20198_s13 + $0x210] sm:$0xff] }
 0x7e0   : > { %4805 = vperm.xlu0 %16154, %v12868_v9   ;;  %v4609_v9 = vld [vmem:[%s20198_s13 + $0x78] sm:$0xff] }
 0x7e2   : > { %14557 = vmatpush3.bf16.msra.mxu1 %v16239_v11  ;;  %v12894_v11 = vld [vmem:[%s20198_s13 + $0x120] sm:$0xff] }
 0x7e3   : > { %14562 = vmatprep.subr.bf16.mxu1 %v20217_v54  ;;  %5019 = vperm.xlu1 %16155, %v12895_v10   ;;  %v4608_v10 = vld [vmem:[%s20198_s13 + $0x70] sm:$0xff] }
 0x7e4   : > { %5014 = vperm.xlu0 %16154, %v12894_v11   ;;  %v12883_v11 = vld [vmem:[%s20198_s13 + $0x108] sm:$0xff] }
 0x7e5   : > { %14539 = vmatmul.mubr.msk.bf16.gmra.mrb[32].mxu1 %vm1901_vm5, %v17091_v16  ;;  %v16240_v16 = vld [vmem:[%s20250_s5] sm:$0xff]  }
 0x7e6   : > { %14542 = vmatprep.mubr.msk.bf16.mxu1 %vm16544_vm2, %v20217_v54 }
 0x7e7   : > { %5228 = vperm.xlu1 %16155, %v12921_v12   ;;  %v12882_v12 = vld [vmem:[%s20198_s13 + $0x100] sm:$0xff] }
 0x7ed   : > { %14543 = vmatmul.mubr.msk.bf16.gmra.mrb[36].mxu1 %vm1901_vm5, %v17100_v17 }
 0x7ee   : > { %14546 = vmatprep.mubr.msk.bf16.mxu1 %vm16544_vm2, %v20217_v54 }
 0x7f5   : > { %14547 = vmatmul.mubr.msk.bf16.gmra.mrb[40].mxu1 %vm1901_vm5, %v17109_v18 }
 0x7f6   : > { %14550 = vmatprep.mubr.msk.bf16.mxu1 %vm16544_vm2, %v20217_v54 }
 0x7fd   : > { %14551 = vmatmul.mubr.msk.bf16.gmra.mrb[44].mxu1 %vm1901_vm5, %v17118_v19  ;;  %v16241_v19 = vld [vmem:[%s20250_s5 + $0x8] sm:$0xff]  }
 0x7fe   : > { %14558 = vmatprep.mubr.msk.bf16.mxu1 %vm16544_vm2, %v20217_v54 }
 0x8b0   : > { %v3686_v13 = vpop.f32.mrb[28].mxu1 }
 0x8b1   : > { %v14536_v14 = vpop.f32.mrb[29].mxu1  ;;  %v3724_v25 = vpack.c.bf16 %v3686_v13, %v3686_v13  ;;  %v12920_v13 = vld [vmem:[%s20198_s13 + $0x1b0] sm:$0xff] }
 0x8b2   : > { %v3689_v15 = vpop.f32.mrb[30].mxu1  ;;  %5223 = vperm.xlu0 %16154, %v12920_v13   ;;  %v4599_v14 = vld [vmem:[%s20198_s13 + $0x28] sm:$0xff]  ;;  %v12909_v13 = vld [vmem:[%s20198_s13 + $0x198] sm:$0xff] }
 0x8b3   : > { %v3729_v17 = vpack.c.bf16 %v3689_v15, %v3689_v15  ;;  %v14537_v18 = vpop.f32.mrb[31].mxu1  ;;  %v4598_v15 = vld [vmem:[%s20198_s13 + $0x20] sm:$0xff]  ;;  %4639 = vperm.xlu1 %16155, %v4599_v14   ;;  %v12908_v14 = vld [vmem:[%s20198_s13 + $0x190] sm:$0xff] }
 0x8b4   : > { %v12899_v18 = vld [vmem:[%s20198_s13 + $0x148] sm:$0xff] }
 0x8b5   : > { %14559 = vmatmul.mubr.msk.bf16.vlgmr.msra.gmra.mrb[48].mxu1 %vm3114_vm7, %v3729_v17  ;;  %v12872_v17 = vld [vmem:[%s20198_s13 + $0xb0] sm:$0xff] }
 0x8b6   : > { %14563 = vmatpush3.bf16.msra.mxu1 %v16240_v16  ;;  %14566 = vmatprep.mubr.msk.bf16.mxu1 %vm16544_vm2, %v20217_v54  ;;  %v12873_v16 = vld [vmem:[%s20198_s13 + $0xb8] sm:$0xff] }
 0x8b7   : > { %14564 = vmatprep.subr.bf16.mxu1 %v20217_v54  ;;  %4634 = vperm.xlu0 %16154, %v4598_v15   ;;  %v12935_v15 = vld [vmem:[%s20198_s13 + $0x228] sm:$0xff] }
 0x8b8   : > { %v3694_v20 = vpop.f32.mrb[32].mxu1  ;;  %4830 = vperm.xlu1 %16155, %v12873_v16   ;;  %v12934_v16 = vld [vmem:[%s20198_s13 + $0x220] sm:$0xff] }
 0x8b9   : > { %v14540_v21 = vpop.f32.mrb[33].mxu1  ;;  %v3845_v32 = vpack.c.bf16 %v3694_v20, %v3694_v20  ;;  %v12925_v20 = vld [vmem:[%s20198_s13 + $0x1d8] sm:$0xff] }
 0x8ba   : > { %14565 = vmatpush3.bf16.msra.mxu1 %v16241_v19  ;;  %v3697_v22 = vpop.f32.mrb[34].mxu1  ;;  %v12898_v19 = vld [vmem:[%s20198_s13 + $0x140] sm:$0xff]  ;;  %v12924_v21 = vld [vmem:[%s20198_s13 + $0x1d0] sm:$0xff] }
 0x8bb   : > { %14570 = vmatprep.subr.bf16.mxu1 %v20217_v54  ;;  %v14541_v23 = vpop.f32.mrb[35].mxu1  ;;  %v3907_v43 = vpack.c.bf16 %v3697_v22, %v3697_v22  ;;  %4825 = vperm.xlu0 %16154, %v12872_v17   ;;  %v4601_v22 = vld [vmem:[%s20198_s13 + $0x38] sm:$0xff]  ;;  %v4611_v17 = vld [vmem:[%s20198_s13 + $0x88] sm:$0xff] }
 0x8bc   : > { %5039 = vperm.xlu1 %16155, %v12899_v18   ;;  %v4600_v23 = vld [vmem:[%s20198_s13 + $0x30] sm:$0xff]  ;;  %v4610_v18 = vld [vmem:[%s20198_s13 + $0x80] sm:$0xff] }
 0x8bf   : > { %5034 = vperm.xlu0 %16154, %v12898_v19   ;;  %v12885_v19 = vld [vmem:[%s20198_s13 + $0x118] sm:$0xff] }
 0x8c0   : > { %v3702_v26 = vpop.f32.mrb[36].mxu1  ;;  %5248 = vperm.xlu1 %16155, %v12925_v20   ;;  %v12884_v20 = vld [vmem:[%s20198_s13 + $0x110] sm:$0xff] }
 0x8c1   : > { %14567 = vmatmul.mubr.msk.bf16.vlgmr.msra.gmra.mrb[48].mxu1 %vm3114_vm7, %v3724_v25  ;;  %v14544_v27 = vpop.f32.mrb[37].mxu1  ;;  %v3969_v45 = vpack.c.bf16 %v3702_v26, %v3702_v26  ;;  %v12874_v25 = vld [vmem:[%s20198_s13 + $0xc0] sm:$0xff]  ;;  %v12901_v26 = vld [vmem:[%s20198_s13 + $0x158] sm:$0xff] }
 0x8c2   : > { %14571 = vmatpush3.bf16.msra.mxu1 %v16242_v24  ;;  %14574 = vmatprep.mubr.msk.bf16.mxu1 %vm16544_vm2, %v20217_v54  ;;  %v3705_v29 = vpop.f32.mrb[38].mxu1  ;;  %v12875_v24 = vld [vmem:[%s20198_s13 + $0xc8] sm:$0xff]  ;;  %v12900_v27 = vld [vmem:[%s20198_s13 + $0x150] sm:$0xff] }
 0x8c3   : > { %14572 = vmatprep.subr.bf16.mxu1 %v20217_v54  ;;  %v14545_v30 = vpop.f32.mrb[39].mxu1  ;;  %v4031_v49 = vpack.c.bf16 %v3705_v29, %v3705_v29  ;;  %5243 = vperm.xlu0 %16154, %v12924_v21   ;;  %v12926_v29 = vld [vmem:[%s20198_s13 + $0x1e0] sm:$0xff]  ;;  %v12911_v21 = vld [vmem:[%s20198_s13 + $0x1a8] sm:$0xff] }
 0x8c4   : > { %4649 = vperm.xlu1 %16155, %v4601_v22   ;;  %v4603_v30 = vld [vmem:[%s20198_s13 + $0x48] sm:$0xff]  ;;  %v12910_v22 = vld [vmem:[%s20198_s13 + $0x1a0] sm:$0xff] }
 0x8c6   : > { %14573 = vmatpush3.bf16.msra.mxu1 %v16243_v28  ;;  %v12927_v28 = vld [vmem:[%s20198_s13 + $0x1e8] sm:$0xff] }
 0x8c7   : > { %14578 = vmatprep.subr.bf16.mxu1 %v20217_v54  ;;  %4644 = vperm.xlu0 %16154, %v4600_v23   ;;  %v12937_v23 = vld [vmem:[%s20198_s13 + $0x238] sm:$0xff] }
 0x8c8   : > { %v3710_v31 = vpop.f32.mrb[40].mxu1  ;;  %4840 = vperm.xlu1 %16155, %v12875_v24   ;;  %v12936_v24 = vld [vmem:[%s20198_s13 + $0x230] sm:$0xff] }
 0x8c9   : > { %v14548_v33 = vpop.f32.mrb[41].mxu1  ;;  %v4093_v51 = vpack.c.bf16 %v3710_v31, %v3710_v31  ;;  %v4602_v31 = vld [vmem:[%s20198_s13 + $0x40] sm:$0xff] }
 0x8ca   : > { %v3713_v35 = vpop.f32.mrb[42].mxu1  ;;  %v12876_v33 = vld [vmem:[%s20198_s13 + $0xd0] sm:$0xff] }
 0x8cb   : > { %v14549_v36 = vpop.f32.mrb[43].mxu1  ;;  %v4155_v56 = vpack.c.bf16 %v3713_v35, %v3713_v35  ;;  %4835 = vperm.xlu0 %16154, %v12874_v25   ;;  %v12902_v35 = vld [vmem:[%s20198_s13 + $0x160] sm:$0xff] }
 0x8cc   : > { %5049 = vperm.xlu1 %16155, %v12901_v26   ;;  %v4280_v25 = vld [vmem:[%s20195_s10] sm:$0x1] }
 0x8cd   : > { %14575 = vmatmul.mubr.msk.bf16.vlgmr.msra.gmra.mrb[48].mxu1 %vm3114_vm7, %v3845_v32  ;;  %v12877_v32 = vld [vmem:[%s20198_s13 + $0xd8] sm:$0xff] }
 0x8ce   : > { %14579 = vmatpush3.bf16.msra.mxu1 %v16244_v34  ;;  %14582 = vmatprep.mubr.msk.bf16.mxu1 %vm16544_vm2, %v20217_v54  ;;  %v12903_v34 = vld [vmem:[%s20198_s13 + $0x168] sm:$0xff] }
 0x8cf   : > { %14580 = vmatprep.subr.bf16.mxu1 %v20217_v54  ;;  %5044 = vperm.xlu0 %16154, %v12900_v27  }
 0x8d0   : > { %v3718_v38 = vpop.f32.mrb[44].mxu1  ;;  %5258 = vperm.xlu1 %16155, %v12927_v28  }
 0x8d1   : > { %v14552_v39 = vpop.f32.mrb[45].mxu1  ;;  %v4217_v58 = vpack.c.bf16 %v3718_v38, %v3718_v38 }
 0x8d2   : > { %14581 = vmatpush3.bf16.msra.mxu1 %v16245_v37  ;;  %v3721_v40 = vpop.f32.mrb[46].mxu1 }
 0x8d3   : > { %14586 = vmatprep.subr.bf16.mxu1 %v20217_v54  ;;  %v14553_v41 = vpop.f32.mrb[47].mxu1  ;;  %5253 = vperm.xlu0 %16154, %v12926_v29   ;;  %v16258_v40 = vld [vmem:[%s20194_s9 + $0x10] sm:$0xff]  }
 0x8d4   : > { %4659 = vperm.xlu1 %16155, %v4603_v30   ;;  %v16268_v30 = vld [vmem:[%s20196_s11 + $0x10] sm:$0xff]  }
 0x8d7   : > { %4654 = vperm.xlu0 %16154, %v4602_v31  }
 0x8d8   : > { %4850 = vperm.xlu1 %16155, %v12877_v32  }
 0x8d9   : > { %14583 = vmatmul.mubr.msk.bf16.vlgmr.msra.gmra.mrb[48].mxu1 %vm3114_vm7, %v3907_v43  ;;  %v16259_v43 = vld [vmem:[%s20194_s9 + $0x18] sm:$0xff]  }
 0x8da   : > { %14587 = vmatpush3.bf16.msra.mxu1 %v16246_v42  ;;  %14590 = vmatprep.mubr.msk.bf16.mxu1 %vm16544_vm2, %v20217_v54 }
 0x8db   : > { %14588 = vmatprep.subr.bf16.mxu1 %v20217_v54  ;;  %4845 = vperm.xlu0 %16154, %v12876_v33   ;;  %v16269_v33 = vld [vmem:[%s20196_s11 + $0x18] sm:$0xff]  }
 0x8dc   : > { %5059 = vperm.xlu1 %16155, %v12903_v34   ;;  %v16270_v34 = vld [vmem:[%s20196_s11 + $0x30] sm:$0xff]  }
 0x8de   : > { %14589 = vmatpush3.bf16.msra.mxu1 %v16247_v44  ;;  %v16260_v44 = vld [vmem:[%s20194_s9 + $0x20] sm:$0xff]  }
 0x8df   : > { %14594 = vmatprep.subr.bf16.mxu1 %v20217_v54  ;;  %5054 = vperm.xlu0 %16154, %v12902_v35   ;;  %v16271_v35 = vld [vmem:[%s20196_s11 + $0x38] sm:$0xff]  }
 0x8e5   : > { %14591 = vmatmul.mubr.msk.bf16.vlgmr.msra.gmra.mrb[48].mxu1 %vm3114_vm7, %v3969_v45 }
 0x8e6   : > { %14595 = vmatpush3.bf16.msra.mxu1 %v16248_v46  ;;  %14598 = vmatprep.mubr.msk.bf16.mxu1 %vm16544_vm2, %v20217_v54  ;;  %v16261_v46 = vld [vmem:[%s20194_s9 + $0x28] sm:$0xff]  }
 0x8e7   : > { %14596 = vmatprep.subr.bf16.mxu1 %v20217_v54 }
 0x8ea   : > { %14597 = vmatpush3.bf16.msra.mxu1 %v16249_v47  ;;  %v16262_v47 = vld [vmem:[%s20194_s9 + $0x30] sm:$0xff]  }
 0x8eb   : > { %14602 = vmatprep.subr.bf16.mxu1 %v20217_v54 }
 0x8f1   : > { %14599 = vmatmul.mubr.msk.bf16.vlgmr.msra.gmra.mrb[48].mxu1 %vm3114_vm7, %v4031_v49  ;;  %v16263_v49 = vld [vmem:[%s20194_s9 + $0x38] sm:$0xff]  }
 0x8f2   : > { %14603 = vmatpush3.bf16.msra.mxu1 %v16250_v48  ;;  %14606 = vmatprep.mubr.msk.bf16.mxu1 %vm16544_vm2, %v20217_v54 }
 0x8f3   : > { %14604 = vmatprep.subr.bf16.mxu1 %v20217_v54 }
 0x8f6   : > { %14605 = vmatpush3.bf16.msra.mxu1 %v16251_v50  ;;  %v16264_v50 = vld [vmem:[%s20196_s11] sm:$0xff]  }
 0x8f7   : > { %14610 = vmatprep.subr.bf16.mxu1 %v20217_v54 }
 0x8fd   : > { %14607 = vmatmul.mubr.msk.bf16.vlgmr.msra.gmra.mrb[48].mxu1 %vm3114_vm7, %v4093_v51 }
 0x8fe   : > { %14611 = vmatpush3.bf16.msra.mxu1 %v16252_v52  ;;  %14614 = vmatprep.mubr.msk.bf16.mxu1 %vm16544_vm2, %v20217_v54  ;;  %v16266_v52 = vld [vmem:[%s20196_s11 + $0x8] sm:$0xff]  }
 0x8ff   : > { %14612 = vmatprep.subr.bf16.mxu1 %v20217_v54 }
 0x902   : > { %14613 = vmatpush3.bf16.msra.mxu1 %v16253_v53  ;;  %v16267_v53 = vld [vmem:[%s20196_s11 + $0x28] sm:$0xff]  }
 0x903   : > { %14618 = vmatprep.subr.bf16.mxu1 %v20217_v54 }
 0x909   : > { %14615 = vmatmul.mubr.msk.bf16.vlgmr.msra.gmra.mrb[48].mxu1 %vm3114_vm7, %v4155_v56  ;;  %v12928_v56 = vld [vmem:[%s20198_s13 + $0x1f0] sm:$0xff] }
 0x90a   : > { %14619 = vmatpush3.bf16.msra.mxu1 %v16254_v55  ;;  %14622 = vmatprep.mubr.msk.bf16.mxu1 %vm16544_vm2, %v20217_v54  ;;  %v12929_v55 = vld [vmem:[%s20198_s13 + $0x1f8] sm:$0xff] }
 0x90b   : > { %14620 = vmatprep.subr.bf16.mxu1 %v20217_v54  ;;  %5268 = vperm.xlu1 %16155, %v12929_v55  }
 0x90c   : > { %5263 = vperm.xlu0 %16154, %v12928_v56  }
 0x90e   : > { %14621 = vmatpush3.bf16.msra.mxu1 %v16255_v57  ;;  %v4605_v57 = vld [vmem:[%s20198_s13 + $0x58] sm:$0xff] }
 0x90f   : > { %14674 = vmatprep.subr.bf16.mxu1 %v20217_v54  ;;  %4669 = vperm.xlu1 %16155, %v4605_v57  }
 0x913   : > { %4860 = vperm.xlu1 %16155, %v12879_v59  }
 0x915   : > { %14623 = vmatmul.mubr.msk.bf16.vlgmr.msra.gmra.mrb[48].mxu1 %vm3114_vm7, %v4217_v58  ;;  %v4604_v58 = vld [vmem:[%s20198_s13 + $0x50] sm:$0xff] }
 0x916   : > { %14678 = vmatprep.mubr.msk.bf16.mxu1 %vm16544_vm2, %v20217_v54  ;;  %14675 = vmatpush3.bf16.msra.mxu1 %v16265_v5  ;;  %v12907_v5 = vld [vmem:[%s20198_s13 + $0x188] sm:$0xff] }
 0x917   : > { %14676 = vmatprep.subr.bf16.mxu1 %v20217_v54  ;;  %4664 = vperm.xlu0 %16154, %v4604_v58  }
 0x918   : > { %5069 = vperm.xlu1 %16155, %v12905_v61   ;;  %v16272_v61 = vld [vmem:[%s20199_s14 + $0x10] sm:$0xff]  }
 0x91a   : > { %14677 = vmatpush3.bf16.msra.mxu1 %v16267_v53 }
 0x91b   : > { %14690 = vmatprep.subr.bf16.mxu1 %v20217_v54  ;;  %4855 = vperm.xlu0 %16154, %v12878_v60  }
 0x91c   : > { %5278 = vperm.xlu1 %16155, %v12931_v63  }
 0x91f   : > { %5064 = vperm.xlu0 %16154, %v12904_v62   ;;  %v16273_v62 = vld [vmem:[%s20199_s14 + $0x18] sm:$0xff]  }
 0x920   : > { %4679 = vperm.xlu1 %16155, %v4607_v1  }
 0x923   : > { %5273 = vperm.xlu0 %16154, %v12930_v0  }
 0x924   : > { %4870 = vperm.xlu1 %16155, %v12881_v3  }
 0x927   : > { %4674 = vperm.xlu0 %16154, %v4606_v2  }
 0x928   : > { %5079 = vperm.xlu1 %16155, %v12907_v5  }
 0x92b   : > { %4865 = vperm.xlu0 %16154, %v12880_v4  }
 0x92c   : > { %5288 = vperm.xlu1 %16155, %v12933_v7  }
 0x92f   : > { %5074 = vperm.xlu0 %16154, %v12906_v6  }
 0x930   : > { %4689 = vperm.xlu1 %16155, %v4609_v9  }
 0x933   : > { %5283 = vperm.xlu0 %16154, %v12932_v8  }
 0x934   : > { %4880 = vperm.xlu1 %16155, %v12883_v11  }
 0x937   : > { %4684 = vperm.xlu0 %16154, %v4608_v10  }
 0x938   : > { %5089 = vperm.xlu1 %16155, %v12909_v13  }
 0x93b   : > { %4875 = vperm.xlu0 %16154, %v12882_v12  }
 0x93c   : > { %5298 = vperm.xlu1 %16155, %v12935_v15  }
 0x93f   : > { %5084 = vperm.xlu0 %16154, %v12908_v14  }
 0x940   : > { %4699 = vperm.xlu1 %16155, %v4611_v17  }
 0x943   : > { %5293 = vperm.xlu0 %16154, %v12934_v16  }
 0x944   : > { %4890 = vperm.xlu1 %16155, %v12885_v19  }
 0x947   : > { %4694 = vperm.xlu0 %16154, %v4610_v18  }
 0x948   : > { %5099 = vperm.xlu1 %16155, %v12911_v21  }
 0x94b   : > { %4885 = vperm.xlu0 %16154, %v12884_v20  }
 0x94c   : > { %5308 = vperm.xlu1 %16155, %v12937_v23  }
 0x94f   : > { %5094 = vperm.xlu0 %16154, %v12910_v22  }
 0x953   : > { %5303 = vperm.xlu0 %16154, %v12936_v24  }
 0x9e8   : > { %v4272_v36 = vpop.f32.mrb[48].mxu1 }
 0x9e9   : > { %v4279_v37 = vmax.f32 %v4272_v36, 0.0  ;;  %v14624_v38 = vpop.f32.mrb[49].mxu1  ;;  %v17650_v36 = vpop.permute.xlu1 %4815 }
 0x9ea   : > { %v4275_v39 = vpop.f32.mrb[50].mxu1 }
 0x9eb   : > { %v4281_v41 = vpack.c.bf16 %v4279_v37, %v4279_v37  ;;  %v14625_v42 = vpop.f32.mrb[51].mxu1  ;;  %v17652_v37 = vpop.permute.xlu0 %4624 }
 0x9ed   : > { %14631 = vmatmul.mubr.msk.bf16.vlgmr.msra.gmra.mrb[68].mxu0 %vm3114_vm7, %v4281_v41  ;;  %v4347_v45 = vshrl.u32 %v4281_v41, 16  ;;  %v4411_v48 = vrot.slane %v4281_v41, 1  ;;  %v17654_v38 = vpop.permute.xlu1 %4820 }
 0x9ee   : > { %14635 = vmatpush3.bf16.msra.mxu0 %v16258_v40  ;;  %14638 = vmatprep.mubr.msk.bf16.mxu0 %vm16544_vm2, %v20217_v54 }
 0x9ef   : > { %14636 = vmatprep.subr.bf16.mxu0 %v20217_v54  ;;  %v4473_v51 = vrot.slane %v4347_v45, 1  ;;  %v17656_v39 = vpop.permute.xlu0 %4629 }
 0x9f1   : > { %v17658_v40 = vpop.permute.xlu1 %5029 }
 0x9f2   : > { %14637 = vmatpush3.bf16.msra.mxu0 %v16259_v43 }
 0x9f3   : > { %14642 = vmatprep.subr.bf16.mxu0 %v20217_v54  ;;  %v17660_v41 = vpop.permute.xlu0 %5024 }
 0x9f5   : > { %v17662_v42 = vpop.permute.xlu1 %5238 }
 0x9f7   : > { %v17664_v43 = vpop.permute.xlu0 %5233 }
 0x9f9   : > { %14639 = vmatmul.mubr.msk.bf16.vlgmr.msra.gmra.mrb[68].mxu0 %vm3114_vm7, %v4347_v45 }
 0x9fa   : > { %14643 = vmatpush3.bf16.msra.mxu0 %v16260_v44  ;;  %14646 = vmatprep.mubr.msk.bf16.mxu0 %vm16544_vm2, %v20217_v54  ;;  %v17666_v44 = vpop.permute.xlu1 %4619 }
 0x9fb   : > { %14644 = vmatprep.subr.bf16.mxu0 %v20217_v54  ;;  %v17668_v45 = vpop.permute.xlu0 %4614 }
 0x9fe   : > { %14645 = vmatpush3.bf16.msra.mxu0 %v16261_v46  ;;  %v17670_v46 = vpop.permute.xlu1 %4810 }
 0x9ff   : > { %14650 = vmatprep.subr.bf16.mxu0 %v20217_v54 }
 0xa05   : > { %14647 = vmatmul.mubr.msk.bf16.vlgmr.msra.gmra.mrb[68].mxu0 %vm3114_vm7, %v4411_v48  ;;  %v17674_v48 = vpop.permute.xlu1 %5019 }
 0xa06   : > { %14651 = vmatpush3.bf16.msra.mxu0 %v16262_v47  ;;  %14654 = vmatprep.mubr.msk.bf16.mxu0 %vm16544_vm2, %v20217_v54  ;;  %v17672_v47 = vpop.permute.xlu0 %4805 }
 0xa07   : > { %14652 = vmatprep.subr.bf16.mxu0 %v20217_v54 }
 0xa0a   : > { %14653 = vmatpush3.bf16.msra.mxu0 %v16263_v49  ;;  %v17676_v49 = vpop.permute.xlu0 %5014 }
 0xa0b   : > { %14658 = vmatprep.subr.bf16.mxu0 %v20217_v54 }
 0xa11   : > { %14655 = vmatmul.mubr.msk.bf16.vlgmr.msra.gmra.mrb[68].mxu0 %vm3114_vm7, %v4473_v51  ;;  %v17680_v51 = vpop.permute.xlu0 %5223 }
 0xa12   : > { %14659 = vmatpush3.bf16.msra.mxu0 %v16264_v50  ;;  %14662 = vmatprep.mubr.msk.bf16.mxu0 %vm16544_vm2, %v20217_v54  ;;  %v17678_v50 = vpop.permute.xlu1 %5228 }
 0xa13   : > { %14660 = vmatprep.subr.bf16.mxu0 %v20217_v54  ;;  %20251 = vst [vmem:[#allocation11_spill] sm:$0xff] %v17678_v50 }
 0xa15   : > { %v17684_v53 = vpop.permute.xlu0 %4634 }
 0xa16   : > { %14661 = vmatpush3.bf16.msra.mxu0 %v16266_v52  ;;  %v17682_v52 = vpop.permute.xlu1 %4639 }
 0xa17   : > { %14666 = vmatprep.subr.bf16.mxu0 %v20217_v54 }
 0xa19   : > { %v17688_v56 = vpop.permute.xlu0 %4825 }
 0xa1a   : > { %v17686_v55 = vpop.permute.xlu1 %4830 }
 0xa1d   : > { %v17692_v58 = vpop.permute.xlu0 %5034 }
 0xa1e   : > { %v17690_v57 = vpop.permute.xlu1 %5039 }
 0xa21   : > { %v17696_v60 = vpop.permute.xlu0 %5243 }
 0xa22   : > { %v17694_v59 = vpop.permute.xlu1 %5248  ;;  %20253 = vst [vmem:[#allocation13_spill] sm:$0xff] %v17696_v60 }
 0xa23   : > { %20252 = vst [vmem:[#allocation12_spill] sm:$0xff] %v17694_v59 }
 0xa25   : > { %v17707_v0 = vpop.permute.xlu0 %4644 }
 0xa26   : > { %v17705_v63 = vpop.permute.xlu1 %4649 }
 0xa29   : > { %v17712_v2 = vpop.permute.xlu0 %4835 }
 0xa2a   : > { %v17710_v1 = vpop.permute.xlu1 %4840 }
 0xa2d   : > { %v17716_v4 = vpop.permute.xlu0 %5044 }
 0xa2e   : > { %v17714_v3 = vpop.permute.xlu1 %5049 }
 0xa31   : > { %v17720_v6 = vpop.permute.xlu0 %5253 }
 0xa32   : > { %v17718_v5 = vpop.permute.xlu1 %5258  ;;  %20255 = vst [vmem:[#allocation15_spill] sm:$0xff] %v17720_v6 }
 0xa33   : > { %20254 = vst [vmem:[#allocation14_spill] sm:$0xff] %v17718_v5 }
 0xa35   : > { %v17724_v8 = vpop.permute.xlu0 %4654 }
 0xa36   : > { %v17722_v7 = vpop.permute.xlu1 %4659 }
 0xa39   : > { %v17728_v10 = vpop.permute.xlu0 %4845 }
 0xa3a   : > { %v17726_v9 = vpop.permute.xlu1 %4850 }
 0xa3d   : > { %v17732_v12 = vpop.permute.xlu0 %5054 }
 0xa3e   : > { %v17730_v11 = vpop.permute.xlu1 %5059 }
 0xa41   : > { %v17736_v14 = vpop.permute.xlu0 %5263 }
 0xa42   : > { %v17734_v13 = vpop.permute.xlu1 %5268  ;;  %20257 = vst [vmem:[#allocation17_spill] sm:$0xff] %v17736_v14 }
 0xa43   : > { %20256 = vst [vmem:[#allocation16_spill] sm:$0xff] %v17734_v13 }
 0xa45   : > { %v17740_v16 = vpop.permute.xlu0 %4664 }
 0xa46   : > { %v17738_v15 = vpop.permute.xlu1 %4669 }
 0xa49   : > { %v17744_v18 = vpop.permute.xlu0 %4855 }
 0xa4a   : > { %v17742_v17 = vpop.permute.xlu1 %4860 }
 0xa4d   : > { %v17748_v20 = vpop.permute.xlu0 %5064 }
 0xa4e   : > { %v17746_v19 = vpop.permute.xlu1 %5069 }
 0xa51   : > { %v17752_v22 = vpop.permute.xlu0 %5273 }
 0xa52   : > { %v17750_v21 = vpop.permute.xlu1 %5278  ;;  %20259 = vst [vmem:[#allocation19_spill] sm:$0xff] %v17752_v22 }
 0xa53   : > { %20258 = vst [vmem:[#allocation18_spill] sm:$0xff] %v17750_v21 }
 0xa55   : > { %v17756_v24 = vpop.permute.xlu0 %4674 }
 0xa56   : > { %v17754_v23 = vpop.permute.xlu1 %4679 }
 0xae4   : > { %v4523_v26 = vpop.f32.mrb[68].mxu0 }
 0xae5   : > { %v15536_v27 = vadd.f32 %v4523_v26, %v4280_v25  ;;  %v14656_v28 = vpop.f32.mrb[69].mxu0  ;;  %v17758_v25 = vpop.permute.xlu1 %4870 }
 0xae6   : > { %v4526_v29 = vpop.f32.mrb[70].mxu0  ;;  %20260 = vst [vmem:[#allocation20_spill] sm:$0xff] %v17758_v25  ;;  %v17760_v26 = vpop.permute.xlu0 %4865 }
 0xae7   : > { %v4532_v31 = vpack.c.bf16 %v15536_v27, %v15536_v27  ;;  %v14657_v32 = vpop.f32.mrb[71].mxu0  ;;  %4531 = vst.msk [vmem:[%s17625_s0] sm:$0x1] %vm4530_vm8, %v15536_v27 }
 0xae9   : > { %14663 = vmatmul.mubr.msk.bf16.vlgmr.msra.gmra.mrb[72].mxu0 %vm3114_vm7, %v4532_v31  ;;  %14679 = vmatmul.mubr.msk.bf16.vlgmr.msra.gmra.mrb[52].mxu1 %vm3114_vm7, %v4532_v31  ;;  %v17762_v27 = vpop.permute.xlu1 %5079 }
 0xaea   : > { %14667 = vmatpush3.bf16.msra.mxu0 %v16268_v30  ;;  %14670 = vmatprep.mubr.msk.bf16.mxu0 %vm16544_vm2, %v20217_v54  ;;  %v17764_v28 = vpop.permute.xlu0 %5074 }
 0xaeb   : > { %14668 = vmatprep.subr.bf16.mxu0 %v20217_v54  ;;  %14694 = vmatprep.mubr.msk.bf16.mxu1 %vm16544_vm2, %v20217_v54 }
 0xaec   : > { %14691 = vmatpush3.bf16.msra.mxu1 %v16272_v61  ;;  %v12890_v61 = vld [vmem:[%s20197_s12 + $0x2] sm:$0x1] }
 0xaed   : > { %14692 = vmatprep.subr.bf16.mxu1 %v20217_v54  ;;  %v17766_v29 = vpop.permute.xlu1 %5288 }
 0xaee   : > { %14669 = vmatpush3.bf16.msra.mxu0 %v16269_v33  ;;  %20261 = vst [vmem:[#allocation21_spill] sm:$0xff] %v17766_v29  ;;  %v17768_v30 = vpop.permute.xlu0 %5283  ;;  %v4702_v33 = vlaneseq }
 0xaef   : > { %14682 = vmatprep.subr.bf16.mxu0 %v20217_v54  ;;  %20262 = vst [vmem:[#allocation22_spill] sm:$0xff] %v17768_v30 }
 0xaf0   : > { %14693 = vmatpush3.bf16.msra.mxu1 %v16273_v62 }
 0xaf1   : > { %14671 = vmatmul.mubr.msk.bf16.vlgmr.msra.gmra.mrb[76].mxu0 %vm3114_vm7, %v4532_v31  ;;  %14698 = vmatprep.subr.bf16.mxu1 %v20217_v54 }
 0xaf2   : > { %14683 = vmatpush3.bf16.msra.mxu0 %v16270_v34  ;;  %14686 = vmatprep.mubr.msk.bf16.mxu0 %vm16544_vm2, %v20217_v54  ;;  %v4685_v32 = vpop.permute.xlu0 %4684  ;;  %v4703_v34 = vshrl.u32 %v4702_v33, 7 }
 0xaf3   : > { %14684 = vmatprep.subr.bf16.mxu0 %v20217_v54 }
 0xaf4   : > { %v17782_v21 = vsub.s32 0, %v4703_v34 }
 0xaf6   : > { %14685 = vmatpush3.bf16.msra.mxu0 %v16271_v35  ;;  %v4537_v35 = vld [vmem:[%s20197_s12] sm:$0x1]  ;;  %v17780_v54 = vpop.permute.xlu0 %4875 }
 0xaf7   : > { %20265 = vst [vmem:[#allocation25_spill] sm:$0xff] %v17780_v54 }
 0xaf9   : > { %14687 = vmatmul.mubr.msk.bf16.vlgmr.msra.gmra.mrb[80].mxu0 %vm3114_vm7, %v4532_v31  ;;  %v17770_v31 = vpop.permute.xlu1 %4689 }
 0xafa   : > { %20263 = vst [vmem:[#allocation23_spill] sm:$0xff] %v17770_v31 }
 0xafd   : > { %v17778_v62 = vpop.permute.xlu1 %4880 }
 0xafe   : > { %20264 = vst [vmem:[#allocation24_spill] sm:$0xff] %v17778_v62 }
 0xbbc   : > { %v4587_v29 = vpop.f32.mrb[72].mxu0  ;;  %v4986_v25 = vpop.f32.mrb[52].mxu1 }
 0xbbd   : > { %v4588_v30 = vadd.f32 %v4587_v29, %v4537_v35  ;;  %v4987_v31 = vadd.f32 %v12890_v61, %v4986_v25  ;;  %v14664_v22 = vpop.f32.mrb[73].mxu0  ;;  %v14680_v33 = vpop.f32.mrb[53].mxu1  ;;  %v12864_v29 = vld [vmem:[%s20197_s12 + $0x1] sm:$0x1] }
 0xbbe   : > { %v4590_v13 = vpop.f32.mrb[74].mxu0  ;;  %v4989_v14 = vpop.f32.mrb[54].mxu1 }
 0xbbf   : > { %v4593_v5 = vmax.f32 %v4588_v30, 0.0  ;;  %v4992_v6 = vmax.f32 %v4987_v31, 0.0  ;;  %v14665_v59 = vpop.f32.mrb[75].mxu0  ;;  %v14681_v60 = vpop.f32.mrb[55].mxu1 }
 0xbc0   : > { %v17811_v30 = vpop.permute.xlu1 %5089 }
 0xbc1   : > { %v17785_v50 = vrot.slane %v4593_v5, %v17782_v21  ;;  %v17788_v62 = vrot.slane %v4992_v6, %v17782_v21  ;;  %v17801_v5 = vpop.permute.xlu0 %5084  ;;  %20269 = vst [vmem:[#allocation29_spill] sm:$0xff] %v17811_v30 }
 0xbc2   : > { %20268 = vst [vmem:[#allocation28_spill] sm:$0xff] %v17801_v5 }
 0xbc3   : > { %20266 = vst [vmem:[#allocation26_spill] sm:$0xff] %v17785_v50  ;;  %20267 = vst [vmem:[#allocation27_spill] sm:$0xff] %v17788_v62  ;;  %v4708_v22 = vmul.f32 %v17785_v50, %v17652_v37  ;;  %v4709_v13 = vmul.f32 %v17785_v50, %v17656_v39  ;;  %v5108_v59 = vmul.f32 %v17788_v62, %v17660_v41 }
 0xbc4   : > { %v5109_v60 = vmul.f32 %v17788_v62, %v17658_v40  ;;  %v4777_v6 = vpop.f32.mrb[76].mxu0  ;;  %v4706_v14 = vmul.f32 %v17785_v50, %v17668_v45  ;;  %v4707_v25 = vmul.f32 %v17785_v50, %v17666_v44  ;;  %v5106_v37 = vmul.f32 %v17788_v62, %v17676_v49 }
 0xbc5   : > { %v5107_v39 = vmul.f32 %v17788_v62, %v17674_v48  ;;  %v4778_v41 = vadd.f32 %v12864_v29, %v4777_v6  ;;  %v14672_v31 = vpop.f32.mrb[77].mxu0  ;;  %v4710_v40 = vmul.f32 %v17785_v50, %v17684_v53  ;;  %v4711_v34 = vmul.f32 %v17785_v50, %v17682_v52  ;;  %v17888_v6 = vpop.permute.xlu1 %5298 }
 0xbc6   : > { %v5110_v45 = vmul.f32 %v17788_v62, %v17692_v58  ;;  %v4780_v44 = vpop.f32.mrb[78].mxu0  ;;  %v5111_v49 = vmul.f32 %v17788_v62, %v17690_v57  ;;  %v4712_v48 = vmul.f32 %v17785_v50, %v17707_v0  ;;  %v4713_v35 = vmul.f32 %v17785_v50, %v17705_v63  ;;  %20275 = vst [vmem:[#allocation35_spill] sm:$0xff] %v17888_v6 }
 0xbc7   : > { %v5112_v61 = vmul.f32 %v17788_v62, %v17716_v4  ;;  %v4783_v53 = vmax.f32 %v4778_v41, 0.0  ;;  %v14673_v33 = vpop.f32.mrb[79].mxu0  ;;  %v5113_v52 = vmul.f32 %v17788_v62, %v17714_v3  ;;  %v17831_v58 = vmul.f32 %v17785_v50, %v17724_v8 }
 0xbc8   : > { %v17835_v57 = vmul.f32 %v17785_v50, %v17722_v7  ;;  %v17839_v0 = vmul.f32 %v17788_v62, %v17732_v12  ;;  %v17843_v63 = vmul.f32 %v17788_v62, %v17730_v11  ;;  %v17847_v4 = vmul.f32 %v17785_v50, %v17740_v16  ;;  %v17868_v16 = vpop.permute.xlu0 %5293 }
 0xbc9   : > { %v17851_v3 = vmul.f32 %v17785_v50, %v17738_v15  ;;  %v17854_v8 = vrot.slane %v4783_v53, %v17782_v21  ;;  %v17858_v7 = vmul.f32 %v17788_v62, %v17748_v20  ;;  %v17862_v12 = vmul.f32 %v17788_v62, %v17746_v19  ;;  %20270 = vst [vmem:[#allocation30_spill] sm:$0xff] %v17868_v16  ;;  %v12916_v15 = vld [vmem:[%s20197_s12 + $0x3] sm:$0x1] }
 0xbca   : > { %v17866_v11 = vmul.f32 %v17785_v50, %v17756_v24  ;;  %v17875_v29 = vmul.f32 %v17785_v50, %v17754_v23  ;;  %v17879_v20 = vmul.f32 %v17788_v62, %v17764_v28  ;;  %v17883_v19 = vmul.f32 %v17788_v62, %v17762_v27 }
 0xbcb   : > { %v17886_v24 = vmul.f32 %v17785_v50, %v4685_v32  ;;  %v4899_v41 = vmul.f32 %v17854_v8, %v17650_v36  ;;  %v4900_v23 = vmul.f32 %v17854_v8, %v17654_v38  ;;  %v4897_v31 = vmul.f32 %v17854_v8, %v17672_v47 }
 0xbcc   : > { %20271 = vst [vmem:[#allocation31_spill] sm:$0xff] %v17875_v29  ;;  %20272 = vst [vmem:[#allocation32_spill] sm:$0xff] %v17879_v20  ;;  %v4898_v28 = vmul.f32 %v17854_v8, %v17670_v46  ;;  %v5195_v44 = vpop.f32.mrb[80].mxu0  ;;  %v4901_v27 = vmul.f32 %v17854_v8, %v17688_v56  ;;  %v4902_v32 = vmul.f32 %v17854_v8, %v17686_v55  ;;  %v17906_v50 = vpop.permute.xlu0 %4694 }
 0xbcd   : > { %20273 = vst [vmem:[#allocation33_spill] sm:$0xff] %v17883_v19  ;;  %20274 = vst [vmem:[#allocation34_spill] sm:$0xff] %v17886_v24  ;;  %v4903_v53 = vmul.f32 %v17854_v8, %v17712_v2  ;;  %v4904_v36 = vmul.f32 %v17854_v8, %v17710_v1  ;;  %v5196_v38 = vadd.f32 %v12916_v15, %v5195_v44  ;;  %v14688_v33 = vpop.f32.mrb[81].mxu0  ;;  %v17908_v44 = vpop.permute.xlu1 %4699 }
 0xbce   : > { %v4917_v6 = vadd.f32 %v4899_v41, %v4708_v22  ;;  %v4918_v47 = vadd.f32 %v4900_v23, %v4709_v13  ;;  %v4915_v24 = vadd.f32 %v4897_v31, %v4706_v14  ;;  %v5198_v16 = vpop.f32.mrb[82].mxu0  ;;  %v4916_v46 = vadd.f32 %v4898_v28, %v4707_v25  ;;  %v20281_v28 = vld [vmem:[#allocation17_spill] sm:$0xff]  ;;  %v16275_v33 = vld [vmem:[%s20199_s14 + $0x8] sm:$0xff]  }
 0xbcf   : > { %v4919_v30 = vadd.f32 %v4901_v27, %v4710_v40  ;;  %v4920_v62 = vadd.f32 %v4902_v32, %v4711_v34  ;;  %v4921_v5 = vadd.f32 %v4903_v53, %v4712_v48  ;;  %v5201_v56 = vmax.f32 %v5196_v38, 0.0  ;;  %v14689_v54 = vpop.f32.mrb[83].mxu0  ;;  %v20279_v40 = vld [vmem:[#allocation15_spill] sm:$0xff]  ;;  %v20280_v34 = vld [vmem:[#allocation14_spill] sm:$0xff]  ;;  %v20282_v32 = vld [vmem:[#allocation16_spill] sm:$0xff] }
 0xbd0   : > { %v5126_v19 = vadd.f32 %v5108_v59, %v4917_v6  ;;  %v5127_v55 = vadd.f32 %v5109_v60, %v4918_v47  ;;  %v5124_v20 = vadd.f32 %v5106_v37, %v4915_v24  ;;  %v5125_v2 = vadd.f32 %v5107_v39, %v4916_v46  ;;  %v20277_v39 = vld [vmem:[#allocation13_spill] sm:$0xff]  ;;  %v4886_v48 = vpop.permute.xlu0 %4885  ;;  %v20284_v46 = vld [vmem:[#allocation19_spill] sm:$0xff] }
 0xbd1   : > { %v5128_v29 = vadd.f32 %v5110_v45, %v4919_v30  ;;  %v5129_v1 = vadd.f32 %v5111_v49, %v4920_v62  ;;  %v4922_v15 = vadd.f32 %v4904_v36, %v4713_v35  ;;  %v17911_v22 = vrot.slane %v5201_v56, %v17782_v21  ;;  %v20278_v30 = vld [vmem:[#allocation12_spill] sm:$0xff]  ;;  %v16274_v35 = vld [vmem:[%s20199_s14] sm:$0xff]   ;;  %v4891_v6 = vpop.permute.xlu1 %4890 }
 0xbd2   : > { %v5130_v13 = vadd.f32 %v5112_v61, %v4921_v5  ;;  %v4905_v14 = vmul.f32 %v17854_v8, %v17728_v10  ;;  %v4906_v54 = vmul.f32 %v17854_v8, %v17726_v9  ;;  %v4907_v60 = vmul.f32 %v17854_v8, %v17744_v18  ;;  %v20276_v9 = vld [vmem:[#allocation11_spill] sm:$0xff] }
 0xbd3   : > { %v5131_v59 = vadd.f32 %v5113_v52, %v4922_v15  ;;  %v4908_v62 = vmul.f32 %v17854_v8, %v17742_v17  ;;  %v4909_v25 = vmul.f32 %v17854_v8, %v17760_v26  ;;  %v5317_v21 = vmul.f32 %v17911_v22, %v17664_v43 }
 0xbd4   : > { %v5318_v5 = vmul.f32 %v17911_v22, %v17662_v42  ;;  %v5315_v10 = vmul.f32 %v17911_v22, %v17680_v51  ;;  %v5316_v37 = vmul.f32 %v17911_v22, %v20276_v9  ;;  %v5319_v18 = vmul.f32 %v17911_v22, %v20277_v39  ;;  %v20291_v39 = vld [vmem:[#allocation26_spill] sm:$0xff] }
 0xbd5   : > { %v5320_v17 = vmul.f32 %v17911_v22, %v20278_v30  ;;  %v5321_v26 = vmul.f32 %v17911_v22, %v20279_v40  ;;  %v5322_v43 = vmul.f32 %v17911_v22, %v20280_v34  ;;  %v5335_v45 = vadd.f32 %v5317_v21, %v5126_v19  ;;  %v20289_v21 = vld [vmem:[#allocation21_spill] sm:$0xff]  ;;  %v20295_v34 = vld [vmem:[#allocation24_spill] sm:$0xff] }
 0xbd6   : > { %v5336_v42 = vadd.f32 %v5318_v5, %v5127_v55  ;;  %v17939_v49 = vadd.f32 %v5315_v10, %v5124_v20  ;;  %v17941_v51 = vadd.f32 %v5316_v37, %v5125_v2  ;;  %v17946_v61 = vadd.f32 %v5319_v18, %v5128_v29  ;;  %v20285_v55 = vld [vmem:[#allocation18_spill] sm:$0xff]  ;;  %v20286_v2 = vld [vmem:[#allocation20_spill] sm:$0xff]  ;;  %v5100_v10 = vpop.permute.xlu1 %5099  ;;  %v20293_v30 = vld [vmem:[#allocation33_spill] sm:$0xff] }
 0xbd7   : > { %v17948_v52 = vadd.f32 %v5320_v17, %v5129_v1  ;;  %v17950_v16 = vadd.f32 %v5321_v26, %v5130_v13  ;;  %v17952_v24 = vadd.f32 %v5322_v43, %v5131_v59  ;;  %v4923_v41 = vadd.f32 %v4905_v14, %v17831_v58  ;;  %v5095_v13 = vpop.permute.xlu0 %5094  ;;  %v20294_v40 = vld [vmem:[#allocation25_spill] sm:$0xff] }
 0xbd8   : > { %v5356_v19 = vpack.c.bf16 %v5336_v42, %v5335_v45  ;;  %v5351_v20 = vpack.c.bf16 %v17941_v51, %v17939_v49  ;;  %v4924_v23 = vadd.f32 %v4906_v54, %v17835_v57  ;;  %v5323_v27 = vmul.f32 %v17911_v22, %v20281_v28  ;;  %v20287_v54 = vld [vmem:[#allocation31_spill] sm:$0xff]  ;;  %v20296_v42 = vld [vmem:[#allocation28_spill] sm:$0xff]  ;;  %v20299_v28 = vld [vmem:[#allocation30_spill] sm:$0xff] }
 0xbd9   : > { %v5474_v31 = vpack.c.bf16 %v17948_v52, %v17946_v61  ;;  %v5538_v29 = vpack.c.bf16 %v17952_v24, %v17950_v16  ;;  %v5324_v53 = vmul.f32 %v17911_v22, %v20282_v32  ;;  %v5132_v36 = vadd.f32 %v17839_v0, %v4923_v41  ;;  %v20298_v41 = vld [vmem:[#allocation29_spill] sm:$0xff]  ;;  %v16281_v61 = vld [vmem:[%s20199_s14 + $0x48] sm:$0xff]   ;;  %v16284_v24 = vld [vmem:[%s20199_s14 + $0x60] sm:$0xff]  }
 0xbda   : > { %14695 = vmatmul.mubr.msk.bf16.vlgmr.msra.gmra.mrb[56].mxu1 %vm3114_vm7, %v5356_v19  ;;  %v5133_v58 = vadd.f32 %v17843_v63, %v4924_v23  ;;  %v4925_v57 = vadd.f32 %v4907_v60, %v17847_v4  ;;  %v4926_v38 = vadd.f32 %v4908_v62, %v17851_v3  ;;  %v20283_v47 = vmov 0.0   ;;  %v20288_v60 = vld [vmem:[#allocation22_spill] sm:$0xff]  ;;  %v16278_v49 = vld [vmem:[%s20199_s14 + $0x30] sm:$0xff]  }
 0xbdb   : > { %14699 = vmatpush3.bf16.msra.mxu1 %v16274_v35  ;;  %14702 = vmatprep.mubr.msk.bf16.mxu1 %vm16544_vm2, %v20283_v47  ;;  %v5325_v56 = vmul.f32 %v17911_v22, %v20284_v46  ;;  %v5326_v0 = vmul.f32 %v17911_v22, %v20285_v55  ;;  %v4910_v63 = vmul.f32 %v17854_v8, %v20286_v2  ;;  %v20297_v35 = vld [vmem:[#allocation27_spill] sm:$0xff]  ;;  %v16279_v51 = vld [vmem:[%s20199_s14 + $0x38] sm:$0xff]   ;;  %v16282_v52 = vld [vmem:[%s20199_s14 + $0x50] sm:$0xff]  }
 0xbdc   : > { %14700 = vmatprep.subr.bf16.mxu1 %v20283_v47  ;;  %v17983_v4 = vadd.f32 %v5323_v27, %v5132_v36  ;;  %v17985_v3 = vadd.f32 %v5324_v53, %v5133_v58  ;;  %v5134_v1 = vadd.f32 %v17858_v7, %v4925_v57  ;;  %v5135_v15 = vadd.f32 %v17862_v12, %v4926_v38  ;;  %v20290_v12 = vld [vmem:[#allocation23_spill] sm:$0xff]  ;;  %v20300_v36 = vld [vmem:[#allocation34_spill] sm:$0xff] }
 0xbdd   : > { %v4927_v14 = vadd.f32 %v4909_v25, %v17866_v11  ;;  %v4928_v59 = vadd.f32 %v4910_v63, %v20287_v54  ;;  %v5327_v62 = vmul.f32 %v17911_v22, %v20288_v60  ;;  %v5328_v5 = vmul.f32 %v17911_v22, %v20289_v21  ;;  %v20292_v11 = vld [vmem:[#allocation32_spill] sm:$0xff]  ;;  %v20301_v38 = vld [vmem:[#allocation35_spill] sm:$0xff]  ;;  %v5309_v54 = vpop.permute.xlu1 %5308  ;;  %v16283_v16 = vld [vmem:[%s20199_s14 + $0x58] sm:$0xff]  }
 0xbde   : > { %v5602_v9 = vpack.c.bf16 %v17985_v3, %v17983_v4  ;;  %v17997_v37 = vadd.f32 %v5325_v56, %v5134_v1  ;;  %v17999_v7 = vadd.f32 %v5326_v0, %v5135_v15  ;;  %v4721_v18 = vmul.f32 %v20291_v39, %v20290_v12  ;;  %v5304_v0 = vpop.permute.xlu0 %5303  ;;  %v16276_v2 = vld [vmem:[%s20199_s14 + $0x20] sm:$0xff]   ;;  %v16287_v4 = vld [vmem:[%s20199_s14 + $0x78] sm:$0xff]  }
 0xbdf   : > { %14701 = vmatpush3.bf16.msra.mxu1 %v16275_v33  ;;  %v5136_v25 = vadd.f32 %v20292_v11, %v4927_v14  ;;  %v5137_v17 = vadd.f32 %v20293_v30, %v4928_v59  ;;  %v4911_v26 = vmul.f32 %v17854_v8, %v20294_v40  ;;  %v4912_v43 = vmul.f32 %v17854_v8, %v20295_v34  ;;  %v16288_v3 = vld [vmem:[%s20199_s14 + $0x80] sm:$0xff]   ;;  %v16293_v34 = vld [vmem:[%s20202_s17 + $0x18] sm:$0xff]  }
 0xbe0   : > { %14706 = vmatprep.subr.bf16.mxu1 %v20283_v47  ;;  %v5666_v45 = vpack.c.bf16 %v17999_v7, %v17997_v37  ;;  %v5120_v19 = vmul.f32 %v20297_v35, %v20296_v42  ;;  %v5121_v23 = vmul.f32 %v20297_v35, %v20298_v41  ;;  %v5329_v27 = vmul.f32 %v17911_v22, %v20299_v28  ;;  %v16290_v37 = vld [vmem:[%s20202_s17] sm:$0xff]   ;;  %v16296_v42 = vld [vmem:[%s20202_s17 + $0x30] sm:$0xff]   ;;  %v16299_v41 = vld [vmem:[%s20202_s17 + $0x48] sm:$0xff]  }
 0xbe1   : > { %v18018_v32 = vadd.f32 %v5327_v62, %v5136_v25  ;;  %v18020_v53 = vadd.f32 %v5328_v5, %v5137_v17  ;;  %v4929_v58 = vadd.f32 %v4911_v26, %v20300_v36  ;;  %v4930_v57 = vadd.f32 %v4912_v43, %v4721_v18  ;;  %14764 = vmatprep.mubr.msk.bf16.mxu0 %vm2396_vm6, %v16290_v37  ;;  %v16292_v26 = vld [vmem:[%s20202_s17 + $0x10] sm:$0xff]   ;;  %v16294_v43 = vld [vmem:[%s20202_s17 + $0x20] sm:$0xff]   ;;  %v16301_v28 = vld [vmem:[%s20202_s17 + $0x58] sm:$0xff]  }
 0xbe2   : > { %v5330_v33 = vmul.f32 %v17911_v22, %v20301_v38  ;;  %v4722_v46 = vmul.f32 %v20291_v39, %v17906_v50  ;;  %v4723_v56 = vmul.f32 %v20291_v39, %v17908_v44  ;;  %v4913_v55 = vmul.f32 %v17854_v8, %v4886_v48  ;;  %v16305_v36 = vld [vmem:[%s20202_s17 + $0x78] sm:$0xff]   ;;  %v16308_v38 = vld [vmem:[%s20202_s17 + $0x90] sm:$0xff]  }
 0xbe3   : > { %v5730_v63 = vpack.c.bf16 %v18020_v53, %v18018_v32  ;;  %v5138_v1 = vadd.f32 %v5120_v19, %v4929_v58  ;;  %v5139_v15 = vadd.f32 %v5121_v23, %v4930_v57  ;;  %v4914_v14 = vmul.f32 %v17854_v8, %v4891_v6  ;;  %v16277_v8 = vld [vmem:[%s20199_s14 + $0x28] sm:$0xff]   ;;  %v16298_v19 = vld [vmem:[%s20202_s17 + $0x40] sm:$0xff]   ;;  %v16300_v23 = vld [vmem:[%s20202_s17 + $0x50] sm:$0xff]  }
 0xbe4   : > { %v4931_v59 = vadd.f32 %v4913_v55, %v4722_v46  ;;  %v5122_v50 = vmul.f32 %v20297_v35, %v5095_v13  ;;  %v5123_v44 = vmul.f32 %v20297_v35, %v5100_v10  ;;  %v5331_v48 = vmul.f32 %v17911_v22, %v5304_v0  ;;  %v16297_v35 = vld [vmem:[%s20202_s17 + $0x38] sm:$0xff]   ;;  %v16303_v32 = vld [vmem:[%s20202_s17 + $0x68] sm:$0xff]   ;;  %v16304_v53 = vld [vmem:[%s20202_s17 + $0x70] sm:$0xff]  }
 0xbe5   : > { %v5347_v60 = vadd.f32 %v5329_v27, %v5138_v1  ;;  %v5348_v62 = vadd.f32 %v5330_v33, %v5139_v15  ;;  %v4932_v21 = vadd.f32 %v4914_v14, %v4723_v56  ;;  %v5332_v5 = vmul.f32 %v17911_v22, %v5309_v54  ;;  %v16302_v27 = vld [vmem:[%s20202_s17 + $0x60] sm:$0xff]   ;;  %v16307_v57 = vld [vmem:[%s20202_s17 + $0x88] sm:$0xff]   ;;  %v16309_v33 = vld [vmem:[%s20202_s17 + $0x98] sm:$0xff]  }
 0xbe6   : > { %14703 = vmatmul.mubr.msk.bf16.vlgmr.msra.gmra.mrb[56].mxu1 %vm3114_vm7, %v5351_v20  ;;  %v5140_v12 = vadd.f32 %v5122_v50, %v4931_v59  ;;  %v16280_v20 = vld [vmem:[%s20199_s14 + $0x40] sm:$0xff]   ;;  %v16311_v56 = vld [vmem:[%s20202_s17 + $0xa8] sm:$0xff]   ;;  %v16312_v55 = vld [vmem:[%s20202_s17 + $0xb0] sm:$0xff]  }
 0xbe7   : > { %14707 = vmatpush3.bf16.msra.mxu1 %v16276_v2  ;;  %14710 = vmatprep.mubr.msk.bf16.mxu1 %vm16544_vm2, %v20283_v47  ;;  %v5794_v6 = vpack.c.bf16 %v5348_v62, %v5347_v60  ;;  %v5141_v13 = vadd.f32 %v5123_v44, %v4932_v21  ;;  %v16306_v58 = vld [vmem:[%s20202_s17 + $0x80] sm:$0xff]   ;;  %v16313_v0 = vld [vmem:[%s20202_s17 + $0xb8] sm:$0xff]   ;;  %v16316_v1 = vld [vmem:[%s20202_s17 + $0xd0] sm:$0xff]  }
 0xbe8   : > { %14708 = vmatprep.subr.bf16.mxu1 %v20283_v47  ;;  %v5349_v10 = vadd.f32 %v5331_v48, %v5140_v12  ;;  %v16310_v46 = vld [vmem:[%s20202_s17 + $0xa0] sm:$0xff]   ;;  %v16317_v15 = vld [vmem:[%s20202_s17 + $0xd8] sm:$0xff]   ;;  %v16326_v54 = vld [vmem:[%s20200_s15 + $0x8] sm:$0xff]  }
 0xbe9   : > { %v5350_v22 = vadd.f32 %v5332_v5, %v5141_v13  ;;  %v16314_v2 = vld [vmem:[%s20202_s17 + $0xc0] sm:$0xff]   ;;  %v16319_v59 = vld [vmem:[%s20202_s17 + $0xe8] sm:$0xff]   ;;  %v16320_v50 = vld [vmem:[%s20202_s17 + $0xf0] sm:$0xff]  }
 0xbea   : > { %v16318_v14 = vld [vmem:[%s20202_s17 + $0xe0] sm:$0xff]   ;;  %v16321_v48 = vld [vmem:[%s20202_s17 + $0xf8] sm:$0xff]   ;;  %v16323_v62 = vld [vmem:[%s20202_s17 + $0x108] sm:$0xff]  }
 0xbeb   : > { %14709 = vmatpush3.bf16.msra.mxu1 %v16277_v8  ;;  %v5858_v39 = vpack.c.bf16 %v5350_v22, %v5349_v10  ;;  %v16327_v44 = vld [vmem:[%s20200_s15] sm:$0xff]   ;;  %v16324_v21 = vld [vmem:[%s20202_s17 + $0x110] sm:$0xff]   ;;  %v16325_v5 = vld [vmem:[%s20202_s17 + $0x118] sm:$0xff]  }
 0xbec   : > { %14714 = vmatprep.subr.bf16.mxu1 %v20283_v47  ;;  %v16322_v60 = vld [vmem:[%s20202_s17 + $0x100] sm:$0xff]  }
 0xbf2   : > { %14711 = vmatmul.mubr.msk.bf16.vlgmr.msra.gmra.mrb[56].mxu1 %vm3114_vm7, %v5474_v31  ;;  %v16285_v31 = vld [vmem:[%s20199_s14 + $0x68] sm:$0xff]  }
 0xbf3   : > { %14715 = vmatpush3.bf16.msra.mxu1 %v16278_v49  ;;  %14718 = vmatprep.mubr.msk.bf16.mxu1 %vm16544_vm2, %v20283_v47 }
 0xbf4   : > { %14716 = vmatprep.subr.bf16.mxu1 %v20283_v47 }
 0xbf7   : > { %14717 = vmatpush3.bf16.msra.mxu1 %v16279_v51 }
 0xbf8   : > { %14722 = vmatprep.subr.bf16.mxu1 %v20283_v47 }
 0xbfe   : > { %14719 = vmatmul.mubr.msk.bf16.vlgmr.msra.gmra.mrb[56].mxu1 %vm3114_vm7, %v5538_v29  ;;  %v16286_v29 = vld [vmem:[%s20199_s14 + $0x70] sm:$0xff]  }
 0xbff   : > { %14723 = vmatpush3.bf16.msra.mxu1 %v16280_v20  ;;  %14726 = vmatprep.mubr.msk.bf16.mxu1 %vm16544_vm2, %v20283_v47 }
 0xc00   : > { %14724 = vmatprep.subr.bf16.mxu1 %v20283_v47 }
 0xc03   : > { %14725 = vmatpush3.bf16.msra.mxu1 %v16281_v61 }
 0xc04   : > { %14730 = vmatprep.subr.bf16.mxu1 %v20283_v47 }
 0xc0a   : > { %14727 = vmatmul.mubr.msk.bf16.vlgmr.msra.gmra.mrb[56].mxu1 %vm3114_vm7, %v5602_v9  ;;  %v16289_v9 = vld [vmem:[%s20199_s14 + $0x88] sm:$0xff]  }
 0xc0b   : > { %14731 = vmatpush3.bf16.msra.mxu1 %v16282_v52  ;;  %14734 = vmatprep.mubr.msk.bf16.mxu1 %vm16544_vm2, %v20283_v47 }
 0xc0c   : > { %14732 = vmatprep.subr.bf16.mxu1 %v20283_v47 }
 0xc0f   : > { %14733 = vmatpush3.bf16.msra.mxu1 %v16283_v16 }
 0xc10   : > { %14738 = vmatprep.subr.bf16.mxu1 %v20283_v47 }
 0xc16   : > { %14735 = vmatmul.mubr.msk.bf16.vlgmr.msra.gmra.mrb[56].mxu1 %vm3114_vm7, %v5666_v45  ;;  %v16295_v45 = vld [vmem:[%s20202_s17 + $0x28] sm:$0xff]  }
 0xc17   : > { %14739 = vmatpush3.bf16.msra.mxu1 %v16284_v24  ;;  %14742 = vmatprep.mubr.msk.bf16.mxu1 %vm16544_vm2, %v20283_v47 }
 0xc18   : > { %14740 = vmatprep.subr.bf16.mxu1 %v20283_v47 }
 0xc1b   : > { %14741 = vmatpush3.bf16.msra.mxu1 %v16285_v31 }
 0xc1c   : > { %14746 = vmatprep.subr.bf16.mxu1 %v20283_v47 }
 0xc22   : > { %14743 = vmatmul.mubr.msk.bf16.vlgmr.msra.gmra.mrb[56].mxu1 %vm3114_vm7, %v5730_v63  ;;  %v16315_v63 = vld [vmem:[%s20202_s17 + $0xc8] sm:$0xff]  }
 0xc23   : > { %14747 = vmatpush3.bf16.msra.mxu1 %v16286_v29  ;;  %14750 = vmatprep.mubr.msk.bf16.mxu1 %vm16544_vm2, %v20283_v47 }
 0xc24   : > { %14748 = vmatprep.subr.bf16.mxu1 %v20283_v47 }
 0xc27   : > { %14749 = vmatpush3.bf16.msra.mxu1 %v16287_v4 }
 0xc28   : > { %14754 = vmatprep.subr.bf16.mxu1 %v20283_v47 }
 0xc2e   : > { %14751 = vmatmul.mubr.msk.bf16.vlgmr.msra.gmra.mrb[56].mxu1 %vm3114_vm7, %v5794_v6 }
 0xc2f   : > { %14755 = vmatpush3.bf16.msra.mxu1 %v16288_v3  ;;  %14758 = vmatprep.mubr.msk.bf16.mxu1 %vm16544_vm2, %v20283_v47 }
 0xc30   : > { %14756 = vmatprep.subr.bf16.mxu1 %v20283_v47  ;;  %v16291_v47 = vld [vmem:[%s20202_s17 + $0x8] sm:$0xff]  }
 0xc33   : > { %14757 = vmatpush3.bf16.msra.mxu1 %v16289_v9  ;;  %v16328_v9 = vld [vmem:[%s20200_s15 + $0x10] sm:$0xff]  }
 0xc34   : > { %14836 = vmatprep.subr.bf16.mxu1 %v16326_v54 }
 0xc3a   : > { %14759 = vmatmul.mubr.msk.bf16.vlgmr.msra.gmra.mrb[56].mxu1 %vm3114_vm7, %v5858_v39 }
 0xc3b   : > { %14837 = vmatpush3.bf16.msra.mxu1 %v16326_v54 }
 0xc3c   : > { %14846 = vmatprep.subr.bf16.mxu1 %v16327_v44 }
 0xd0d   : > { %v5913_v7 = vpop.f32.mrb[56].mxu1 }
 0xd0e   : > { %v14760_v18 = vpop.f32.mrb[57].mxu1  ;;  %v5922_v25 = vmax.f32 %v5913_v7, 0.0 }
 0xd0f   : > { %v5916_v11 = vpop.f32.mrb[58].mxu1 }
 0xd10   : > { %v5923_v30 = vmax.f32 %v5916_v11, 0.0  ;;  %v14761_v17 = vpop.f32.mrb[59].mxu1 }
 0xd12   : > { %v5996_v40 = vpack.c.bf16 %v5923_v30, %v5922_v25 }
 0xd14   : > { %14762 = vmatprep.subr.bf16.mxu0 %v5996_v40 }
 0xd15   : > { %14763 = vmatpush3.bf16.msra.mxu0 %v5996_v40 }
 0xd18   : > { %14765 = vmatmul.mubr.msk.bf16.vlgmr.msra.gmra.mrb[84].mxu0 %vm2396_vm6, %v16291_v47 }
 0xd19   : > { %14768 = vmatprep.mubr.msk.bf16.mxu0 %vm2396_vm6, %v16292_v26 }
 0xd20   : > { %14769 = vmatmul.mubr.msk.bf16.gmra.mrb[88].mxu0 %vm2396_vm6, %v16293_v34 }
 0xd21   : > { %14772 = vmatprep.mubr.msk.bf16.mxu0 %vm2396_vm6, %v16294_v43 }
 0xd28   : > { %14773 = vmatmul.mubr.msk.bf16.gmra.mrb[92].mxu0 %vm2396_vm6, %v16295_v45  ;;  %v16329_v45 = vld [vmem:[%s20200_s15 + $0x18] sm:$0xff]  }
 0xd29   : > { %14776 = vmatprep.mubr.msk.bf16.mxu0 %vm2396_vm6, %v16296_v42 }
 0xd30   : > { %14777 = vmatmul.mubr.msk.bf16.gmra.mrb[96].mxu0 %vm2396_vm6, %v16297_v35 }
 0xd31   : > { %14780 = vmatprep.mubr.msk.bf16.mxu0 %vm2396_vm6, %v16298_v19 }
 0xd38   : > { %14781 = vmatmul.mubr.msk.bf16.gmra.mrb[100].mxu0 %vm2396_vm6, %v16299_v41 }
 0xd39   : > { %14784 = vmatprep.mubr.msk.bf16.mxu0 %vm2396_vm6, %v16300_v23 }
 0xd40   : > { %14785 = vmatmul.mubr.msk.bf16.gmra.mrb[104].mxu0 %vm2396_vm6, %v16301_v28 }
 0xd41   : > { %14788 = vmatprep.mubr.msk.bf16.mxu0 %vm2396_vm6, %v16302_v27 }
 0xd48   : > { %14789 = vmatmul.mubr.msk.bf16.gmra.mrb[108].mxu0 %vm2396_vm6, %v16303_v32 }
 0xd49   : > { %14792 = vmatprep.mubr.msk.bf16.mxu0 %vm2396_vm6, %v16304_v53 }
 0xd50   : > { %14793 = vmatmul.mubr.msk.bf16.gmra.mrb[112].mxu0 %vm2396_vm6, %v16305_v36 }
 0xd51   : > { %14796 = vmatprep.mubr.msk.bf16.mxu0 %vm2396_vm6, %v16306_v58 }
 0xd58   : > { %14797 = vmatmul.mubr.msk.bf16.gmra.mrb[116].mxu0 %vm2396_vm6, %v16307_v57 }
 0xd59   : > { %14800 = vmatprep.mubr.msk.bf16.mxu0 %vm2396_vm6, %v16308_v38  ;;  %v16330_v38 = vld [vmem:[%s20200_s15 + $0x20] sm:$0xff]  }
 0xd60   : > { %14801 = vmatmul.mubr.msk.bf16.gmra.mrb[120].mxu0 %vm2396_vm6, %v16309_v33 }
 0xd61   : > { %14804 = vmatprep.mubr.msk.bf16.mxu0 %vm2396_vm6, %v16310_v46 }
 0xd68   : > { %14805 = vmatmul.mubr.msk.bf16.gmra.mrb[124].mxu0 %vm2396_vm6, %v16311_v56 }
 0xd69   : > { %14808 = vmatprep.mubr.msk.bf16.mxu0 %vm2396_vm6, %v16312_v55 }
 0xd70   : > { %14809 = vmatmul.mubr.msk.bf16.gmra.mrb[128].mxu0 %vm2396_vm6, %v16313_v0 }
 0xd71   : > { %14812 = vmatprep.mubr.msk.bf16.mxu0 %vm2396_vm6, %v16314_v2 }
 0xd78   : > { %14813 = vmatmul.mubr.msk.bf16.gmra.mrb[132].mxu0 %vm2396_vm6, %v16315_v63 }
 0xd79   : > { %14816 = vmatprep.mubr.msk.bf16.mxu0 %vm2396_vm6, %v16316_v1 }
 0xd80   : > { %14817 = vmatmul.mubr.msk.bf16.gmra.mrb[136].mxu0 %vm2396_vm6, %v16317_v15 }
 0xd81   : > { %14820 = vmatprep.mubr.msk.bf16.mxu0 %vm2396_vm6, %v16318_v14 }
 0xd88   : > { %14821 = vmatmul.mubr.msk.bf16.gmra.mrb[140].mxu0 %vm2396_vm6, %v16319_v59 }
 0xd89   : > { %14824 = vmatprep.mubr.msk.bf16.mxu0 %vm2396_vm6, %v16320_v50  ;;  %v16331_v50 = vld [vmem:[%s20200_s15 + $0x28] sm:$0xff]  }
 0xd90   : > { %14825 = vmatmul.mubr.msk.bf16.gmra.mrb[144].mxu0 %vm2396_vm6, %v16321_v48 }
 0xd91   : > { %14828 = vmatprep.mubr.msk.bf16.mxu0 %vm2396_vm6, %v16322_v60 }
 0xd98   : > { %14829 = vmatmul.mubr.msk.bf16.gmra.mrb[148].mxu0 %vm2396_vm6, %v16323_v62 }
 0xd99   : > { %14832 = vmatprep.mubr.msk.bf16.mxu0 %vm2396_vm6, %v16324_v21 }
 0xda0   : > { %14833 = vmatmul.mubr.msk.bf16.gmra.mrb[152].mxu0 %vm2396_vm6, %v16325_v5 }
 0xdeb   : > { %v14766_v12 = vpop.f32.mrb[84].mxu0 }
 0xdec   : > { %v6319_v8 = vpop.f32.mrb[85].mxu0 }
 0xded   : > { %v14767_v6 = vpop.f32.mrb[86].mxu0 }
 0xdee   : > { %v6607_v13 = vpack.c.bf16 %v14767_v6, %v14766_v12  ;;  %v6322_v10 = vpop.f32.mrb[87].mxu0 }
 0xdef   : > { %v6606_v22 = vpack.c.bf16 %v6322_v10, %v6319_v8 }
 0xdf3   : > { %v14770_v39 = vpop.f32.mrb[88].mxu0 }
 0xdf4   : > { %v6335_v49 = vpop.f32.mrb[89].mxu0 }
 0xdf5   : > { %v14771_v51 = vpop.f32.mrb[90].mxu0 }
 0xdf6   : > { %v6609_v20 = vpack.c.bf16 %v14771_v51, %v14770_v39  ;;  %v6338_v61 = vpop.f32.mrb[91].mxu0  ;;  %v16332_v39 = vld [vmem:[%s20200_s15 + $0x30] sm:$0xff]  }
 0xdf7   : > { %v6608_v52 = vpack.c.bf16 %v6338_v61, %v6335_v49 }
 0xdfb   : > { %v14774_v16 = vpop.f32.mrb[92].mxu0 }
 0xdfc   : > { %v6351_v24 = vpop.f32.mrb[93].mxu0 }
 0xdfd   : > { %v14775_v31 = vpop.f32.mrb[94].mxu0 }
 0xdfe   : > { %v6613_v29 = vpack.c.bf16 %v14775_v31, %v14774_v16  ;;  %v6354_v4 = vpop.f32.mrb[95].mxu0 }
 0xdff   : > { %v6612_v3 = vpack.c.bf16 %v6354_v4, %v6351_v24 }
 0xe01   : > { %14838 = vmatprep.mubr.msk.bf16.mxu1 %vm2396_vm6, %v6612_v3 }
 0xe02   : > { %14839 = vmatmul.mubr.msk.bf16.vlgmr.msra.gmra.mrb[60].mxu1 %vm2396_vm6, %v6613_v29 }
 0xe03   : > { %v14778_v37 = vpop.f32.mrb[96].mxu0  ;;  %14847 = vmatpush3.bf16.msra.mxu1 %v16327_v44 }
 0xe04   : > { %v6367_v7 = vpop.f32.mrb[97].mxu0  ;;  %14856 = vmatprep.subr.bf16.mxu1 %v16328_v9 }
 0xe05   : > { %v14779_v18 = vpop.f32.mrb[98].mxu0 }
 0xe06   : > { %v6615_v11 = vpack.c.bf16 %v14779_v18, %v14778_v37  ;;  %v6370_v25 = vpop.f32.mrb[99].mxu0  ;;  %v16333_v37 = vld [vmem:[%s20200_s15 + $0x38] sm:$0xff]  }
 0xe07   : > { %v6614_v30 = vpack.c.bf16 %v6370_v25, %v6367_v7 }
 0xe09   : > { %14842 = vmatprep.mubr.msk.bf16.mxu1 %vm2396_vm6, %v6614_v30 }
 0xe0a   : > { %14843 = vmatmul.mubr.msk.bf16.gmra.mrb[64].mxu1 %vm2396_vm6, %v6615_v11 }
 0xe0b   : > { %14848 = vmatprep.mubr.msk.bf16.mxu1 %vm2396_vm6, %v6606_v22  ;;  %v14782_v17 = vpop.f32.mrb[100].mxu0 }
 0xe0c   : > { %v6383_v40 = vpop.f32.mrb[101].mxu0 }
 0xe0d   : > { %v14783_v47 = vpop.f32.mrb[102].mxu0 }
 0xe0e   : > { %v6786_v26 = vpack.c.bf16 %v14783_v47, %v14782_v17  ;;  %v6386_v34 = vpop.f32.mrb[103].mxu0 }
 0xe0f   : > { %v6785_v43 = vpack.c.bf16 %v6386_v34, %v6383_v40 }
 0xe12   : > { %14849 = vmatmul.mubr.msk.bf16.vlgmr.msra.gmra.mrb[60].mxu1 %vm2396_vm6, %v6607_v13 }
 0xe13   : > { %14852 = vmatprep.mubr.msk.bf16.mxu1 %vm2396_vm6, %v6608_v52  ;;  %14857 = vmatpush3.bf16.msra.mxu1 %v16328_v9  ;;  %v14786_v42 = vpop.f32.mrb[104].mxu0 }
 0xe14   : > { %v6399_v35 = vpop.f32.mrb[105].mxu0  ;;  %14866 = vmatprep.subr.bf16.mxu1 %v16329_v45 }
 0xe15   : > { %v14787_v19 = vpop.f32.mrb[106].mxu0 }
 0xe16   : > { %v6788_v41 = vpack.c.bf16 %v14787_v19, %v14786_v42  ;;  %v6402_v23 = vpop.f32.mrb[107].mxu0  ;;  %v16334_v42 = vld [vmem:[%s20200_s15 + $0x40] sm:$0xff]  }
 0xe17   : > { %v6787_v28 = vpack.c.bf16 %v6402_v23, %v6399_v35 }
 0xe1a   : > { %14853 = vmatmul.mubr.msk.bf16.gmra.mrb[64].mxu1 %vm2396_vm6, %v6609_v20 }
 0xe1b   : > { %14858 = vmatprep.mubr.msk.bf16.mxu1 %vm2396_vm6, %v6785_v43  ;;  %v14790_v27 = vpop.f32.mrb[108].mxu0 }
 0xe1c   : > { %v6415_v32 = vpop.f32.mrb[109].mxu0 }
 0xe1d   : > { %v14791_v53 = vpop.f32.mrb[110].mxu0 }
 0xe1e   : > { %v6884_v36 = vpack.c.bf16 %v14791_v53, %v14790_v27  ;;  %v6418_v58 = vpop.f32.mrb[111].mxu0 }
 0xe1f   : > { %v6883_v57 = vpack.c.bf16 %v6418_v58, %v6415_v32 }
 0xe22   : > { %14859 = vmatmul.mubr.msk.bf16.vlgmr.msra.gmra.mrb[60].mxu1 %vm2396_vm6, %v6786_v26 }
 0xe23   : > { %14862 = vmatprep.mubr.msk.bf16.mxu1 %vm2396_vm6, %v6787_v28  ;;  %14867 = vmatpush3.bf16.msra.mxu1 %v16329_v45  ;;  %v14794_v33 = vpop.f32.mrb[112].mxu0 }
 0xe24   : > { %v6431_v46 = vpop.f32.mrb[113].mxu0  ;;  %14876 = vmatprep.subr.bf16.mxu1 %v16330_v38 }
 0xe25   : > { %v14795_v56 = vpop.f32.mrb[114].mxu0 }
 0xe26   : > { %v6886_v55 = vpack.c.bf16 %v14795_v56, %v14794_v33  ;;  %v6434_v0 = vpop.f32.mrb[115].mxu0 }
 0xe27   : > { %v6885_v2 = vpack.c.bf16 %v6434_v0, %v6431_v46 }
 0xe2a   : > { %14863 = vmatmul.mubr.msk.bf16.gmra.mrb[64].mxu1 %vm2396_vm6, %v6788_v41 }
 0xe2b   : > { %14868 = vmatprep.mubr.msk.bf16.mxu1 %vm2396_vm6, %v6883_v57  ;;  %v14798_v63 = vpop.f32.mrb[116].mxu0 }
 0xe2c   : > { %v6447_v1 = vpop.f32.mrb[117].mxu0 }
 0xe2d   : > { %v14799_v15 = vpop.f32.mrb[118].mxu0 }
 0xe2e   : > { %v6982_v14 = vpack.c.bf16 %v14799_v15, %v14798_v63  ;;  %v6450_v54 = vpop.f32.mrb[119].mxu0  ;;  %v16335_v63 = vld [vmem:[%s20203_s18] sm:$0xff]  }
 0xe2f   : > { %v6981_v59 = vpack.c.bf16 %v6450_v54, %v6447_v1  ;;  %14934 = vmatprep.mubr.msk.bf16.mxu0 %vm1763_vm3, %v16335_v63  ;;  %v16377_v63 = vld [vmem:[%s20203_s18 + $0x150] sm:$0xff]  }
 0xe32   : > { %14869 = vmatmul.mubr.msk.bf16.vlgmr.msra.gmra.mrb[60].mxu1 %vm2396_vm6, %v6884_v36 }
 0xe33   : > { %14872 = vmatprep.mubr.msk.bf16.mxu1 %vm2396_vm6, %v6885_v2  ;;  %14877 = vmatpush3.bf16.msra.mxu1 %v16330_v38  ;;  %v14802_v44 = vpop.f32.mrb[120].mxu0 }
 0xe34   : > { %v6463_v48 = vpop.f32.mrb[121].mxu0  ;;  %14886 = vmatprep.subr.bf16.mxu1 %v16331_v50 }
 0xe35   : > { %v14803_v60 = vpop.f32.mrb[122].mxu0 }
 0xe36   : > { %v6984_v62 = vpack.c.bf16 %v14803_v60, %v14802_v44  ;;  %v6466_v21 = vpop.f32.mrb[123].mxu0 }
 0xe37   : > { %v6983_v5 = vpack.c.bf16 %v6466_v21, %v6463_v48 }
 0xe3a   : > { %14873 = vmatmul.mubr.msk.bf16.gmra.mrb[64].mxu1 %vm2396_vm6, %v6886_v55 }
 0xe3b   : > { %14878 = vmatprep.mubr.msk.bf16.mxu1 %vm2396_vm6, %v6981_v59  ;;  %v14806_v12 = vpop.f32.mrb[124].mxu0 }
 0xe3c   : > { %v6479_v8 = vpop.f32.mrb[125].mxu0 }
 0xe3d   : > { %v14807_v6 = vpop.f32.mrb[126].mxu0 }
 0xe3e   : > { %v7080_v13 = vpack.c.bf16 %v14807_v6, %v14806_v12  ;;  %v6482_v10 = vpop.f32.mrb[127].mxu0 }
 0xe3f   : > { %v7079_v22 = vpack.c.bf16 %v6482_v10, %v6479_v8 }
 0xe42   : > { %14879 = vmatmul.mubr.msk.bf16.vlgmr.msra.gmra.mrb[60].mxu1 %vm2396_vm6, %v6982_v14 }
 0xe43   : > { %14882 = vmatprep.mubr.msk.bf16.mxu1 %vm2396_vm6, %v6983_v5  ;;  %14887 = vmatpush3.bf16.msra.mxu1 %v16331_v50  ;;  %v14810_v49 = vpop.f32.mrb[128].mxu0 }
 0xe44   : > { %v6495_v51 = vpop.f32.mrb[129].mxu0  ;;  %14896 = vmatprep.subr.bf16.mxu1 %v16332_v39 }
 0xe45   : > { %v14811_v20 = vpop.f32.mrb[130].mxu0 }
 0xe46   : > { %v7082_v61 = vpack.c.bf16 %v14811_v20, %v14810_v49  ;;  %v6498_v52 = vpop.f32.mrb[131].mxu0  ;;  %v16337_v20 = vld [vmem:[%s20203_s18 + $0x10] sm:$0xff]  }
 0xe47   : > { %v7081_v16 = vpack.c.bf16 %v6498_v52, %v6495_v51  ;;  %v16336_v51 = vld [vmem:[%s20203_s18 + $0x8] sm:$0xff]   ;;  %v16339_v52 = vld [vmem:[%s20203_s18 + $0x20] sm:$0xff]  }
 0xe4a   : > { %14883 = vmatmul.mubr.msk.bf16.gmra.mrb[64].mxu1 %vm2396_vm6, %v6984_v62 }
 0xe4b   : > { %14888 = vmatprep.mubr.msk.bf16.mxu1 %vm2396_vm6, %v7079_v22  ;;  %v14814_v24 = vpop.f32.mrb[132].mxu0 }
 0xe4c   : > { %v6511_v31 = vpop.f32.mrb[133].mxu0 }
 0xe4d   : > { %v14815_v29 = vpop.f32.mrb[134].mxu0 }
 0xe4e   : > { %v7178_v4 = vpack.c.bf16 %v14815_v29, %v14814_v24  ;;  %v6514_v3 = vpop.f32.mrb[135].mxu0  ;;  %v16341_v24 = vld [vmem:[%s20203_s18 + $0x30] sm:$0xff]   ;;  %v16343_v29 = vld [vmem:[%s20203_s18 + $0x40] sm:$0xff]  }
 0xe4f   : > { %v7177_v9 = vpack.c.bf16 %v6514_v3, %v6511_v31  ;;  %v16342_v31 = vld [vmem:[%s20203_s18 + $0x38] sm:$0xff]   ;;  %v16345_v3 = vld [vmem:[%s20203_s18 + $0x50] sm:$0xff]  }
 0xe52   : > { %14889 = vmatmul.mubr.msk.bf16.vlgmr.msra.gmra.mrb[60].mxu1 %vm2396_vm6, %v7080_v13 }
 0xe53   : > { %14892 = vmatprep.mubr.msk.bf16.mxu1 %vm2396_vm6, %v7081_v16  ;;  %14897 = vmatpush3.bf16.msra.mxu1 %v16332_v39  ;;  %v14818_v7 = vpop.f32.mrb[136].mxu0  ;;  %v16340_v16 = vld [vmem:[%s20203_s18 + $0x28] sm:$0xff]  }
 0xe54   : > { %v6527_v18 = vpop.f32.mrb[137].mxu0  ;;  %14906 = vmatprep.subr.bf16.mxu1 %v16333_v37 }
 0xe55   : > { %v14819_v11 = vpop.f32.mrb[138].mxu0 }
 0xe56   : > { %v7180_v25 = vpack.c.bf16 %v14819_v11, %v14818_v7  ;;  %v6530_v30 = vpop.f32.mrb[139].mxu0  ;;  %v16348_v7 = vld [vmem:[%s20203_s18 + $0x68] sm:$0xff]   ;;  %v16350_v11 = vld [vmem:[%s20203_s18 + $0x78] sm:$0xff]  }
 0xe57   : > { %v7179_v17 = vpack.c.bf16 %v6530_v30, %v6527_v18  ;;  %v16349_v18 = vld [vmem:[%s20203_s18 + $0x70] sm:$0xff]   ;;  %v16352_v30 = vld [vmem:[%s20203_s18 + $0x88] sm:$0xff]  }
 0xe5a   : > { %14893 = vmatmul.mubr.msk.bf16.gmra.mrb[64].mxu1 %vm2396_vm6, %v7082_v61  ;;  %v16338_v61 = vld [vmem:[%s20203_s18 + $0x18] sm:$0xff]  }
 0xe5b   : > { %14898 = vmatprep.mubr.msk.bf16.mxu1 %vm2396_vm6, %v7177_v9  ;;  %v14822_v40 = vpop.f32.mrb[140].mxu0  ;;  %v16346_v9 = vld [vmem:[%s20203_s18 + $0x58] sm:$0xff]  }
 0xe5c   : > { %v6543_v47 = vpop.f32.mrb[141].mxu0 }
 0xe5d   : > { %v14823_v26 = vpop.f32.mrb[142].mxu0 }
 0xe5e   : > { %v7276_v34 = vpack.c.bf16 %v14823_v26, %v14822_v40  ;;  %v6546_v43 = vpop.f32.mrb[143].mxu0  ;;  %v16354_v40 = vld [vmem:[%s20203_s18 + $0x98] sm:$0xff]   ;;  %v16356_v26 = vld [vmem:[%s20203_s18 + $0xa8] sm:$0xff]  }
 0xe5f   : > { %v7275_v45 = vpack.c.bf16 %v6546_v43, %v6543_v47  ;;  %v16355_v47 = vld [vmem:[%s20203_s18 + $0xa0] sm:$0xff]   ;;  %v16358_v43 = vld [vmem:[%s20203_s18 + $0xb8] sm:$0xff]  }
 0xe62   : > { %14899 = vmatmul.mubr.msk.bf16.vlgmr.msra.gmra.mrb[60].mxu1 %vm2396_vm6, %v7178_v4  ;;  %v16344_v4 = vld [vmem:[%s20203_s18 + $0x48] sm:$0xff]  }
 0xe63   : > { %14902 = vmatprep.mubr.msk.bf16.mxu1 %vm2396_vm6, %v7179_v17  ;;  %14907 = vmatpush3.bf16.msra.mxu1 %v16333_v37  ;;  %v14826_v35 = vpop.f32.mrb[144].mxu0  ;;  %v16347_v37 = vld [vmem:[%s20203_s18 + $0x60] sm:$0xff]   ;;  %v16353_v17 = vld [vmem:[%s20203_s18 + $0x90] sm:$0xff]  }
 0xe64   : > { %v6559_v19 = vpop.f32.mrb[145].mxu0  ;;  %14916 = vmatprep.subr.bf16.mxu1 %v16334_v42 }
 0xe65   : > { %v14827_v41 = vpop.f32.mrb[146].mxu0 }
 0xe66   : > { %v7278_v23 = vpack.c.bf16 %v14827_v41, %v14826_v35  ;;  %v6562_v28 = vpop.f32.mrb[147].mxu0  ;;  %v16361_v35 = vld [vmem:[%s20203_s18 + $0xd0] sm:$0xff]   ;;  %v16363_v41 = vld [vmem:[%s20203_s18 + $0xe0] sm:$0xff]  }
 0xe67   : > { %v7277_v27 = vpack.c.bf16 %v6562_v28, %v6559_v19  ;;  %v16362_v19 = vld [vmem:[%s20203_s18 + $0xd8] sm:$0xff]   ;;  %v16365_v28 = vld [vmem:[%s20203_s18 + $0xf0] sm:$0xff]  }
 0xe6a   : > { %14903 = vmatmul.mubr.msk.bf16.gmra.mrb[64].mxu1 %vm2396_vm6, %v7180_v25  ;;  %v16351_v25 = vld [vmem:[%s20203_s18 + $0x80] sm:$0xff]  }
 0xe6b   : > { %14908 = vmatprep.mubr.msk.bf16.mxu1 %vm2396_vm6, %v7275_v45  ;;  %v14830_v32 = vpop.f32.mrb[148].mxu0  ;;  %v16359_v45 = vld [vmem:[%s20203_s18 + $0xc0] sm:$0xff]  }
 0xe6c   : > { %v6575_v53 = vpop.f32.mrb[149].mxu0 }
 0xe6d   : > { %v14831_v36 = vpop.f32.mrb[150].mxu0 }
 0xe6e   : > { %v7374_v58 = vpack.c.bf16 %v14831_v36, %v14830_v32  ;;  %v6578_v57 = vpop.f32.mrb[151].mxu0  ;;  %v16367_v32 = vld [vmem:[%s20203_s18 + $0x100] sm:$0xff]   ;;  %v16369_v36 = vld [vmem:[%s20203_s18 + $0x110] sm:$0xff]  }
 0xe6f   : > { %v7373_v38 = vpack.c.bf16 %v6578_v57, %v6575_v53  ;;  %v16368_v53 = vld [vmem:[%s20203_s18 + $0x108] sm:$0xff]   ;;  %v16371_v57 = vld [vmem:[%s20203_s18 + $0x120] sm:$0xff]  }
 0xe72   : > { %14909 = vmatmul.mubr.msk.bf16.vlgmr.msra.gmra.mrb[60].mxu1 %vm2396_vm6, %v7276_v34  ;;  %v16357_v34 = vld [vmem:[%s20203_s18 + $0xb0] sm:$0xff]  }
 0xe73   : > { %14912 = vmatprep.mubr.msk.bf16.mxu1 %vm2396_vm6, %v7277_v27  ;;  %14917 = vmatpush3.bf16.msra.mxu1 %v16334_v42  ;;  %v14834_v33 = vpop.f32.mrb[152].mxu0  ;;  %v16360_v42 = vld [vmem:[%s20203_s18 + $0xc8] sm:$0xff]   ;;  %v16366_v27 = vld [vmem:[%s20203_s18 + $0xf8] sm:$0xff]  }
 0xe74   : > { %v6591_v46 = vpop.f32.mrb[153].mxu0 }
 0xe75   : > { %v14835_v56 = vpop.f32.mrb[154].mxu0 }
 0xe76   : > { %v7376_v55 = vpack.c.bf16 %v14835_v56, %v14834_v33  ;;  %v6594_v0 = vpop.f32.mrb[155].mxu0  ;;  %v16373_v33 = vld [vmem:[%s20203_s18 + $0x130] sm:$0xff]   ;;  %v16375_v56 = vld [vmem:[%s20203_s18 + $0x140] sm:$0xff]  }
 0xe77   : > { %v7375_v2 = vpack.c.bf16 %v6594_v0, %v6591_v46  ;;  %v16374_v46 = vld [vmem:[%s20203_s18 + $0x138] sm:$0xff]  }
 0xe7a   : > { %14913 = vmatmul.mubr.msk.bf16.gmra.mrb[64].mxu1 %vm2396_vm6, %v7278_v23  ;;  %v16364_v23 = vld [vmem:[%s20203_s18 + $0xe8] sm:$0xff]  }
 0xe7b   : > { %14918 = vmatprep.mubr.msk.bf16.mxu1 %vm2396_vm6, %v7373_v38  ;;  %v16372_v38 = vld [vmem:[%s20203_s18 + $0x128] sm:$0xff]  }
 0xe82   : > { %14919 = vmatmul.mubr.msk.bf16.vlgmr.msra.gmra.mrb[60].mxu1 %vm2396_vm6, %v7374_v58  ;;  %v16370_v58 = vld [vmem:[%s20203_s18 + $0x118] sm:$0xff]  }
 0xe83   : > { %14922 = vmatprep.mubr.msk.bf16.mxu1 %vm2396_vm6, %v7375_v2  ;;  %v16376_v2 = vld [vmem:[%s20203_s18 + $0x148] sm:$0xff]  }
 0xe8a   : > { %14923 = vmatmul.mubr.msk.bf16.gmra.mrb[64].mxu1 %vm2396_vm6, %v7376_v55  ;;  %v13418_v55 = vld [vmem:[%s20201_s16 + $0x4] sm:$0xf] }
 0xe8b   : > { %16102 = vmatprep.subr.msk.bf16.mxu1 %vm1905_vm4, %v13418_v55  ;;  %v10192_v0 = vsel %vm1905_vm4, %v13418_v55, 0 }
 0xe8c   : > { %15223 = vmatpush3.bf16.msra.mxu1 %v10192_v0 }
 0xf55   : > { %v14920_v1 = vpop.f32.mrb[60].mxu1 }
 0xf56   : > { %v7432_v15 = vpop.f32.mrb[61].mxu1  ;;  %v7473_v54 = vmax.f32 %v14920_v1, 0.0  ;;  %v16378_v1 = vld [vmem:[%s20203_s18 + $0x158] sm:$0xff]  }
 0xf57   : > { %v14921_v14 = vpop.f32.mrb[62].mxu1  ;;  %v7471_v44 = vmax.f32 %v7432_v15, 0.0  ;;  %v16379_v15 = vld [vmem:[%s20203_s18 + $0x160] sm:$0xff]  }
 0xf58   : > { %v7474_v59 = vmax.f32 %v14921_v14, 0.0  ;;  %v7435_v50 = vpop.f32.mrb[63].mxu1  ;;  %v16380_v14 = vld [vmem:[%s20203_s18 + $0x168] sm:$0xff]  }
 0xf59   : > { %v7472_v48 = vmax.f32 %v7435_v50, 0.0  ;;  %v16383_v50 = vld [vmem:[%s20203_s18 + $0x180] sm:$0xff]  }
 0xf5a   : > { %v7768_v60 = vpack.c.bf16 %v7474_v59, %v7473_v54  ;;  %v16381_v54 = vld [vmem:[%s20203_s18 + $0x170] sm:$0xff]   ;;  %v16382_v59 = vld [vmem:[%s20203_s18 + $0x178] sm:$0xff]  }
 0xf5b   : > { %v7767_v62 = vpack.c.bf16 %v7472_v48, %v7471_v44  ;;  %v16384_v44 = vld [vmem:[%s20203_s18 + $0x188] sm:$0xff]   ;;  %v16385_v48 = vld [vmem:[%s20203_s18 + $0x190] sm:$0xff]  }
 0xf5d   : > { %v14924_v21 = vpop.f32.mrb[64].mxu1  ;;  %14926 = vmatprep.subr.bf16.mxu0 %v7767_v62 }
 0xf5e   : > { %v7448_v5 = vpop.f32.mrb[65].mxu1  ;;  %14927 = vmatpush3.bf16.msra.mxu0 %v7767_v62  ;;  %v7477_v8 = vmax.f32 %v14924_v21, 0.0  ;;  %v16387_v62 = vld [vmem:[%s20203_s18 + $0x1a0] sm:$0xff]   ;;  %v16388_v21 = vld [vmem:[%s20203_s18 + $0x1a8] sm:$0xff]  }
 0xf5f   : > { %v14925_v12 = vpop.f32.mrb[66].mxu1  ;;  %14928 = vmatprep.subr.bf16.mxu0 %v7768_v60  ;;  %v7475_v10 = vmax.f32 %v7448_v5, 0.0  ;;  %v16389_v5 = vld [vmem:[%s20203_s18 + $0x1b0] sm:$0xff]  }
 0xf60   : > { %v7478_v6 = vmax.f32 %v14925_v12, 0.0  ;;  %v7451_v13 = vpop.f32.mrb[67].mxu1  ;;  %v18564_v12 = vld [vmem:[%s20201_s16] sm:$0xf] }
 0xf61   : > { %v7476_v22 = vmax.f32 %v7451_v13, 0.0  ;;  %16103 = vmatprep.subr.msk.bf16.mxu1 %vm1905_vm4, %v18564_v12  ;;  %v16390_v13 = vld [vmem:[%s20203_s18 + $0x1b8] sm:$0xff]  }
 0xf62   : > { %v7770_v39 = vpack.c.bf16 %v7478_v6, %v7477_v8  ;;  %14929 = vmatpush3.bf16.msra.mxu0 %v7768_v60  ;;  %v16386_v60 = vld [vmem:[%s20203_s18 + $0x198] sm:$0xff]  }
 0xf63   : > { %v7769_v49 = vpack.c.bf16 %v7476_v22, %v7475_v10  ;;  %v16391_v22 = vld [vmem:[%s20203_s18 + $0x1c0] sm:$0xff]  }
 0xf65   : > { %14930 = vmatprep.subr.bf16.mxu0 %v7769_v49 }
 0xf66   : > { %14931 = vmatpush3.bf16.msra.mxu0 %v7769_v49 }
 0xf67   : > { %14932 = vmatprep.subr.bf16.mxu0 %v7770_v39 }
 0xf6a   : > { %14933 = vmatpush3.bf16.msra.mxu0 %v7770_v39 }
 0xf6d   : > { %14935 = vmatmul.mubr.msk.bf16.vlgmr.msra.gmra.mrb[156].mxu0 %vm1763_vm3, %v16336_v51 }
 0xf6e   : > { %14938 = vmatprep.mubr.msk.bf16.mxu0 %vm1763_vm3, %v16337_v20 }
 0xf75   : > { %14939 = vmatmul.mubr.msk.bf16.gmra.mrb[160].mxu0 %vm1763_vm3, %v16338_v61 }
 0xf76   : > { %14942 = vmatprep.mubr.msk.bf16.mxu0 %vm1763_vm3, %v16339_v52  ;;  %v16392_v52 = vld [vmem:[%s20203_s18 + $0x1c8] sm:$0xff]  }
 0xf7d   : > { %14943 = vmatmul.mubr.msk.bf16.gmra.mrb[164].mxu0 %vm1763_vm3, %v16340_v16 }
 0xf7e   : > { %14946 = vmatprep.mubr.msk.bf16.mxu0 %vm1763_vm3, %v16341_v24  ;;  %v16393_v24 = vld [vmem:[%s20203_s18 + $0x1d0] sm:$0xff]  }
 0xf85   : > { %14947 = vmatmul.mubr.msk.bf16.gmra.mrb[168].mxu0 %vm1763_vm3, %v16342_v31 }
 0xf86   : > { %14950 = vmatprep.mubr.msk.bf16.mxu0 %vm1763_vm3, %v16343_v29 }
 0xf8d   : > { %14951 = vmatmul.mubr.msk.bf16.gmra.mrb[172].mxu0 %vm1763_vm3, %v16344_v4 }
 0xf8e   : > { %14954 = vmatprep.mubr.msk.bf16.mxu0 %vm1763_vm3, %v16345_v3 }
 0xf95   : > { %14955 = vmatmul.mubr.msk.bf16.gmra.mrb[176].mxu0 %vm1763_vm3, %v16346_v9 }
 0xf96   : > { %14958 = vmatprep.mubr.msk.bf16.mxu0 %vm1763_vm3, %v16347_v37  ;;  %v16394_v37 = vld [vmem:[%s20203_s18 + $0x1d8] sm:$0xff]  }
 0xf9d   : > { %14959 = vmatmul.mubr.msk.bf16.gmra.mrb[180].mxu0 %vm1763_vm3, %v16348_v7 }
 0xf9e   : > { %14962 = vmatprep.mubr.msk.bf16.mxu0 %vm1763_vm3, %v16349_v18  ;;  %v16395_v18 = vld [vmem:[%s20203_s18 + $0x1e0] sm:$0xff]  }
 0xfa5   : > { %14963 = vmatmul.mubr.msk.bf16.gmra.mrb[184].mxu0 %vm1763_vm3, %v16350_v11 }
 0xfa6   : > { %14966 = vmatprep.mubr.msk.bf16.mxu0 %vm1763_vm3, %v16351_v25 }
 0xfad   : > { %14967 = vmatmul.mubr.msk.bf16.gmra.mrb[188].mxu0 %vm1763_vm3, %v16352_v30 }
 0xfae   : > { %14970 = vmatprep.mubr.msk.bf16.mxu0 %vm1763_vm3, %v16353_v17 }
 0xfb5   : > { %14971 = vmatmul.mubr.msk.bf16.gmra.mrb[192].mxu0 %vm1763_vm3, %v16354_v40 }
 0xfb6   : > { %14974 = vmatprep.mubr.msk.bf16.mxu0 %vm1763_vm3, %v16355_v47  ;;  %v16396_v47 = vld [vmem:[%s20203_s18 + $0x1e8] sm:$0xff]  }
 0xfbd   : > { %14975 = vmatmul.mubr.msk.bf16.gmra.mrb[196].mxu0 %vm1763_vm3, %v16356_v26 }
 0xfbe   : > { %14978 = vmatprep.mubr.msk.bf16.mxu0 %vm1763_vm3, %v16357_v34  ;;  %v16397_v34 = vld [vmem:[%s20203_s18 + $0x1f0] sm:$0xff]  }
 0xfc5   : > { %14979 = vmatmul.mubr.msk.bf16.gmra.mrb[200].mxu0 %vm1763_vm3, %v16358_v43 }
 0xfc6   : > { %14982 = vmatprep.mubr.msk.bf16.mxu0 %vm1763_vm3, %v16359_v45 }
 0xfcd   : > { %14983 = vmatmul.mubr.msk.bf16.gmra.mrb[204].mxu0 %vm1763_vm3, %v16360_v42 }
 0xfce   : > { %14986 = vmatprep.mubr.msk.bf16.mxu0 %vm1763_vm3, %v16361_v35 }
 0xfd5   : > { %14987 = vmatmul.mubr.msk.bf16.gmra.mrb[208].mxu0 %vm1763_vm3, %v16362_v19 }
 0xfd6   : > { %14990 = vmatprep.mubr.msk.bf16.mxu0 %vm1763_vm3, %v16363_v41  ;;  %v16398_v41 = vld [vmem:[%s20203_s18 + $0x1f8] sm:$0xff]  }
 0xfdd   : > { %14991 = vmatmul.mubr.msk.bf16.gmra.mrb[212].mxu0 %vm1763_vm3, %v16364_v23 }
 0xfde   : > { %14994 = vmatprep.mubr.msk.bf16.mxu0 %vm1763_vm3, %v16365_v28  ;;  %v16399_v28 = vld [vmem:[%s20203_s18 + $0x200] sm:$0xff]  }
 0xfe5   : > { %14995 = vmatmul.mubr.msk.bf16.gmra.mrb[216].mxu0 %vm1763_vm3, %v16366_v27 }
 0xfe6   : > { %14998 = vmatprep.mubr.msk.bf16.mxu0 %vm1763_vm3, %v16367_v32 }
 0xfed   : > { %14999 = vmatmul.mubr.msk.bf16.gmra.mrb[220].mxu0 %vm1763_vm3, %v16368_v53 }
 0xfee   : > { %15002 = vmatprep.mubr.msk.bf16.mxu0 %vm1763_vm3, %v16369_v36 }
 0xff5   : > { %15003 = vmatmul.mubr.msk.bf16.gmra.mrb[224].mxu0 %vm1763_vm3, %v16370_v58 }
 0xff6   : > { %15006 = vmatprep.mubr.msk.bf16.mxu0 %vm1763_vm3, %v16371_v57  ;;  %v16400_v57 = vld [vmem:[%s20203_s18 + $0x208] sm:$0xff]  }
 0xffd   : > { %15007 = vmatmul.mubr.msk.bf16.gmra.mrb[228].mxu0 %vm1763_vm3, %v16372_v38 }
 0xffe   : > { %15010 = vmatprep.mubr.msk.bf16.mxu0 %vm1763_vm3, %v16373_v33  ;;  %v16401_v33 = vld [vmem:[%s20203_s18 + $0x210] sm:$0xff]  }
0x1005   : > { %15011 = vmatmul.mubr.msk.bf16.gmra.mrb[232].mxu0 %vm1763_vm3, %v16374_v46 }
0x1006   : > { %15014 = vmatprep.mubr.msk.bf16.mxu0 %vm1763_vm3, %v16375_v56 }
0x100d   : > { %15015 = vmatmul.mubr.msk.bf16.gmra.mrb[236].mxu0 %vm1763_vm3, %v16376_v2 }
0x100e   : > { %15018 = vmatprep.mubr.msk.bf16.mxu0 %vm1763_vm3, %v16377_v63  ;;  %v16402_v63 = vld [vmem:[%s20203_s18 + $0x218] sm:$0xff]  }
0x1015   : > { %15019 = vmatmul.mubr.msk.bf16.gmra.mrb[240].mxu0 %vm1763_vm3, %v16378_v1 }
0x1016   : > { %15022 = vmatprep.mubr.msk.bf16.mxu0 %vm1763_vm3, %v16379_v15  ;;  %v16403_v15 = vld [vmem:[%s20203_s18 + $0x220] sm:$0xff]  }
0x101d   : > { %15023 = vmatmul.mubr.msk.bf16.gmra.mrb[244].mxu0 %vm1763_vm3, %v16380_v14 }
0x101e   : > { %15026 = vmatprep.mubr.msk.bf16.mxu0 %vm1763_vm3, %v16381_v54 }
0x1025   : > { %15027 = vmatmul.mubr.msk.bf16.gmra.mrb[248].mxu0 %vm1763_vm3, %v16382_v59 }
0x1026   : > { %15030 = vmatprep.mubr.msk.bf16.mxu0 %vm1763_vm3, %v16383_v50 }
0x102d   : > { %15031 = vmatmul.mubr.msk.bf16.gmra.mrb[252].mxu0 %vm1763_vm3, %v16384_v44 }
0x102e   : > { %15034 = vmatprep.mubr.msk.bf16.mxu0 %vm1763_vm3, %v16385_v48  ;;  %v16404_v48 = vld [vmem:[%s20203_s18 + $0x228] sm:$0xff]  }
0x1035   : > { %15035 = vmatmul.mubr.msk.bf16.gmra.mrb[0].mxu0 %vm1763_vm3, %v16386_v60 }
0x1036   : > { %15038 = vmatprep.mubr.msk.bf16.mxu0 %vm1763_vm3, %v16387_v62  ;;  %v16405_v62 = vld [vmem:[%s20203_s18 + $0x230] sm:$0xff]  }
0x103d   : > { %15039 = vmatmul.mubr.msk.bf16.gmra.mrb[4].mxu0 %vm1763_vm3, %v16388_v21 }
0x103e   : > { %15042 = vmatprep.mubr.msk.bf16.mxu0 %vm1763_vm3, %v16389_v5 }
0x1040   : > { %v18566_v8 = vpop.f32.mrb[156].mxu0 }
0x1041   : > { %v18570_v6 = vpop.f32.mrb[157].mxu0 }
0x1042   : > { %v18575_v10 = vpop.f32.mrb[158].mxu0 }
0x1043   : > { %v10109_v39 = vpack.c.bf16 %v18575_v10, %v18566_v8  ;;  %v18582_v49 = vpop.f32.mrb[159].mxu0  ;;  %v16425_v10 = vld [vmem:[%s20203_s18 + $0x2d0] sm:$0xff]  }
0x1044   : > { %v10108_v51 = vpack.c.bf16 %v18582_v49, %v18570_v6 }
0x1045   : > { %15043 = vmatmul.mubr.msk.bf16.gmra.mrb[8].mxu0 %vm1763_vm3, %v16390_v13 }
0x1046   : > { %15046 = vmatprep.mubr.msk.bf16.mxu0 %vm1763_vm3, %v16391_v22 }
0x1048   : > { %v18588_v20 = vpop.f32.mrb[160].mxu0 }
0x1049   : > { %v18590_v61 = vpop.f32.mrb[161].mxu0 }
0x104a   : > { %v18595_v16 = vpop.f32.mrb[162].mxu0 }
0x104b   : > { %v10111_v31 = vpack.c.bf16 %v18595_v16, %v18588_v20  ;;  %v18602_v29 = vpop.f32.mrb[163].mxu0  ;;  %v16427_v20 = vld [vmem:[%s20203_s18 + $0x2e0] sm:$0xff]  }
0x104c   : > { %v10110_v4 = vpack.c.bf16 %v18602_v29, %v18590_v61 }
0x104d   : > { %15047 = vmatmul.mubr.msk.bf16.gmra.mrb[12].mxu0 %vm1763_vm3, %v16392_v52 }
0x104e   : > { %15050 = vmatprep.mubr.msk.bf16.mxu0 %vm1763_vm3, %v16393_v24  ;;  %v16406_v24 = vld [vmem:[%s20203_s18 + $0x238] sm:$0xff]  }
0x1050   : > { %v18608_v3 = vpop.f32.mrb[164].mxu0 }
0x1051   : > { %v18610_v9 = vpop.f32.mrb[165].mxu0 }
0x1052   : > { %v18615_v7 = vpop.f32.mrb[166].mxu0 }
0x1053   : > { %v10113_v11 = vpack.c.bf16 %v18615_v7, %v18608_v3  ;;  %v18622_v25 = vpop.f32.mrb[167].mxu0  ;;  %v16429_v3 = vld [vmem:[%s20203_s18 + $0x2f0] sm:$0xff]  }
0x1054   : > { %v10112_v30 = vpack.c.bf16 %v18622_v25, %v18610_v9 }
0x1055   : > { %15051 = vmatmul.mubr.msk.bf16.gmra.mrb[16].mxu0 %vm1763_vm3, %v16394_v37 }
0x1056   : > { %15054 = vmatprep.mubr.msk.bf16.mxu0 %vm1763_vm3, %v16395_v18  ;;  %v16407_v18 = vld [vmem:[%s20203_s18 + $0x240] sm:$0xff]  }
0x1058   : > { %v18628_v17 = vpop.f32.mrb[168].mxu0 }
0x1059   : > { %v18630_v40 = vpop.f32.mrb[169].mxu0 }
0x105a   : > { %v18635_v26 = vpop.f32.mrb[170].mxu0 }
0x105b   : > { %v10115_v43 = vpack.c.bf16 %v18635_v26, %v18628_v17  ;;  %v18642_v45 = vpop.f32.mrb[171].mxu0  ;;  %v16431_v17 = vld [vmem:[%s20203_s18 + $0x300] sm:$0xff]  }
0x105c   : > { %v10114_v42 = vpack.c.bf16 %v18642_v45, %v18630_v40 }
0x105d   : > { %15055 = vmatmul.mubr.msk.bf16.gmra.mrb[20].mxu0 %vm1763_vm3, %v16396_v47 }
0x105e   : > { %15058 = vmatprep.mubr.msk.bf16.mxu0 %vm1763_vm3, %v16397_v34 }
0x1060   : > { %v18648_v35 = vpop.f32.mrb[172].mxu0 }
0x1061   : > { %v18650_v19 = vpop.f32.mrb[173].mxu0 }
0x1062   : > { %v18655_v23 = vpop.f32.mrb[174].mxu0 }
0x1063   : > { %v10117_v27 = vpack.c.bf16 %v18655_v23, %v18648_v35  ;;  %v18662_v32 = vpop.f32.mrb[175].mxu0  ;;  %v16433_v35 = vld [vmem:[%s20203_s18 + $0x310] sm:$0xff]  }
0x1064   : > { %v10116_v53 = vpack.c.bf16 %v18662_v32, %v18650_v19 }
0x1065   : > { %15059 = vmatmul.mubr.msk.bf16.gmra.mrb[24].mxu0 %vm1763_vm3, %v16398_v41 }
0x1066   : > { %15062 = vmatprep.mubr.msk.bf16.mxu0 %vm1763_vm3, %v16399_v28  ;;  %v10404_v28 = vsel %vm1905_vm4, %v18564_v12, 0  ;;  %v16408_v12 = vld [vmem:[%s20203_s18 + $0x248] sm:$0xff]  }
0x1068   : > { %v18668_v36 = vpop.f32.mrb[176].mxu0 }
0x1069   : > { %v18670_v58 = vpop.f32.mrb[177].mxu0 }
0x106a   : > { %v18675_v38 = vpop.f32.mrb[178].mxu0 }
0x106b   : > { %v10119_v46 = vpack.c.bf16 %v18675_v38, %v18668_v36  ;;  %v18682_v56 = vpop.f32.mrb[179].mxu0  ;;  %v16435_v36 = vld [vmem:[%s20203_s18 + $0x320] sm:$0xff]  }
0x106c   : > { %v10118_v55 = vpack.c.bf16 %v18682_v56, %v18670_v58 }
0x106d   : > { %15063 = vmatmul.mubr.msk.bf16.gmra.mrb[28].mxu0 %vm1763_vm3, %v16400_v57  ;;  %v18742_v57 = vld [vmem:[%s20201_s16 + $0x8] sm:$0xf] }
0x106e   : > { %15066 = vmatprep.mubr.msk.bf16.mxu0 %vm1763_vm3, %v16401_v33 }
0x1070   : > { %v18688_v0 = vpop.f32.mrb[180].mxu0 }
0x1071   : > { %v18690_v2 = vpop.f32.mrb[181].mxu0 }
0x1072   : > { %v18695_v1 = vpop.f32.mrb[182].mxu0 }
0x1073   : > { %v10121_v14 = vpack.c.bf16 %v18695_v1, %v18688_v0  ;;  %v18702_v54 = vpop.f32.mrb[183].mxu0  ;;  %v16437_v0 = vld [vmem:[%s20203_s18 + $0x330] sm:$0xff]  }
0x1074   : > { %v10120_v59 = vpack.c.bf16 %v18702_v54, %v18690_v2 }
0x1075   : > { %15067 = vmatmul.mubr.msk.bf16.gmra.mrb[32].mxu0 %vm1763_vm3, %v16402_v63 }
0x1076   : > { %15070 = vmatprep.mubr.msk.bf16.mxu0 %vm1763_vm3, %v16403_v15 }
0x1078   : > { %v18708_v50 = vpop.f32.mrb[184].mxu0 }
0x1079   : > { %v18710_v44 = vpop.f32.mrb[185].mxu0 }
0x107a   : > { %v18715_v60 = vpop.f32.mrb[186].mxu0 }
0x107b   : > { %v10123_v21 = vpack.c.bf16 %v18715_v60, %v18708_v50  ;;  %v18722_v5 = vpop.f32.mrb[187].mxu0  ;;  %v16439_v50 = vld [vmem:[%s20203_s18 + $0x340] sm:$0xff]  }
0x107c   : > { %v10122_v13 = vpack.c.bf16 %v18722_v5, %v18710_v44 }
0x107d   : > { %15071 = vmatmul.mubr.msk.bf16.gmra.mrb[36].mxu0 %vm1763_vm3, %v16404_v48  ;;  %v16409_v48 = vld [vmem:[%s20203_s18 + $0x250] sm:$0xff]  }
0x107e   : > { %15074 = vmatprep.mubr.msk.bf16.mxu0 %vm1763_vm3, %v16405_v62 }
0x1080   : > { %v14968_v22 = vpop.f32.mrb[188].mxu0 }
0x1081   : > { %v9085_v52 = vpop.f32.mrb[189].mxu0 }
0x1082   : > { %v14969_v37 = vpop.f32.mrb[190].mxu0 }
0x1083   : > { %v10126_v47 = vpack.c.bf16 %v14969_v37, %v14968_v22  ;;  %v9088_v34 = vpop.f32.mrb[191].mxu0 }
0x1084   : > { %v10125_v41 = vpack.c.bf16 %v9088_v34, %v9085_v52  ;;  %v16411_v34 = vld [vmem:[%s20203_s18 + $0x260] sm:$0xff]  }
0x1085   : > { %15075 = vmatmul.mubr.msk.bf16.gmra.mrb[40].mxu0 %vm1763_vm3, %v16406_v24 }
0x1086   : > { %15224 = vmatprep.mubr.msk.bf16.mxu1 %vm1901_vm5, %v10125_v41  ;;  %15078 = vmatprep.mubr.msk.bf16.mxu0 %vm1763_vm3, %v16407_v18  ;;  %v16410_v18 = vld [vmem:[%s20203_s18 + $0x258] sm:$0xff]  }
0x1087   : > { %15225 = vmatmul.mubr.msk.bf16.vlgmr.msra.gmra.mrb[68].mxu1 %vm1901_vm5, %v10126_v47 }
0x1088   : > { %v14972_v33 = vpop.f32.mrb[192].mxu0  ;;  %15257 = vmatpush3.bf16.msra.mxu1 %v10404_v28 }
0x1089   : > { %v9101_v63 = vpop.f32.mrb[193].mxu0  ;;  %16104 = vmatprep.subr.msk.bf16.mxu1 %vm1905_vm4, %v18742_v57 }
0x108a   : > { %v14973_v15 = vpop.f32.mrb[194].mxu0 }
0x108b   : > { %v10128_v62 = vpack.c.bf16 %v14973_v15, %v14972_v33  ;;  %v9104_v22 = vpop.f32.mrb[195].mxu0  ;;  %v16412_v15 = vld [vmem:[%s20203_s18 + $0x268] sm:$0xff]  }
0x108c   : > { %v10127_v52 = vpack.c.bf16 %v9104_v22, %v9101_v63 }
0x108d   : > { %15079 = vmatmul.mubr.msk.bf16.gmra.mrb[44].mxu0 %vm1763_vm3, %v16408_v12 }
0x108e   : > { %15228 = vmatprep.mubr.msk.bf16.mxu1 %vm1901_vm5, %v10127_v52  ;;  %15082 = vmatprep.mubr.msk.bf16.mxu0 %vm1763_vm3, %v16409_v48 }
0x108f   : > { %15229 = vmatmul.mubr.msk.bf16.gmra.mrb[72].mxu1 %vm1901_vm5, %v10128_v62  ;;  %v16413_v62 = vld [vmem:[%s20203_s18 + $0x270] sm:$0xff]  }
0x1090   : > { %v14976_v24 = vpop.f32.mrb[196].mxu0 }
0x1091   : > { %v9117_v37 = vpop.f32.mrb[197].mxu0 }
0x1092   : > { %v14977_v47 = vpop.f32.mrb[198].mxu0 }
0x1093   : > { %v10130_v41 = vpack.c.bf16 %v14977_v47, %v14976_v24  ;;  %v9120_v28 = vpop.f32.mrb[199].mxu0  ;;  %v16414_v47 = vld [vmem:[%s20203_s18 + $0x278] sm:$0xff]  }
0x1094   : > { %v10129_v33 = vpack.c.bf16 %v9120_v28, %v9117_v37 }
0x1095   : > { %15083 = vmatmul.mubr.msk.bf16.gmra.mrb[48].mxu0 %vm1763_vm3, %v16410_v18 }
0x1096   : > { %15232 = vmatprep.mubr.msk.bf16.mxu1 %vm1901_vm5, %v10129_v33  ;;  %15086 = vmatprep.mubr.msk.bf16.mxu0 %vm1763_vm3, %v16411_v34 }
0x1097   : > { %15233 = vmatmul.mubr.msk.bf16.gmra.mrb[76].mxu1 %vm1901_vm5, %v10130_v41  ;;  %v16415_v41 = vld [vmem:[%s20203_s18 + $0x280] sm:$0xff]  }
0x1098   : > { %v14980_v63 = vpop.f32.mrb[200].mxu0 }
0x1099   : > { %v9133_v12 = vpop.f32.mrb[201].mxu0 }
0x109a   : > { %v14981_v48 = vpop.f32.mrb[202].mxu0 }
0x109b   : > { %v10132_v22 = vpack.c.bf16 %v14981_v48, %v14980_v63  ;;  %v9136_v52 = vpop.f32.mrb[203].mxu0  ;;  %v16416_v48 = vld [vmem:[%s20203_s18 + $0x288] sm:$0xff]  }
0x109c   : > { %v10131_v24 = vpack.c.bf16 %v9136_v52, %v9133_v12 }
0x109d   : > { %15087 = vmatmul.mubr.msk.bf16.gmra.mrb[52].mxu0 %vm1763_vm3, %v16412_v15 }
0x109e   : > { %15236 = vmatprep.mubr.msk.bf16.mxu1 %vm1901_vm5, %v10131_v24  ;;  %15090 = vmatprep.mubr.msk.bf16.mxu0 %vm1763_vm3, %v16413_v62 }
0x109f   : > { %15237 = vmatmul.mubr.msk.bf16.gmra.mrb[80].mxu1 %vm1901_vm5, %v10132_v22  ;;  %v16417_v22 = vld [vmem:[%s20203_s18 + $0x290] sm:$0xff]  }
0x10a0   : > { %v14984_v37 = vpop.f32.mrb[204].mxu0 }
0x10a1   : > { %v9149_v18 = vpop.f32.mrb[205].mxu0 }
0x10a2   : > { %v14985_v34 = vpop.f32.mrb[206].mxu0 }
0x10a3   : > { %v10134_v28 = vpack.c.bf16 %v14985_v34, %v14984_v37  ;;  %v9152_v33 = vpop.f32.mrb[207].mxu0  ;;  %v16418_v34 = vld [vmem:[%s20203_s18 + $0x298] sm:$0xff]  }
0x10a4   : > { %v10133_v63 = vpack.c.bf16 %v9152_v33, %v9149_v18 }
0x10a5   : > { %15091 = vmatmul.mubr.msk.bf16.gmra.mrb[56].mxu0 %vm1763_vm3, %v16414_v47 }
0x10a6   : > { %15240 = vmatprep.mubr.msk.bf16.mxu1 %vm1901_vm5, %v10133_v63  ;;  %15094 = vmatprep.mubr.msk.bf16.mxu0 %vm1763_vm3, %v16415_v41 }
0x10a7   : > { %15241 = vmatmul.mubr.msk.bf16.gmra.mrb[84].mxu1 %vm1901_vm5, %v10134_v28  ;;  %v16419_v28 = vld [vmem:[%s20203_s18 + $0x2a0] sm:$0xff]  }
0x10a8   : > { %v14988_v12 = vpop.f32.mrb[208].mxu0 }
0x10a9   : > { %v9165_v15 = vpop.f32.mrb[209].mxu0 }
0x10aa   : > { %v14989_v62 = vpop.f32.mrb[210].mxu0 }
0x10ab   : > { %v10136_v52 = vpack.c.bf16 %v14989_v62, %v14988_v12  ;;  %v9168_v24 = vpop.f32.mrb[211].mxu0  ;;  %v16420_v62 = vld [vmem:[%s20203_s18 + $0x2a8] sm:$0xff]  }
0x10ac   : > { %v10135_v37 = vpack.c.bf16 %v9168_v24, %v9165_v15 }
0x10ad   : > { %15095 = vmatmul.mubr.msk.bf16.gmra.mrb[60].mxu0 %vm1763_vm3, %v16416_v48 }
0x10ae   : > { %15244 = vmatprep.mubr.msk.bf16.mxu1 %vm1901_vm5, %v10135_v37  ;;  %15098 = vmatprep.mubr.msk.bf16.mxu0 %vm1763_vm3, %v16417_v22 }
0x10af   : > { %15245 = vmatmul.mubr.msk.bf16.gmra.mrb[88].mxu1 %vm1901_vm5, %v10136_v52  ;;  %v16421_v52 = vld [vmem:[%s20203_s18 + $0x2b0] sm:$0xff]  }
0x10b0   : > { %v14992_v18 = vpop.f32.mrb[212].mxu0 }
0x10b1   : > { %v9181_v47 = vpop.f32.mrb[213].mxu0 }
0x10b2   : > { %v14993_v41 = vpop.f32.mrb[214].mxu0 }
0x10b3   : > { %v10138_v33 = vpack.c.bf16 %v14993_v41, %v14992_v18  ;;  %v9184_v63 = vpop.f32.mrb[215].mxu0  ;;  %v16422_v41 = vld [vmem:[%s20203_s18 + $0x2b8] sm:$0xff]  }
0x10b4   : > { %v10137_v12 = vpack.c.bf16 %v9184_v63, %v9181_v47 }
0x10b5   : > { %15099 = vmatmul.mubr.msk.bf16.gmra.mrb[64].mxu0 %vm1763_vm3, %v16418_v34 }
0x10b6   : > { %15248 = vmatprep.mubr.msk.bf16.mxu1 %vm1901_vm5, %v10137_v12  ;;  %15102 = vmatprep.mubr.msk.bf16.mxu0 %vm1763_vm3, %v16419_v28  ;;  %v18846_v12 = vld [vmem:[%s20201_s16 + $0xc] sm:$0xf] }
0x10b7   : > { %15249 = vmatmul.mubr.msk.bf16.gmra.mrb[92].mxu1 %vm1901_vm5, %v10138_v33  ;;  %v16423_v33 = vld [vmem:[%s20203_s18 + $0x2c0] sm:$0xff]  }
0x10b8   : > { %v14996_v15 = vpop.f32.mrb[216].mxu0 }
0x10b9   : > { %v9197_v48 = vpop.f32.mrb[217].mxu0 }
0x10ba   : > { %v14997_v22 = vpop.f32.mrb[218].mxu0 }
0x10bb   : > { %v10140_v24 = vpack.c.bf16 %v14997_v22, %v14996_v15  ;;  %v9200_v37 = vpop.f32.mrb[219].mxu0  ;;  %v16426_v22 = vld [vmem:[%s20203_s18 + $0x2d8] sm:$0xff]  }
0x10bc   : > { %v10139_v18 = vpack.c.bf16 %v9200_v37, %v9197_v48  ;;  %v16424_v48 = vld [vmem:[%s20203_s18 + $0x2c8] sm:$0xff]  }
0x10bd   : > { %15103 = vmatmul.mubr.msk.bf16.gmra.mrb[68].mxu0 %vm1763_vm3, %v16420_v62 }
0x10be   : > { %15252 = vmatprep.mubr.msk.bf16.mxu1 %vm1901_vm5, %v10139_v18  ;;  %15106 = vmatprep.mubr.msk.bf16.mxu0 %vm1763_vm3, %v16421_v52  ;;  %v16430_v18 = vld [vmem:[%s20203_s18 + $0x2f8] sm:$0xff]  }
0x10bf   : > { %15253 = vmatmul.mubr.msk.bf16.gmra.mrb[96].mxu1 %vm1901_vm5, %v10140_v24  ;;  %v16428_v24 = vld [vmem:[%s20203_s18 + $0x2e8] sm:$0xff]  }
0x10c0   : > { %15258 = vmatprep.mubr.msk.bf16.mxu1 %vm1901_vm5, %v10108_v51  ;;  %v18821_v47 = vpop.f32.mrb[220].mxu0  ;;  %v10634_v51 = vsel %vm1905_vm4, %v18742_v57, 0 }
0x10c1   : > { %v18823_v34 = vpop.f32.mrb[221].mxu0 }
0x10c2   : > { %v18828_v28 = vpop.f32.mrb[222].mxu0 }
0x10c3   : > { %v10568_v63 = vpack.c.bf16 %v18828_v28, %v18821_v47  ;;  %v18835_v6 = vpop.f32.mrb[223].mxu0  ;;  %v16441_v28 = vld [vmem:[%s20203_s18 + $0x350] sm:$0xff]  }
0x10c4   : > { %v10567_v49 = vpack.c.bf16 %v18835_v6, %v18823_v34  ;;  %v10896_v6 = vsel %vm1905_vm4, %v18846_v12, 0 }
0x10c5   : > { %15107 = vmatmul.mubr.msk.bf16.gmra.mrb[72].mxu0 %vm1763_vm3, %v16422_v41 }
0x10c6   : > { %15110 = vmatprep.mubr.msk.bf16.mxu0 %vm1763_vm3, %v16423_v33  ;;  %v16432_v33 = vld [vmem:[%s20203_s18 + $0x308] sm:$0xff]  }
0x10c7   : > { %15259 = vmatmul.mubr.msk.bf16.vlgmr.msra.gmra.mrb[68].mxu1 %vm1901_vm5, %v10109_v39 }
0x10c8   : > { %15262 = vmatprep.mubr.msk.bf16.mxu1 %vm1901_vm5, %v10110_v4  ;;  %15291 = vmatpush3.bf16.msra.mxu1 %v10634_v51  ;;  %v18856_v57 = vpop.f32.mrb[224].mxu0 }
0x10c9   : > { %v18858_v15 = vpop.f32.mrb[225].mxu0  ;;  %16105 = vmatprep.subr.msk.bf16.mxu1 %vm1905_vm4, %v18846_v12 }
0x10ca   : > { %v18865_v8 = vpop.f32.mrb[226].mxu0 }
0x10cb   : > { %v10570_v39 = vpack.c.bf16 %v18865_v8, %v18856_v57  ;;  %v18872_v61 = vpop.f32.mrb[227].mxu0  ;;  %v16443_v57 = vld [vmem:[%s20203_s18 + $0x360] sm:$0xff]  }
0x10cc   : > { %v10569_v29 = vpack.c.bf16 %v18872_v61, %v18858_v15 }
0x10cd   : > { %15111 = vmatmul.mubr.msk.bf16.gmra.mrb[76].mxu0 %vm1763_vm3, %v16424_v48  ;;  %v16434_v48 = vld [vmem:[%s20203_s18 + $0x318] sm:$0xff]  }
0x10ce   : > { %15114 = vmatprep.mubr.msk.bf16.mxu0 %vm1763_vm3, %v16425_v10 }
0x10cf   : > { %15263 = vmatmul.mubr.msk.bf16.gmra.mrb[72].mxu1 %vm1901_vm5, %v10111_v31 }
0x10d0   : > { %15266 = vmatprep.mubr.msk.bf16.mxu1 %vm1901_vm5, %v10112_v30  ;;  %v18886_v4 = vpop.f32.mrb[228].mxu0 }
0x10d1   : > { %v18888_v62 = vpop.f32.mrb[229].mxu0 }
0x10d2   : > { %v18893_v52 = vpop.f32.mrb[230].mxu0 }
0x10d3   : > { %v10572_v16 = vpack.c.bf16 %v18893_v52, %v18886_v4  ;;  %v18900_v31 = vpop.f32.mrb[231].mxu0  ;;  %v16445_v4 = vld [vmem:[%s20203_s18 + $0x370] sm:$0xff]  }
0x10d4   : > { %v10571_v9 = vpack.c.bf16 %v18900_v31, %v18888_v62 }
0x10d5   : > { %15115 = vmatmul.mubr.msk.bf16.gmra.mrb[80].mxu0 %vm1763_vm3, %v16426_v22  ;;  %v16436_v22 = vld [vmem:[%s20203_s18 + $0x328] sm:$0xff]  }
0x10d6   : > { %15118 = vmatprep.mubr.msk.bf16.mxu0 %vm1763_vm3, %v16427_v20 }
0x10d7   : > { %15267 = vmatmul.mubr.msk.bf16.gmra.mrb[76].mxu1 %vm1901_vm5, %v10113_v11 }
0x10d8   : > { %15270 = vmatprep.mubr.msk.bf16.mxu1 %vm1901_vm5, %v10114_v42  ;;  %v18914_v25 = vpop.f32.mrb[232].mxu0 }
0x10d9   : > { %v18916_v30 = vpop.f32.mrb[233].mxu0 }
0x10da   : > { %v18921_v37 = vpop.f32.mrb[234].mxu0 }
0x10db   : > { %v10574_v7 = vpack.c.bf16 %v18921_v37, %v18914_v25  ;;  %v18928_v11 = vpop.f32.mrb[235].mxu0  ;;  %v16447_v25 = vld [vmem:[%s20203_s18 + $0x380] sm:$0xff]  }
0x10dc   : > { %v10573_v40 = vpack.c.bf16 %v18928_v11, %v18916_v30 }
0x10dd   : > { %15119 = vmatmul.mubr.msk.bf16.gmra.mrb[84].mxu0 %vm1763_vm3, %v16428_v24  ;;  %v16438_v24 = vld [vmem:[%s20203_s18 + $0x338] sm:$0xff]  }
0x10de   : > { %15122 = vmatprep.mubr.msk.bf16.mxu0 %vm1763_vm3, %v16429_v3 }
0x10df   : > { %15271 = vmatmul.mubr.msk.bf16.gmra.mrb[80].mxu1 %vm1901_vm5, %v10115_v43 }
0x10e0   : > { %15274 = vmatprep.mubr.msk.bf16.mxu1 %vm1901_vm5, %v10116_v53  ;;  %v18942_v45 = vpop.f32.mrb[236].mxu0 }
0x10e1   : > { %v18944_v42 = vpop.f32.mrb[237].mxu0 }
0x10e2   : > { %v18949_v41 = vpop.f32.mrb[238].mxu0 }
0x10e3   : > { %v10576_v26 = vpack.c.bf16 %v18949_v41, %v18942_v45  ;;  %v18956_v43 = vpop.f32.mrb[239].mxu0  ;;  %v16449_v45 = vld [vmem:[%s20203_s18 + $0x390] sm:$0xff]  }
0x10e4   : > { %v10575_v19 = vpack.c.bf16 %v18956_v43, %v18944_v42 }
0x10e5   : > { %15123 = vmatmul.mubr.msk.bf16.gmra.mrb[88].mxu0 %vm1763_vm3, %v16430_v18 }
0x10e6   : > { %15126 = vmatprep.mubr.msk.bf16.mxu0 %vm1763_vm3, %v16431_v17  ;;  %v16440_v17 = vld [vmem:[%s20203_s18 + $0x348] sm:$0xff]  }
0x10e7   : > { %15275 = vmatmul.mubr.msk.bf16.gmra.mrb[84].mxu1 %vm1901_vm5, %v10117_v27 }
0x10e8   : > { %15278 = vmatprep.mubr.msk.bf16.mxu1 %vm1901_vm5, %v10118_v55  ;;  %v18970_v32 = vpop.f32.mrb[240].mxu0 }
0x10e9   : > { %v18972_v53 = vpop.f32.mrb[241].mxu0 }
0x10ea   : > { %v18977_v51 = vpop.f32.mrb[242].mxu0 }
0x10eb   : > { %v10578_v23 = vpack.c.bf16 %v18977_v51, %v18970_v32  ;;  %v18984_v27 = vpop.f32.mrb[243].mxu0  ;;  %v16451_v32 = vld [vmem:[%s20203_s18 + $0x3a0] sm:$0xff]  }
0x10ec   : > { %v10577_v58 = vpack.c.bf16 %v18984_v27, %v18972_v53 }
0x10ed   : > { %15127 = vmatmul.mubr.msk.bf16.gmra.mrb[92].mxu0 %vm1763_vm3, %v16432_v33 }
0x10ee   : > { %15130 = vmatprep.mubr.msk.bf16.mxu0 %vm1763_vm3, %v16433_v35  ;;  %v16442_v35 = vld [vmem:[%s20203_s18 + $0x358] sm:$0xff]  }
0x10ef   : > { %15279 = vmatmul.mubr.msk.bf16.gmra.mrb[88].mxu1 %vm1901_vm5, %v10119_v46 }
0x10f0   : > { %15282 = vmatprep.mubr.msk.bf16.mxu1 %vm1901_vm5, %v10120_v59  ;;  %v18998_v56 = vpop.f32.mrb[244].mxu0 }
0x10f1   : > { %v19000_v55 = vpop.f32.mrb[245].mxu0 }
0x10f2   : > { %v19005_v10 = vpop.f32.mrb[246].mxu0 }
0x10f3   : > { %v10580_v38 = vpack.c.bf16 %v19005_v10, %v18998_v56  ;;  %v19012_v46 = vpop.f32.mrb[247].mxu0  ;;  %v16453_v56 = vld [vmem:[%s20203_s18 + $0x3b0] sm:$0xff]  }
0x10f4   : > { %v10579_v2 = vpack.c.bf16 %v19012_v46, %v19000_v55 }
0x10f5   : > { %15131 = vmatmul.mubr.msk.bf16.gmra.mrb[96].mxu0 %vm1763_vm3, %v16434_v48 }
0x10f6   : > { %15134 = vmatprep.mubr.msk.bf16.mxu0 %vm1763_vm3, %v16435_v36  ;;  %v16444_v36 = vld [vmem:[%s20203_s18 + $0x368] sm:$0xff]  }
0x10f7   : > { %15283 = vmatmul.mubr.msk.bf16.gmra.mrb[92].mxu1 %vm1901_vm5, %v10121_v14 }
0x10f8   : > { %15286 = vmatprep.mubr.msk.bf16.mxu1 %vm1901_vm5, %v10122_v13  ;;  %v19026_v54 = vpop.f32.mrb[248].mxu0 }
0x10f9   : > { %v19028_v59 = vpop.f32.mrb[249].mxu0 }
0x10fa   : > { %v19033_v20 = vpop.f32.mrb[250].mxu0 }
0x10fb   : > { %v10582_v1 = vpack.c.bf16 %v19033_v20, %v19026_v54  ;;  %v19040_v14 = vpop.f32.mrb[251].mxu0  ;;  %v16455_v54 = vld [vmem:[%s20203_s18 + $0x3c0] sm:$0xff]  }
0x10fc   : > { %v10581_v44 = vpack.c.bf16 %v19040_v14, %v19028_v59 }
0x10fd   : > { %15135 = vmatmul.mubr.msk.bf16.gmra.mrb[100].mxu0 %vm1763_vm3, %v16436_v22 }
0x10fe   : > { %15138 = vmatprep.mubr.msk.bf16.mxu0 %vm1763_vm3, %v16437_v0  ;;  %v16446_v0 = vld [vmem:[%s20203_s18 + $0x378] sm:$0xff]  }
0x10ff   : > { %15287 = vmatmul.mubr.msk.bf16.gmra.mrb[96].mxu1 %vm1901_vm5, %v10123_v21 }
0x1100   : > { %15292 = vmatprep.mubr.msk.bf16.mxu1 %vm1901_vm5, %v10567_v49  ;;  %v19054_v5 = vpop.f32.mrb[252].mxu0  ;;  %v19079_v49 = vld [vmem:[%s20201_s16 + $0x10] sm:$0xf] }
0x1101   : > { %v19056_v13 = vpop.f32.mrb[253].mxu0 }
0x1102   : > { %v19061_v3 = vpop.f32.mrb[254].mxu0 }
0x1103   : > { %v10830_v60 = vpack.c.bf16 %v19061_v3, %v19054_v5  ;;  %v19068_v21 = vpop.f32.mrb[255].mxu0  ;;  %v16457_v3 = vld [vmem:[%s20203_s18 + $0x3d0] sm:$0xff]  }
0x1104   : > { %v10829_v34 = vpack.c.bf16 %v19068_v21, %v19056_v13  ;;  %v11158_v21 = vsel %vm1905_vm4, %v19079_v49, 0 }
0x1105   : > { %15139 = vmatmul.mubr.msk.bf16.gmra.mrb[104].mxu0 %vm1763_vm3, %v16438_v24 }
0x1106   : > { %15142 = vmatprep.mubr.msk.bf16.mxu0 %vm1763_vm3, %v16439_v50  ;;  %v16448_v50 = vld [vmem:[%s20203_s18 + $0x388] sm:$0xff]  }
0x1107   : > { %15293 = vmatmul.mubr.msk.bf16.vlgmr.msra.gmra.mrb[68].mxu1 %vm1901_vm5, %v10568_v63 }
0x1108   : > { %15296 = vmatprep.mubr.msk.bf16.mxu1 %vm1901_vm5, %v10569_v29  ;;  %15325 = vmatpush3.bf16.msra.mxu1 %v10896_v6  ;;  %v19089_v12 = vpop.f32.mrb[0].mxu0 }
0x1109   : > { %v19091_v18 = vpop.f32.mrb[1].mxu0  ;;  %16106 = vmatprep.subr.msk.bf16.mxu1 %vm1905_vm4, %v19079_v49 }
0x110a   : > { %v19098_v47 = vpop.f32.mrb[2].mxu0 }
0x110b   : > { %v10832_v63 = vpack.c.bf16 %v19098_v47, %v19089_v12  ;;  %v19105_v15 = vpop.f32.mrb[3].mxu0  ;;  %v16459_v12 = vld [vmem:[%s20203_s18 + $0x3e0] sm:$0xff]  }
0x110c   : > { %v10831_v61 = vpack.c.bf16 %v19105_v15, %v19091_v18 }
0x110d   : > { %15143 = vmatmul.mubr.msk.bf16.gmra.mrb[108].mxu0 %vm1763_vm3, %v16440_v17  ;;  %v16450_v17 = vld [vmem:[%s20203_s18 + $0x398] sm:$0xff]  }
0x110e   : > { %15146 = vmatprep.mubr.msk.bf16.mxu0 %vm1763_vm3, %v16441_v28 }
0x110f   : > { %15297 = vmatmul.mubr.msk.bf16.gmra.mrb[72].mxu1 %vm1901_vm5, %v10570_v39 }
0x1110   : > { %15300 = vmatprep.mubr.msk.bf16.mxu1 %vm1901_vm5, %v10571_v9  ;;  %v19119_v29 = vpop.f32.mrb[4].mxu0 }
0x1111   : > { %v19121_v33 = vpop.f32.mrb[5].mxu0 }
0x1112   : > { %v19126_v48 = vpop.f32.mrb[6].mxu0 }
0x1113   : > { %v10834_v8 = vpack.c.bf16 %v19126_v48, %v19119_v29  ;;  %v19133_v39 = vpop.f32.mrb[7].mxu0  ;;  %v16461_v29 = vld [vmem:[%s20203_s18 + $0x3f0] sm:$0xff]  }
0x1114   : > { %v10833_v62 = vpack.c.bf16 %v19133_v39, %v19121_v33 }
0x1115   : > { %15147 = vmatmul.mubr.msk.bf16.gmra.mrb[112].mxu0 %vm1763_vm3, %v16442_v35  ;;  %v16452_v35 = vld [vmem:[%s20203_s18 + $0x3a8] sm:$0xff]  }
0x1116   : > { %15150 = vmatprep.mubr.msk.bf16.mxu0 %vm1763_vm3, %v16443_v57 }
0x1117   : > { %15301 = vmatmul.mubr.msk.bf16.gmra.mrb[76].mxu1 %vm1901_vm5, %v10572_v16 }
0x1118   : > { %15304 = vmatprep.mubr.msk.bf16.mxu1 %vm1901_vm5, %v10573_v40  ;;  %v19147_v31 = vpop.f32.mrb[8].mxu0 }
0x1119   : > { %v19149_v9 = vpop.f32.mrb[9].mxu0 }
0x111a   : > { %v19154_v22 = vpop.f32.mrb[10].mxu0 }
0x111b   : > { %v10836_v52 = vpack.c.bf16 %v19154_v22, %v19147_v31  ;;  %v19161_v16 = vpop.f32.mrb[11].mxu0  ;;  %v16463_v31 = vld [vmem:[%s20203_s18 + $0x400] sm:$0xff]  }
0x111c   : > { %v10835_v30 = vpack.c.bf16 %v19161_v16, %v19149_v9 }
0x111d   : > { %15151 = vmatmul.mubr.msk.bf16.gmra.mrb[116].mxu0 %vm1763_vm3, %v16444_v36  ;;  %v16454_v36 = vld [vmem:[%s20203_s18 + $0x3b8] sm:$0xff]  }
0x111e   : > { %15154 = vmatprep.mubr.msk.bf16.mxu0 %vm1763_vm3, %v16445_v4 }
0x111f   : > { %15305 = vmatmul.mubr.msk.bf16.gmra.mrb[80].mxu1 %vm1901_vm5, %v10574_v7 }
0x1120   : > { %15308 = vmatprep.mubr.msk.bf16.mxu1 %vm1901_vm5, %v10575_v19  ;;  %v19175_v11 = vpop.f32.mrb[12].mxu0 }
0x1121   : > { %v19177_v40 = vpop.f32.mrb[13].mxu0 }
0x1122   : > { %v19182_v24 = vpop.f32.mrb[14].mxu0 }
0x1123   : > { %v10838_v37 = vpack.c.bf16 %v19182_v24, %v19175_v11  ;;  %v19189_v7 = vpop.f32.mrb[15].mxu0  ;;  %v16465_v11 = vld [vmem:[%s20203_s18 + $0x410] sm:$0xff]  }
0x1124   : > { %v10837_v42 = vpack.c.bf16 %v19189_v7, %v19177_v40 }
0x1125   : > { %15155 = vmatmul.mubr.msk.bf16.gmra.mrb[120].mxu0 %vm1763_vm3, %v16446_v0 }
0x1126   : > { %15158 = vmatprep.mubr.msk.bf16.mxu0 %vm1763_vm3, %v16447_v25  ;;  %v16456_v25 = vld [vmem:[%s20203_s18 + $0x3c8] sm:$0xff]  }
0x1127   : > { %15309 = vmatmul.mubr.msk.bf16.gmra.mrb[84].mxu1 %vm1901_vm5, %v10576_v26 }
0x1128   : > { %15312 = vmatprep.mubr.msk.bf16.mxu1 %vm1901_vm5, %v10577_v58  ;;  %v19203_v43 = vpop.f32.mrb[16].mxu0 }
0x1129   : > { %v19205_v19 = vpop.f32.mrb[17].mxu0 }
0x112a   : > { %v19210_v6 = vpop.f32.mrb[18].mxu0 }
0x112b   : > { %v10840_v41 = vpack.c.bf16 %v19210_v6, %v19203_v43  ;;  %v19217_v26 = vpop.f32.mrb[19].mxu0  ;;  %v16467_v43 = vld [vmem:[%s20203_s18 + $0x420] sm:$0xff]  }
0x112c   : > { %v10839_v53 = vpack.c.bf16 %v19217_v26, %v19205_v19 }
0x112d   : > { %15159 = vmatmul.mubr.msk.bf16.gmra.mrb[124].mxu0 %vm1763_vm3, %v16448_v50 }
0x112e   : > { %15162 = vmatprep.mubr.msk.bf16.mxu0 %vm1763_vm3, %v16449_v45  ;;  %v16458_v45 = vld [vmem:[%s20203_s18 + $0x3d8] sm:$0xff]  }
0x112f   : > { %15313 = vmatmul.mubr.msk.bf16.gmra.mrb[88].mxu1 %vm1901_vm5, %v10578_v23 }
0x1130   : > { %15316 = vmatprep.mubr.msk.bf16.mxu1 %vm1901_vm5, %v10579_v2  ;;  %v19231_v27 = vpop.f32.mrb[20].mxu0 }
0x1131   : > { %v19233_v58 = vpop.f32.mrb[21].mxu0 }
0x1132   : > { %v19238_v28 = vpop.f32.mrb[22].mxu0 }
0x1133   : > { %v10842_v51 = vpack.c.bf16 %v19238_v28, %v19231_v27  ;;  %v19245_v23 = vpop.f32.mrb[23].mxu0  ;;  %v16469_v27 = vld [vmem:[%s20203_s18 + $0x430] sm:$0xff]  }
0x1134   : > { %v10841_v55 = vpack.c.bf16 %v19245_v23, %v19233_v58 }
0x1135   : > { %15163 = vmatmul.mubr.msk.bf16.gmra.mrb[128].mxu0 %vm1763_vm3, %v16450_v17 }
0x1136   : > { %15166 = vmatprep.mubr.msk.bf16.mxu0 %vm1763_vm3, %v16451_v32  ;;  %v16460_v32 = vld [vmem:[%s20203_s18 + $0x3e8] sm:$0xff]  }
0x1137   : > { %15317 = vmatmul.mubr.msk.bf16.gmra.mrb[92].mxu1 %vm1901_vm5, %v10580_v38 }
0x1138   : > { %15320 = vmatprep.mubr.msk.bf16.mxu1 %vm1901_vm5, %v10581_v44  ;;  %v19259_v46 = vpop.f32.mrb[24].mxu0 }
0x1139   : > { %v19261_v2 = vpop.f32.mrb[25].mxu0 }
0x113a   : > { %v19266_v57 = vpop.f32.mrb[26].mxu0 }
0x113b   : > { %v10844_v10 = vpack.c.bf16 %v19266_v57, %v19259_v46  ;;  %v19273_v38 = vpop.f32.mrb[27].mxu0  ;;  %v16471_v46 = vld [vmem:[%s20203_s18 + $0x440] sm:$0xff]  }
0x113c   : > { %v10843_v59 = vpack.c.bf16 %v19273_v38, %v19261_v2 }
0x113d   : > { %15167 = vmatmul.mubr.msk.bf16.gmra.mrb[132].mxu0 %vm1763_vm3, %v16452_v35 }
0x113e   : > { %15170 = vmatprep.mubr.msk.bf16.mxu0 %vm1763_vm3, %v16453_v56  ;;  %v16462_v56 = vld [vmem:[%s20203_s18 + $0x3f8] sm:$0xff]  }
0x113f   : > { %15321 = vmatmul.mubr.msk.bf16.gmra.mrb[96].mxu1 %vm1901_vm5, %v10582_v1 }
0x1140   : > { %15326 = vmatprep.mubr.msk.bf16.mxu1 %vm1901_vm5, %v10829_v34  ;;  %v19287_v14 = vpop.f32.mrb[28].mxu0  ;;  %v19312_v34 = vld [vmem:[%s20201_s16 + $0x14] sm:$0xf] }
0x1141   : > { %v19289_v44 = vpop.f32.mrb[29].mxu0 }
0x1142   : > { %v19294_v4 = vpop.f32.mrb[30].mxu0 }
0x1143   : > { %v11092_v20 = vpack.c.bf16 %v19294_v4, %v19287_v14  ;;  %v19301_v1 = vpop.f32.mrb[31].mxu0  ;;  %v16473_v4 = vld [vmem:[%s20203_s18 + $0x450] sm:$0xff]  }
0x1144   : > { %v11091_v13 = vpack.c.bf16 %v19301_v1, %v19289_v44  ;;  %v11420_v1 = vsel %vm1905_vm4, %v19312_v34, 0 }
0x1145   : > { %15171 = vmatmul.mubr.msk.bf16.gmra.mrb[136].mxu0 %vm1763_vm3, %v16454_v36 }
0x1146   : > { %15174 = vmatprep.mubr.msk.bf16.mxu0 %vm1763_vm3, %v16455_v54  ;;  %v16464_v54 = vld [vmem:[%s20203_s18 + $0x408] sm:$0xff]  }
0x1147   : > { %15327 = vmatmul.mubr.msk.bf16.vlgmr.msra.gmra.mrb[68].mxu1 %vm1901_vm5, %v10830_v60 }
0x1148   : > { %15330 = vmatprep.mubr.msk.bf16.mxu1 %vm1901_vm5, %v10831_v61  ;;  %15359 = vmatpush3.bf16.msra.mxu1 %v11158_v21  ;;  %v19322_v49 = vpop.f32.mrb[32].mxu0 }
0x1149   : > { %v19324_v0 = vpop.f32.mrb[33].mxu0  ;;  %16107 = vmatprep.subr.msk.bf16.mxu1 %vm1905_vm4, %v19312_v34 }
0x114a   : > { %v19331_v5 = vpop.f32.mrb[34].mxu0 }
0x114b   : > { %v11094_v60 = vpack.c.bf16 %v19331_v5, %v19322_v49  ;;  %v19338_v18 = vpop.f32.mrb[35].mxu0  ;;  %v16475_v49 = vld [vmem:[%s20203_s18 + $0x460] sm:$0xff]  }
0x114c   : > { %v11093_v15 = vpack.c.bf16 %v19338_v18, %v19324_v0 }
0x114d   : > { %15175 = vmatmul.mubr.msk.bf16.gmra.mrb[140].mxu0 %vm1763_vm3, %v16456_v25  ;;  %v16466_v25 = vld [vmem:[%s20203_s18 + $0x418] sm:$0xff]  }
0x114e   : > { %15178 = vmatprep.mubr.msk.bf16.mxu0 %vm1763_vm3, %v16457_v3 }
0x114f   : > { %15331 = vmatmul.mubr.msk.bf16.gmra.mrb[72].mxu1 %vm1901_vm5, %v10832_v63 }
0x1150   : > { %15334 = vmatprep.mubr.msk.bf16.mxu1 %vm1901_vm5, %v10833_v62  ;;  %v19352_v61 = vpop.f32.mrb[36].mxu0 }
0x1151   : > { %v19354_v50 = vpop.f32.mrb[37].mxu0 }
0x1152   : > { %v19359_v17 = vpop.f32.mrb[38].mxu0 }
0x1153   : > { %v11096_v47 = vpack.c.bf16 %v19359_v17, %v19352_v61  ;;  %v19366_v63 = vpop.f32.mrb[39].mxu0  ;;  %v16477_v61 = vld [vmem:[%s20203_s18 + $0x470] sm:$0xff]  }
0x1154   : > { %v11095_v33 = vpack.c.bf16 %v19366_v63, %v19354_v50 }
0x1155   : > { %15179 = vmatmul.mubr.msk.bf16.gmra.mrb[144].mxu0 %vm1763_vm3, %v16458_v45  ;;  %v16468_v45 = vld [vmem:[%s20203_s18 + $0x428] sm:$0xff]  }
0x1156   : > { %15182 = vmatprep.mubr.msk.bf16.mxu0 %vm1763_vm3, %v16459_v12 }
0x1157   : > { %15335 = vmatmul.mubr.msk.bf16.gmra.mrb[76].mxu1 %vm1901_vm5, %v10834_v8 }
0x1158   : > { %15338 = vmatprep.mubr.msk.bf16.mxu1 %vm1901_vm5, %v10835_v30  ;;  %v19380_v39 = vpop.f32.mrb[40].mxu0 }
0x1159   : > { %v19382_v62 = vpop.f32.mrb[41].mxu0 }
0x115a   : > { %v19387_v35 = vpop.f32.mrb[42].mxu0 }
0x115b   : > { %v11098_v48 = vpack.c.bf16 %v19387_v35, %v19380_v39  ;;  %v19394_v8 = vpop.f32.mrb[43].mxu0 }
0x115c   : > { %v11097_v9 = vpack.c.bf16 %v19394_v8, %v19382_v62 }
0x115d   : > { %15183 = vmatmul.mubr.msk.bf16.gmra.mrb[148].mxu0 %vm1763_vm3, %v16460_v32  ;;  %v16470_v32 = vld [vmem:[%s20203_s18 + $0x438] sm:$0xff]  }
0x115e   : > { %15186 = vmatprep.mubr.msk.bf16.mxu0 %vm1763_vm3, %v16461_v29 }
0x115f   : > { %15339 = vmatmul.mubr.msk.bf16.gmra.mrb[80].mxu1 %vm1901_vm5, %v10836_v52 }
0x1160   : > { %15342 = vmatprep.mubr.msk.bf16.mxu1 %vm1901_vm5, %v10837_v42  ;;  %v19408_v16 = vpop.f32.mrb[44].mxu0 }
0x1161   : > { %v19410_v30 = vpop.f32.mrb[45].mxu0 }
0x1162   : > { %v19415_v36 = vpop.f32.mrb[46].mxu0 }
0x1163   : > { %v11100_v22 = vpack.c.bf16 %v19415_v36, %v19408_v16  ;;  %v19422_v52 = vpop.f32.mrb[47].mxu0 }
0x1164   : > { %v11099_v40 = vpack.c.bf16 %v19422_v52, %v19410_v30 }
0x1165   : > { %15187 = vmatmul.mubr.msk.bf16.gmra.mrb[152].mxu0 %vm1763_vm3, %v16462_v56 }
0x1166   : > { %15190 = vmatprep.mubr.msk.bf16.mxu0 %vm1763_vm3, %v16463_v31  ;;  %v16472_v31 = vld [vmem:[%s20203_s18 + $0x448] sm:$0xff]  }
0x1167   : > { %15343 = vmatmul.mubr.msk.bf16.gmra.mrb[84].mxu1 %vm1901_vm5, %v10838_v37 }
0x1168   : > { %15346 = vmatprep.mubr.msk.bf16.mxu1 %vm1901_vm5, %v10839_v53  ;;  %v19436_v7 = vpop.f32.mrb[48].mxu0 }
0x1169   : > { %v19438_v42 = vpop.f32.mrb[49].mxu0 }
0x116a   : > { %v19443_v21 = vpop.f32.mrb[50].mxu0 }
0x116b   : > { %v11102_v24 = vpack.c.bf16 %v19443_v21, %v19436_v7  ;;  %v19450_v37 = vpop.f32.mrb[51].mxu0 }
0x116c   : > { %v11101_v19 = vpack.c.bf16 %v19450_v37, %v19438_v42 }
0x116d   : > { %15191 = vmatmul.mubr.msk.bf16.gmra.mrb[156].mxu0 %vm1763_vm3, %v16464_v54 }
0x116e   : > { %15194 = vmatprep.mubr.msk.bf16.mxu0 %vm1763_vm3, %v16465_v11  ;;  %v16474_v11 = vld [vmem:[%s20203_s18 + $0x458] sm:$0xff]  }
0x116f   : > { %15347 = vmatmul.mubr.msk.bf16.gmra.mrb[88].mxu1 %vm1901_vm5, %v10840_v41 }
0x1170   : > { %15350 = vmatprep.mubr.msk.bf16.mxu1 %vm1901_vm5, %v10841_v55  ;;  %v19464_v26 = vpop.f32.mrb[52].mxu0 }
0x1171   : > { %v19466_v53 = vpop.f32.mrb[53].mxu0 }
0x1172   : > { %v19471_v3 = vpop.f32.mrb[54].mxu0 }
0x1173   : > { %v11104_v6 = vpack.c.bf16 %v19471_v3, %v19464_v26  ;;  %v19478_v41 = vpop.f32.mrb[55].mxu0 }
0x1174   : > { %v11103_v58 = vpack.c.bf16 %v19478_v41, %v19466_v53 }
0x1175   : > { %15195 = vmatmul.mubr.msk.bf16.gmra.mrb[160].mxu0 %vm1763_vm3, %v16466_v25 }
0x1176   : > { %15198 = vmatprep.mubr.msk.bf16.mxu0 %vm1763_vm3, %v16467_v43  ;;  %v16476_v43 = vld [vmem:[%s20203_s18 + $0x468] sm:$0xff]  }
0x1177   : > { %15351 = vmatmul.mubr.msk.bf16.gmra.mrb[92].mxu1 %vm1901_vm5, %v10842_v51 }
0x1178   : > { %15354 = vmatprep.mubr.msk.bf16.mxu1 %vm1901_vm5, %v10843_v59  ;;  %v19492_v23 = vpop.f32.mrb[56].mxu0 }
0x1179   : > { %v19494_v55 = vpop.f32.mrb[57].mxu0 }
0x117a   : > { %v19499_v12 = vpop.f32.mrb[58].mxu0 }
0x117b   : > { %v11106_v28 = vpack.c.bf16 %v19499_v12, %v19492_v23  ;;  %v19506_v51 = vpop.f32.mrb[59].mxu0 }
0x117c   : > { %v11105_v2 = vpack.c.bf16 %v19506_v51, %v19494_v55 }
0x117d   : > { %15199 = vmatmul.mubr.msk.bf16.gmra.mrb[164].mxu0 %vm1763_vm3, %v16468_v45 }
0x117e   : > { %15202 = vmatprep.mubr.msk.bf16.mxu0 %vm1763_vm3, %v16469_v27  ;;  %v16478_v27 = vld [vmem:[%s20203_s18 + $0x478] sm:$0xff]  }
0x117f   : > { %15355 = vmatmul.mubr.msk.bf16.gmra.mrb[96].mxu1 %vm1901_vm5, %v10844_v10 }
0x1180   : > { %15360 = vmatprep.mubr.msk.bf16.mxu1 %vm1901_vm5, %v11091_v13  ;;  %v19520_v38 = vpop.f32.mrb[60].mxu0  ;;  %v19545_v13 = vld [vmem:[%s20201_s16 + $0x18] sm:$0xf] }
0x1181   : > { %v19522_v59 = vpop.f32.mrb[61].mxu0  ;;  %v11682_v12 = vsel %vm1905_vm4, %v19545_v13, 0 }
0x1182   : > { %v19527_v29 = vpop.f32.mrb[62].mxu0 }
0x1183   : > { %v11354_v57 = vpack.c.bf16 %v19527_v29, %v19520_v38  ;;  %v19534_v10 = vpop.f32.mrb[63].mxu0 }
0x1184   : > { %v11353_v44 = vpack.c.bf16 %v19534_v10, %v19522_v59 }
0x1185   : > { %15203 = vmatmul.mubr.msk.bf16.gmra.mrb[168].mxu0 %vm1763_vm3, %v16470_v32 }
0x1186   : > { %15206 = vmatprep.mubr.msk.bf16.mxu0 %vm1763_vm3, %v16471_v46 }
0x1187   : > { %15361 = vmatmul.mubr.msk.bf16.vlgmr.msra.gmra.mrb[68].mxu1 %vm1901_vm5, %v11092_v20 }
0x1188   : > { %15364 = vmatprep.mubr.msk.bf16.mxu1 %vm1901_vm5, %v11093_v15  ;;  %15393 = vmatpush3.bf16.msra.mxu1 %v11420_v1  ;;  %v19555_v34 = vpop.f32.mrb[64].mxu0 }
0x1189   : > { %v19557_v56 = vpop.f32.mrb[65].mxu0  ;;  %16108 = vmatprep.subr.msk.bf16.mxu1 %vm1905_vm4, %v19545_v13 }
0x118a   : > { %v19564_v14 = vpop.f32.mrb[66].mxu0 }
0x118b   : > { %v11356_v20 = vpack.c.bf16 %v19564_v14, %v19555_v34  ;;  %v19571_v0 = vpop.f32.mrb[67].mxu0 }
0x118c   : > { %v11355_v18 = vpack.c.bf16 %v19571_v0, %v19557_v56 }
0x118d   : > { %15207 = vmatmul.mubr.msk.bf16.gmra.mrb[172].mxu0 %vm1763_vm3, %v16472_v31 }
0x118e   : > { %15210 = vmatprep.mubr.msk.bf16.mxu0 %vm1763_vm3, %v16473_v4 }
0x118f   : > { %15365 = vmatmul.mubr.msk.bf16.gmra.mrb[72].mxu1 %vm1901_vm5, %v11094_v60 }
0x1190   : > { %15368 = vmatprep.mubr.msk.bf16.mxu1 %vm1901_vm5, %v11095_v33  ;;  %v19585_v15 = vpop.f32.mrb[68].mxu0 }
0x1191   : > { %v19587_v54 = vpop.f32.mrb[69].mxu0 }
0x1192   : > { %v19592_v25 = vpop.f32.mrb[70].mxu0 }
0x1193   : > { %v11358_v5 = vpack.c.bf16 %v19592_v25, %v19585_v15  ;;  %v19599_v60 = vpop.f32.mrb[71].mxu0 }
0x1194   : > { %v11357_v50 = vpack.c.bf16 %v19599_v60, %v19587_v54 }
0x1195   : > { %15211 = vmatmul.mubr.msk.bf16.gmra.mrb[176].mxu0 %vm1763_vm3, %v16474_v11 }
0x1196   : > { %15214 = vmatprep.mubr.msk.bf16.mxu0 %vm1763_vm3, %v16475_v49 }
0x1197   : > { %15369 = vmatmul.mubr.msk.bf16.gmra.mrb[76].mxu1 %vm1901_vm5, %v11096_v47 }
0x1198   : > { %15372 = vmatprep.mubr.msk.bf16.mxu1 %vm1901_vm5, %v11097_v9  ;;  %v19613_v63 = vpop.f32.mrb[72].mxu0 }
0x1199   : > { %v19615_v33 = vpop.f32.mrb[73].mxu0 }
0x119a   : > { %v19620_v45 = vpop.f32.mrb[74].mxu0 }
0x119b   : > { %v11360_v17 = vpack.c.bf16 %v19620_v45, %v19613_v63  ;;  %v19627_v47 = vpop.f32.mrb[75].mxu0 }
0x119c   : > { %v11359_v62 = vpack.c.bf16 %v19627_v47, %v19615_v33 }
0x119d   : > { %15215 = vmatmul.mubr.msk.bf16.gmra.mrb[180].mxu0 %vm1763_vm3, %v16476_v43 }
0x119e   : > { %15218 = vmatprep.mubr.msk.bf16.mxu0 %vm1763_vm3, %v16477_v61 }
0x119f   : > { %15373 = vmatmul.mubr.msk.bf16.gmra.mrb[80].mxu1 %vm1901_vm5, %v11098_v48 }
0x11a0   : > { %15376 = vmatprep.mubr.msk.bf16.mxu1 %vm1901_vm5, %v11099_v40  ;;  %v19641_v8 = vpop.f32.mrb[76].mxu0 }
0x11a1   : > { %v19643_v9 = vpop.f32.mrb[77].mxu0 }
0x11a2   : > { %v19648_v32 = vpop.f32.mrb[78].mxu0 }
0x11a3   : > { %v11362_v39 = vpack.c.bf16 %v19648_v32, %v19641_v8  ;;  %v19652_v35 = vpop.f32.mrb[79].mxu0 }
0x11a4   : > { %v11361_v48 = vpack.c.bf16 %v19652_v35, %v19643_v9 }
0x11a5   : > { %15219 = vmatmul.mubr.msk.bf16.gmra.mrb[184].mxu0 %vm1763_vm3, %v16478_v27 }
0x11a7   : > { %15377 = vmatmul.mubr.msk.bf16.gmra.mrb[84].mxu1 %vm1901_vm5, %v11100_v22 }
0x11a8   : > { %15380 = vmatprep.mubr.msk.bf16.mxu1 %vm1901_vm5, %v11101_v19  ;;  %v19665_v30 = vpop.f32.mrb[80].mxu0 }
0x11a9   : > { %v19667_v52 = vpop.f32.mrb[81].mxu0 }
0x11aa   : > { %v19669_v40 = vpop.f32.mrb[82].mxu0 }
0x11ab   : > { %v11364_v46 = vpack.c.bf16 %v19669_v40, %v19665_v30  ;;  %v19673_v1 = vpop.f32.mrb[83].mxu0 }
0x11ac   : > { %v11363_v16 = vpack.c.bf16 %v19673_v1, %v19667_v52 }
0x11af   : > { %15381 = vmatmul.mubr.msk.bf16.gmra.mrb[88].mxu1 %vm1901_vm5, %v11102_v24 }
0x11b0   : > { %15384 = vmatprep.mubr.msk.bf16.mxu1 %vm1901_vm5, %v11103_v58  ;;  %v19685_v36 = vpop.f32.mrb[84].mxu0 }
0x11b1   : > { %v19687_v22 = vpop.f32.mrb[85].mxu0 }
0x11b2   : > { %v19689_v42 = vpop.f32.mrb[86].mxu0 }
0x11b3   : > { %v11366_v37 = vpack.c.bf16 %v19689_v42, %v19685_v36  ;;  %v19693_v19 = vpop.f32.mrb[87].mxu0 }
0x11b4   : > { %v11365_v7 = vpack.c.bf16 %v19693_v19, %v19687_v22 }
0x11b7   : > { %15385 = vmatmul.mubr.msk.bf16.gmra.mrb[92].mxu1 %vm1901_vm5, %v11104_v6 }
0x11b8   : > { %15388 = vmatprep.mubr.msk.bf16.mxu1 %vm1901_vm5, %v11105_v2  ;;  %v19705_v21 = vpop.f32.mrb[88].mxu0 }
0x11b9   : > { %v19707_v24 = vpop.f32.mrb[89].mxu0 }
0x11ba   : > { %v19709_v53 = vpop.f32.mrb[90].mxu0 }
0x11bb   : > { %v11368_v41 = vpack.c.bf16 %v19709_v53, %v19705_v21  ;;  %v19713_v58 = vpop.f32.mrb[91].mxu0 }
0x11bc   : > { %v11367_v26 = vpack.c.bf16 %v19713_v58, %v19707_v24 }
0x11bf   : > { %15389 = vmatmul.mubr.msk.bf16.gmra.mrb[96].mxu1 %vm1901_vm5, %v11106_v28  ;;  %v19742_v28 = vld [vmem:[%s20201_s16 + $0x1c] sm:$0xf] }
0x11c0   : > { %15394 = vmatprep.mubr.msk.bf16.mxu1 %vm1901_vm5, %v11353_v44  ;;  %v19725_v3 = vpop.f32.mrb[92].mxu0  ;;  %v11944_v19 = vsel %vm1905_vm4, %v19742_v28, 0 }
0x11c1   : > { %v19727_v6 = vpop.f32.mrb[93].mxu0 }
0x11c2   : > { %v19729_v55 = vpop.f32.mrb[94].mxu0 }
0x11c3   : > { %v11616_v51 = vpack.c.bf16 %v19729_v55, %v19725_v3  ;;  %v19733_v2 = vpop.f32.mrb[95].mxu0 }
0x11c4   : > { %v11615_v23 = vpack.c.bf16 %v19733_v2, %v19727_v6 }
0x11c7   : > { %15395 = vmatmul.mubr.msk.bf16.vlgmr.msra.gmra.mrb[68].mxu1 %vm1901_vm5, %v11354_v57 }
0x11c8   : > { %15398 = vmatprep.mubr.msk.bf16.mxu1 %vm1901_vm5, %v11355_v18  ;;  %15427 = vmatpush3.bf16.msra.mxu1 %v11682_v12  ;;  %v19752_v59 = vpop.f32.mrb[96].mxu0 }
0x11c9   : > { %v19754_v10 = vpop.f32.mrb[97].mxu0  ;;  %16109 = vmatprep.subr.msk.bf16.mxu1 %vm1905_vm4, %v19742_v28 }
0x11ca   : > { %v19758_v44 = vpop.f32.mrb[98].mxu0 }
0x11cb   : > { %v11618_v38 = vpack.c.bf16 %v19758_v44, %v19752_v59  ;;  %v9744_v29 = vpop.f32.mrb[99].mxu0 }
0x11cc   : > { %v11617_v57 = vpack.c.bf16 %v9744_v29, %v19754_v10 }
0x11cf   : > { %15399 = vmatmul.mubr.msk.bf16.gmra.mrb[72].mxu1 %vm1901_vm5, %v11356_v20 }
0x11d0   : > { %15402 = vmatprep.mubr.msk.bf16.mxu1 %vm1901_vm5, %v11357_v50  ;;  %v19771_v13 = vpop.f32.mrb[100].mxu0 }
0x11d1   : > { %v19773_v56 = vpop.f32.mrb[101].mxu0 }
0x11d2   : > { %v19775_v31 = vpop.f32.mrb[102].mxu0 }
0x11d3   : > { %v11620_v4 = vpack.c.bf16 %v19775_v31, %v19771_v13  ;;  %v19779_v0 = vpop.f32.mrb[103].mxu0 }
0x11d4   : > { %v11619_v34 = vpack.c.bf16 %v19779_v0, %v19773_v56 }
0x11d7   : > { %15403 = vmatmul.mubr.msk.bf16.gmra.mrb[76].mxu1 %vm1901_vm5, %v11358_v5 }
0x11d8   : > { %15406 = vmatprep.mubr.msk.bf16.mxu1 %vm1901_vm5, %v11359_v62  ;;  %v19791_v14 = vpop.f32.mrb[104].mxu0 }
0x11d9   : > { %v19793_v20 = vpop.f32.mrb[105].mxu0 }
0x11da   : > { %v19795_v18 = vpop.f32.mrb[106].mxu0 }
0x11db   : > { %v11622_v54 = vpack.c.bf16 %v19795_v18, %v19791_v14  ;;  %v19799_v11 = vpop.f32.mrb[107].mxu0 }
0x11dc   : > { %v11621_v15 = vpack.c.bf16 %v19799_v11, %v19793_v20 }
0x11df   : > { %15407 = vmatmul.mubr.msk.bf16.gmra.mrb[80].mxu1 %vm1901_vm5, %v11360_v17 }
0x11e0   : > { %15410 = vmatprep.mubr.msk.bf16.mxu1 %vm1901_vm5, %v11361_v48  ;;  %v19811_v25 = vpop.f32.mrb[108].mxu0 }
0x11e1   : > { %v19813_v49 = vpop.f32.mrb[109].mxu0 }
0x11e2   : > { %v19815_v5 = vpop.f32.mrb[110].mxu0 }
0x11e3   : > { %v11624_v60 = vpack.c.bf16 %v19815_v5, %v19811_v25  ;;  %v19819_v50 = vpop.f32.mrb[111].mxu0 }
0x11e4   : > { %v11623_v63 = vpack.c.bf16 %v19819_v50, %v19813_v49 }
0x11e7   : > { %15411 = vmatmul.mubr.msk.bf16.gmra.mrb[84].mxu1 %vm1901_vm5, %v11362_v39 }
0x11e8   : > { %15414 = vmatprep.mubr.msk.bf16.mxu1 %vm1901_vm5, %v11363_v16  ;;  %v19828_v33 = vpop.f32.mrb[112].mxu0 }
0x11e9   : > { %v19830_v43 = vpop.f32.mrb[113].mxu0 }
0x11ea   : > { %v19832_v45 = vpop.f32.mrb[114].mxu0 }
0x11eb   : > { %v11626_v61 = vpack.c.bf16 %v19832_v45, %v19828_v33  ;;  %v19836_v17 = vpop.f32.mrb[115].mxu0 }
0x11ec   : > { %v11625_v47 = vpack.c.bf16 %v19836_v17, %v19830_v43 }
0x11ef   : > { %15415 = vmatmul.mubr.msk.bf16.gmra.mrb[88].mxu1 %vm1901_vm5, %v11364_v46 }
0x11f0   : > { %15418 = vmatprep.mubr.msk.bf16.mxu1 %vm1901_vm5, %v11365_v7  ;;  %v19845_v62 = vpop.f32.mrb[116].mxu0  ;;  %v19896_v7 = vld [vmem:[%s20201_s16 + $0x20] sm:$0xf] }
0x11f1   : > { %v19847_v8 = vpop.f32.mrb[117].mxu0 }
0x11f2   : > { %v19849_v9 = vpop.f32.mrb[118].mxu0 }
0x11f3   : > { %v11628_v27 = vpack.c.bf16 %v19849_v9, %v19845_v62  ;;  %v19853_v32 = vpop.f32.mrb[119].mxu0 }
0x11f4   : > { %v11627_v39 = vpack.c.bf16 %v19853_v32, %v19847_v8  ;;  %v12206_v32 = vsel %vm1905_vm4, %v19896_v7, 0 }
0x11f7   : > { %15419 = vmatmul.mubr.msk.bf16.gmra.mrb[92].mxu1 %vm1901_vm5, %v11366_v37 }
0x11f8   : > { %15422 = vmatprep.mubr.msk.bf16.mxu1 %vm1901_vm5, %v11367_v26  ;;  %v19862_v35 = vpop.f32.mrb[120].mxu0 }
0x11f9   : > { %v19864_v48 = vpop.f32.mrb[121].mxu0 }
0x11fa   : > { %v19866_v30 = vpop.f32.mrb[122].mxu0 }
0x11fb   : > { %v11630_v52 = vpack.c.bf16 %v19866_v30, %v19862_v35  ;;  %v19870_v40 = vpop.f32.mrb[123].mxu0 }
0x11fc   : > { %v11629_v46 = vpack.c.bf16 %v19870_v40, %v19864_v48 }
0x11ff   : > { %15423 = vmatmul.mubr.msk.bf16.gmra.mrb[96].mxu1 %vm1901_vm5, %v11368_v41 }
0x1200   : > { %15428 = vmatprep.mubr.msk.bf16.mxu1 %vm1901_vm5, %v11615_v23  ;;  %v19879_v1 = vpop.f32.mrb[124].mxu0 }
0x1201   : > { %v19881_v16 = vpop.f32.mrb[125].mxu0 }
0x1202   : > { %v19883_v36 = vpop.f32.mrb[126].mxu0 }
0x1203   : > { %v11878_v22 = vpack.c.bf16 %v19883_v36, %v19879_v1  ;;  %v19887_v42 = vpop.f32.mrb[127].mxu0 }
0x1204   : > { %v11877_v37 = vpack.c.bf16 %v19887_v42, %v19881_v16 }
0x1207   : > { %15429 = vmatmul.mubr.msk.bf16.vlgmr.msra.gmra.mrb[68].mxu1 %vm1901_vm5, %v11616_v51 }
0x1208   : > { %15432 = vmatprep.mubr.msk.bf16.mxu1 %vm1901_vm5, %v11617_v57  ;;  %15461 = vmatpush3.bf16.msra.mxu1 %v11944_v19  ;;  %v19903_v21 = vpop.f32.mrb[128].mxu0 }
0x1209   : > { %v19905_v24 = vpop.f32.mrb[129].mxu0  ;;  %16110 = vmatprep.subr.msk.bf16.mxu1 %vm1905_vm4, %v19896_v7 }
0x120a   : > { %v19909_v53 = vpop.f32.mrb[130].mxu0 }
0x120b   : > { %v11880_v41 = vpack.c.bf16 %v19909_v53, %v19903_v21  ;;  %v9872_v58 = vpop.f32.mrb[131].mxu0 }
0x120c   : > { %v11879_v26 = vpack.c.bf16 %v9872_v58, %v19905_v24 }
0x120f   : > { %15433 = vmatmul.mubr.msk.bf16.gmra.mrb[72].mxu1 %vm1901_vm5, %v11618_v38 }
0x1210   : > { %15436 = vmatprep.mubr.msk.bf16.mxu1 %vm1901_vm5, %v11619_v34  ;;  %v19919_v3 = vpop.f32.mrb[132].mxu0 }
0x1211   : > { %v19921_v6 = vpop.f32.mrb[133].mxu0 }
0x1212   : > { %v19923_v55 = vpop.f32.mrb[134].mxu0 }
0x1213   : > { %v11882_v51 = vpack.c.bf16 %v19923_v55, %v19919_v3  ;;  %v9888_v2 = vpop.f32.mrb[135].mxu0 }
0x1214   : > { %v11881_v23 = vpack.c.bf16 %v9888_v2, %v19921_v6 }
0x1217   : > { %15437 = vmatmul.mubr.msk.bf16.gmra.mrb[76].mxu1 %vm1901_vm5, %v11620_v4 }
0x1218   : > { %15440 = vmatprep.mubr.msk.bf16.mxu1 %vm1901_vm5, %v11621_v15  ;;  %v19933_v12 = vpop.f32.mrb[136].mxu0 }
0x1219   : > { %v19935_v28 = vpop.f32.mrb[137].mxu0 }
0x121a   : > { %v19937_v59 = vpop.f32.mrb[138].mxu0 }
0x121b   : > { %v11884_v10 = vpack.c.bf16 %v19937_v59, %v19933_v12  ;;  %v9904_v44 = vpop.f32.mrb[139].mxu0 }
0x121c   : > { %v11883_v38 = vpack.c.bf16 %v9904_v44, %v19935_v28 }
0x121f   : > { %15441 = vmatmul.mubr.msk.bf16.gmra.mrb[80].mxu1 %vm1901_vm5, %v11622_v54 }
0x1220   : > { %15444 = vmatprep.mubr.msk.bf16.mxu1 %vm1901_vm5, %v11623_v63  ;;  %v19947_v29 = vpop.f32.mrb[140].mxu0 }
0x1221   : > { %v19949_v57 = vpop.f32.mrb[141].mxu0 }
0x1222   : > { %v19951_v13 = vpop.f32.mrb[142].mxu0 }
0x1223   : > { %v11886_v56 = vpack.c.bf16 %v19951_v13, %v19947_v29  ;;  %v9920_v31 = vpop.f32.mrb[143].mxu0 }
0x1224   : > { %v11885_v4 = vpack.c.bf16 %v9920_v31, %v19949_v57 }
0x1227   : > { %15445 = vmatmul.mubr.msk.bf16.gmra.mrb[84].mxu1 %vm1901_vm5, %v11624_v60 }
0x1228   : > { %15448 = vmatprep.mubr.msk.bf16.mxu1 %vm1901_vm5, %v11625_v47  ;;  %v19961_v0 = vpop.f32.mrb[144].mxu0 }
0x1229   : > { %v19963_v34 = vpop.f32.mrb[145].mxu0 }
0x122a   : > { %v19965_v14 = vpop.f32.mrb[146].mxu0 }
0x122b   : > { %v11888_v20 = vpack.c.bf16 %v19965_v14, %v19961_v0  ;;  %v9936_v18 = vpop.f32.mrb[147].mxu0 }
0x122c   : > { %v11887_v54 = vpack.c.bf16 %v9936_v18, %v19963_v34 }
0x122f   : > { %15449 = vmatmul.mubr.msk.bf16.gmra.mrb[88].mxu1 %vm1901_vm5, %v11626_v61 }
0x1230   : > { %15452 = vmatprep.mubr.msk.bf16.mxu1 %vm1901_vm5, %v11627_v39  ;;  %v19975_v11 = vpop.f32.mrb[148].mxu0 }
0x1231   : > { %v19977_v15 = vpop.f32.mrb[149].mxu0 }
0x1232   : > { %v19979_v25 = vpop.f32.mrb[150].mxu0 }
0x1233   : > { %v11890_v49 = vpack.c.bf16 %v19979_v25, %v19975_v11  ;;  %v9952_v5 = vpop.f32.mrb[151].mxu0 }
0x1234   : > { %v11889_v60 = vpack.c.bf16 %v9952_v5, %v19977_v15 }
0x1237   : > { %15453 = vmatmul.mubr.msk.bf16.gmra.mrb[92].mxu1 %vm1901_vm5, %v11628_v27 }
0x1238   : > { %15456 = vmatprep.mubr.msk.bf16.mxu1 %vm1901_vm5, %v11629_v46  ;;  %v19989_v50 = vpop.f32.mrb[152].mxu0 }
0x1239   : > { %v19991_v63 = vpop.f32.mrb[153].mxu0 }
0x123a   : > { %v19993_v33 = vpop.f32.mrb[154].mxu0 }
0x123b   : > { %v11892_v43 = vpack.c.bf16 %v19993_v33, %v19989_v50  ;;  %v9968_v45 = vpop.f32.mrb[155].mxu0 }
0x123c   : > { %v11891_v61 = vpack.c.bf16 %v9968_v45, %v19991_v63 }
0x123f   : > { %15457 = vmatmul.mubr.msk.bf16.gmra.mrb[96].mxu1 %vm1901_vm5, %v11630_v52 }
0x1240   : > { %15462 = vmatprep.mubr.msk.bf16.mxu1 %vm1901_vm5, %v11877_v37  ;;  %v20003_v17 = vpop.f32.mrb[156].mxu0 }
0x1241   : > { %v20005_v47 = vpop.f32.mrb[157].mxu0 }
0x1242   : > { %v20007_v62 = vpop.f32.mrb[158].mxu0 }
0x1243   : > { %v12140_v8 = vpack.c.bf16 %v20007_v62, %v20003_v17  ;;  %v9984_v9 = vpop.f32.mrb[159].mxu0 }
0x1244   : > { %v12139_v27 = vpack.c.bf16 %v9984_v9, %v20005_v47 }
0x1247   : > { %15463 = vmatmul.mubr.msk.bf16.vlgmr.msra.gmra.mrb[68].mxu1 %vm1901_vm5, %v11878_v22 }
0x1248   : > { %15466 = vmatprep.mubr.msk.bf16.mxu1 %vm1901_vm5, %v11879_v26  ;;  %15495 = vmatpush3.bf16.msra.mxu1 %v12206_v32  ;;  %v15196_v39 = vpop.f32.mrb[160].mxu0 }
0x1249   : > { %v9997_v35 = vpop.f32.mrb[161].mxu0 }
0x124a   : > { %v15197_v48 = vpop.f32.mrb[162].mxu0 }
0x124b   : > { %v12142_v30 = vpack.c.bf16 %v15197_v48, %v15196_v39  ;;  %v10000_v52 = vpop.f32.mrb[163].mxu0 }
0x124c   : > { %v12141_v40 = vpack.c.bf16 %v10000_v52, %v9997_v35 }
0x124f   : > { %15467 = vmatmul.mubr.msk.bf16.gmra.mrb[72].mxu1 %vm1901_vm5, %v11880_v41 }
0x1250   : > { %15470 = vmatprep.mubr.msk.bf16.mxu1 %vm1901_vm5, %v11881_v23  ;;  %v15200_v46 = vpop.f32.mrb[164].mxu0 }
0x1251   : > { %v10013_v1 = vpop.f32.mrb[165].mxu0 }
0x1252   : > { %v15201_v16 = vpop.f32.mrb[166].mxu0 }
0x1253   : > { %v12144_v36 = vpack.c.bf16 %v15201_v16, %v15200_v46  ;;  %v10016_v22 = vpop.f32.mrb[167].mxu0 }
0x1254   : > { %v12143_v42 = vpack.c.bf16 %v10016_v22, %v10013_v1 }
0x1257   : > { %15471 = vmatmul.mubr.msk.bf16.gmra.mrb[76].mxu1 %vm1901_vm5, %v11882_v51 }
0x1258   : > { %15474 = vmatprep.mubr.msk.bf16.mxu1 %vm1901_vm5, %v11883_v38  ;;  %v15204_v37 = vpop.f32.mrb[168].mxu0 }
0x1259   : > { %v10029_v19 = vpop.f32.mrb[169].mxu0 }
0x125a   : > { %v15205_v7 = vpop.f32.mrb[170].mxu0 }
0x125b   : > { %v12146_v21 = vpack.c.bf16 %v15205_v7, %v15204_v37  ;;  %v10032_v24 = vpop.f32.mrb[171].mxu0 }
0x125c   : > { %v12145_v53 = vpack.c.bf16 %v10032_v24, %v10029_v19 }
0x125f   : > { %15475 = vmatmul.mubr.msk.bf16.gmra.mrb[80].mxu1 %vm1901_vm5, %v11884_v10 }
0x1260   : > { %15478 = vmatprep.mubr.msk.bf16.mxu1 %vm1901_vm5, %v11885_v4  ;;  %v15208_v41 = vpop.f32.mrb[172].mxu0 }
0x1261   : > { %v10045_v58 = vpop.f32.mrb[173].mxu0 }
0x1262   : > { %v15209_v26 = vpop.f32.mrb[174].mxu0 }
0x1263   : > { %v12148_v3 = vpack.c.bf16 %v15209_v26, %v15208_v41  ;;  %v10048_v6 = vpop.f32.mrb[175].mxu0 }
0x1264   : > { %v12147_v55 = vpack.c.bf16 %v10048_v6, %v10045_v58 }
0x1267   : > { %15479 = vmatmul.mubr.msk.bf16.gmra.mrb[84].mxu1 %vm1901_vm5, %v11886_v56 }
0x1268   : > { %15482 = vmatprep.mubr.msk.bf16.mxu1 %vm1901_vm5, %v11887_v54  ;;  %v15212_v51 = vpop.f32.mrb[176].mxu0 }
0x1269   : > { %v10061_v2 = vpop.f32.mrb[177].mxu0 }
0x126a   : > { %v15213_v23 = vpop.f32.mrb[178].mxu0 }
0x126b   : > { %v12150_v12 = vpack.c.bf16 %v15213_v23, %v15212_v51  ;;  %v10064_v28 = vpop.f32.mrb[179].mxu0 }
0x126c   : > { %v12149_v59 = vpack.c.bf16 %v10064_v28, %v10061_v2 }
0x126f   : > { %15483 = vmatmul.mubr.msk.bf16.gmra.mrb[88].mxu1 %vm1901_vm5, %v11888_v20 }
0x1270   : > { %15486 = vmatprep.mubr.msk.bf16.mxu1 %vm1901_vm5, %v11889_v60  ;;  %v15216_v10 = vpop.f32.mrb[180].mxu0 }
0x1271   : > { %v10077_v44 = vpop.f32.mrb[181].mxu0 }
0x1272   : > { %v15217_v38 = vpop.f32.mrb[182].mxu0 }
0x1273   : > { %v12152_v29 = vpack.c.bf16 %v15217_v38, %v15216_v10  ;;  %v10080_v57 = vpop.f32.mrb[183].mxu0 }
0x1274   : > { %v12151_v13 = vpack.c.bf16 %v10080_v57, %v10077_v44 }
0x1277   : > { %15487 = vmatmul.mubr.msk.bf16.gmra.mrb[92].mxu1 %vm1901_vm5, %v11890_v49 }
0x1278   : > { %15490 = vmatprep.mubr.msk.bf16.mxu1 %vm1901_vm5, %v11891_v61  ;;  %v15220_v56 = vpop.f32.mrb[184].mxu0 }
0x1279   : > { %v10093_v31 = vpop.f32.mrb[185].mxu0 }
0x127a   : > { %v15221_v4 = vpop.f32.mrb[186].mxu0 }
0x127b   : > { %v12154_v0 = vpack.c.bf16 %v15221_v4, %v15220_v56  ;;  %v10096_v34 = vpop.f32.mrb[187].mxu0 }
0x127c   : > { %v12153_v14 = vpack.c.bf16 %v10096_v34, %v10093_v31 }
0x127f   : > { %15491 = vmatmul.mubr.msk.bf16.gmra.mrb[96].mxu1 %vm1901_vm5, %v11892_v43 }
0x1280   : > { %15496 = vmatprep.mubr.msk.bf16.mxu1 %vm1901_vm5, %v12139_v27 }
0x1287   : > { %15497 = vmatmul.mubr.msk.bf16.vlgmr.msra.gmra.mrb[68].mxu1 %vm1901_vm5, %v12140_v8 }
0x1288   : > { %15500 = vmatprep.mubr.msk.bf16.mxu1 %vm1901_vm5, %v12141_v40 }
0x128f   : > { %15501 = vmatmul.mubr.msk.bf16.gmra.mrb[72].mxu1 %vm1901_vm5, %v12142_v30 }
0x1290   : > { %15504 = vmatprep.mubr.msk.bf16.mxu1 %vm1901_vm5, %v12143_v42 }
0x1297   : > { %15505 = vmatmul.mubr.msk.bf16.gmra.mrb[76].mxu1 %vm1901_vm5, %v12144_v36 }
0x1298   : > { %15508 = vmatprep.mubr.msk.bf16.mxu1 %vm1901_vm5, %v12145_v53 }
0x129f   : > { %15509 = vmatmul.mubr.msk.bf16.gmra.mrb[80].mxu1 %vm1901_vm5, %v12146_v21 }
0x12a0   : > { %15512 = vmatprep.mubr.msk.bf16.mxu1 %vm1901_vm5, %v12147_v55 }
0x12a7   : > { %15513 = vmatmul.mubr.msk.bf16.gmra.mrb[84].mxu1 %vm1901_vm5, %v12148_v3 }
0x12a8   : > { %15516 = vmatprep.mubr.msk.bf16.mxu1 %vm1901_vm5, %v12149_v59 }
0x12af   : > { %15517 = vmatmul.mubr.msk.bf16.gmra.mrb[88].mxu1 %vm1901_vm5, %v12150_v12 }
0x12b0   : > { %15520 = vmatprep.mubr.msk.bf16.mxu1 %vm1901_vm5, %v12151_v13 }
0x12b7   : > { %15521 = vmatmul.mubr.msk.bf16.gmra.mrb[92].mxu1 %vm1901_vm5, %v12152_v29 }
0x12b8   : > { %15524 = vmatprep.mubr.msk.bf16.mxu1 %vm1901_vm5, %v12153_v14 }
0x12bf   : > { %15525 = vmatmul.mubr.msk.bf16.gmra.mrb[96].mxu1 %vm1901_vm5, %v12154_v0 }
0x12c0   : > { %16492 = shalt.err (!%p16489_p3)
}
0x12c1   : > { %s16493_s2 = scalar_lea.hbm %s20076_s3, 16  ;;  %s16497_s23 = scalar_lea.hbm %s20204_s19, 32 }
0x12c2   : > { %p16494_p4 = scmp.ne.s32.totalorder %s20076_s3, %s16493_s2  ;;  %p16498_p9 = scmp.lt.u32.totalorder %s20076_s3, %s20204_s19 }
0x12c3   : > { %p16499_p10 = scmp.lt.u32.totalorder %s16497_s23, %s16493_s2  ;;  %p16501_p12 = scmp.lt.u32.totalorder %s16493_s2, %s20076_s3 }
0x12c4   : > { %p16495_p7 = pnand %p16494_p4, %p16690_p5 }
0x12c5   : > { %p16500_p11 = por %p16499_p10, %p16498_p9 }
0x12c6   : > { %p16496_p8 = pneg %p16495_p7 }
0x12c7   : > { %p16502_p13 = por %p16501_p12, %p16500_p11 }
0x12c9   : > { %p16503_p0 = pnand %p16502_p13, %p16496_p8 }
0x12cb   : > { %16506 = shalt.err (!%p16503_p0)
}
0x12cc   : > { %16112 = dma.vmem_to_hbm [thread:$0]  (%p16690_p5), %s12452_s1, 16, %s20076_s3, %s12434_s29  }
0x12cd   : > { %s13573_s7 = sshll.u32 %s16710_s27, 8  ;;  %s20303_s20 = sld [smem:[#allocation44_spill]] }
0x12d3   : > { %s20102_s0 = scalar_lea.vmem %s20303_s20, %s13573_s7 }
0x135a   : > { %v15498_v20 = vpop.f32.mrb[68].mxu1 }
0x135b   : > { %12403 = vst.msk [vmem:[%s20102_s0 + $0x10] sm:$0xff] %vm736_vm1, %v15498_v20  ;;  %v12242_v18 = vpop.f32.mrb[69].mxu1 }
0x135c   : > { %12401 = vst.msk [vmem:[%s20102_s0] sm:$0xff] %vm736_vm1, %v12242_v18  ;;  %v15499_v54 = vpop.f32.mrb[70].mxu1 }
0x135d   : > { %12404 = vst.msk [vmem:[%s20102_s0 + $0x18] sm:$0xff] %vm736_vm1, %v15499_v54  ;;  %v12245_v11 = vpop.f32.mrb[71].mxu1 }
0x135e   : > { %12402 = vst.msk [vmem:[%s20102_s0 + $0x8] sm:$0xff] %vm736_vm1, %v12245_v11 }
0x1362   : > { %v15502_v15 = vpop.f32.mrb[72].mxu1 }
0x1363   : > { %12407 = vst.msk [vmem:[%s20102_s0 + $0x30] sm:$0xff] %vm736_vm1, %v15502_v15  ;;  %v12258_v25 = vpop.f32.mrb[73].mxu1 }
0x1364   : > { %12405 = vst.msk [vmem:[%s20102_s0 + $0x20] sm:$0xff] %vm736_vm1, %v12258_v25  ;;  %v15503_v49 = vpop.f32.mrb[74].mxu1 }
0x1365   : > { %12408 = vst.msk [vmem:[%s20102_s0 + $0x38] sm:$0xff] %vm736_vm1, %v15503_v49  ;;  %v12261_v5 = vpop.f32.mrb[75].mxu1 }
0x1366   : > { %12406 = vst.msk [vmem:[%s20102_s0 + $0x28] sm:$0xff] %vm736_vm1, %v12261_v5 }
0x136a   : > { %v15506_v60 = vpop.f32.mrb[76].mxu1 }
0x136b   : > { %12411 = vst.msk [vmem:[%s20102_s0 + $0x50] sm:$0xff] %vm736_vm1, %v15506_v60  ;;  %v12274_v50 = vpop.f32.mrb[77].mxu1 }
0x136c   : > { %12409 = vst.msk [vmem:[%s20102_s0 + $0x40] sm:$0xff] %vm736_vm1, %v12274_v50  ;;  %v15507_v63 = vpop.f32.mrb[78].mxu1 }
0x136d   : > { %12412 = vst.msk [vmem:[%s20102_s0 + $0x58] sm:$0xff] %vm736_vm1, %v15507_v63  ;;  %v12277_v33 = vpop.f32.mrb[79].mxu1 }
0x136e   : > { %12410 = vst.msk [vmem:[%s20102_s0 + $0x48] sm:$0xff] %vm736_vm1, %v12277_v33 }
0x1372   : > { %v15510_v43 = vpop.f32.mrb[80].mxu1 }
0x1373   : > { %12415 = vst.msk [vmem:[%s20102_s0 + $0x70] sm:$0xff] %vm736_vm1, %v15510_v43  ;;  %v12290_v45 = vpop.f32.mrb[81].mxu1 }
0x1374   : > { %12413 = vst.msk [vmem:[%s20102_s0 + $0x60] sm:$0xff] %vm736_vm1, %v12290_v45  ;;  %v15511_v61 = vpop.f32.mrb[82].mxu1 }
0x1375   : > { %12416 = vst.msk [vmem:[%s20102_s0 + $0x78] sm:$0xff] %vm736_vm1, %v15511_v61  ;;  %v12293_v17 = vpop.f32.mrb[83].mxu1 }
0x1376   : > { %12414 = vst.msk [vmem:[%s20102_s0 + $0x68] sm:$0xff] %vm736_vm1, %v12293_v17 }
0x137a   : > { %v15514_v47 = vpop.f32.mrb[84].mxu1 }
0x137b   : > { %12419 = vst.msk [vmem:[%s20102_s0 + $0x90] sm:$0xff] %vm736_vm1, %v15514_v47  ;;  %v12306_v62 = vpop.f32.mrb[85].mxu1 }
0x137c   : > { %12417 = vst.msk [vmem:[%s20102_s0 + $0x80] sm:$0xff] %vm736_vm1, %v12306_v62  ;;  %v15515_v8 = vpop.f32.mrb[86].mxu1 }
0x137d   : > { %12420 = vst.msk [vmem:[%s20102_s0 + $0x98] sm:$0xff] %vm736_vm1, %v15515_v8  ;;  %v12309_v9 = vpop.f32.mrb[87].mxu1 }
0x137e   : > { %12418 = vst.msk [vmem:[%s20102_s0 + $0x88] sm:$0xff] %vm736_vm1, %v12309_v9 }
0x1382   : > { %v15518_v27 = vpop.f32.mrb[88].mxu1 }
0x1383   : > { %12423 = vst.msk [vmem:[%s20102_s0 + $0xb0] sm:$0xff] %vm736_vm1, %v15518_v27  ;;  %v12322_v32 = vpop.f32.mrb[89].mxu1 }
0x1384   : > { %12421 = vst.msk [vmem:[%s20102_s0 + $0xa0] sm:$0xff] %vm736_vm1, %v12322_v32  ;;  %v15519_v39 = vpop.f32.mrb[90].mxu1 }
0x1385   : > { %12424 = vst.msk [vmem:[%s20102_s0 + $0xb8] sm:$0xff] %vm736_vm1, %v15519_v39  ;;  %v12325_v35 = vpop.f32.mrb[91].mxu1 }
0x1386   : > { %12422 = vst.msk [vmem:[%s20102_s0 + $0xa8] sm:$0xff] %vm736_vm1, %v12325_v35 }
0x138a   : > { %v15522_v48 = vpop.f32.mrb[92].mxu1 }
0x138b   : > { %12427 = vst.msk [vmem:[%s20102_s0 + $0xd0] sm:$0xff] %vm736_vm1, %v15522_v48  ;;  %v12338_v30 = vpop.f32.mrb[93].mxu1 }
0x138c   : > { %12425 = vst.msk [vmem:[%s20102_s0 + $0xc0] sm:$0xff] %vm736_vm1, %v12338_v30  ;;  %v15523_v52 = vpop.f32.mrb[94].mxu1 }
0x138d   : > { %12428 = vst.msk [vmem:[%s20102_s0 + $0xd8] sm:$0xff] %vm736_vm1, %v15523_v52  ;;  %v12341_v40 = vpop.f32.mrb[95].mxu1 }
0x138e   : > { %12426 = vst.msk [vmem:[%s20102_s0 + $0xc8] sm:$0xff] %vm736_vm1, %v12341_v40 }
0x1392   : > { %v15526_v46 = vpop.f32.mrb[96].mxu1 }
0x1393   : > { %12431 = vst.msk [vmem:[%s20102_s0 + $0xf0] sm:$0xff] %vm736_vm1, %v15526_v46  ;;  %v12354_v1 = vpop.f32.mrb[97].mxu1 }
0x1394   : > { %12429 = vst.msk [vmem:[%s20102_s0 + $0xe0] sm:$0xff] %vm736_vm1, %v12354_v1  ;;  %v15527_v16 = vpop.f32.mrb[98].mxu1 }
0x1395   : > { %12432 = vst.msk [vmem:[%s20102_s0 + $0xf8] sm:$0xff] %vm736_vm1, %v15527_v16  ;;  %v12357_v36 = vpop.f32.mrb[99].mxu1 }
0x1396   : > { %12430 = vst.msk [vmem:[%s20102_s0 + $0xe8] sm:$0xff] %vm736_vm1, %v12357_v36 }
0x1397 PF: > { %s20304_s4 = sld [smem:[#allocation7_spill]]  ;;  %s20305_s27 = sld [smem:[#allocation5_spill]] }
0x139d   : > { %p16118_p5 = scmp.ge.s32.totalorder %s20304_s4, 2  ;;  %s12466_s1 = sand.u32 1, %s20305_s27  }
0x139e   : > { %s12467_s29 = scalar_lea.sflag [#allocation3], %s12466_s1 }
0x139f   : > { %p16115_p1 = pnand %p16118_p5, %p16694_p6 }
0x13a1   : > { %16524 = dma.done.wait (!%p16115_p1), %s12467_s29, 16  }
0x13a2   : > { %16526 = vsyncadd (!%p16115_p1), %s12467_s29, 4294967280  ;;  %s20307_s24 = sld [smem:[#allocation8_spill]]  ;;  %s20308_s2 = sld [smem:[#allocation6_spill]] }
0x13a3   : > { %s20309_s23 = sld [smem:[#allocation9_spill]]  ;;  %s20310_s1 = smov %s16533_s22 }
0x13a8   : > { %p31_p2 = scmp.ge.s32.totalorder %s20307_s24, 4   ;;  %s20311_s22 = smov %s20308_s2 }
0x13aa   :  { %33 = sbr.rel (!%p31_p2) target bundleno = 13 (0xd), region = 219 }
0x13b1   :  { %12479 = vsyncpa [#allocation3], 1 }
0x13b2   :  { %12481 = vsyncpa [#allocation3 + $0x1], 1 }

</bundles_post_ra>
